<compile_context>
chip_gen: v7x
topology: tpu7x:2x2x1
jax: 0.10.0
libtpu: 0.0.40
codegen_flags: <defaults>
</compile_context>

<pallas_src>
import jax
import jax.numpy as jnp
from jax import lax
from jax.experimental import pallas as pl
from jax.experimental.pallas import tpu as pltpu

EPS = 1e-5
NP = 128                        # lane-padded channel width
TM = 512                        # row tile (sublane axis) over M
VMEM_LIMIT = 32 * 1024 * 1024   # explicit scoped-VMEM budget (fits v5e/v6e/v7x)


# --------------------------------------------------------------------------
# Glue helpers (plain JAX)
# --------------------------------------------------------------------------
def _round_up(x, m):
    return (x + m - 1) // m * m


def _pad2(a, rows, cols):
    return jnp.pad(a, ((0, rows - a.shape[0]), (0, cols - a.shape[1])))


def _pad_row(v):
    """(C,) -> (1, NP) f32, zero padded on lanes."""
    v = v.reshape(1, -1).astype(jnp.float32)
    return jnp.pad(v, ((0, 0), (0, NP - v.shape[1])))


def _im2col_nhwc(x, kh, kw, sh, sw, ph, pw):
    """NHWC -> (N*Ho*Wo, kh*kw*C) patch matrix, K ordered (kh, kw, c)."""
    n, h, w, c = x.shape
    xp = jnp.pad(x, ((0, 0), (ph, ph), (pw, pw), (0, 0)))
    ho = (h + 2 * ph - kh) // sh + 1
    wo = (w + 2 * pw - kw) // sw + 1
    cols = []
    for u in range(kh):
        for v in range(kw):
            cols.append(xp[:, u:u + (ho - 1) * sh + 1:sh,
                           v:v + (wo - 1) * sw + 1:sw, :])
    patches = jnp.concatenate(cols, axis=-1)          # (N, Ho, Wo, kh*kw*C)
    return patches.reshape(n * ho * wo, kh * kw * c), ho, wo


def _weight_to_kn(w, cin_pad, k_pad, cout_pad):
    """OIHW conv weight -> (k_pad, cout_pad) matmul weight, K ordered (kh, kw, cin)."""
    o, i, kh, kw = w.shape
    wk = jnp.transpose(w, (2, 3, 1, 0)).astype(jnp.float32)   # (KH, KW, I, O)
    wk = jnp.pad(wk, ((0, 0), (0, 0), (0, cin_pad - i), (0, cout_pad - o)))
    wk = wk.reshape(kh * kw * cin_pad, cout_pad)
    return jnp.pad(wk, ((0, k_pad - wk.shape[0]), (0, 0)))


# --------------------------------------------------------------------------
# Kernel 1: tiled  patches @ W + bias, plus per-channel sum / sumsq
#           accumulated across the M grid axis (phase 1 of BatchNorm).
# --------------------------------------------------------------------------
def _conv_stats(patches, w_kn, bias, m_true, tm):
    mp, kp = patches.shape
    nw = w_kn.shape[1]
    needs_mask = mp != m_true

    def kernel(p_ref, w_ref, b_ref, y_ref, st_ref):
        @pl.when(pl.program_id(0) == 0)
        def _init():
            st_ref[...] = jnp.zeros_like(st_ref)

        y = jnp.dot(p_ref[...], w_ref[...],
                    preferred_element_type=jnp.float32)      # bf16 in, f32 acc
        y = y + b_ref[...]
        if needs_mask:  # zero rows past the true M so batch stats stay exact
            row = pl.program_id(0) * tm + lax.broadcasted_iota(
                jnp.int32, (tm, 1), 0)
            y = jnp.where(row < m_true, y, 0.0)
        y_ref[...] = y
        st_ref[...] += jnp.concatenate(
            [jnp.sum(y, axis=0, keepdims=True),
             jnp.sum(y * y, axis=0, keepdims=True)], axis=0)

    return pl.pallas_call(
        kernel,
        grid=(mp // tm,),
        in_specs=[pl.BlockSpec((tm, kp), lambda i: (i, 0)),
                  pl.BlockSpec((kp, nw), lambda i: (0, 0)),
                  pl.BlockSpec((1, nw), lambda i: (0, 0))],
        out_specs=[pl.BlockSpec((tm, nw), lambda i: (i, 0)),
                   pl.BlockSpec((2, nw), lambda i: (0, 0))],
        out_shape=[jax.ShapeDtypeStruct((mp, nw), jnp.float32),
                   jax.ShapeDtypeStruct((2, nw), jnp.float32)],
        compiler_params=pltpu.CompilerParams(
            dimension_semantics=("arbitrary",),   # stats block is revisited
            vmem_limit_bytes=VMEM_LIMIT),
    )(patches, w_kn, bias)


# --------------------------------------------------------------------------
# Kernel 2: BN finalize (one column block of the fused conv output) + ReLU.
# --------------------------------------------------------------------------
def _bn_relu(y_raw, stats, gamma_beta, col_block, m_true, tm, out_dtype):
    mp = y_raw.shape[0]
    inv_m = 1.0 / float(m_true)

    def kernel(y_ref, st_ref, gb_ref, o_ref):
        st = st_ref[...]
        mean = st[0:1, :] * inv_m
        var = st[1:2, :] * inv_m - mean * mean
        scale = lax.rsqrt(var + EPS) * gb_ref[0:1, :]
        shift = gb_ref[1:2, :] - mean * scale
        o_ref[...] = jnp.maximum(y_ref[...] * scale + shift,
                                 0.0).astype(o_ref.dtype)

    return pl.pallas_call(
        kernel,
        grid=(mp // tm,),
        in_specs=[pl.BlockSpec((tm, NP), lambda i: (i, col_block)),
                  pl.BlockSpec((2, NP), lambda i: (0, col_block)),
                  pl.BlockSpec((2, NP), lambda i: (0, 0))],
        out_specs=pl.BlockSpec((tm, NP), lambda i: (i, 0)),
        out_shape=jax.ShapeDtypeStruct((mp, NP), out_dtype),
        compiler_params=pltpu.CompilerParams(
            dimension_semantics=("parallel",),    # megacore-shardable on v7x
            vmem_limit_bytes=VMEM_LIMIT),
    )(y_raw, stats, gamma_beta)


# --------------------------------------------------------------------------
# Kernel 3: BN(layer2) + BN(shortcut) + residual add + ReLU.
# --------------------------------------------------------------------------
def _bn_dual_add_relu(y2_raw, stats2, y_pair, stats_pair, prms, m_true, tm):
    mp = y2_raw.shape[0]
    inv_m = 1.0 / float(m_true)

    def kernel(y2_ref, st2_ref, ys_ref, sts_ref, p_ref, o_ref):
        def affine(st, g, b):
            mean = st[0:1, :] * inv_m
            var = st[1:2, :] * inv_m - mean * mean
            scale = lax.rsqrt(var + EPS) * g
            return scale, b - mean * scale

        s2, t2 = affine(st2_ref[...], p_ref[0:1, :], p_ref[1:2, :])
        ss, ts = affine(sts_ref[...], p_ref[2:3, :], p_ref[3:4, :])
        out = (y2_ref[...] * s2 + t2) + (ys_ref[...] * ss + ts)
        o_ref[...] = jnp.maximum(out, 0.0)

    return pl.pallas_call(
        kernel,
        grid=(mp // tm,),
        in_specs=[pl.BlockSpec((tm, NP), lambda i: (i, 0)),   # layer2 conv raw
                  pl.BlockSpec((2, NP), lambda i: (0, 0)),    # layer2 stats
                  pl.BlockSpec((tm, NP), lambda i: (i, 1)),   # shortcut half
                  pl.BlockSpec((2, NP), lambda i: (0, 1)),    # shortcut stats
                  pl.BlockSpec((4, NP), lambda i: (0, 0))],   # g2,b2,gs,bs
        out_specs=pl.BlockSpec((tm, NP), lambda i: (i, 0)),
        out_shape=jax.ShapeDtypeStruct((mp, NP), jnp.float32),
        compiler_params=pltpu.CompilerParams(
            dimension_semantics=("parallel",),
            vmem_limit_bytes=VMEM_LIMIT),
    )(y2_raw, stats2, y_pair, stats_pair, prms)


# --------------------------------------------------------------------------
# BasicBlock forward (NCHW in, NCHW out)
# --------------------------------------------------------------------------
def basic_block_forward(x, params, kernel_size, stride, padding, *, tm=TM):
    n, c_in, h, w = x.shape
    kh, kw = kernel_size
    sh, sw = stride
    ph, pw = padding
    c_out = params["w1"].shape[0]
    assert c_out <= NP and c_in <= NP

    # shared im2col for layer1 conv and shortcut conv (same hyper-params)
    x_nhwc = jnp.transpose(x, (0, 2, 3, 1))
    p0, ho, wo = _im2col_nhwc(x_nhwc, kh, kw, sh, sw, ph, pw)
    m_true = n * ho * wo
    tm_eff = tm if m_true > tm else _round_up(m_true, 16)
    mp = _round_up(m_true, tm_eff)

    k1 = _round_up(kh * kw * c_in, 128)
    p0p = _pad2(p0, mp, k1).astype(jnp.bfloat16)

    # fuse layer1 + shortcut into one (k1, 2*NP) matmul operand
    w1 = _weight_to_kn(params["w1"], c_in, k1, NP)
    ws = _weight_to_kn(params["ws"], c_in, k1, NP)
    w_pair = jnp.concatenate([w1, ws], axis=1).astype(jnp.bfloat16)
    b_pair = jnp.concatenate([_pad_row(params["b1"]), _pad_row(params["bs"])],
                             axis=1)

    y_pair, stats_pair = _conv_stats(p0p, w_pair, b_pair, m_true, tm_eff)

    # BN1 + ReLU on the layer1 half; emit bf16 directly for the next matmul
    gb1 = jnp.concatenate([_pad_row(params["g1"]), _pad_row(params["beta1"])],
                          axis=0)
    y1_act = _bn_relu(y_pair, stats_pair, gb1, 0, m_true, tm_eff, jnp.bfloat16)

    # layer2: (3,1) conv, stride 1, pad (1,0); channels stay lane-padded
    y1_img = y1_act[:m_true].reshape(n, ho, wo, NP)
    p2, ho2, wo2 = _im2col_nhwc(y1_img, 3, 1, 1, 1, 1, 0)
    assert (ho2, wo2) == (ho, wo)
    p2p = _pad2(p2, mp, 3 * NP)

    w2 = _weight_to_kn(params["w2"], NP, 3 * NP, NP).astype(jnp.bfloat16)
    b2 = _pad_row(params["b2"])
    y2_raw, stats2 = _conv_stats(p2p, w2, b2, m_true, tm_eff)

    # BN2 + BN_shortcut + residual add + ReLU
    prms = jnp.concatenate([_pad_row(params["g2"]), _pad_row(params["beta2"]),
                            _pad_row(params["gs"]), _pad_row(params["betas"])],
                           axis=0)
    out = _bn_dual_add_relu(y2_raw, stats2, y_pair, stats_pair, prms,
                            m_true, tm_eff)

    out = out[:m_true, :c_out].reshape(n, ho, wo, c_out)
    return jnp.transpose(out, (0, 3, 1, 2))


# --------------------------------------------------------------------------
# Pure-JAX reference (conv inputs rounded to bf16 to match the MXU precision;
# accumulation and BatchNorm in f32, training-mode batch statistics).
# --------------------------------------------------------------------------
def _conv_bn_ref(x, w, b, gamma, beta, stride, padding, relu):
    y = lax.conv_general_dilated(
        x.astype(jnp.bfloat16), w.astype(jnp.bfloat16),
        window_strides=stride,
        padding=[(padding[0], padding[0]), (padding[1], padding[1])],
        dimension_numbers=("NCHW", "OIHW", "NCHW"),
        preferred_element_type=jnp.float32)
    y = y + b.reshape(1, -1, 1, 1)
    mu = jnp.mean(y, axis=(0, 2, 3), keepdims=True)
    var = jnp.mean((y - mu) ** 2, axis=(0, 2, 3), keepdims=True)
    y = (y - mu) * lax.rsqrt(var + EPS)
    y = y * gamma.reshape(1, -1, 1, 1) + beta.reshape(1, -1, 1, 1)
    return jnp.maximum(y, 0.0) if relu else y


def basic_block_ref(x, params, kernel_size, stride, padding):
    identity = _conv_bn_ref(x, params["ws"], params["bs"], params["gs"],
                            params["betas"], stride, padding, relu=False)
    y = _conv_bn_ref(x, params["w1"], params["b1"], params["g1"],
                     params["beta1"], stride, padding, relu=True)
    y = _conv_bn_ref(y, params["w2"], params["b2"], params["g2"],
                     params["beta2"], (1, 1), (1, 0), relu=False)
    return jnp.maximum(y + identity, 0.0)


# --------------------------------------------------------------------------
if __name__ == "__main__":
    # WISDM-like shapes: batch=2, C_in=4, C_out=8, time H=200, accel axes W=3.
    # M = 2*200*3 = 1200 -> 3 row-tiles of 512 (exercises tiling + row mask).
    B, C_IN, C_OUT, H, W = 2, 4, 8, 200, 3
    K_SIZE, STRIDE, PAD = (3, 1), (1, 1), (1, 0)

    key = jax.random.PRNGKey(0)
    ks = jax.random.split(key, 13)

    def nrm(k, shape, s=0.1):
        return (s * jax.random.normal(k, shape)).astype(jnp.float32)

    params = {
        "w1": nrm(ks[0], (C_OUT, C_IN, *K_SIZE)),
        "b1": nrm(ks[1], (C_OUT,)),
        "g1": 1.0 + nrm(ks[2], (C_OUT,)),
        "beta1": nrm(ks[3], (C_OUT,)),
        "w2": nrm(ks[4], (C_OUT, C_OUT, 3, 1)),
        "b2": nrm(ks[5], (C_OUT,)),
        "g2": 1.0 + nrm(ks[6], (C_OUT,)),
        "beta2": nrm(ks[7], (C_OUT,)),
        "ws": nrm(ks[8], (C_OUT, C_IN, *K_SIZE)),
        "bs": nrm(ks[9], (C_OUT,)),
        "gs": 1.0 + nrm(ks[10], (C_OUT,)),
        "betas": nrm(ks[11], (C_OUT,)),
    }
    x = jax.random.normal(ks[12], (B, C_IN, H, W), dtype=jnp.float32)

    fwd = jax.jit(lambda xx, pp: basic_block_forward(xx, pp, K_SIZE, STRIDE, PAD))
    out = jax.block_until_ready(fwd(x, params))

    ref = jax.block_until_ready(basic_block_ref(x, params, K_SIZE, STRIDE, PAD))
    assert out.shape == ref.shape == (B, C_OUT, H, W)
    max_err = float(jnp.max(jnp.abs(out - ref)))
    assert jnp.allclose(out, ref, atol=2e-2, rtol=2e-2), max_err

    print("KERNEL_OK")
</pallas_src>

<mosaic_0001>
module attributes {stable_mosaic.version = 11 : i64} {
  func.func @kernel(%arg0: i32, %arg1: memref<512x128xbf16, #tpu.memory_space<vmem>>, %arg2: memref<128x256xbf16, #tpu.memory_space<vmem>>, %arg3: memref<1x256xf32, #tpu.memory_space<vmem>>, %arg4: memref<512x256xf32, #tpu.memory_space<vmem>>, %arg5: memref<2x256xf32, #tpu.memory_space<vmem>>) attributes {dimension_semantics = [#tpu.dimension_semantics<arbitrary>], iteration_bounds = array<i64: 3>, scalar_prefetch = 0 : i64, scratch_operands = 0 : i64, tpu.core_type = #tpu.core_type<tc>, window_params = [{transform_indices = @transform_0, window_bounds = array<i64: 512, 128>}, {pipeline_mode = #tpu.pipeline_mode<synchronous>, transform_indices = @transform_1, window_bounds = array<i64: 128, 256>}, {pipeline_mode = #tpu.pipeline_mode<synchronous>, transform_indices = @transform_2, window_bounds = array<i64: 1, 256>}, {transform_indices = @transform_3, window_bounds = array<i64: 512, 256>}, {pipeline_mode = #tpu.pipeline_mode<synchronous>, transform_indices = @transform_4, window_bounds = array<i64: 2, 256>}]} {
    %c0_i32 = arith.constant 0 : i32
    %0 = arith.cmpi eq, %arg0, %c0_i32 : i32
    %1 = arith.extui %0 : i1 to i32
    %c0_i32_0 = arith.constant 0 : i32
    %2 = arith.cmpi ne, %1, %c0_i32_0 : i32
    scf.if %2 {
      %cst_15 = arith.constant 0.000000e+00 : f32
      %29 = vector.broadcast %cst_15 : f32 to vector<2x256xf32>
      %c0_16 = arith.constant 0 : index
      %c0_17 = arith.constant 0 : index
      %30 = vector.load %arg5[%c0_16, %c0_17] : memref<2x256xf32, #tpu.memory_space<vmem>>, vector<2x256xf32>
      tpu.vector_store %arg5[%c0_16, %c0_17], %29 {strides = array<i32>} : memref<2x256xf32, #tpu.memory_space<vmem>>, vector<2x256xf32>,
    } else {
    }
    %c0 = arith.constant 0 : index
    %c0_1 = arith.constant 0 : index
    %3 = vector.load %arg1[%c0, %c0_1] : memref<512x128xbf16, #tpu.memory_space<vmem>>, vector<512x128xbf16>
    %c0_2 = arith.constant 0 : index
    %c0_3 = arith.constant 0 : index
    %4 = vector.load %arg2[%c0_2, %c0_3] : memref<128x256xbf16, #tpu.memory_space<vmem>>, vector<128x256xbf16>
    %cst = arith.constant dense<0.000000e+00> : vector<512x256xf32>
    %5 = tpu.matmul %3, %4, %cst {dimension_numbers = #tpu.dot_dimension_numbers<[1], [0], [0], [1], [0, 0, 1, 1], [], []>} : vector<512x128xbf16>, vector<128x256xbf16>, vector<512x256xf32> -> vector<512x256xf32>
    %c0_4 = arith.constant 0 : index
    %c0_5 = arith.constant 0 : index
    %6 = vector.load %arg3[%c0_4, %c0_5] : memref<1x256xf32, #tpu.memory_space<vmem>>, vector<1x256xf32>
    %7 = vector.broadcast %6 : vector<1x256xf32> to vector<512x256xf32>
    %8 = arith.addf %5, %7 : vector<512x256xf32>
    %c512_i32 = arith.constant 512 : i32
    %9 = arith.muli %arg0, %c512_i32 : i32
    %10 = tpu.iota {dimensions = array<i32: 0>} : vector<512x1xi32>
    %11 = vector.broadcast %9 : i32 to vector<512x1xi32>
    %12 = arith.addi %11, %10 : vector<512x1xi32>
    %c1200_i32 = arith.constant 1200 : i32
    %13 = vector.broadcast %c1200_i32 : i32 to vector<512x1xi32>
    %14 = arith.cmpi slt, %12, %13 : vector<512x1xi32>
    %cst_6 = arith.constant 0.000000e+00 : f32
    %15 = vector.shape_cast %14 : vector<512x1xi1> to vector<512x1xi1>
    %16 = vector.broadcast %15 : vector<512x1xi1> to vector<512x256xi1>
    %17 = vector.broadcast %cst_6 : f32 to vector<512x256xf32>
    %18 = arith.select %16, %8, %17 : vector<512x256xi1>, vector<512x256xf32>
    %c0_7 = arith.constant 0 : index
    %c0_8 = arith.constant 0 : index
    %19 = vector.load %arg4[%c0_7, %c0_8] : memref<512x256xf32, #tpu.memory_space<vmem>>, vector<512x256xf32>
    tpu.vector_store %arg4[%c0_7, %c0_8], %18 {strides = array<i32>} : memref<512x256xf32, #tpu.memory_space<vmem>>, vector<512x256xf32>,
    %c0_9 = arith.constant 0 : index
    %c0_10 = arith.constant 0 : index
    %20 = vector.load %arg5[%c0_9, %c0_10] : memref<2x256xf32, #tpu.memory_space<vmem>>, vector<2x256xf32>
    %cst_11 = arith.constant dense<0.000000e+00> : vector<256xf32>
    %21 = vector.multi_reduction <add>, %18, %cst_11 [0] : vector<512x256xf32> to vector<256xf32>
    %22 = vector.shape_cast %21 : vector<256xf32> to vector<1x256xf32>
    %23 = arith.mulf %18, %18 : vector<512x256xf32>
    %cst_12 = arith.constant dense<0.000000e+00> : vector<256xf32>
    %24 = vector.multi_reduction <add>, %23, %cst_12 [0] : vector<512x256xf32> to vector<256xf32>
    %25 = vector.shape_cast %24 : vector<256xf32> to vector<1x256xf32>
    %26 = tpu.concatenate %22, %25 in 0 : vector<1x256xf32>, vector<1x256xf32> -> vector<2x256xf32>
    %27 = arith.addf %20, %26 : vector<2x256xf32>
    %c0_13 = arith.constant 0 : index
    %c0_14 = arith.constant 0 : index
    %28 = vector.load %arg5[%c0_13, %c0_14] : memref<2x256xf32, #tpu.memory_space<vmem>>, vector<2x256xf32>
    tpu.vector_store %arg5[%c0_13, %c0_14], %27 {strides = array<i32>} : memref<2x256xf32, #tpu.memory_space<vmem>>, vector<2x256xf32>,
    return
  }
  func.func @transform_0(%arg0: i32) -> (i32, i32) {
    %c0_i32 = arith.constant 0 : i32
    %c0_i32_0 = arith.constant 0 : i32
    return %arg0, %c0_i32 : i32, i32
  }
  func.func @transform_1(%arg0: i32) -> (i32, i32) {
    %c0_i32 = arith.constant 0 : i32
    %c0_i32_0 = arith.constant 0 : i32
    %c0_i32_1 = arith.constant 0 : i32
    return %c0_i32, %c0_i32_0 : i32, i32
  }
  func.func @transform_2(%arg0: i32) -> (i32, i32) {
    %c0_i32 = arith.constant 0 : i32
    %c0_i32_0 = arith.constant 0 : i32
    %c0_i32_1 = arith.constant 0 : i32
    return %c0_i32, %c0_i32_0 : i32, i32
  }
  func.func @transform_3(%arg0: i32) -> (i32, i32) {
    %c0_i32 = arith.constant 0 : i32
    %c0_i32_0 = arith.constant 0 : i32
    return %arg0, %c0_i32 : i32, i32
  }
  func.func @transform_4(%arg0: i32) -> (i32, i32) {
    %c0_i32 = arith.constant 0 : i32
    %c0_i32_0 = arith.constant 0 : i32
    %c0_i32_1 = arith.constant 0 : i32
    return %c0_i32, %c0_i32_0 : i32, i32
  }
}

module attributes {stable_mosaic.version = 11 : i64} {
  func.func @kernel(%arg0: i32, %arg1: memref<512x128xf32, #tpu.memory_space<vmem>>, %arg2: memref<2x128xf32, #tpu.memory_space<vmem>>, %arg3: memref<2x128xf32, #tpu.memory_space<vmem>>, %arg4: memref<512x128xbf16, #tpu.memory_space<vmem>>) attributes {dimension_semantics = [#tpu.dimension_semantics<parallel>], iteration_bounds = array<i64: 3>, scalar_prefetch = 0 : i64, scratch_operands = 0 : i64, tpu.core_type = #tpu.core_type<tc>, window_params = [{transform_indices = @transform_0, window_bounds = array<i64: 512, 128>}, {transform_indices = @transform_1, window_bounds = array<i64: 2, 128>}, {pipeline_mode = #tpu.pipeline_mode<synchronous>, transform_indices = @transform_2, window_bounds = array<i64: 2, 128>}, {transform_indices = @transform_3, window_bounds = array<i64: 512, 128>}]} {
    %c0 = arith.constant 0 : index
    %c0_0 = arith.constant 0 : index
    %0 = vector.load %arg2[%c0, %c0_0] : memref<2x128xf32, #tpu.memory_space<vmem>>, vector<2x128xf32>
    %1 = vector.extract_strided_slice %0 {offsets = [0, 0], sizes = [1, 128], strides = [1, 1]} : vector<2x128xf32> to vector<1x128xf32>
    %cst = arith.constant 8.33333353E-4 : f32
    %2 = vector.broadcast %cst : f32 to vector<1x128xf32>
    %3 = arith.mulf %1, %2 : vector<1x128xf32>
    %4 = vector.extract_strided_slice %0 {offsets = [1, 0], sizes = [1, 128], strides = [1, 1]} : vector<2x128xf32> to vector<1x128xf32>
    %cst_1 = arith.constant 8.33333353E-4 : f32
    %5 = vector.broadcast %cst_1 : f32 to vector<1x128xf32>
    %6 = arith.mulf %4, %5 : vector<1x128xf32>
    %7 = arith.mulf %3, %3 : vector<1x128xf32>
    %8 = arith.subf %6, %7 : vector<1x128xf32>
    %cst_2 = arith.constant 9.99999974E-6 : f32
    %9 = vector.broadcast %cst_2 : f32 to vector<1x128xf32>
    %10 = arith.addf %8, %9 : vector<1x128xf32>
    %11 = math.rsqrt %10 : vector<1x128xf32>
    %c0_3 = arith.constant 0 : index
    %c0_4 = arith.constant 0 : index
    %12 = vector.load %arg3[%c0_3, %c0_4] : memref<2x128xf32, #tpu.memory_space<vmem>>, vector<1x128xf32>
    %13 = arith.mulf %11, %12 : vector<1x128xf32>
    %c1 = arith.constant 1 : index
    %c0_5 = arith.constant 0 : index
    %14 = vector.load %arg3[%c1, %c0_5] : memref<2x128xf32, #tpu.memory_space<vmem>>, vector<1x128xf32>
    %15 = arith.mulf %3, %13 : vector<1x128xf32>
    %16 = arith.subf %14, %15 : vector<1x128xf32>
    %c0_6 = arith.constant 0 : index
    %c0_7 = arith.constant 0 : index
    %17 = vector.load %arg1[%c0_6, %c0_7] : memref<512x128xf32, #tpu.memory_space<vmem>>, vector<512x128xf32>
    %18 = vector.broadcast %13 : vector<1x128xf32> to vector<512x128xf32>
    %19 = arith.mulf %17, %18 : vector<512x128xf32>
    %20 = vector.broadcast %16 : vector<1x128xf32> to vector<512x128xf32>
    %21 = arith.addf %19, %20 : vector<512x128xf32>
    %cst_8 = arith.constant 0.000000e+00 : f32
    %22 = vector.broadcast %cst_8 : f32 to vector<512x128xf32>
    %23 = arith.maximumf %21, %22 : vector<512x128xf32>
    %24 = arith.truncf %23 : vector<512x128xf32> to vector<512x128xbf16>
    %c0_9 = arith.constant 0 : index
    %c0_10 = arith.constant 0 : index
    %25 = vector.load %arg4[%c0_9, %c0_10] : memref<512x128xbf16, #tpu.memory_space<vmem>>, vector<512x128xbf16>
    tpu.vector_store %arg4[%c0_9, %c0_10], %24 {strides = array<i32>} : memref<512x128xbf16, #tpu.memory_space<vmem>>, vector<512x128xbf16>,
    return
  }
  func.func @transform_0(%arg0: i32) -> (i32, i32) {
    %c0_i32 = arith.constant 0 : i32
    %c0_i32_0 = arith.constant 0 : i32
    return %arg0, %c0_i32 : i32, i32
  }
  func.func @transform_1(%arg0: i32) -> (i32, i32) {
    %c0_i32 = arith.constant 0 : i32
    %c0_i32_0 = arith.constant 0 : i32
    %c0_i32_1 = arith.constant 0 : i32
    return %c0_i32, %c0_i32_0 : i32, i32
  }
  func.func @transform_2(%arg0: i32) -> (i32, i32) {
    %c0_i32 = arith.constant 0 : i32
    %c0_i32_0 = arith.constant 0 : i32
    %c0_i32_1 = arith.constant 0 : i32
    return %c0_i32, %c0_i32_0 : i32, i32
  }
  func.func @transform_3(%arg0: i32) -> (i32, i32) {
    %c0_i32 = arith.constant 0 : i32
    %c0_i32_0 = arith.constant 0 : i32
    return %arg0, %c0_i32 : i32, i32
  }
}

module attributes {stable_mosaic.version = 11 : i64} {
  func.func @kernel(%arg0: i32, %arg1: memref<512x384xbf16, #tpu.memory_space<vmem>>, %arg2: memref<384x128xbf16, #tpu.memory_space<vmem>>, %arg3: memref<1x128xf32, #tpu.memory_space<vmem>>, %arg4: memref<512x128xf32, #tpu.memory_space<vmem>>, %arg5: memref<2x128xf32, #tpu.memory_space<vmem>>) attributes {dimension_semantics = [#tpu.dimension_semantics<arbitrary>], iteration_bounds = array<i64: 3>, scalar_prefetch = 0 : i64, scratch_operands = 0 : i64, tpu.core_type = #tpu.core_type<tc>, window_params = [{transform_indices = @transform_0, window_bounds = array<i64: 512, 384>}, {pipeline_mode = #tpu.pipeline_mode<synchronous>, transform_indices = @transform_1, window_bounds = array<i64: 384, 128>}, {pipeline_mode = #tpu.pipeline_mode<synchronous>, transform_indices = @transform_2, window_bounds = array<i64: 1, 128>}, {transform_indices = @transform_3, window_bounds = array<i64: 512, 128>}, {pipeline_mode = #tpu.pipeline_mode<synchronous>, transform_indices = @transform_4, window_bounds = array<i64: 2, 128>}]} {
    %c0_i32 = arith.constant 0 : i32
    %0 = arith.cmpi eq, %arg0, %c0_i32 : i32
    %1 = arith.extui %0 : i1 to i32
    %c0_i32_0 = arith.constant 0 : i32
    %2 = arith.cmpi ne, %1, %c0_i32_0 : i32
    scf.if %2 {
      %cst_15 = arith.constant 0.000000e+00 : f32
      %29 = vector.broadcast %cst_15 : f32 to vector<2x128xf32>
      %c0_16 = arith.constant 0 : index
      %c0_17 = arith.constant 0 : index
      %30 = vector.load %arg5[%c0_16, %c0_17] : memref<2x128xf32, #tpu.memory_space<vmem>>, vector<2x128xf32>
      tpu.vector_store %arg5[%c0_16, %c0_17], %29 {strides = array<i32>} : memref<2x128xf32, #tpu.memory_space<vmem>>, vector<2x128xf32>,
    } else {
    }
    %c0 = arith.constant 0 : index
    %c0_1 = arith.constant 0 : index
    %3 = vector.load %arg1[%c0, %c0_1] : memref<512x384xbf16, #tpu.memory_space<vmem>>, vector<512x384xbf16>
    %c0_2 = arith.constant 0 : index
    %c0_3 = arith.constant 0 : index
    %4 = vector.load %arg2[%c0_2, %c0_3] : memref<384x128xbf16, #tpu.memory_space<vmem>>, vector<384x128xbf16>
    %cst = arith.constant dense<0.000000e+00> : vector<512x128xf32>
    %5 = tpu.matmul %3, %4, %cst {dimension_numbers = #tpu.dot_dimension_numbers<[1], [0], [0], [1], [0, 0, 1, 1], [], []>} : vector<512x384xbf16>, vector<384x128xbf16>, vector<512x128xf32> -> vector<512x128xf32>
    %c0_4 = arith.constant 0 : index
    %c0_5 = arith.constant 0 : index
    %6 = vector.load %arg3[%c0_4, %c0_5] : memref<1x128xf32, #tpu.memory_space<vmem>>, vector<1x128xf32>
    %7 = vector.broadcast %6 : vector<1x128xf32> to vector<512x128xf32>
    %8 = arith.addf %5, %7 : vector<512x128xf32>
    %c512_i32 = arith.constant 512 : i32
    %9 = arith.muli %arg0, %c512_i32 : i32
    %10 = tpu.iota {dimensions = array<i32: 0>} : vector<512x1xi32>
    %11 = vector.broadcast %9 : i32 to vector<512x1xi32>
    %12 = arith.addi %11, %10 : vector<512x1xi32>
    %c1200_i32 = arith.constant 1200 : i32
    %13 = vector.broadcast %c1200_i32 : i32 to vector<512x1xi32>
    %14 = arith.cmpi slt, %12, %13 : vector<512x1xi32>
    %cst_6 = arith.constant 0.000000e+00 : f32
    %15 = vector.shape_cast %14 : vector<512x1xi1> to vector<512x1xi1>
    %16 = vector.broadcast %15 : vector<512x1xi1> to vector<512x128xi1>
    %17 = vector.broadcast %cst_6 : f32 to vector<512x128xf32>
    %18 = arith.select %16, %8, %17 : vector<512x128xi1>, vector<512x128xf32>
    %c0_7 = arith.constant 0 : index
    %c0_8 = arith.constant 0 : index
    %19 = vector.load %arg4[%c0_7, %c0_8] : memref<512x128xf32, #tpu.memory_space<vmem>>, vector<512x128xf32>
    tpu.vector_store %arg4[%c0_7, %c0_8], %18 {strides = array<i32>} : memref<512x128xf32, #tpu.memory_space<vmem>>, vector<512x128xf32>,
    %c0_9 = arith.constant 0 : index
    %c0_10 = arith.constant 0 : index
    %20 = vector.load %arg5[%c0_9, %c0_10] : memref<2x128xf32, #tpu.memory_space<vmem>>, vector<2x128xf32>
    %cst_11 = arith.constant dense<0.000000e+00> : vector<128xf32>
    %21 = vector.multi_reduction <add>, %18, %cst_11 [0] : vector<512x128xf32> to vector<128xf32>
    %22 = vector.shape_cast %21 : vector<128xf32> to vector<1x128xf32>
    %23 = arith.mulf %18, %18 : vector<512x128xf32>
    %cst_12 = arith.constant dense<0.000000e+00> : vector<128xf32>
    %24 = vector.multi_reduction <add>, %23, %cst_12 [0] : vector<512x128xf32> to vector<128xf32>
    %25 = vector.shape_cast %24 : vector<128xf32> to vector<1x128xf32>
    %26 = tpu.concatenate %22, %25 in 0 : vector<1x128xf32>, vector<1x128xf32> -> vector<2x128xf32>
    %27 = arith.addf %20, %26 : vector<2x128xf32>
    %c0_13 = arith.constant 0 : index
    %c0_14 = arith.constant 0 : index
    %28 = vector.load %arg5[%c0_13, %c0_14] : memref<2x128xf32, #tpu.memory_space<vmem>>, vector<2x128xf32>
    tpu.vector_store %arg5[%c0_13, %c0_14], %27 {strides = array<i32>} : memref<2x128xf32, #tpu.memory_space<vmem>>, vector<2x128xf32>,
    return
  }
  func.func @transform_0(%arg0: i32) -> (i32, i32) {
    %c0_i32 = arith.constant 0 : i32
    %c0_i32_0 = arith.constant 0 : i32
    return %arg0, %c0_i32 : i32, i32
  }
  func.func @transform_1(%arg0: i32) -> (i32, i32) {
    %c0_i32 = arith.constant 0 : i32
    %c0_i32_0 = arith.constant 0 : i32
    %c0_i32_1 = arith.constant 0 : i32
    return %c0_i32, %c0_i32_0 : i32, i32
  }
  func.func @transform_2(%arg0: i32) -> (i32, i32) {
    %c0_i32 = arith.constant 0 : i32
    %c0_i32_0 = arith.constant 0 : i32
    %c0_i32_1 = arith.constant 0 : i32
    return %c0_i32, %c0_i32_0 : i32, i32
  }
  func.func @transform_3(%arg0: i32) -> (i32, i32) {
    %c0_i32 = arith.constant 0 : i32
    %c0_i32_0 = arith.constant 0 : i32
    return %arg0, %c0_i32 : i32, i32
  }
  func.func @transform_4(%arg0: i32) -> (i32, i32) {
    %c0_i32 = arith.constant 0 : i32
    %c0_i32_0 = arith.constant 0 : i32
    %c0_i32_1 = arith.constant 0 : i32
    return %c0_i32, %c0_i32_0 : i32, i32
  }
}

module attributes {stable_mosaic.version = 11 : i64} {
  func.func @kernel(%arg0: i32, %arg1: memref<512x128xf32, #tpu.memory_space<vmem>>, %arg2: memref<2x128xf32, #tpu.memory_space<vmem>>, %arg3: memref<512x128xf32, #tpu.memory_space<vmem>>, %arg4: memref<2x128xf32, #tpu.memory_space<vmem>>, %arg5: memref<4x128xf32, #tpu.memory_space<vmem>>, %arg6: memref<512x128xf32, #tpu.memory_space<vmem>>) attributes {dimension_semantics = [#tpu.dimension_semantics<parallel>], iteration_bounds = array<i64: 3>, scalar_prefetch = 0 : i64, scratch_operands = 0 : i64, tpu.core_type = #tpu.core_type<tc>, window_params = [{transform_indices = @transform_0, window_bounds = array<i64: 512, 128>}, {pipeline_mode = #tpu.pipeline_mode<synchronous>, transform_indices = @transform_1, window_bounds = array<i64: 2, 128>}, {transform_indices = @transform_2, window_bounds = array<i64: 512, 128>}, {transform_indices = @transform_3, window_bounds = array<i64: 2, 128>}, {pipeline_mode = #tpu.pipeline_mode<synchronous>, transform_indices = @transform_4, window_bounds = array<i64: 4, 128>}, {transform_indices = @transform_5, window_bounds = array<i64: 512, 128>}]} {
    %c0 = arith.constant 0 : index
    %c0_0 = arith.constant 0 : index
    %0 = vector.load %arg2[%c0, %c0_0] : memref<2x128xf32, #tpu.memory_space<vmem>>, vector<2x128xf32>
    %c0_1 = arith.constant 0 : index
    %c0_2 = arith.constant 0 : index
    %1 = vector.load %arg5[%c0_1, %c0_2] : memref<4x128xf32, #tpu.memory_space<vmem>>, vector<1x128xf32>
    %c1 = arith.constant 1 : index
    %c0_3 = arith.constant 0 : index
    %2 = vector.load %arg5[%c1, %c0_3] : memref<4x128xf32, #tpu.memory_space<vmem>>, vector<1x128xf32>
    %3 = vector.extract_strided_slice %0 {offsets = [0, 0], sizes = [1, 128], strides = [1, 1]} : vector<2x128xf32> to vector<1x128xf32>
    %cst = arith.constant 8.33333353E-4 : f32
    %4 = vector.broadcast %cst : f32 to vector<1x128xf32>
    %5 = arith.mulf %3, %4 : vector<1x128xf32>
    %6 = vector.extract_strided_slice %0 {offsets = [1, 0], sizes = [1, 128], strides = [1, 1]} : vector<2x128xf32> to vector<1x128xf32>
    %cst_4 = arith.constant 8.33333353E-4 : f32
    %7 = vector.broadcast %cst_4 : f32 to vector<1x128xf32>
    %8 = arith.mulf %6, %7 : vector<1x128xf32>
    %9 = arith.mulf %5, %5 : vector<1x128xf32>
    %10 = arith.subf %8, %9 : vector<1x128xf32>
    %cst_5 = arith.constant 9.99999974E-6 : f32
    %11 = vector.broadcast %cst_5 : f32 to vector<1x128xf32>
    %12 = arith.addf %10, %11 : vector<1x128xf32>
    %13 = math.rsqrt %12 : vector<1x128xf32>
    %14 = arith.mulf %13, %1 : vector<1x128xf32>
    %15 = arith.mulf %5, %14 : vector<1x128xf32>
    %16 = arith.subf %2, %15 : vector<1x128xf32>
    %c0_6 = arith.constant 0 : index
    %c0_7 = arith.constant 0 : index
    %17 = vector.load %arg4[%c0_6, %c0_7] : memref<2x128xf32, #tpu.memory_space<vmem>>, vector<2x128xf32>
    %c2 = arith.constant 2 : index
    %c0_8 = arith.constant 0 : index
    %18 = vector.load %arg5[%c2, %c0_8] : memref<4x128xf32, #tpu.memory_space<vmem>>, vector<1x128xf32>
    %c3 = arith.constant 3 : index
    %c0_9 = arith.constant 0 : index
    %19 = vector.load %arg5[%c3, %c0_9] : memref<4x128xf32, #tpu.memory_space<vmem>>, vector<1x128xf32>
    %20 = vector.extract_strided_slice %17 {offsets = [0, 0], sizes = [1, 128], strides = [1, 1]} : vector<2x128xf32> to vector<1x128xf32>
    %cst_10 = arith.constant 8.33333353E-4 : f32
    %21 = vector.broadcast %cst_10 : f32 to vector<1x128xf32>
    %22 = arith.mulf %20, %21 : vector<1x128xf32>
    %23 = vector.extract_strided_slice %17 {offsets = [1, 0], sizes = [1, 128], strides = [1, 1]} : vector<2x128xf32> to vector<1x128xf32>
    %cst_11 = arith.constant 8.33333353E-4 : f32
    %24 = vector.broadcast %cst_11 : f32 to vector<1x128xf32>
    %25 = arith.mulf %23, %24 : vector<1x128xf32>
    %26 = arith.mulf %22, %22 : vector<1x128xf32>
    %27 = arith.subf %25, %26 : vector<1x128xf32>
    %cst_12 = arith.constant 9.99999974E-6 : f32
    %28 = vector.broadcast %cst_12 : f32 to vector<1x128xf32>
    %29 = arith.addf %27, %28 : vector<1x128xf32>
    %30 = math.rsqrt %29 : vector<1x128xf32>
    %31 = arith.mulf %30, %18 : vector<1x128xf32>
    %32 = arith.mulf %22, %31 : vector<1x128xf32>
    %33 = arith.subf %19, %32 : vector<1x128xf32>
    %c0_13 = arith.constant 0 : index
    %c0_14 = arith.constant 0 : index
    %34 = vector.load %arg1[%c0_13, %c0_14] : memref<512x128xf32, #tpu.memory_space<vmem>>, vector<512x128xf32>
    %35 = vector.broadcast %14 : vector<1x128xf32> to vector<512x128xf32>
    %36 = arith.mulf %34, %35 : vector<512x128xf32>
    %37 = vector.broadcast %16 : vector<1x128xf32> to vector<512x128xf32>
    %38 = arith.addf %36, %37 : vector<512x128xf32>
    %c0_15 = arith.constant 0 : index
    %c0_16 = arith.constant 0 : index
    %39 = vector.load %arg3[%c0_15, %c0_16] : memref<512x128xf32, #tpu.memory_space<vmem>>, vector<512x128xf32>
    %40 = vector.broadcast %31 : vector<1x128xf32> to vector<512x128xf32>
    %41 = arith.mulf %39, %40 : vector<512x128xf32>
    %42 = vector.broadcast %33 : vector<1x128xf32> to vector<512x128xf32>
    %43 = arith.addf %41, %42 : vector<512x128xf32>
    %44 = arith.addf %38, %43 : vector<512x128xf32>
    %cst_17 = arith.constant 0.000000e+00 : f32
    %45 = vector.broadcast %cst_17 : f32 to vector<512x128xf32>
    %46 = arith.maximumf %44, %45 : vector<512x128xf32>
    %c0_18 = arith.constant 0 : index
    %c0_19 = arith.constant 0 : index
    %47 = vector.load %arg6[%c0_18, %c0_19] : memref<512x128xf32, #tpu.memory_space<vmem>>, vector<512x128xf32>
    tpu.vector_store %arg6[%c0_18, %c0_19], %46 {strides = array<i32>} : memref<512x128xf32, #tpu.memory_space<vmem>>, vector<512x128xf32>,
    return
  }
  func.func @transform_0(%arg0: i32) -> (i32, i32) {
    %c0_i32 = arith.constant 0 : i32
    %c0_i32_0 = arith.constant 0 : i32
    return %arg0, %c0_i32 : i32, i32
  }
  func.func @transform_1(%arg0: i32) -> (i32, i32) {
    %c0_i32 = arith.constant 0 : i32
    %c0_i32_0 = arith.constant 0 : i32
    %c0_i32_1 = arith.constant 0 : i32
    return %c0_i32, %c0_i32_0 : i32, i32
  }
  func.func @transform_2(%arg0: i32) -> (i32, i32) {
    %c1_i32 = arith.constant 1 : i32
    %c0_i32 = arith.constant 0 : i32
    return %arg0, %c1_i32 : i32, i32
  }
  func.func @transform_3(%arg0: i32) -> (i32, i32) {
    %c0_i32 = arith.constant 0 : i32
    %c1_i32 = arith.constant 1 : i32
    %c0_i32_0 = arith.constant 0 : i32
    return %c0_i32, %c1_i32 : i32, i32
  }
  func.func @transform_4(%arg0: i32) -> (i32, i32) {
    %c0_i32 = arith.constant 0 : i32
    %c0_i32_0 = arith.constant 0 : i32
    %c0_i32_1 = arith.constant 0 : i32
    return %c0_i32, %c0_i32_0 : i32, i32
  }
  func.func @transform_5(%arg0: i32) -> (i32, i32) {
    %c0_i32 = arith.constant 0 : i32
    %c0_i32_0 = arith.constant 0 : i32
    return %arg0, %c0_i32 : i32, i32
  }
}

</mosaic_0001>

<bundles_post_ra>
// kernel: _lambda_.5
= control target key start
LH: loop header
LB: loop body
LE: loop exit
PB: predicated region body
PF: predicated region fallthrough
CT: control target
= control target key end

     0   :  { %s1532_s12 = smov 0   ;;  %s1534_s13 = smov 0   ;;  %s1966_s0 = inlined_call_operand.vmem [shape: f32[1536,256], index: 0, kind: input, shape index: {}]   ;;  %s1967_s1 = inlined_call_operand.vmem [shape: f32[2,256], index: 1, kind: input, shape index: {}]   ;;  %s1968_s2 = inlined_call_operand.vmem [shape: f32[2,128], index: 2, kind: input, shape index: {}]   ;;  %s1969_s3 = inlined_call_operand.vmem [shape: bf16[1536,128], index: 3, kind: output, shape index: {}]  }
   0x1   :  { %s1536_s14 = smov 0  }
   0x2 LB: > { %s1127_s15 = sadd.s32 4294967295, %s1510_s14   ;;  %s1549_s16 = sadd.s32 1, %s1510_s14   ;;  %s1510_s14 = sphi %s1536_s14, %s1972_s14   ;;  %s1506_s13 = sphi %s1534_s13, %s1971_s13   ;;  %s1502_s12 = sphi %s1532_s12, %s1970_s12  }
   0x3   : > { %s17_s17 = ssub.s32 %s1510_s14, %s1549_s16  ;;  %s20_s18 = sadd.s32 1, %s1506_s13 }
   0x4   : > { %p18_p0 = scmp.eq.s32.totalorder %s17_s17, 0  ;;  %p27_p1 = scmp.ne.s32.totalorder %s1506_s13, %s1502_s12 }
   0x5   : > { %p28_p2 = scmp.eq.s32.totalorder %s1510_s14, 0  ;;  %p1130_p4 = scmp.ge.s32.totalorder %s1510_s14, 3 }
   0x6   : > { %s1558_s19 = scalar_select %p18_p0, %s1506_s13, %s20_s18  }
   0x7   : > { %p29_p3 = por %p28_p2, %p27_p1  ;;  %127 = sbr.rel (%p1130_p4) target bundleno = 50 (0x32), region = 24 }
   0xe   : > { %130 = sbr.rel (!%p29_p3) target bundleno = 50 (0x32), region = 28  ;;  %s132_s20 = sand.u32 (%p29_p3), 1, %s1506_s13  }
   0xf   : > { %s1206_s21 = sshll.u32 (%p29_p3), %s1510_s14, 10  ;;  %s1131_s22 = sshll.u32 (%p29_p3), %s132_s20, 9 }
  0x10   : > { %s1566_s25 = scalar_lea.vmem (%p29_p3), %s1966_s0, %s1206_s21  ;;  %s1571_s26 = scalar_lea.vmem (%p29_p3), [#allocation2], %s1131_s22 }
  0x11   : > { %v292_v0 = vld [vmem:[%s1566_s25] sm:$0xff] (%p29_p3)  ;;  %v294_v1 = vld [vmem:[%s1566_s25 + $0x10] sm:$0xff] (%p29_p3) }
  0x12   : > { %v296_v2 = vld [vmem:[%s1566_s25 + $0x20] sm:$0xff] (%p29_p3)  ;;  %293 = vst [vmem:[%s1571_s26] sm:$0xff] (%p29_p3), %v292_v0  ;;  %295 = vst [vmem:[%s1571_s26 + $0x8] sm:$0xff] (%p29_p3), %v294_v1  ;;  %v298_v3 = vld [vmem:[%s1566_s25 + $0x30] sm:$0xff] (%p29_p3) }
  0x13   : > { %297 = vst [vmem:[%s1571_s26 + $0x10] sm:$0xff] (%p29_p3), %v296_v2  ;;  %v300_v4 = vld [vmem:[%s1566_s25 + $0x40] sm:$0xff] (%p29_p3)  ;;  %v302_v5 = vld [vmem:[%s1566_s25 + $0x50] sm:$0xff] (%p29_p3)  ;;  %299 = vst [vmem:[%s1571_s26 + $0x18] sm:$0xff] (%p29_p3), %v298_v3 }
  0x14   : > { %301 = vst [vmem:[%s1571_s26 + $0x20] sm:$0xff] (%p29_p3), %v300_v4  ;;  %303 = vst [vmem:[%s1571_s26 + $0x28] sm:$0xff] (%p29_p3), %v302_v5  ;;  %v304_v6 = vld [vmem:[%s1566_s25 + $0x60] sm:$0xff] (%p29_p3)  ;;  %v306_v7 = vld [vmem:[%s1566_s25 + $0x70] sm:$0xff] (%p29_p3) }
  0x15   : > { %v308_v8 = vld [vmem:[%s1566_s25 + $0x80] sm:$0xff]  ;;  %305 = vst [vmem:[%s1571_s26 + $0x30] sm:$0xff] %v304_v6  ;;  %307 = vst [vmem:[%s1571_s26 + $0x38] sm:$0xff] %v306_v7  ;;  %v310_v9 = vld [vmem:[%s1566_s25 + $0x90] sm:$0xff] }
  0x16   : > { %309 = vst [vmem:[%s1571_s26 + $0x40] sm:$0xff] %v308_v8  ;;  %v312_v10 = vld [vmem:[%s1566_s25 + $0xa0] sm:$0xff]  ;;  %v314_v11 = vld [vmem:[%s1566_s25 + $0xb0] sm:$0xff]  ;;  %311 = vst [vmem:[%s1571_s26 + $0x48] sm:$0xff] %v310_v9 }
  0x17   : > { %313 = vst [vmem:[%s1571_s26 + $0x50] sm:$0xff] %v312_v10  ;;  %315 = vst [vmem:[%s1571_s26 + $0x58] sm:$0xff] %v314_v11  ;;  %v316_v12 = vld [vmem:[%s1566_s25 + $0xc0] sm:$0xff]  ;;  %v318_v13 = vld [vmem:[%s1566_s25 + $0xd0] sm:$0xff] }
  0x18   : > { %v320_v14 = vld [vmem:[%s1566_s25 + $0xe0] sm:$0xff]  ;;  %317 = vst [vmem:[%s1571_s26 + $0x60] sm:$0xff] %v316_v12  ;;  %319 = vst [vmem:[%s1571_s26 + $0x68] sm:$0xff] %v318_v13  ;;  %v322_v15 = vld [vmem:[%s1566_s25 + $0xf0] sm:$0xff] }
  0x19   : > { %321 = vst [vmem:[%s1571_s26 + $0x70] sm:$0xff] %v320_v14  ;;  %v324_v16 = vld [vmem:[%s1566_s25 + $0x100] sm:$0xff]  ;;  %v326_v17 = vld [vmem:[%s1566_s25 + $0x110] sm:$0xff]  ;;  %323 = vst [vmem:[%s1571_s26 + $0x78] sm:$0xff] %v322_v15 }
  0x1a   : > { %325 = vst [vmem:[%s1571_s26 + $0x80] sm:$0xff] %v324_v16  ;;  %327 = vst [vmem:[%s1571_s26 + $0x88] sm:$0xff] %v326_v17  ;;  %v328_v18 = vld [vmem:[%s1566_s25 + $0x120] sm:$0xff]  ;;  %v330_v19 = vld [vmem:[%s1566_s25 + $0x130] sm:$0xff] }
  0x1b   : > { %v332_v20 = vld [vmem:[%s1566_s25 + $0x140] sm:$0xff]  ;;  %329 = vst [vmem:[%s1571_s26 + $0x90] sm:$0xff] %v328_v18  ;;  %331 = vst [vmem:[%s1571_s26 + $0x98] sm:$0xff] %v330_v19  ;;  %v334_v21 = vld [vmem:[%s1566_s25 + $0x150] sm:$0xff] }
  0x1c   : > { %333 = vst [vmem:[%s1571_s26 + $0xa0] sm:$0xff] %v332_v20  ;;  %v336_v22 = vld [vmem:[%s1566_s25 + $0x160] sm:$0xff]  ;;  %v338_v23 = vld [vmem:[%s1566_s25 + $0x170] sm:$0xff]  ;;  %335 = vst [vmem:[%s1571_s26 + $0xa8] sm:$0xff] %v334_v21 }
  0x1d   : > { %337 = vst [vmem:[%s1571_s26 + $0xb0] sm:$0xff] %v336_v22  ;;  %339 = vst [vmem:[%s1571_s26 + $0xb8] sm:$0xff] %v338_v23  ;;  %v340_v24 = vld [vmem:[%s1566_s25 + $0x180] sm:$0xff]  ;;  %v342_v25 = vld [vmem:[%s1566_s25 + $0x190] sm:$0xff] }
  0x1e   : > { %v344_v26 = vld [vmem:[%s1566_s25 + $0x1a0] sm:$0xff]  ;;  %341 = vst [vmem:[%s1571_s26 + $0xc0] sm:$0xff] %v340_v24  ;;  %343 = vst [vmem:[%s1571_s26 + $0xc8] sm:$0xff] %v342_v25  ;;  %v346_v27 = vld [vmem:[%s1566_s25 + $0x1b0] sm:$0xff] }
  0x1f   : > { %345 = vst [vmem:[%s1571_s26 + $0xd0] sm:$0xff] %v344_v26  ;;  %v348_v28 = vld [vmem:[%s1566_s25 + $0x1c0] sm:$0xff]  ;;  %v350_v29 = vld [vmem:[%s1566_s25 + $0x1d0] sm:$0xff]  ;;  %347 = vst [vmem:[%s1571_s26 + $0xd8] sm:$0xff] %v346_v27 }
  0x20   : > { %349 = vst [vmem:[%s1571_s26 + $0xe0] sm:$0xff] %v348_v28  ;;  %351 = vst [vmem:[%s1571_s26 + $0xe8] sm:$0xff] %v350_v29  ;;  %v352_v30 = vld [vmem:[%s1566_s25 + $0x1e0] sm:$0xff]  ;;  %v354_v31 = vld [vmem:[%s1566_s25 + $0x1f0] sm:$0xff] }
  0x21   : > { %v356_v32 = vld [vmem:[%s1566_s25 + $0x200] sm:$0xff]  ;;  %353 = vst [vmem:[%s1571_s26 + $0xf0] sm:$0xff] %v352_v30  ;;  %355 = vst [vmem:[%s1571_s26 + $0xf8] sm:$0xff] %v354_v31  ;;  %v358_v33 = vld [vmem:[%s1566_s25 + $0x210] sm:$0xff] }
  0x22   : > { %357 = vst [vmem:[%s1571_s26 + $0x100] sm:$0xff] %v356_v32  ;;  %v360_v34 = vld [vmem:[%s1566_s25 + $0x220] sm:$0xff]  ;;  %v362_v35 = vld [vmem:[%s1566_s25 + $0x230] sm:$0xff]  ;;  %359 = vst [vmem:[%s1571_s26 + $0x108] sm:$0xff] %v358_v33 }
  0x23   : > { %361 = vst [vmem:[%s1571_s26 + $0x110] sm:$0xff] %v360_v34  ;;  %363 = vst [vmem:[%s1571_s26 + $0x118] sm:$0xff] %v362_v35  ;;  %v364_v36 = vld [vmem:[%s1566_s25 + $0x240] sm:$0xff]  ;;  %v366_v37 = vld [vmem:[%s1566_s25 + $0x250] sm:$0xff] }
  0x24   : > { %v368_v38 = vld [vmem:[%s1566_s25 + $0x260] sm:$0xff]  ;;  %365 = vst [vmem:[%s1571_s26 + $0x120] sm:$0xff] %v364_v36  ;;  %367 = vst [vmem:[%s1571_s26 + $0x128] sm:$0xff] %v366_v37  ;;  %v370_v39 = vld [vmem:[%s1566_s25 + $0x270] sm:$0xff] }
  0x25   : > { %369 = vst [vmem:[%s1571_s26 + $0x130] sm:$0xff] %v368_v38  ;;  %v372_v40 = vld [vmem:[%s1566_s25 + $0x280] sm:$0xff]  ;;  %v374_v41 = vld [vmem:[%s1566_s25 + $0x290] sm:$0xff]  ;;  %371 = vst [vmem:[%s1571_s26 + $0x138] sm:$0xff] %v370_v39 }
  0x26   : > { %373 = vst [vmem:[%s1571_s26 + $0x140] sm:$0xff] %v372_v40  ;;  %375 = vst [vmem:[%s1571_s26 + $0x148] sm:$0xff] %v374_v41  ;;  %v376_v42 = vld [vmem:[%s1566_s25 + $0x2a0] sm:$0xff]  ;;  %v378_v43 = vld [vmem:[%s1566_s25 + $0x2b0] sm:$0xff] }
  0x27   : > { %v380_v44 = vld [vmem:[%s1566_s25 + $0x2c0] sm:$0xff]  ;;  %377 = vst [vmem:[%s1571_s26 + $0x150] sm:$0xff] %v376_v42  ;;  %379 = vst [vmem:[%s1571_s26 + $0x158] sm:$0xff] %v378_v43  ;;  %v382_v45 = vld [vmem:[%s1566_s25 + $0x2d0] sm:$0xff] }
  0x28   : > { %381 = vst [vmem:[%s1571_s26 + $0x160] sm:$0xff] %v380_v44  ;;  %v384_v46 = vld [vmem:[%s1566_s25 + $0x2e0] sm:$0xff]  ;;  %v386_v47 = vld [vmem:[%s1566_s25 + $0x2f0] sm:$0xff]  ;;  %383 = vst [vmem:[%s1571_s26 + $0x168] sm:$0xff] %v382_v45 }
  0x29   : > { %385 = vst [vmem:[%s1571_s26 + $0x170] sm:$0xff] %v384_v46  ;;  %387 = vst [vmem:[%s1571_s26 + $0x178] sm:$0xff] %v386_v47  ;;  %v388_v48 = vld [vmem:[%s1566_s25 + $0x300] sm:$0xff]  ;;  %v390_v49 = vld [vmem:[%s1566_s25 + $0x310] sm:$0xff] }
  0x2a   : > { %v392_v50 = vld [vmem:[%s1566_s25 + $0x320] sm:$0xff]  ;;  %389 = vst [vmem:[%s1571_s26 + $0x180] sm:$0xff] %v388_v48  ;;  %391 = vst [vmem:[%s1571_s26 + $0x188] sm:$0xff] %v390_v49  ;;  %v394_v51 = vld [vmem:[%s1566_s25 + $0x330] sm:$0xff] }
  0x2b   : > { %393 = vst [vmem:[%s1571_s26 + $0x190] sm:$0xff] %v392_v50  ;;  %v396_v52 = vld [vmem:[%s1566_s25 + $0x340] sm:$0xff]  ;;  %v398_v53 = vld [vmem:[%s1566_s25 + $0x350] sm:$0xff]  ;;  %395 = vst [vmem:[%s1571_s26 + $0x198] sm:$0xff] %v394_v51 }
  0x2c   : > { %397 = vst [vmem:[%s1571_s26 + $0x1a0] sm:$0xff] %v396_v52  ;;  %399 = vst [vmem:[%s1571_s26 + $0x1a8] sm:$0xff] %v398_v53  ;;  %v400_v54 = vld [vmem:[%s1566_s25 + $0x360] sm:$0xff]  ;;  %v402_v55 = vld [vmem:[%s1566_s25 + $0x370] sm:$0xff] }
  0x2d   : > { %v404_v56 = vld [vmem:[%s1566_s25 + $0x380] sm:$0xff]  ;;  %401 = vst [vmem:[%s1571_s26 + $0x1b0] sm:$0xff] %v400_v54  ;;  %403 = vst [vmem:[%s1571_s26 + $0x1b8] sm:$0xff] %v402_v55  ;;  %v406_v57 = vld [vmem:[%s1566_s25 + $0x390] sm:$0xff] }
  0x2e   : > { %405 = vst [vmem:[%s1571_s26 + $0x1c0] sm:$0xff] %v404_v56  ;;  %v408_v58 = vld [vmem:[%s1566_s25 + $0x3a0] sm:$0xff]  ;;  %v410_v59 = vld [vmem:[%s1566_s25 + $0x3b0] sm:$0xff]  ;;  %407 = vst [vmem:[%s1571_s26 + $0x1c8] sm:$0xff] %v406_v57 }
  0x2f   : > { %409 = vst [vmem:[%s1571_s26 + $0x1d0] sm:$0xff] %v408_v58  ;;  %411 = vst [vmem:[%s1571_s26 + $0x1d8] sm:$0xff] %v410_v59  ;;  %v412_v60 = vld [vmem:[%s1566_s25 + $0x3c0] sm:$0xff]  ;;  %v414_v61 = vld [vmem:[%s1566_s25 + $0x3d0] sm:$0xff] }
  0x30   : > { %v416_v62 = vld [vmem:[%s1566_s25 + $0x3e0] sm:$0xff]  ;;  %413 = vst [vmem:[%s1571_s26 + $0x1e0] sm:$0xff] %v412_v60  ;;  %415 = vst [vmem:[%s1571_s26 + $0x1e8] sm:$0xff] %v414_v61  ;;  %v418_v63 = vld [vmem:[%s1566_s25 + $0x3f0] sm:$0xff] }
  0x31   : > { %417 = vst [vmem:[%s1571_s26 + $0x1f0] sm:$0xff] %v416_v62  ;;  %419 = vst [vmem:[%s1571_s26 + $0x1f8] sm:$0xff] %v418_v63 }
  0x32 PF: > { %p1135_p5 = scmp.ge.s32.totalorder %s1510_s14, 1  ;;  %p424_p6 = scmp.lt.s32.totalorder %s1510_s14, 4 }
  0x34   : > { %p425_p7 = pnand %p1135_p5, %p424_p6 }
  0x35   : > { %v461_v0 = vld [vmem:[%s1967_s1] sm:$0x3] (!%p425_p7)  ;;  %v545_v6 = vlaneseq (!%p425_p7)  ;;  %s431_s29 = sand.u32 (!%p425_p7), 1, %s1502_s12   ;;  %s1709_s6 = sshll.u32 (!%p425_p7), %s1127_s15, 6 }
  0x36   : > { %428 = sbr.rel (%p425_p7) target bundleno = 141 (0x8d), region = 66  ;;  %v462_v1 = vmul.f32 (!%p425_p7), 0.00083333335, %v461_v0  ;;  %v470_v7 = vld [vmem:[%s1968_s2] sm:$0x1] (!%p425_p7)  ;;  %s1136_s5 = sshll.u32 (!%p425_p7), %s431_s29, 9 }
  0x37   : > { %v546_v8 = vshrl.u32 (!%p425_p7), %v545_v6, 7  ;;  %v472_v9 = vrot.slane (!%p425_p7), %v470_v7, 7  ;;  %s1711_s7 = scalar_lea.vmem (!%p425_p7), [#allocation2], %s1136_s5  ;;  %v475_v16 = vld [vmem:[%s1968_s2 + $0x1] sm:$0x1] (!%p425_p7)  ;;  %p456_p8 = scmp.lt.s32.totalorder (!%p425_p7), %s1709_s6, 191 }
  0x38   : > { %v463_v2 = vmul.f32 (!%p425_p7), %v462_v1, %v462_v1  ;;  %v481_v13 = vld [vmem:[%s1711_s7] sm:$0xff] (!%p425_p7)  ;;  %v482_v14 = vld [vmem:[%s1711_s7 + $0x8] sm:$0xff] (!%p425_p7)  ;;  %v483_v15 = vld [vmem:[%s1711_s7 + $0x10] sm:$0xff] (!%p425_p7) }
  0x39   : > { %v547_v10 = vsub.s32 (!%p425_p7), 1, %v546_v8  ;;  %v484_v17 = vld [vmem:[%s1711_s7 + $0x18] sm:$0xff] (!%p425_p7)  ;;  %v485_v18 = vld [vmem:[%s1711_s7 + $0x20] sm:$0xff] (!%p425_p7)  ;;  %v486_v19 = vld [vmem:[%s1711_s7 + $0x28] sm:$0xff] (!%p425_p7)  ;;  %v615_v25 = vsub.s32 (!%p425_p7), 0, %v546_v8 }
  0x3a   : > { %v465_v3 = vrot.slane (!%p425_p7), %v463_v2, 7  ;;  %v487_v22 = vld [vmem:[%s1711_s7 + $0x30] sm:$0xff] (!%p425_p7)  ;;  %v488_v23 = vld [vmem:[%s1711_s7 + $0x38] sm:$0xff] (!%p425_p7)  ;;  %v489_v24 = vld [vmem:[%s1711_s7 + $0x40] sm:$0xff] (!%p425_p7) }
  0x3b   : > { %v490_v26 = vld [vmem:[%s1711_s7 + $0x48] sm:$0xff] (!%p425_p7)  ;;  %v491_v27 = vld [vmem:[%s1711_s7 + $0x50] sm:$0xff] (!%p425_p7)  ;;  %v492_v28 = vld [vmem:[%s1711_s7 + $0x58] sm:$0xff] (!%p425_p7) }
  0x3c   : > { %v467_v4 = vsub.f32 (!%p425_p7), %v462_v1, %v465_v3  ;;  %v493_v33 = vld [vmem:[%s1711_s7 + $0x60] sm:$0xff] (!%p425_p7)  ;;  %v494_v34 = vld [vmem:[%s1711_s7 + $0x68] sm:$0xff] (!%p425_p7)  ;;  %v495_v35 = vld [vmem:[%s1711_s7 + $0x70] sm:$0xff] (!%p425_p7) }
  0x3d   : > { %v496_v40 = vld [vmem:[%s1711_s7 + $0x78] sm:$0xff]  ;;  %v497_v41 = vld [vmem:[%s1711_s7 + $0x80] sm:$0xff]  ;;  %v498_v42 = vld [vmem:[%s1711_s7 + $0x88] sm:$0xff]  ;;  %s1974_s6 = smov (!%p456_p8, %s1709_s6), 191 }
  0x3e   : > { %v468_v5 = vadd.f32 1e-05, %v467_v4  ;;  %v499_v47 = vld [vmem:[%s1711_s7 + $0x90] sm:$0xff]  ;;  %v500_v48 = vld [vmem:[%s1711_s7 + $0x98] sm:$0xff]  ;;  %v501_v49 = vld [vmem:[%s1711_s7 + $0xa0] sm:$0xff]  ;;  %s1138_s10 = sshll.u32 %s1974_s6, 2 }
  0x3f   : > { %s1780_s14 = scalar_lea.vmem %s1969_s3, %s1138_s10 }
  0x40   : > { %1486 = vrsqrt.f32 %v468_v5 }
  0x4a   : > { %v1487_v11 = vpop.eup %1486 }
  0x4b   : > { %v474_v12 = vmul.f32 %v1487_v11, %v472_v9 }
  0x4d   : > { %v477_v20 = vrot.slane %v474_v12, 1  ;;  %v1723_v21 = vrot.slane %v474_v12, %v547_v10 }
  0x4f   : > { %v479_v29 = vmul.f32 %v477_v20, %v462_v1  ;;  %v549_v30 = vmul.f32 %v1723_v21, %v481_v13  ;;  %v550_v31 = vmul.f32 %v1723_v21, %v482_v14  ;;  %v551_v32 = vmul.f32 %v1723_v21, %v483_v15 }
  0x50   : > { %v552_v36 = vmul.f32 %v1723_v21, %v484_v17  ;;  %v553_v37 = vmul.f32 %v1723_v21, %v485_v18  ;;  %v554_v38 = vmul.f32 %v1723_v21, %v486_v19  ;;  %v555_v39 = vmul.f32 %v1723_v21, %v487_v22 }
  0x51   : > { %v480_v43 = vsub.f32 %v475_v16, %v479_v29  ;;  %v556_v44 = vmul.f32 %v1723_v21, %v488_v23  ;;  %v557_v45 = vmul.f32 %v1723_v21, %v489_v24  ;;  %v558_v46 = vmul.f32 %v1723_v21, %v490_v26 }
  0x52   : > { %v559_v50 = vmul.f32 %v1723_v21, %v491_v27  ;;  %v560_v51 = vmul.f32 %v1723_v21, %v492_v28  ;;  %v561_v52 = vmul.f32 %v1723_v21, %v493_v33  ;;  %v562_v53 = vmul.f32 %v1723_v21, %v494_v34 }
  0x53   : > { %v1759_v54 = vrot.slane %v480_v43, %v615_v25  ;;  %v563_v55 = vmul.f32 %v1723_v21, %v495_v35  ;;  %v564_v56 = vmul.f32 %v1723_v21, %v496_v40  ;;  %v565_v57 = vmul.f32 %v1723_v21, %v497_v41  ;;  %v502_v35 = vld [vmem:[%s1711_s7 + $0xa8] sm:$0xff]  ;;  %v503_v40 = vld [vmem:[%s1711_s7 + $0xb0] sm:$0xff]  ;;  %v504_v41 = vld [vmem:[%s1711_s7 + $0xb8] sm:$0xff] }
  0x54   : > { %v566_v58 = vmul.f32 %v1723_v21, %v498_v42  ;;  %v567_v59 = vmul.f32 %v1723_v21, %v499_v47  ;;  %v568_v60 = vmul.f32 %v1723_v21, %v500_v48  ;;  %v569_v61 = vmul.f32 %v1723_v21, %v501_v49 }
  0x55   : > { %v617_v62 = vadd.f32 %v1759_v54, %v549_v30  ;;  %v618_v63 = vadd.f32 %v1759_v54, %v550_v31  ;;  %v619_v0 = vadd.f32 %v1759_v54, %v551_v32  ;;  %v620_v1 = vadd.f32 %v1759_v54, %v552_v36 }
  0x56   : > { %v621_v2 = vadd.f32 %v1759_v54, %v553_v37  ;;  %v622_v3 = vadd.f32 %v1759_v54, %v554_v38  ;;  %v623_v4 = vadd.f32 %v1759_v54, %v555_v39  ;;  %v624_v5 = vadd.f32 %v1759_v54, %v556_v44 }
  0x57   : > { %v681_v6 = vmax.f32 %v617_v62, 0.0  ;;  %v682_v7 = vmax.f32 %v618_v63, 0.0  ;;  %v683_v8 = vmax.f32 %v619_v0, 0.0  ;;  %v684_v9 = vmax.f32 %v620_v1, 0.0  ;;  %v509_v63 = vld [vmem:[%s1711_s7 + $0xe0] sm:$0xff] }
  0x58   : > { %v685_v10 = vmax.f32 %v621_v2, 0.0  ;;  %v686_v11 = vmax.f32 %v622_v3, 0.0  ;;  %v687_v12 = vmax.f32 %v623_v4, 0.0  ;;  %v688_v13 = vmax.f32 %v624_v5, 0.0 }
  0x59   : > { %v1274_v14 = vpack.c.bf16 %v682_v7, %v681_v6  ;;  %v1279_v15 = vpack.c.bf16 %v684_v9, %v683_v8  ;;  %v625_v16 = vadd.f32 %v1759_v54, %v557_v45  ;;  %v626_v17 = vadd.f32 %v1759_v54, %v558_v46  ;;  %v505_v46 = vld [vmem:[%s1711_s7 + $0xc0] sm:$0xff]  ;;  %v510_v8 = vld [vmem:[%s1711_s7 + $0xe8] sm:$0xff] }
  0x5a   : > { %v1284_v18 = vpack.c.bf16 %v686_v11, %v685_v10  ;;  %v1289_v19 = vpack.c.bf16 %v688_v13, %v687_v12  ;;  %v627_v20 = vadd.f32 %v1759_v54, %v559_v50  ;;  %v628_v22 = vadd.f32 %v1759_v54, %v560_v51  ;;  %v506_v51 = vld [vmem:[%s1711_s7 + $0xc8] sm:$0xff]  ;;  %v511_v13 = vld [vmem:[%s1711_s7 + $0xf0] sm:$0xff] }
  0x5b   : > { %1275 = vst [vmem:[%s1780_s14] sm:$0xff] %v1274_v14   ;;  %1431 = vst [vmem:[%s1780_s14 + $0x8] sm:$0xff] %v1279_v15   ;;  %v689_v23 = vmax.f32 %v625_v16, 0.0  ;;  %v690_v24 = vmax.f32 %v626_v17, 0.0  ;;  %v629_v25 = vadd.f32 %v1759_v54, %v561_v52  ;;  %v630_v26 = vadd.f32 %v1759_v54, %v562_v53  ;;  %v512_v14 = vld [vmem:[%s1711_s7 + $0xf8] sm:$0xff] }
  0x5c   : > { %1432 = vst [vmem:[%s1780_s14 + $0x10] sm:$0xff] %v1284_v18   ;;  %1433 = vst [vmem:[%s1780_s14 + $0x18] sm:$0xff] %v1289_v19   ;;  %v691_v27 = vmax.f32 %v627_v20, 0.0  ;;  %v692_v28 = vmax.f32 %v628_v22, 0.0  ;;  %v631_v29 = vadd.f32 %v1759_v54, %v563_v55  ;;  %v632_v30 = vadd.f32 %v1759_v54, %v564_v56  ;;  %v513_v19 = vld [vmem:[%s1711_s7 + $0x100] sm:$0xff] }
  0x5d   : > { %v1294_v31 = vpack.c.bf16 %v690_v24, %v689_v23  ;;  %v693_v32 = vmax.f32 %v629_v25, 0.0  ;;  %v694_v33 = vmax.f32 %v630_v26, 0.0  ;;  %v633_v34 = vadd.f32 %v1759_v54, %v565_v57  ;;  %v507_v57 = vld [vmem:[%s1711_s7 + $0xd0] sm:$0xff]  ;;  %v514_v25 = vld [vmem:[%s1711_s7 + $0x108] sm:$0xff] }
  0x5e   : > { %v1299_v36 = vpack.c.bf16 %v692_v28, %v691_v27  ;;  %v695_v37 = vmax.f32 %v631_v29, 0.0  ;;  %v696_v38 = vmax.f32 %v632_v30, 0.0  ;;  %v634_v39 = vadd.f32 %v1759_v54, %v566_v58  ;;  %v508_v58 = vld [vmem:[%s1711_s7 + $0xd8] sm:$0xff]  ;;  %v515_v30 = vld [vmem:[%s1711_s7 + $0x110] sm:$0xff] }
  0x5f   : > { %1434 = vst [vmem:[%s1780_s14 + $0x20] sm:$0xff] %v1294_v31   ;;  %v1304_v42 = vpack.c.bf16 %v694_v33, %v693_v32  ;;  %v697_v43 = vmax.f32 %v633_v34, 0.0  ;;  %v635_v44 = vadd.f32 %v1759_v54, %v567_v59  ;;  %v636_v45 = vadd.f32 %v1759_v54, %v568_v60  ;;  %v516_v31 = vld [vmem:[%s1711_s7 + $0x118] sm:$0xff] }
  0x60   : > { %1435 = vst [vmem:[%s1780_s14 + $0x28] sm:$0xff] %v1299_v36   ;;  %v1309_v47 = vpack.c.bf16 %v696_v38, %v695_v37  ;;  %v698_v48 = vmax.f32 %v634_v39, 0.0  ;;  %v570_v49 = vmul.f32 %v1723_v21, %v502_v35  ;;  %v637_v50 = vadd.f32 %v1759_v54, %v569_v61  ;;  %v517_v36 = vld [vmem:[%s1711_s7 + $0x120] sm:$0xff] }
  0x61   : > { %1436 = vst [vmem:[%s1780_s14 + $0x30] sm:$0xff] %v1304_v42   ;;  %v699_v52 = vmax.f32 %v635_v44, 0.0  ;;  %v700_v53 = vmax.f32 %v636_v45, 0.0  ;;  %v571_v55 = vmul.f32 %v1723_v21, %v503_v40  ;;  %v572_v56 = vmul.f32 %v1723_v21, %v504_v41  ;;  %v518_v45 = vld [vmem:[%s1711_s7 + $0x128] sm:$0xff] }
  0x62   : > { %1437 = vst [vmem:[%s1780_s14 + $0x38] sm:$0xff] %v1309_v47   ;;  %v1314_v59 = vpack.c.bf16 %v698_v48, %v697_v43  ;;  %v638_v60 = vadd.f32 %v1759_v54, %v570_v49  ;;  %v701_v62 = vmax.f32 %v637_v50, 0.0  ;;  %v573_v61 = vmul.f32 %v1723_v21, %v505_v46  ;;  %v519_v50 = vld [vmem:[%s1711_s7 + $0x130] sm:$0xff] }
  0x63   : > { %v1319_v0 = vpack.c.bf16 %v700_v53, %v699_v52  ;;  %v639_v1 = vadd.f32 %v1759_v54, %v571_v55  ;;  %v640_v2 = vadd.f32 %v1759_v54, %v572_v56  ;;  %v574_v3 = vmul.f32 %v1723_v21, %v506_v51  ;;  %v520_v51 = vld [vmem:[%s1711_s7 + $0x138] sm:$0xff] }
  0x64   : > { %1438 = vst [vmem:[%s1780_s14 + $0x40] sm:$0xff] %v1314_v59   ;;  %v702_v4 = vmax.f32 %v638_v60, 0.0  ;;  %v641_v5 = vadd.f32 %v1759_v54, %v573_v61  ;;  %v575_v6 = vmul.f32 %v1723_v21, %v507_v57  ;;  %v576_v7 = vmul.f32 %v1723_v21, %v508_v58  ;;  %v521_v57 = vld [vmem:[%s1711_s7 + $0x140] sm:$0xff]  ;;  %v522_v61 = vld [vmem:[%s1711_s7 + $0x148] sm:$0xff] }
  0x65   : > { %1439 = vst [vmem:[%s1780_s14 + $0x48] sm:$0xff] %v1319_v0   ;;  %v703_v9 = vmax.f32 %v639_v1, 0.0  ;;  %v704_v10 = vmax.f32 %v640_v2, 0.0  ;;  %v642_v11 = vadd.f32 %v1759_v54, %v574_v3  ;;  %v577_v12 = vmul.f32 %v1723_v21, %v509_v63  ;;  %v523_v3 = vld [vmem:[%s1711_s7 + $0x150] sm:$0xff] }
  0x66   : > { %v1324_v15 = vpack.c.bf16 %v702_v4, %v701_v62  ;;  %v705_v16 = vmax.f32 %v641_v5, 0.0  ;;  %v643_v17 = vadd.f32 %v1759_v54, %v575_v6  ;;  %v644_v18 = vadd.f32 %v1759_v54, %v576_v7  ;;  %v524_v4 = vld [vmem:[%s1711_s7 + $0x158] sm:$0xff] }
  0x67   : > { %v1329_v20 = vpack.c.bf16 %v704_v10, %v703_v9  ;;  %v706_v22 = vmax.f32 %v642_v11, 0.0  ;;  %v578_v23 = vmul.f32 %v1723_v21, %v510_v8  ;;  %v645_v24 = vadd.f32 %v1759_v54, %v577_v12  ;;  %v525_v9 = vld [vmem:[%s1711_s7 + $0x160] sm:$0xff] }
  0x68   : > { %1440 = vst [vmem:[%s1780_s14 + $0x50] sm:$0xff] %v1324_v15   ;;  %v707_v26 = vmax.f32 %v643_v17, 0.0  ;;  %v708_v27 = vmax.f32 %v644_v18, 0.0  ;;  %v579_v28 = vmul.f32 %v1723_v21, %v511_v13  ;;  %v580_v29 = vmul.f32 %v1723_v21, %v512_v14  ;;  %v526_v18 = vld [vmem:[%s1711_s7 + $0x168] sm:$0xff] }
  0x69   : > { %1441 = vst [vmem:[%s1780_s14 + $0x58] sm:$0xff] %v1329_v20   ;;  %v1334_v32 = vpack.c.bf16 %v706_v22, %v705_v16  ;;  %v646_v33 = vadd.f32 %v1759_v54, %v578_v23  ;;  %v709_v34 = vmax.f32 %v645_v24, 0.0  ;;  %v581_v35 = vmul.f32 %v1723_v21, %v513_v19  ;;  %v527_v24 = vld [vmem:[%s1711_s7 + $0x170] sm:$0xff] }
  0x6a   : > { %v1339_v37 = vpack.c.bf16 %v708_v27, %v707_v26  ;;  %v647_v38 = vadd.f32 %v1759_v54, %v579_v28  ;;  %v648_v39 = vadd.f32 %v1759_v54, %v580_v29  ;;  %v582_v40 = vmul.f32 %v1723_v21, %v514_v25  ;;  %v528_v25 = vld [vmem:[%s1711_s7 + $0x178] sm:$0xff] }
  0x6b   : > { %1442 = vst [vmem:[%s1780_s14 + $0x60] sm:$0xff] %v1334_v32   ;;  %v710_v41 = vmax.f32 %v646_v33, 0.0  ;;  %v649_v42 = vadd.f32 %v1759_v54, %v581_v35  ;;  %v583_v43 = vmul.f32 %v1723_v21, %v515_v30  ;;  %v584_v44 = vmul.f32 %v1723_v21, %v516_v31  ;;  %v529_v30 = vld [vmem:[%s1711_s7 + $0x180] sm:$0xff]  ;;  %v530_v35 = vld [vmem:[%s1711_s7 + $0x188] sm:$0xff] }
  0x6c   : > { %1443 = vst [vmem:[%s1780_s14 + $0x68] sm:$0xff] %v1339_v37   ;;  %v711_v46 = vmax.f32 %v647_v38, 0.0  ;;  %v712_v47 = vmax.f32 %v648_v39, 0.0  ;;  %v650_v48 = vadd.f32 %v1759_v54, %v582_v40  ;;  %v585_v49 = vmul.f32 %v1723_v21, %v517_v36  ;;  %v531_v40 = vld [vmem:[%s1711_s7 + $0x190] sm:$0xff] }
  0x6d   : > { %v1344_v52 = vpack.c.bf16 %v710_v41, %v709_v34  ;;  %v713_v53 = vmax.f32 %v649_v42, 0.0  ;;  %v651_v55 = vadd.f32 %v1759_v54, %v583_v43  ;;  %v652_v56 = vadd.f32 %v1759_v54, %v584_v44  ;;  %v532_v41 = vld [vmem:[%s1711_s7 + $0x198] sm:$0xff] }
  0x6e   : > { %v1349_v58 = vpack.c.bf16 %v712_v47, %v711_v46  ;;  %v714_v59 = vmax.f32 %v650_v48, 0.0  ;;  %v586_v60 = vmul.f32 %v1723_v21, %v518_v45  ;;  %v653_v62 = vadd.f32 %v1759_v54, %v585_v49  ;;  %v533_v46 = vld [vmem:[%s1711_s7 + $0x1a0] sm:$0xff] }
  0x6f   : > { %1444 = vst [vmem:[%s1780_s14 + $0x70] sm:$0xff] %v1344_v52   ;;  %v715_v63 = vmax.f32 %v651_v55, 0.0  ;;  %v716_v0 = vmax.f32 %v652_v56, 0.0  ;;  %v587_v1 = vmul.f32 %v1723_v21, %v519_v50  ;;  %v588_v2 = vmul.f32 %v1723_v21, %v520_v51  ;;  %v534_v56 = vld [vmem:[%s1711_s7 + $0x1a8] sm:$0xff] }
  0x70   : > { %1445 = vst [vmem:[%s1780_s14 + $0x78] sm:$0xff] %v1349_v58   ;;  %v1354_v5 = vpack.c.bf16 %v714_v59, %v713_v53  ;;  %v654_v6 = vadd.f32 %v1759_v54, %v586_v60  ;;  %v717_v7 = vmax.f32 %v653_v62, 0.0  ;;  %v589_v8 = vmul.f32 %v1723_v21, %v521_v57  ;;  %v535_v62 = vld [vmem:[%s1711_s7 + $0x1b0] sm:$0xff] }
  0x71   : > { %v1359_v10 = vpack.c.bf16 %v716_v0, %v715_v63  ;;  %v655_v11 = vadd.f32 %v1759_v54, %v587_v1  ;;  %v656_v12 = vadd.f32 %v1759_v54, %v588_v2  ;;  %v590_v13 = vmul.f32 %v1723_v21, %v522_v61  ;;  %v536_v61 = vld [vmem:[%s1711_s7 + $0x1b8] sm:$0xff] }
  0x72   : > { %1446 = vst [vmem:[%s1780_s14 + $0x80] sm:$0xff] %v1354_v5   ;;  %v718_v14 = vmax.f32 %v654_v6, 0.0  ;;  %v657_v15 = vadd.f32 %v1759_v54, %v589_v8  ;;  %v591_v16 = vmul.f32 %v1723_v21, %v523_v3  ;;  %v592_v17 = vmul.f32 %v1723_v21, %v524_v4  ;;  %v537_v3 = vld [vmem:[%s1711_s7 + $0x1c0] sm:$0xff]  ;;  %v538_v8 = vld [vmem:[%s1711_s7 + $0x1c8] sm:$0xff] }
  0x73   : > { %1447 = vst [vmem:[%s1780_s14 + $0x88] sm:$0xff] %v1359_v10   ;;  %v719_v19 = vmax.f32 %v655_v11, 0.0  ;;  %v720_v20 = vmax.f32 %v656_v12, 0.0  ;;  %v658_v22 = vadd.f32 %v1759_v54, %v590_v13  ;;  %v593_v23 = vmul.f32 %v1723_v21, %v525_v9  ;;  %v539_v13 = vld [vmem:[%s1711_s7 + $0x1d0] sm:$0xff] }
  0x74   : > { %v1364_v26 = vpack.c.bf16 %v718_v14, %v717_v7  ;;  %v721_v27 = vmax.f32 %v657_v15, 0.0  ;;  %v659_v28 = vadd.f32 %v1759_v54, %v591_v16  ;;  %v660_v29 = vadd.f32 %v1759_v54, %v592_v17  ;;  %v540_v14 = vld [vmem:[%s1711_s7 + $0x1d8] sm:$0xff] }
  0x75   : > { %v1369_v31 = vpack.c.bf16 %v720_v20, %v719_v19  ;;  %v722_v32 = vmax.f32 %v658_v22, 0.0  ;;  %v594_v33 = vmul.f32 %v1723_v21, %v526_v18  ;;  %v661_v34 = vadd.f32 %v1759_v54, %v593_v23  ;;  %v541_v19 = vld [vmem:[%s1711_s7 + $0x1e0] sm:$0xff] }
  0x76   : > { %1448 = vst [vmem:[%s1780_s14 + $0x90] sm:$0xff] %v1364_v26   ;;  %v723_v36 = vmax.f32 %v659_v28, 0.0  ;;  %v724_v37 = vmax.f32 %v660_v29, 0.0  ;;  %v595_v38 = vmul.f32 %v1723_v21, %v527_v24  ;;  %v596_v39 = vmul.f32 %v1723_v21, %v528_v25  ;;  %v542_v29 = vld [vmem:[%s1711_s7 + $0x1e8] sm:$0xff] }
  0x77   : > { %1449 = vst [vmem:[%s1780_s14 + $0x98] sm:$0xff] %v1369_v31   ;;  %v1374_v42 = vpack.c.bf16 %v722_v32, %v721_v27  ;;  %v662_v43 = vadd.f32 %v1759_v54, %v594_v33  ;;  %v725_v44 = vmax.f32 %v661_v34, 0.0  ;;  %v597_v45 = vmul.f32 %v1723_v21, %v529_v30  ;;  %v543_v34 = vld [vmem:[%s1711_s7 + $0x1f0] sm:$0xff] }
  0x78   : > { %v1379_v47 = vpack.c.bf16 %v724_v37, %v723_v36  ;;  %v663_v48 = vadd.f32 %v1759_v54, %v595_v38  ;;  %v664_v49 = vadd.f32 %v1759_v54, %v596_v39  ;;  %v598_v50 = vmul.f32 %v1723_v21, %v530_v35  ;;  %v544_v35 = vld [vmem:[%s1711_s7 + $0x1f8] sm:$0xff] }
  0x79   : > { %1450 = vst [vmem:[%s1780_s14 + $0xa0] sm:$0xff] %v1374_v42   ;;  %v726_v51 = vmax.f32 %v662_v43, 0.0  ;;  %v665_v52 = vadd.f32 %v1759_v54, %v597_v45  ;;  %v599_v53 = vmul.f32 %v1723_v21, %v531_v40  ;;  %v600_v55 = vmul.f32 %v1723_v21, %v532_v41 }
  0x7a   : > { %1451 = vst [vmem:[%s1780_s14 + $0xa8] sm:$0xff] %v1379_v47   ;;  %v727_v57 = vmax.f32 %v663_v48, 0.0  ;;  %v728_v58 = vmax.f32 %v664_v49, 0.0  ;;  %v666_v59 = vadd.f32 %v1759_v54, %v598_v50  ;;  %v601_v60 = vmul.f32 %v1723_v21, %v533_v46 }
  0x7b   : > { %v1384_v63 = vpack.c.bf16 %v726_v51, %v725_v44  ;;  %v729_v0 = vmax.f32 %v665_v52, 0.0  ;;  %v667_v1 = vadd.f32 %v1759_v54, %v599_v53  ;;  %v668_v2 = vadd.f32 %v1759_v54, %v600_v55 }
  0x7c   : > { %v1389_v4 = vpack.c.bf16 %v728_v58, %v727_v57  ;;  %v730_v5 = vmax.f32 %v666_v59, 0.0  ;;  %v602_v6 = vmul.f32 %v1723_v21, %v534_v56  ;;  %v669_v7 = vadd.f32 %v1759_v54, %v601_v60 }
  0x7d   : > { %1452 = vst [vmem:[%s1780_s14 + $0xb0] sm:$0xff] %v1384_v63   ;;  %v731_v9 = vmax.f32 %v667_v1, 0.0  ;;  %v732_v10 = vmax.f32 %v668_v2, 0.0  ;;  %v603_v11 = vmul.f32 %v1723_v21, %v535_v62  ;;  %v604_v12 = vmul.f32 %v1723_v21, %v536_v61 }
  0x7e   : > { %1453 = vst [vmem:[%s1780_s14 + $0xb8] sm:$0xff] %v1389_v4   ;;  %v1394_v15 = vpack.c.bf16 %v730_v5, %v729_v0  ;;  %v670_v16 = vadd.f32 %v1759_v54, %v602_v6  ;;  %v733_v17 = vmax.f32 %v669_v7, 0.0  ;;  %v605_v18 = vmul.f32 %v1723_v21, %v537_v3 }
  0x7f   : > { %v1399_v20 = vpack.c.bf16 %v732_v10, %v731_v9  ;;  %v671_v22 = vadd.f32 %v1759_v54, %v603_v11  ;;  %v672_v23 = vadd.f32 %v1759_v54, %v604_v12  ;;  %v606_v24 = vmul.f32 %v1723_v21, %v538_v8 }
  0x80   : > { %1454 = vst [vmem:[%s1780_s14 + $0xc0] sm:$0xff] %v1394_v15   ;;  %v734_v25 = vmax.f32 %v670_v16, 0.0  ;;  %v673_v26 = vadd.f32 %v1759_v54, %v605_v18  ;;  %v607_v27 = vmul.f32 %v1723_v21, %v539_v13  ;;  %v608_v28 = vmul.f32 %v1723_v21, %v540_v14 }
  0x81   : > { %1455 = vst [vmem:[%s1780_s14 + $0xc8] sm:$0xff] %v1399_v20   ;;  %v735_v30 = vmax.f32 %v671_v22, 0.0  ;;  %v736_v31 = vmax.f32 %v672_v23, 0.0  ;;  %v674_v32 = vadd.f32 %v1759_v54, %v606_v24  ;;  %v609_v33 = vmul.f32 %v1723_v21, %v541_v19 }
  0x82   : > { %v1404_v36 = vpack.c.bf16 %v734_v25, %v733_v17  ;;  %v737_v37 = vmax.f32 %v673_v26, 0.0  ;;  %v675_v38 = vadd.f32 %v1759_v54, %v607_v27  ;;  %v676_v39 = vadd.f32 %v1759_v54, %v608_v28 }
  0x83   : > { %v1409_v40 = vpack.c.bf16 %v736_v31, %v735_v30  ;;  %v738_v41 = vmax.f32 %v674_v32, 0.0  ;;  %v610_v42 = vmul.f32 %v1723_v21, %v542_v29  ;;  %v677_v43 = vadd.f32 %v1759_v54, %v609_v33 }
  0x84   : > { %1456 = vst [vmem:[%s1780_s14 + $0xd0] sm:$0xff] %v1404_v36   ;;  %v739_v44 = vmax.f32 %v675_v38, 0.0  ;;  %v740_v45 = vmax.f32 %v676_v39, 0.0  ;;  %v611_v46 = vmul.f32 %v1723_v21, %v543_v34  ;;  %v612_v47 = vmul.f32 %v1723_v21, %v544_v35 }
  0x85   : > { %1457 = vst [vmem:[%s1780_s14 + $0xd8] sm:$0xff] %v1409_v40   ;;  %v1414_v48 = vpack.c.bf16 %v738_v41, %v737_v37  ;;  %v678_v49 = vadd.f32 %v1759_v54, %v610_v42  ;;  %v741_v50 = vmax.f32 %v677_v43, 0.0 }
  0x86   : > { %v1419_v51 = vpack.c.bf16 %v740_v45, %v739_v44  ;;  %v679_v52 = vadd.f32 %v1759_v54, %v611_v46  ;;  %v680_v53 = vadd.f32 %v1759_v54, %v612_v47 }
  0x87   : > { %1458 = vst [vmem:[%s1780_s14 + $0xe0] sm:$0xff] %v1414_v48   ;;  %v742_v55 = vmax.f32 %v678_v49, 0.0 }
  0x88   : > { %1459 = vst [vmem:[%s1780_s14 + $0xe8] sm:$0xff] %v1419_v51   ;;  %v743_v56 = vmax.f32 %v679_v52, 0.0  ;;  %v744_v57 = vmax.f32 %v680_v53, 0.0 }
  0x89   : > { %v1424_v58 = vpack.c.bf16 %v742_v55, %v741_v50 }
  0x8a   : > { %v1429_v59 = vpack.c.bf16 %v744_v57, %v743_v56 }
  0x8b   : > { %1460 = vst [vmem:[%s1780_s14 + $0xf0] sm:$0xff] %v1424_v58  }
  0x8c   : > { %1461 = vst [vmem:[%s1780_s14 + $0xf8] sm:$0xff] %v1429_v59  }
  0x8d PF: > { %p10_p9 = scmp.ge.s32.totalorder %s1549_s16, 5   ;;  %s1970_s12 = smov %s1506_s13 }
  0x8e   : > { %s1971_s13 = smov %s1558_s19  ;;  %s1972_s14 = smov %s1549_s16 }
  0x8f   :  { %12 = sbr.rel (!%p10_p9) target bundleno = 2 (0x2), region = 105 }

// kernel: _lambda_.4
= control target key start
LH: loop header
LB: loop body
LE: loop exit
PB: predicated region body
PF: predicated region fallthrough
CT: control target
= control target key end

     0   :  { %s2199_s15 = smov 0   ;;  %s3473_s0 = inlined_call_operand.vmem [shape: bf16[1536,128], index: 0, kind: input, shape index: {}]   ;;  %s3474_s1 = inlined_call_operand.vmem [shape: bf16[128,256], index: 1, kind: input, shape index: {}]   ;;  %s3475_s2 = inlined_call_operand.vmem [shape: f32[1,256], index: 2, kind: input, shape index: {}]   ;;  %s3476_s3 = inlined_call_operand.vmem [shape: f32[1536,256], index: 3, kind: output, shape index: {0}]   ;;  %s3477_s4 = inlined_call_operand.vmem [shape: f32[2,256], index: 4, kind: output, shape index: {1}]  }
   0x1 LB: > { %s2205_s16 = sadd.s32 4294967295, %s2169_s15   ;;  %p1992_p0 = scmp.ge.s32.totalorder %s2169_s15, 1  ;;  %s2169_s15 = sphi %s2199_s15, %s15_s15  }
   0x2   : > { %p161_p1 = scmp.lt.s32.totalorder %s2169_s15, 4 }
   0x4   : > { %p162_p2 = pnand %p1992_p0, %p161_p1 }
   0x6   : > { %165 = sbr.rel (%p162_p2) target bundleno = 489 (0x1e9), region = 32 }
   0xd   : > { %s1993_s17 = sshll.u32 %s2205_s16, 6  ;;  %p1998_p4 = scmp.ne.s32.totalorder %s2205_s16, 0 }
   0xe   : > { %p189_p3 = scmp.lt.s32.totalorder %s1993_s17, 191  ;;  %v2171_v0 = vmov (!%p1998_p4), 0.0  }
   0xf   : > { %205 = sbr.rel (%p1998_p4) target bundleno = 22 (0x16), region = 36  ;;  %206 = vst [vmem:[%s3477_s4] sm:$0xf] (!%p1998_p4), %v2171_v0 }
  0x10   : > { %s3551_s17 = smov (!%p189_p3, %s1993_s17), 191 }
  0x11   : > { %s1994_s18 = sshll.u32 %s3551_s17, 2  ;;  %s2050_s19 = sshll.u32 %s3551_s17, 4 }
  0x12   : > { %s2213_s22 = scalar_lea.vmem %s3473_s0, %s1994_s18  ;;  %s2218_s25 = scalar_lea.vmem %s3476_s3, %s2050_s19 }
  0x16 PF: > { %v2078_v1 = vld [vmem:[%s3474_s1 + $0x4] ss:$8 sps:$4 sm:$0xff]   ;;  %v2080_v2 = vld [vmem:[%s3474_s1] ss:$8 sps:$4 sm:$0xff]   ;;  %v2172_v3 = vmov 0   ;;  %v2104_v22 = vld [vmem:[%s2213_s22 + $0x10] sm:$0xff]   ;;  %v289_v50 = vlaneseq }
  0x17   : > { %603 = vmatprep.mubr.bf16.mxu0 %v2172_v3  ;;  %763 = vmatprep.mubr.bf16.mxu1 %v2172_v3  ;;  %v2081_v4 = vld [vmem:[%s3474_s1 + $0x14] ss:$8 sps:$4 sm:$0xff]   ;;  %v2083_v5 = vld [vmem:[%s3474_s1 + $0x10] ss:$8 sps:$4 sm:$0xff]   ;;  %v2084_v6 = vld [vmem:[%s3474_s1 + $0x24] ss:$8 sps:$4 sm:$0xff]  }
  0x18   : > { %571 = vmatprep.subr.bf16.mxu0 %v2078_v1  ;;  %2051 = vmatprep.subr.bf16.mxu1 %v2078_v1  ;;  %v2086_v7 = vld [vmem:[%s3474_s1 + $0x20] ss:$8 sps:$4 sm:$0xff]   ;;  %v2087_v8 = vld [vmem:[%s3474_s1 + $0x34] ss:$8 sps:$4 sm:$0xff]   ;;  %v2089_v9 = vld [vmem:[%s3474_s1 + $0x30] ss:$8 sps:$4 sm:$0xff]  }
  0x19   : > { %572 = vmatpush1.bf16.msra.mxu0 %v2080_v2  ;;  %2059 = vmatpush1.bf16.msra.mxu1 %v2080_v2  ;;  %v2090_v10 = vld [vmem:[%s3474_s1 + $0x44] ss:$8 sps:$4 sm:$0xff]   ;;  %v2092_v11 = vld [vmem:[%s3474_s1 + $0x40] ss:$8 sps:$4 sm:$0xff]   ;;  %v2093_v12 = vld [vmem:[%s3474_s1 + $0x54] ss:$8 sps:$4 sm:$0xff]  }
  0x1a   : > { %573 = vmatprep.subr.bf16.mxu0 %v2081_v4  ;;  %2052 = vmatprep.subr.bf16.mxu1 %v2081_v4  ;;  %v2095_v13 = vld [vmem:[%s3474_s1 + $0x50] ss:$8 sps:$4 sm:$0xff]   ;;  %v2096_v14 = vld [vmem:[%s3474_s1 + $0x64] ss:$8 sps:$4 sm:$0xff]   ;;  %v2098_v15 = vld [vmem:[%s3474_s1 + $0x60] ss:$8 sps:$4 sm:$0xff]  }
  0x1b   : > { %v2099_v16 = vld [vmem:[%s3474_s1 + $0x74] ss:$8 sps:$4 sm:$0xff]   ;;  %v2101_v17 = vld [vmem:[%s3474_s1 + $0x70] ss:$8 sps:$4 sm:$0xff]   ;;  %v2102_v18 = vld [vmem:[%s2213_s22] sm:$0xff]   ;;  %v2336_v51 = vshrl.u32 %v289_v50, 7 }
  0x1c   : > { %v2110_v19 = vld [vmem:[%s2213_s22 + $0x80] sm:$0xff]   ;;  %v2103_v20 = vld [vmem:[%s2213_s22 + $0x8] sm:$0xff]   ;;  %v2114_v23 = vld [vmem:[%s2213_s22 + $0x90] sm:$0xff]   ;;  %s2047_s12 = sshll.u32 %s2205_s16, 9 }
  0x1d   : > { %574 = vmatpush1.bf16.msra.mxu0 %v2083_v5  ;;  %2060 = vmatpush1.bf16.msra.mxu1 %v2083_v5  ;;  %v2112_v21 = vld [vmem:[%s2213_s22 + $0x88] sm:$0xff]   ;;  %v2105_v24 = vld [vmem:[%s2213_s22 + $0x18] sm:$0xff]   ;;  %v2106_v26 = vld [vmem:[%s2213_s22 + $0x20] sm:$0xff]   ;;  %v291_v52 = vsub.s32 0, %v2336_v51  ;;  %v2343_v54 = vstv %s2047_s12  ;;  %v295_v55 = vsub.s32 1, %v2336_v51  ;;  %v927_v56 = vadd.s32 8, %v2336_v51 }
  0x1e   : > { %575 = vmatprep.subr.bf16.mxu0 %v2084_v6  ;;  %2053 = vmatprep.subr.bf16.mxu1 %v2084_v6  ;;  %v2116_v25 = vld [vmem:[%s2213_s22 + $0x98] sm:$0xff]   ;;  %v2118_v27 = vld [vmem:[%s2213_s22 + $0xa0] sm:$0xff]   ;;  %v2107_v28 = vld [vmem:[%s2213_s22 + $0x28] sm:$0xff]   ;;  %v928_v57 = vadd.s32 16, %v2336_v51  ;;  %v929_v59 = vadd.s32 24, %v2336_v51  ;;  %v2353_v60 = vadd.s32 %v2343_v54, %v2336_v51  ;;  %v930_v61 = vadd.s32 32, %v2336_v51 }
  0x1f   : > { %v2120_v29 = vld [vmem:[%s2213_s22 + $0xa8] sm:$0xff]   ;;  %v2108_v30 = vld [vmem:[%s2213_s22 + $0x30] sm:$0xff]   ;;  %v2109_v32 = vld [vmem:[%s2213_s22 + $0x38] sm:$0xff]   ;;  %v931_v62 = vadd.s32 40, %v2336_v51  ;;  %v932_v63 = vadd.s32 48, %v2336_v51  ;;  %v933_v0 = vadd.s32 56, %v2336_v51  ;;  %v2365_v5 = vadd.s32 %v2343_v54, %v927_v56 }
  0x20   : > { %v2122_v31 = vld [vmem:[%s2213_s22 + $0xb0] sm:$0xff]   ;;  %v2124_v33 = vld [vmem:[%s2213_s22 + $0xb8] sm:$0xff]   ;;  %v2111_v34 = vld [vmem:[%s2213_s22 + $0x40] sm:$0xff]   ;;  %v934_v1 = vadd.s32 64, %v2336_v51  ;;  %v935_v2 = vadd.s32 72, %v2336_v51  ;;  %v2368_v6 = vadd.s32 %v2343_v54, %v928_v57  ;;  %vm1055_vm0 = vcmp.lt.s32.totalorder %v2353_v60, 1200 }
  0x21   : > { %576 = vmatpush1.bf16.msra.mxu0 %v2086_v7  ;;  %2061 = vmatpush1.bf16.msra.mxu1 %v2086_v7  ;;  %v2126_v35 = vld [vmem:[%s2213_s22 + $0xc0] sm:$0xff]   ;;  %v2113_v36 = vld [vmem:[%s2213_s22 + $0x48] sm:$0xff]   ;;  %v2115_v38 = vld [vmem:[%s2213_s22 + $0x50] sm:$0xff]   ;;  %v937_v7 = vadd.s32 88, %v2336_v51  ;;  %vm1056_vm1 = vcmp.lt.s32.totalorder %v2365_v5, 1200 }
  0x22   : > { %577 = vmatprep.subr.bf16.mxu0 %v2087_v8  ;;  %2054 = vmatprep.subr.bf16.mxu1 %v2087_v8  ;;  %v2127_v37 = vld [vmem:[%s2213_s22 + $0xc8] sm:$0xff]   ;;  %v2128_v39 = vld [vmem:[%s2213_s22 + $0xd0] sm:$0xff]   ;;  %v2117_v40 = vld [vmem:[%s2213_s22 + $0x58] sm:$0xff]   ;;  %v2372_v8 = vadd.s32 %v2343_v54, %v929_v59  ;;  %vm1057_vm4 = vcmp.lt.s32.totalorder %v2368_v6, 1200 }
  0x23   : > { %v2129_v41 = vld [vmem:[%s2213_s22 + $0xd8] sm:$0xff]   ;;  %v2119_v42 = vld [vmem:[%s2213_s22 + $0x60] sm:$0xff]   ;;  %v2121_v44 = vld [vmem:[%s2213_s22 + $0x68] sm:$0xff]  }
  0x24   : > { %v2130_v43 = vld [vmem:[%s2213_s22 + $0xe0] sm:$0xff]   ;;  %v2131_v45 = vld [vmem:[%s2213_s22 + $0xe8] sm:$0xff]   ;;  %v2123_v46 = vld [vmem:[%s2213_s22 + $0x70] sm:$0xff]   ;;  %vm1058_vm6 = vcmp.lt.s32.totalorder %v2372_v8, 1200 }
  0x25   : > { %578 = vmatpush1.bf16.msra.mxu0 %v2089_v9  ;;  %2062 = vmatpush1.bf16.msra.mxu1 %v2089_v9  ;;  %v2132_v47 = vld [vmem:[%s2213_s22 + $0xf0] sm:$0xff]   ;;  %v2125_v48 = vld [vmem:[%s2213_s22 + $0x78] sm:$0xff]   ;;  %v287_v53 = vld [vmem:[%s3475_s2] sm:$0x3]  ;;  %v938_v9 = vadd.s32 96, %v2336_v51 }
  0x26   : > { %579 = vmatprep.subr.bf16.mxu0 %v2090_v10  ;;  %2055 = vmatprep.subr.bf16.mxu1 %v2090_v10  ;;  %v2133_v49 = vld [vmem:[%s2213_s22 + $0xf8] sm:$0xff]   ;;  %v2348_v58 = vrot.slane %v287_v53, %v291_v52  ;;  %v2362_v4 = vrot.slane %v287_v53, %v295_v55  ;;  %v958_v10 = vadd.s32 256, %v2336_v51 }
  0x29   : > { %580 = vmatpush1.bf16.msra.mxu0 %v2092_v11  ;;  %2063 = vmatpush1.bf16.msra.mxu1 %v2092_v11  ;;  %v959_v11 = vadd.s32 264, %v2336_v51 }
  0x2a   : > { %581 = vmatprep.subr.bf16.mxu0 %v2093_v12  ;;  %2056 = vmatprep.subr.bf16.mxu1 %v2093_v12  ;;  %v2378_v12 = vadd.s32 %v2343_v54, %v930_v61  ;;  %v948_v61 = vadd.s32 176, %v2336_v51 }
  0x2c   : > { %vm1059_vm8 = vcmp.lt.s32.totalorder %v2378_v12, 1200 }
  0x2d   : > { %582 = vmatpush1.bf16.msra.mxu0 %v2095_v13  ;;  %2064 = vmatpush1.bf16.msra.mxu1 %v2095_v13  ;;  %v2381_v13 = vadd.s32 %v2343_v54, %v931_v62 }
  0x2e   : > { %583 = vmatprep.subr.bf16.mxu0 %v2096_v14  ;;  %2057 = vmatprep.subr.bf16.mxu1 %v2096_v14  ;;  %v2384_v14 = vadd.s32 %v2343_v54, %v932_v63 }
  0x2f   : > { %vm1060_vm10 = vcmp.lt.s32.totalorder %v2381_v13, 1200 }
  0x30   : > { %vm1061_vm12 = vcmp.lt.s32.totalorder %v2384_v14, 1200 }
  0x31   : > { %584 = vmatpush1.bf16.msra.mxu0 %v2098_v15  ;;  %2065 = vmatpush1.bf16.msra.mxu1 %v2098_v15  ;;  %v960_v15 = vadd.s32 272, %v2336_v51 }
  0x32   : > { %585 = vmatprep.subr.bf16.mxu0 %v2099_v16  ;;  %2058 = vmatprep.subr.bf16.mxu1 %v2099_v16  ;;  %v2389_v16 = vadd.s32 %v2343_v54, %v933_v0 }
  0x34   : > { %vm1062_vm13 = vcmp.lt.s32.totalorder %v2389_v16, 1200 }
  0x35   : > { %586 = vmatpush1.bf16.msra.mxu0 %v2101_v17  ;;  %2066 = vmatpush1.bf16.msra.mxu1 %v2101_v17  ;;  %v2392_v17 = vadd.s32 %v2343_v54, %v934_v1 }
  0x38   : > { %604 = vmatmul.mubr.bf16.vlgmr.msra.gmra.mrb[0].mxu0 %v2102_v18  ;;  %764 = vmatmul.mubr.bf16.vlgmr.msra.gmra.mrb[0].mxu1 %v2110_v19  ;;  %v2395_v18 = vadd.s32 %v2343_v54, %v935_v2 }
  0x39   : > { %613 = vmatprep.mubr.bf16.mxu0 %v2172_v3  ;;  %773 = vmatprep.mubr.bf16.mxu1 %v2172_v3 }
  0x40   : > { %614 = vmatmul.mubr.bf16.gmra.mrb[4].mxu0 %v2103_v20  ;;  %774 = vmatmul.mubr.bf16.gmra.mrb[4].mxu1 %v2112_v21  ;;  %v2401_v20 = vadd.s32 %v2343_v54, %v937_v7  ;;  %v939_v21 = vadd.s32 104, %v2336_v51 }
  0x41   : > { %623 = vmatprep.mubr.bf16.mxu0 %v2172_v3  ;;  %783 = vmatprep.mubr.bf16.mxu1 %v2172_v3 }
  0x48   : > { %624 = vmatmul.mubr.bf16.gmra.mrb[8].mxu0 %v2104_v22  ;;  %784 = vmatmul.mubr.bf16.gmra.mrb[8].mxu1 %v2114_v23  ;;  %v940_v22 = vadd.s32 112, %v2336_v51  ;;  %v941_v23 = vadd.s32 120, %v2336_v51 }
  0x49   : > { %633 = vmatprep.mubr.bf16.mxu0 %v2172_v3  ;;  %793 = vmatprep.mubr.bf16.mxu1 %v2172_v3 }
  0x50   : > { %634 = vmatmul.mubr.bf16.gmra.mrb[12].mxu0 %v2105_v24  ;;  %794 = vmatmul.mubr.bf16.gmra.mrb[12].mxu1 %v2116_v25  ;;  %v2408_v24 = vadd.s32 %v2343_v54, %v938_v9  ;;  %v1023_v25 = vadd.s32 %v2343_v54, %v958_v10 }
  0x51   : > { %643 = vmatprep.mubr.bf16.mxu0 %v2172_v3  ;;  %803 = vmatprep.mubr.bf16.mxu1 %v2172_v3 }
  0x52   : > { %vm1087_vm2 = vcmp.lt.s32.totalorder %v1023_v25, 1200 }
  0x58   : > { %644 = vmatmul.mubr.bf16.gmra.mrb[16].mxu0 %v2106_v26  ;;  %804 = vmatmul.mubr.bf16.gmra.mrb[16].mxu1 %v2118_v27  ;;  %v2412_v26 = vadd.s32 %v2343_v54, %v959_v11  ;;  %v942_v27 = vadd.s32 128, %v2336_v51 }
  0x59   : > { %653 = vmatprep.mubr.bf16.mxu0 %v2172_v3  ;;  %813 = vmatprep.mubr.bf16.mxu1 %v2172_v3 }
  0x5a   : > { %vm1088_vm3 = vcmp.lt.s32.totalorder %v2412_v26, 1200 }
  0x60   : > { %654 = vmatmul.mubr.bf16.gmra.mrb[20].mxu0 %v2107_v28  ;;  %814 = vmatmul.mubr.bf16.gmra.mrb[20].mxu1 %v2120_v29  ;;  %v943_v28 = vadd.s32 136, %v2336_v51  ;;  %v2417_v29 = vadd.s32 %v2343_v54, %v960_v15 }
  0x61   : > { %663 = vmatprep.mubr.bf16.mxu0 %v2172_v3  ;;  %823 = vmatprep.mubr.bf16.mxu1 %v2172_v3 }
  0x62   : > { %vm1089_vm5 = vcmp.lt.s32.totalorder %v2417_v29, 1200 }
  0x68   : > { %664 = vmatmul.mubr.bf16.gmra.mrb[24].mxu0 %v2108_v30  ;;  %824 = vmatmul.mubr.bf16.gmra.mrb[24].mxu1 %v2122_v31  ;;  %v961_v30 = vadd.s32 280, %v2336_v51  ;;  %v944_v31 = vadd.s32 144, %v2336_v51 }
  0x69   : > { %673 = vmatprep.mubr.bf16.mxu0 %v2172_v3  ;;  %833 = vmatprep.mubr.bf16.mxu1 %v2172_v3 }
  0x70   : > { %674 = vmatmul.mubr.bf16.gmra.mrb[28].mxu0 %v2109_v32  ;;  %834 = vmatmul.mubr.bf16.gmra.mrb[28].mxu1 %v2124_v33  ;;  %v945_v32 = vadd.s32 152, %v2336_v51  ;;  %v962_v33 = vadd.s32 288, %v2336_v51 }
  0x71   : > { %683 = vmatprep.mubr.bf16.mxu0 %v2172_v3  ;;  %843 = vmatprep.mubr.bf16.mxu1 %v2172_v3 }
  0x78   : > { %684 = vmatmul.mubr.bf16.gmra.mrb[32].mxu0 %v2111_v34  ;;  %844 = vmatmul.mubr.bf16.gmra.mrb[32].mxu1 %v2126_v35  ;;  %v963_v34 = vadd.s32 296, %v2336_v51  ;;  %v946_v35 = vadd.s32 160, %v2336_v51 }
  0x79   : > { %693 = vmatprep.mubr.bf16.mxu0 %v2172_v3  ;;  %853 = vmatprep.mubr.bf16.mxu1 %v2172_v3 }
  0x7a   : > { %v2459_v50 = vadd.s32 %v2343_v54, %v963_v34  ;;  %v2462_v52 = vadd.s32 %v2343_v54, %v946_v35 }
  0x7c   : > { %vm1092_vm11 = vcmp.lt.s32.totalorder %v2459_v50, 1200 }
  0x80   : > { %694 = vmatmul.mubr.bf16.gmra.mrb[36].mxu0 %v2113_v36  ;;  %854 = vmatmul.mubr.bf16.gmra.mrb[36].mxu1 %v2127_v37  ;;  %v2426_v36 = vadd.s32 %v2343_v54, %v939_v21  ;;  %v2429_v37 = vadd.s32 %v2343_v54, %v940_v22 }
  0x81   : > { %703 = vmatprep.mubr.bf16.mxu0 %v2172_v3  ;;  %863 = vmatprep.mubr.bf16.mxu1 %v2172_v3 }
  0x88   : > { %704 = vmatmul.mubr.bf16.gmra.mrb[40].mxu0 %v2115_v38  ;;  %864 = vmatmul.mubr.bf16.gmra.mrb[40].mxu1 %v2128_v39  ;;  %v2432_v38 = vadd.s32 %v2343_v54, %v941_v23  ;;  %v947_v39 = vadd.s32 168, %v2336_v51 }
  0x89   : > { %713 = vmatprep.mubr.bf16.mxu0 %v2172_v3  ;;  %873 = vmatprep.mubr.bf16.mxu1 %v2172_v3 }
  0x8a   : > { %v2467_v59 = vadd.s32 %v2343_v54, %v947_v39 }
  0x90   : > { %714 = vmatmul.mubr.bf16.gmra.mrb[44].mxu0 %v2117_v40  ;;  %874 = vmatmul.mubr.bf16.gmra.mrb[44].mxu1 %v2129_v41  ;;  %v2436_v40 = vadd.s32 %v2343_v54, %v942_v27  ;;  %v964_v41 = vadd.s32 304, %v2336_v51  ;;  %v949_v27 = vadd.s32 184, %v2336_v51 }
  0x91   : > { %723 = vmatprep.mubr.bf16.mxu0 %v2172_v3  ;;  %883 = vmatprep.mubr.bf16.mxu1 %v2172_v3 }
  0x92   : > { %v2474_v2 = vadd.s32 %v2343_v54, %v964_v41  ;;  %v2512_v5 = vadd.s32 %v2343_v54, %v949_v27 }
  0x94   : > { %vm1093_vm14 = vcmp.lt.s32.totalorder %v2474_v2, 1200 }
  0x98   : > { %724 = vmatmul.mubr.bf16.gmra.mrb[48].mxu0 %v2119_v42  ;;  %884 = vmatmul.mubr.bf16.gmra.mrb[48].mxu1 %v2130_v43  ;;  %v965_v42 = vadd.s32 312, %v2336_v51  ;;  %v2442_v43 = vadd.s32 %v2343_v54, %v943_v28  ;;  %v966_v28 = vadd.s32 320, %v2336_v51 }
  0x99   : > { %733 = vmatprep.mubr.bf16.mxu0 %v2172_v3  ;;  %893 = vmatprep.mubr.bf16.mxu1 %v2172_v3 }
  0xa0   : > { %734 = vmatmul.mubr.bf16.gmra.mrb[52].mxu0 %v2121_v44  ;;  %894 = vmatmul.mubr.bf16.gmra.mrb[52].mxu1 %v2131_v45  ;;  %v2445_v44 = vadd.s32 %v2343_v54, %v961_v30  ;;  %v2448_v45 = vadd.s32 %v2343_v54, %v944_v31 }
  0xa1   : > { %743 = vmatprep.mubr.bf16.mxu0 %v2172_v3  ;;  %903 = vmatprep.mubr.bf16.mxu1 %v2172_v3 }
  0xa2   : > { %vm1090_vm7 = vcmp.lt.s32.totalorder %v2445_v44, 1200 }
  0xa8   : > { %744 = vmatmul.mubr.bf16.gmra.mrb[56].mxu0 %v2123_v46  ;;  %904 = vmatmul.mubr.bf16.gmra.mrb[56].mxu1 %v2132_v47 }
  0xa9   : > { %753 = vmatprep.mubr.bf16.mxu0 %v2172_v3  ;;  %913 = vmatprep.mubr.bf16.mxu1 %v2172_v3  ;;  %v936_v3 = vadd.s32 80, %v2336_v51 }
  0xab   : > { %v2398_v19 = vadd.s32 %v2343_v54, %v936_v3  ;;  %v2477_v3 = vadd.s32 %v2343_v54, %v965_v42 }
  0xad   : > { %vm1094_vm15 = vcmp.lt.s32.totalorder %v2477_v3, 1200 }
  0xb0   : > { %754 = vmatmul.mubr.bf16.gmra.mrb[60].mxu0 %v2125_v48  ;;  %914 = vmatmul.mubr.bf16.gmra.mrb[60].mxu1 %v2133_v49  ;;  %v2453_v48 = vadd.s32 %v2343_v54, %v945_v32  ;;  %v2456_v49 = vadd.s32 %v2343_v54, %v962_v33  ;;  %v967_v32 = vadd.s32 328, %v2336_v51 }
  0xb2   : > { %vm1091_vm9 = vcmp.lt.s32.totalorder %v2456_v49, 1200  ;;  %v2527_v26 = vadd.s32 %v2343_v54, %v967_v32 }
 0x10b   : > { %v605_v46 = vpop.f32.mrb[0].mxu0  ;;  %v765_v47 = vpop.f32.mrb[0].mxu1 }
 0x10c   : > { %v606_v53 = vadd.f32 %v605_v46, %v2348_v58  ;;  %v607_v55 = vpop.f32.mrb[1].mxu0  ;;  %v766_v56 = vadd.f32 %v765_v47, %v2348_v58  ;;  %v767_v57 = vpop.f32.mrb[1].mxu1 }
 0x10d   : > { %v608_v62 = vadd.f32 %v607_v55, %v2362_v4  ;;  %v609_v63 = vpop.f32.mrb[2].mxu0  ;;  %v768_v0 = vadd.f32 %v767_v57, %v2362_v4  ;;  %v769_v1 = vpop.f32.mrb[2].mxu1  ;;  %v950_v57 = vadd.s32 192, %v2336_v51 }
 0x10e   : > { %v1247_v7 = vsel %vm1055_vm0, %v606_v53, 0.0  ;;  %v610_v9 = vadd.f32 %v609_v63, %v2348_v58  ;;  %v611_v10 = vpop.f32.mrb[3].mxu0  ;;  %v1311_v11 = vsel %vm1087_vm2, %v766_v56, 0.0  ;;  %v770_v15 = vadd.f32 %v769_v1, %v2348_v58  ;;  %v771_v21 = vpop.f32.mrb[3].mxu1 }
 0x10f   : > { %1375 = vst [vmem:[%s2218_s25] sm:$0xff] %v1247_v7  ;;  %v1248_v22 = vsel %vm1055_vm0, %v608_v62, 0.0  ;;  %v612_v23 = vadd.f32 %v611_v10, %v2362_v4  ;;  %1439 = vst [vmem:[%s2218_s25 + $0x200] sm:$0xff] %v1311_v11  ;;  %v1312_v31 = vsel %vm1087_vm2, %v768_v0, 0.0  ;;  %v1642_v33 = vmul.f32 %v1247_v7, %v1247_v7 }
 0x110   : > { %1376 = vst [vmem:[%s2218_s25 + $0x8] sm:$0xff] %v1248_v22  ;;  %v1249_v30 = vsel %vm1056_vm1, %v610_v9, 0.0  ;;  %v1313_v60 = vsel %vm1088_vm3, %v770_v15, 0.0  ;;  %1440 = vst [vmem:[%s2218_s25 + $0x208] sm:$0xff] %v1312_v31  ;;  %v1643_v41 = vmul.f32 %v1248_v22, %v1248_v22  ;;  %v772_v46 = vadd.f32 %v771_v21, %v2362_v4 }
 0x111   : > { %1377 = vst [vmem:[%s2218_s25 + $0x10] sm:$0xff] %v1249_v30  ;;  %v1504_v34 = vadd.f32 %v1249_v30, %v1247_v7  ;;  %v1644_v35 = vmul.f32 %v1249_v30, %v1249_v30  ;;  %v1250_v39 = vsel %vm1056_vm1, %v612_v23, 0.0  ;;  %1441 = vst [vmem:[%s2218_s25 + $0x210] sm:$0xff] %v1313_v60  ;;  %v2509_v56 = vadd.s32 %v2343_v54, %v948_v61 }
 0x112   : > { %1378 = vst [vmem:[%s2218_s25 + $0x18] sm:$0xff] %v1250_v39  ;;  %v1573_v25 = vadd.f32 %v1250_v39, %v1248_v22  ;;  %v1645_v42 = vmul.f32 %v1250_v39, %v1250_v39  ;;  %v1314_v1 = vsel %vm1088_vm3, %v772_v46, 0.0  ;;  %v2524_v21 = vadd.s32 %v2343_v54, %v966_v28 }
 0x113   : > { %v1770_v47 = vadd.f32 %v1644_v35, %v1642_v33  ;;  %v615_v53 = vpop.f32.mrb[4].mxu0  ;;  %v775_v55 = vpop.f32.mrb[4].mxu1  ;;  %1442 = vst [vmem:[%s2218_s25 + $0x218] sm:$0xff] %v1314_v1  ;;  %v951_v46 = vadd.s32 200, %v2336_v51  ;;  %vm1063_vm0 = vcmp.lt.s32.totalorder %v2392_v17, 1200  ;;  %vm1064_vm1 = vcmp.lt.s32.totalorder %v2395_v18, 1200 }
 0x114   : > { %v1839_v62 = vadd.f32 %v1645_v42, %v1643_v41  ;;  %v616_v63 = vadd.f32 %v615_v53, %v2348_v58  ;;  %v617_v0 = vpop.f32.mrb[5].mxu0  ;;  %v776_v7 = vadd.f32 %v775_v55, %v2348_v58  ;;  %v777_v9 = vpop.f32.mrb[5].mxu1  ;;  %vm1095_vm2 = vcmp.lt.s32.totalorder %v2524_v21, 1200 }
 0x115   : > { %v618_v10 = vadd.f32 %v617_v0, %v2362_v4  ;;  %v619_v61 = vpop.f32.mrb[6].mxu0  ;;  %v778_v11 = vadd.f32 %v777_v9, %v2362_v4  ;;  %v779_v15 = vpop.f32.mrb[6].mxu1  ;;  %vm1096_vm3 = vcmp.lt.s32.totalorder %v2527_v26, 1200 }
 0x116   : > { %v1251_v22 = vsel %vm1057_vm4, %v616_v63, 0.0  ;;  %v620_v23 = vadd.f32 %v619_v61, %v2348_v58  ;;  %v621_v27 = vpop.f32.mrb[7].mxu0  ;;  %v1315_v30 = vsel %vm1089_vm5, %v776_v7, 0.0  ;;  %v780_v31 = vadd.f32 %v779_v15, %v2348_v58  ;;  %v781_v60 = vpop.f32.mrb[7].mxu1 }
 0x117   : > { %1379 = vst [vmem:[%s2218_s25 + $0x20] sm:$0xff] %v1251_v22  ;;  %v1505_v33 = vadd.f32 %v1504_v34, %v1251_v22  ;;  %v1646_v28 = vmul.f32 %v1251_v22, %v1251_v22  ;;  %v1252_v32 = vsel %vm1057_vm4, %v618_v10, 0.0  ;;  %v622_v35 = vadd.f32 %v621_v27, %v2362_v4  ;;  %1443 = vst [vmem:[%s2218_s25 + $0x220] sm:$0xff] %v1315_v30 }
 0x118   : > { %1380 = vst [vmem:[%s2218_s25 + $0x28] sm:$0xff] %v1252_v32  ;;  %v1574_v39 = vadd.f32 %v1573_v25, %v1252_v32  ;;  %v1647_v41 = vmul.f32 %v1252_v32, %v1252_v32  ;;  %v1253_v42 = vsel %vm1058_vm6, %v620_v23, 0.0  ;;  %v1316_v25 = vsel %vm1089_vm5, %v778_v11, 0.0 }
 0x119   : > { %v1771_v53 = vadd.f32 %v1770_v47, %v1646_v28  ;;  %1381 = vst [vmem:[%s2218_s25 + $0x30] sm:$0xff] %v1253_v42  ;;  %v1506_v34 = vadd.f32 %v1505_v33, %v1253_v42  ;;  %v1648_v55 = vmul.f32 %v1253_v42, %v1253_v42  ;;  %v1254_v6 = vsel %vm1058_vm6, %v622_v35, 0.0  ;;  %1444 = vst [vmem:[%s2218_s25 + $0x228] sm:$0xff] %v1316_v25 }
 0x11a   : > { %v1840_v63 = vadd.f32 %v1839_v62, %v1647_v41  ;;  %1382 = vst [vmem:[%s2218_s25 + $0x38] sm:$0xff] %v1254_v6  ;;  %v1575_v0 = vadd.f32 %v1574_v39, %v1254_v6  ;;  %v1649_v1 = vmul.f32 %v1254_v6, %v1254_v6  ;;  %v1317_v47 = vsel %vm1090_vm7, %v780_v31, 0.0 }
 0x11b   : > { %v1772_v7 = vadd.f32 %v1771_v53, %v1648_v55  ;;  %v625_v9 = vpop.f32.mrb[8].mxu0  ;;  %v782_v8 = vadd.f32 %v781_v60, %v2362_v4  ;;  %v785_v62 = vpop.f32.mrb[8].mxu1  ;;  %v2557_v10 = vadd.s32 %v2343_v54, %v950_v57  ;;  %1445 = vst [vmem:[%s2218_s25 + $0x230] sm:$0xff] %v1317_v47  ;;  %v2563_v23 = vadd.s32 %v2343_v54, %v951_v46 }
 0x11c   : > { %v1841_v61 = vadd.f32 %v1840_v63, %v1649_v1  ;;  %v626_v29 = vadd.f32 %v625_v9, %v2348_v58  ;;  %v627_v11 = vpop.f32.mrb[9].mxu0  ;;  %v786_v15 = vadd.f32 %v785_v62, %v2348_v58  ;;  %v787_v22 = vpop.f32.mrb[9].mxu1  ;;  %v968_v60 = vadd.s32 336, %v2336_v51 }
 0x11d   : > { %v628_v27 = vadd.f32 %v627_v11, %v2362_v4  ;;  %v629_v30 = vpop.f32.mrb[10].mxu0  ;;  %v1318_v57 = vsel %vm1090_vm7, %v782_v8, 0.0  ;;  %v789_v31 = vpop.f32.mrb[10].mxu1  ;;  %v969_v33 = vadd.s32 344, %v2336_v51  ;;  %v788_v39 = vadd.f32 %v787_v22, %v2362_v4 }
 0x11e   : > { %v1255_v28 = vsel %vm1059_vm8, %v626_v29, 0.0  ;;  %v630_v32 = vadd.f32 %v629_v30, %v2348_v58  ;;  %v631_v35 = vpop.f32.mrb[11].mxu0  ;;  %1446 = vst [vmem:[%s2218_s25 + $0x238] sm:$0xff] %v1318_v57  ;;  %v1319_v44 = vsel %vm1091_vm9, %v786_v15, 0.0  ;;  %v791_v41 = vpop.f32.mrb[11].mxu1  ;;  %v952_v25 = vadd.s32 208, %v2336_v51 }
 0x11f   : > { %1383 = vst [vmem:[%s2218_s25 + $0x40] sm:$0xff] %v1255_v28  ;;  %v1507_v42 = vadd.f32 %v1506_v34, %v1255_v28  ;;  %v1650_v46 = vmul.f32 %v1255_v28, %v1255_v28  ;;  %v1256_v53 = vsel %vm1059_vm8, %v628_v27, 0.0  ;;  %v632_v55 = vadd.f32 %v631_v35, %v2362_v4  ;;  %1447 = vst [vmem:[%s2218_s25 + $0x240] sm:$0xff] %v1319_v44 }
 0x120   : > { %1384 = vst [vmem:[%s2218_s25 + $0x48] sm:$0xff] %v1256_v53  ;;  %v1576_v6 = vadd.f32 %v1575_v0, %v1256_v53  ;;  %v1651_v63 = vmul.f32 %v1256_v53, %v1256_v53  ;;  %v1257_v1 = vsel %vm1060_vm10, %v630_v32, 0.0  ;;  %v1320_v0 = vsel %vm1091_vm9, %v788_v39, 0.0 }
 0x121   : > { %v1773_v9 = vadd.f32 %v1772_v7, %v1650_v46  ;;  %1385 = vst [vmem:[%s2218_s25 + $0x50] sm:$0xff] %v1257_v1  ;;  %v1508_v34 = vadd.f32 %v1507_v42, %v1257_v1  ;;  %v1652_v47 = vmul.f32 %v1257_v1, %v1257_v1  ;;  %v1258_v12 = vsel %vm1060_vm10, %v632_v55, 0.0  ;;  %1448 = vst [vmem:[%s2218_s25 + $0x248] sm:$0xff] %v1320_v0 }
 0x122   : > { %v1842_v8 = vadd.f32 %v1841_v61, %v1651_v63  ;;  %1386 = vst [vmem:[%s2218_s25 + $0x58] sm:$0xff] %v1258_v12  ;;  %v1577_v62 = vadd.f32 %v1576_v6, %v1258_v12  ;;  %v1653_v29 = vmul.f32 %v1258_v12, %v1258_v12  ;;  %v790_v7 = vadd.f32 %v789_v31, %v2348_v58 }
 0x123   : > { %v1774_v11 = vadd.f32 %v1773_v9, %v1652_v47  ;;  %v635_v15 = vpop.f32.mrb[12].mxu0  ;;  %v792_v22 = vadd.f32 %v791_v41, %v2362_v4  ;;  %v795_v13 = vpop.f32.mrb[12].mxu1  ;;  %v2600_v61 = vadd.s32 %v2343_v54, %v968_v60  ;;  %v2605_v32 = vadd.s32 %v2343_v54, %v969_v33 }
 0x124   : > { %v1843_v27 = vadd.f32 %v1842_v8, %v1653_v29  ;;  %v636_v30 = vadd.f32 %v635_v15, %v2348_v58  ;;  %v637_v49 = vpop.f32.mrb[13].mxu0  ;;  %v796_v57 = vadd.f32 %v795_v13, %v2348_v58  ;;  %v797_v28 = vpop.f32.mrb[13].mxu1  ;;  %v1321_v60 = vsel %vm1092_vm11, %v790_v7, 0.0 }
 0x125   : > { %v638_v31 = vadd.f32 %v637_v49, %v2362_v4  ;;  %v639_v35 = vpop.f32.mrb[14].mxu0  ;;  %v1322_v44 = vsel %vm1092_vm11, %v792_v22, 0.0  ;;  %v799_v39 = vpop.f32.mrb[14].mxu1  ;;  %v2615_v41 = vadd.s32 %v2343_v54, %v952_v25  ;;  %1449 = vst [vmem:[%s2218_s25 + $0x250] sm:$0xff] %v1321_v60  ;;  %v798_v53 = vadd.f32 %v797_v28, %v2362_v4 }
 0x126   : > { %v1259_v33 = vsel %vm1061_vm12, %v636_v30, 0.0  ;;  %v640_v42 = vadd.f32 %v639_v35, %v2348_v58  ;;  %v641_v46 = vpop.f32.mrb[15].mxu0  ;;  %1450 = vst [vmem:[%s2218_s25 + $0x258] sm:$0xff] %v1322_v44  ;;  %v801_v50 = vpop.f32.mrb[15].mxu1  ;;  %v2624_v55 = vadd.s32 216, %v2336_v51  ;;  %v1323_v8 = vsel %vm1093_vm14, %v796_v57, 0.0 }
 0x127   : > { %1387 = vst [vmem:[%s2218_s25 + $0x60] sm:$0xff] %v1259_v33  ;;  %v1509_v6 = vadd.f32 %v1508_v34, %v1259_v33  ;;  %v1654_v63 = vmul.f32 %v1259_v33, %v1259_v33  ;;  %v1260_v1 = vsel %vm1061_vm12, %v638_v31, 0.0  ;;  %v642_v25 = vadd.f32 %v641_v46, %v2362_v4  ;;  %1451 = vst [vmem:[%s2218_s25 + $0x260] sm:$0xff] %v1323_v8 }
 0x128   : > { %1388 = vst [vmem:[%s2218_s25 + $0x68] sm:$0xff] %v1260_v1  ;;  %v1578_v9 = vadd.f32 %v1577_v62, %v1260_v1  ;;  %v1655_v47 = vmul.f32 %v1260_v1, %v1260_v1  ;;  %v1261_v12 = vsel %vm1062_vm13, %v640_v42, 0.0  ;;  %v970_v22 = vadd.s32 352, %v2336_v51 }
 0x129   : > { %v1775_v29 = vadd.f32 %v1774_v11, %v1654_v63  ;;  %1389 = vst [vmem:[%s2218_s25 + $0x70] sm:$0xff] %v1261_v12  ;;  %v1510_v0 = vadd.f32 %v1509_v6, %v1261_v12  ;;  %v1656_v34 = vmul.f32 %v1261_v12, %v1261_v12  ;;  %v1262_v15 = vsel %vm1062_vm13, %v642_v25, 0.0 }
 0x12a   : > { %v1844_v14 = vadd.f32 %v1843_v27, %v1655_v47  ;;  %1390 = vst [vmem:[%s2218_s25 + $0x78] sm:$0xff] %v1262_v15  ;;  %v1579_v7 = vadd.f32 %v1578_v9, %v1262_v15  ;;  %v1657_v62 = vmul.f32 %v1262_v15, %v1262_v15  ;;  %vm1065_vm4 = vcmp.lt.s32.totalorder %v2398_v19, 1200 }
 0x12b   : > { %v1776_v13 = vadd.f32 %v1775_v29, %v1656_v34  ;;  %v645_v30 = vpop.f32.mrb[16].mxu0  ;;  %v1324_v11 = vsel %vm1093_vm14, %v798_v53, 0.0  ;;  %v800_v16 = vadd.f32 %v799_v39, %v2348_v58  ;;  %v802_v49 = vadd.f32 %v801_v50, %v2362_v4  ;;  %v805_v27 = vpop.f32.mrb[16].mxu1 }
 0x12c   : > { %v1845_v57 = vadd.f32 %v1844_v14, %v1657_v62  ;;  %v646_v28 = vadd.f32 %v645_v30, %v2348_v58  ;;  %v647_v31 = vpop.f32.mrb[17].mxu0  ;;  %1452 = vst [vmem:[%s2218_s25 + $0x268] sm:$0xff] %v1324_v11  ;;  %v806_v35 = vadd.f32 %v805_v27, %v2348_v58  ;;  %v807_v60 = vpop.f32.mrb[17].mxu1  ;;  %v971_v44 = vadd.s32 360, %v2336_v51 }
 0x12d   : > { %v648_v2 = vadd.f32 %v647_v31, %v2362_v4  ;;  %v649_v33 = vpop.f32.mrb[18].mxu0  ;;  %vm1066_vm5 = vcmp.lt.s32.totalorder %v2401_v20, 1200  ;;  %v1325_v39 = vsel %vm1094_vm15, %v800_v16, 0.0  ;;  %v1326_v42 = vsel %vm1094_vm15, %v802_v49, 0.0  ;;  %v809_v46 = vpop.f32.mrb[18].mxu1 }
 0x12e   : > { %vm1097_vm6 = vcmp.lt.s32.totalorder %v2600_v61, 1200  ;;  %v2659_v53 = vadd.s32 224, %v2336_v51  ;;  %v1263_v50 = vsel %vm1063_vm0, %v646_v28, 0.0  ;;  %v650_v6 = vadd.f32 %v649_v33, %v2348_v58  ;;  %v651_v63 = vpop.f32.mrb[19].mxu0  ;;  %1453 = vst [vmem:[%s2218_s25 + $0x270] sm:$0xff] %v1325_v39  ;;  %1454 = vst [vmem:[%s2218_s25 + $0x278] sm:$0xff] %v1326_v42 }
 0x12f   : > { %v808_v1 = vadd.f32 %v807_v60, %v2362_v4  ;;  %v811_v3 = vpop.f32.mrb[19].mxu1  ;;  %v2668_v25 = vadd.s32 %v2343_v54, %v970_v22  ;;  %1391 = vst [vmem:[%s2218_s25 + $0x80] sm:$0xff] %v1263_v50  ;;  %v1511_v9 = vadd.f32 %v1510_v0, %v1263_v50  ;;  %v1658_v47 = vmul.f32 %v1263_v50, %v1263_v50 }
 0x130   : > { %v1264_v12 = vsel %vm1063_vm0, %v648_v2, 0.0  ;;  %v652_v8 = vadd.f32 %v651_v63, %v2362_v4  ;;  %v1265_v15 = vsel %vm1064_vm1, %v650_v6, 0.0  ;;  %v1327_v14 = vsel %vm1095_vm2, %v806_v35, 0.0 }
 0x131   : > { %1392 = vst [vmem:[%s2218_s25 + $0x88] sm:$0xff] %v1264_v12  ;;  %v1580_v29 = vadd.f32 %v1579_v7, %v1264_v12  ;;  %v1659_v34 = vmul.f32 %v1264_v12, %v1264_v12  ;;  %v1777_v62 = vadd.f32 %v1776_v13, %v1658_v47  ;;  %1393 = vst [vmem:[%s2218_s25 + $0x90] sm:$0xff] %v1265_v15  ;;  %vm1098_vm7 = vcmp.lt.s32.totalorder %v2605_v32, 1200 }
 0x132   : > { %v1512_v22 = vadd.f32 %v1511_v9, %v1265_v15  ;;  %v1660_v0 = vmul.f32 %v1265_v15, %v1265_v15  ;;  %v1266_v30 = vsel %vm1064_vm1, %v652_v8, 0.0  ;;  %1455 = vst [vmem:[%s2218_s25 + $0x280] sm:$0xff] %v1327_v14  ;;  %v972_v16 = vadd.s32 368, %v2336_v51 }
 0x133   : > { %v1846_v17 = vadd.f32 %v1845_v57, %v1659_v34  ;;  %1394 = vst [vmem:[%s2218_s25 + $0x98] sm:$0xff] %v1266_v30  ;;  %v1581_v11 = vadd.f32 %v1580_v29, %v1266_v30  ;;  %v1661_v7 = vmul.f32 %v1266_v30, %v1266_v30  ;;  %v655_v27 = vpop.f32.mrb[20].mxu0  ;;  %vm1067_vm8 = vcmp.lt.s32.totalorder %v2408_v24, 1200  ;;  %v815_v57 = vpop.f32.mrb[20].mxu1 }
 0x134   : > { %v1778_v49 = vadd.f32 %v1777_v62, %v1660_v0  ;;  %v1328_v13 = vsel %vm1095_vm2, %v808_v1, 0.0  ;;  %v810_v18 = vadd.f32 %v809_v46, %v2348_v58  ;;  %v812_v28 = vadd.f32 %v811_v3, %v2362_v4  ;;  %v657_v60 = vpop.f32.mrb[21].mxu0  ;;  %v817_v33 = vpop.f32.mrb[21].mxu1 }
 0x135   : > { %v1847_v31 = vadd.f32 %v1846_v17, %v1661_v7  ;;  %v656_v35 = vadd.f32 %v655_v27, %v2348_v58  ;;  %1456 = vst [vmem:[%s2218_s25 + $0x288] sm:$0xff] %v1328_v13  ;;  %v816_v2 = vadd.f32 %v815_v57, %v2348_v58  ;;  %v2695_v39 = vadd.s32 %v2343_v54, %v971_v44  ;;  %v659_v42 = vpop.f32.mrb[22].mxu0  ;;  %v819_v6 = vpop.f32.mrb[22].mxu1 }
 0x136   : > { %v658_v21 = vadd.f32 %v657_v60, %v2362_v4  ;;  %vm1068_vm9 = vcmp.lt.s32.totalorder %v2426_v36, 1200  ;;  %v1329_v46 = vsel %vm1096_vm3, %v810_v18, 0.0  ;;  %v1330_v50 = vsel %vm1096_vm3, %v812_v28, 0.0  ;;  %v661_v3 = vpop.f32.mrb[23].mxu0  ;;  %v821_v47 = vpop.f32.mrb[23].mxu1 }
 0x137   : > { %vm1099_vm10 = vcmp.lt.s32.totalorder %v2668_v25, 1200  ;;  %v973_v63 = vadd.s32 376, %v2336_v51  ;;  %v1267_v44 = vsel %vm1065_vm4, %v656_v35, 0.0  ;;  %v660_v1 = vadd.f32 %v659_v42, %v2348_v58  ;;  %1457 = vst [vmem:[%s2218_s25 + $0x290] sm:$0xff] %v1329_v46  ;;  %1458 = vst [vmem:[%s2218_s25 + $0x298] sm:$0xff] %v1330_v50 }
 0x138   : > { %v818_v9 = vadd.f32 %v817_v33, %v2362_v4  ;;  %v2712_v26 = vadd.s32 %v2343_v54, %v972_v16  ;;  %1395 = vst [vmem:[%s2218_s25 + $0xa0] sm:$0xff] %v1267_v44  ;;  %v1513_v12 = vadd.f32 %v1512_v22, %v1267_v44  ;;  %v1662_v8 = vmul.f32 %v1267_v44, %v1267_v44 }
 0x139   : > { %v1268_v29 = vsel %vm1065_vm4, %v658_v21, 0.0  ;;  %v662_v34 = vadd.f32 %v661_v3, %v2362_v4  ;;  %v1269_v62 = vsel %vm1066_vm5, %v660_v1, 0.0  ;;  %v1331_v0 = vsel %vm1097_vm6, %v816_v2, 0.0 }
 0x13a   : > { %1396 = vst [vmem:[%s2218_s25 + $0xa8] sm:$0xff] %v1268_v29  ;;  %v1582_v15 = vadd.f32 %v1581_v11, %v1268_v29  ;;  %v1663_v14 = vmul.f32 %v1268_v29, %v1268_v29  ;;  %v1779_v30 = vadd.f32 %v1778_v49, %v1662_v8  ;;  %1397 = vst [vmem:[%s2218_s25 + $0xb0] sm:$0xff] %v1269_v62  ;;  %vm1100_vm11 = vcmp.lt.s32.totalorder %v2695_v39, 1200 }
 0x13b   : > { %v1514_v17 = vadd.f32 %v1513_v12, %v1269_v62  ;;  %v1664_v22 = vmul.f32 %v1269_v62, %v1269_v62  ;;  %v1270_v7 = vsel %vm1066_vm5, %v662_v34, 0.0  ;;  %1459 = vst [vmem:[%s2218_s25 + $0x2a0] sm:$0xff] %v1331_v0  ;;  %v665_v13 = vpop.f32.mrb[24].mxu0  ;;  %vm1069_vm12 = vcmp.lt.s32.totalorder %v2429_v37, 1200  ;;  %v825_v28 = vpop.f32.mrb[24].mxu1 }
 0x13c   : > { %v1848_v19 = vadd.f32 %v1847_v31, %v1663_v14  ;;  %1398 = vst [vmem:[%s2218_s25 + $0xb8] sm:$0xff] %v1270_v7  ;;  %v1583_v16 = vadd.f32 %v1582_v15, %v1270_v7  ;;  %v1665_v11 = vmul.f32 %v1270_v7, %v1270_v7  ;;  %v1332_v49 = vsel %vm1097_vm6, %v818_v9, 0.0  ;;  %v667_v35 = vpop.f32.mrb[25].mxu0  ;;  %v827_v2 = vpop.f32.mrb[25].mxu1 }
 0x13d   : > { %v1780_v27 = vadd.f32 %v1779_v30, %v1664_v22  ;;  %v820_v18 = vadd.f32 %v819_v6, %v2348_v58  ;;  %v822_v20 = vadd.f32 %v821_v47, %v2362_v4  ;;  %v666_v31 = vadd.f32 %v665_v13, %v2348_v58  ;;  %1460 = vst [vmem:[%s2218_s25 + $0x2a8] sm:$0xff] %v1332_v49  ;;  %v669_v21 = vpop.f32.mrb[26].mxu0  ;;  %v829_v50 = vpop.f32.mrb[26].mxu1 }
 0x13e   : > { %v1849_v57 = vadd.f32 %v1848_v19, %v1665_v11  ;;  %v826_v60 = vadd.f32 %v825_v28, %v2348_v58  ;;  %v2738_v33 = vadd.s32 %v2343_v54, %v973_v63  ;;  %v668_v61 = vadd.f32 %v667_v35, %v2362_v4  ;;  %v671_v44 = vpop.f32.mrb[27].mxu0  ;;  %v831_v3 = vpop.f32.mrb[27].mxu1 }
 0x13f   : > { %vm1070_vm13 = vcmp.lt.s32.totalorder %v2432_v38, 1200  ;;  %v1333_v42 = vsel %vm1098_vm7, %v820_v18, 0.0  ;;  %v1334_v46 = vsel %vm1098_vm7, %v822_v20, 0.0  ;;  %vm1101_vm14 = vcmp.lt.s32.totalorder %v2712_v26, 1200 }
 0x140   : > { %v1271_v6 = vsel %vm1067_vm8, %v666_v31, 0.0  ;;  %v670_v63 = vadd.f32 %v669_v21, %v2348_v58  ;;  %1461 = vst [vmem:[%s2218_s25 + $0x2b0] sm:$0xff] %v1333_v42  ;;  %1462 = vst [vmem:[%s2218_s25 + $0x2b8] sm:$0xff] %v1334_v46  ;;  %v828_v1 = vadd.f32 %v827_v2, %v2362_v4  ;;  %v974_v9 = vadd.s32 384, %v2336_v51 }
 0x141   : > { %1399 = vst [vmem:[%s2218_s25 + $0xc0] sm:$0xff] %v1271_v6  ;;  %v1515_v32 = vadd.f32 %v1514_v17, %v1271_v6  ;;  %v1666_v47 = vmul.f32 %v1271_v6, %v1271_v6  ;;  %v1272_v12 = vsel %vm1067_vm8, %v668_v61, 0.0  ;;  %v672_v8 = vadd.f32 %v671_v44, %v2362_v4 }
 0x142   : > { %1400 = vst [vmem:[%s2218_s25 + $0xc8] sm:$0xff] %v1272_v12  ;;  %v1584_v29 = vadd.f32 %v1583_v16, %v1272_v12  ;;  %v1667_v34 = vmul.f32 %v1272_v12, %v1272_v12  ;;  %v1273_v15 = vsel %vm1068_vm9, %v670_v63, 0.0  ;;  %v1335_v14 = vsel %vm1099_vm10, %v826_v60, 0.0 }
 0x143   : > { %v1781_v62 = vadd.f32 %v1780_v27, %v1666_v47  ;;  %1401 = vst [vmem:[%s2218_s25 + $0xd0] sm:$0xff] %v1273_v15  ;;  %v1516_v0 = vadd.f32 %v1515_v32, %v1273_v15  ;;  %v1668_v30 = vmul.f32 %v1273_v15, %v1273_v15  ;;  %v1274_v17 = vsel %vm1068_vm9, %v672_v8, 0.0  ;;  %1463 = vst [vmem:[%s2218_s25 + $0x2c0] sm:$0xff] %v1335_v14  ;;  %v675_v11 = vpop.f32.mrb[28].mxu0  ;;  %v835_v49 = vpop.f32.mrb[28].mxu1 }
 0x144   : > { %v1850_v24 = vadd.f32 %v1849_v57, %v1667_v34  ;;  %1402 = vst [vmem:[%s2218_s25 + $0xd8] sm:$0xff] %v1274_v17  ;;  %v1585_v22 = vadd.f32 %v1584_v29, %v1274_v17  ;;  %v1669_v7 = vmul.f32 %v1274_v17, %v1274_v17  ;;  %v975_v19 = vadd.s32 392, %v2336_v51  ;;  %v677_v28 = vpop.f32.mrb[29].mxu0  ;;  %v837_v31 = vpop.f32.mrb[29].mxu1 }
 0x145   : > { %v1782_v16 = vadd.f32 %v1781_v62, %v1668_v30  ;;  %vm1071_vm15 = vcmp.lt.s32.totalorder %v2436_v40, 1200  ;;  %v1336_v27 = vsel %vm1099_vm10, %v828_v1, 0.0  ;;  %v830_v13 = vadd.f32 %v829_v50, %v2348_v58  ;;  %v679_v35 = vpop.f32.mrb[30].mxu0  ;;  %v839_v61 = vpop.f32.mrb[30].mxu1 }
 0x146   : > { %v832_v36 = vadd.f32 %v831_v3, %v2362_v4  ;;  %v1851_v18 = vadd.f32 %v1850_v24, %v1669_v7  ;;  %v676_v20 = vadd.f32 %v675_v11, %v2348_v58  ;;  %1464 = vst [vmem:[%s2218_s25 + $0x2c8] sm:$0xff] %v1336_v27  ;;  %v836_v57 = vadd.f32 %v835_v49, %v2348_v58  ;;  %v681_v50 = vpop.f32.mrb[31].mxu0  ;;  %v841_v63 = vpop.f32.mrb[31].mxu1 }
 0x147   : > { %vm1102_vm0 = vcmp.lt.s32.totalorder %v2738_v33, 1200  ;;  %v678_v25 = vadd.f32 %v677_v28, %v2362_v4  ;;  %vm1072_vm1 = vcmp.lt.s32.totalorder %v2442_v43, 1200  ;;  %v1337_v60 = vsel %vm1100_vm11, %v830_v13, 0.0 }
 0x148   : > { %v1338_v2 = vsel %vm1100_vm11, %v832_v36, 0.0  ;;  %v2785_v21 = vadd.s32 %v2343_v54, %v974_v9  ;;  %v1275_v42 = vsel %vm1069_vm12, %v676_v20, 0.0  ;;  %v680_v46 = vadd.f32 %v679_v35, %v2348_v58  ;;  %1465 = vst [vmem:[%s2218_s25 + $0x2d0] sm:$0xff] %v1337_v60 }
 0x149   : > { %1466 = vst [vmem:[%s2218_s25 + $0x2d8] sm:$0xff] %v1338_v2  ;;  %v838_v6 = vadd.f32 %v837_v31, %v2362_v4  ;;  %v2794_v39 = vadd.s32 %v2343_v54, %v975_v19  ;;  %1403 = vst [vmem:[%s2218_s25 + $0xe0] sm:$0xff] %v1275_v42  ;;  %v1517_v44 = vadd.f32 %v1516_v0, %v1275_v42  ;;  %v1276_v3 = vsel %vm1069_vm12, %v678_v25, 0.0 }
 0x14a   : > { %v1670_v1 = vmul.f32 %v1275_v42, %v1275_v42  ;;  %v682_v9 = vadd.f32 %v681_v50, %v2362_v4  ;;  %1404 = vst [vmem:[%s2218_s25 + $0xe8] sm:$0xff] %v1276_v3  ;;  %v1586_v32 = vadd.f32 %v1585_v22, %v1276_v3  ;;  %v1671_v47 = vmul.f32 %v1276_v3, %v1276_v3 }
 0x14b   : > { %v1277_v12 = vsel %vm1070_vm13, %v680_v46, 0.0  ;;  %v1339_v8 = vsel %vm1101_vm14, %v836_v57, 0.0  ;;  %v976_v30 = vadd.s32 400, %v2336_v51  ;;  %v685_v24 = vpop.f32.mrb[32].mxu0  ;;  %vm1073_vm2 = vcmp.lt.s32.totalorder %v2448_v45, 1200  ;;  %v845_v19 = vpop.f32.mrb[32].mxu1 }
 0x14c   : > { %v1783_v29 = vadd.f32 %v1782_v16, %v1670_v1  ;;  %1405 = vst [vmem:[%s2218_s25 + $0xf0] sm:$0xff] %v1277_v12  ;;  %v1518_v34 = vadd.f32 %v1517_v44, %v1277_v12  ;;  %v1672_v15 = vmul.f32 %v1277_v12, %v1277_v12  ;;  %v1278_v14 = vsel %vm1070_vm13, %v682_v9, 0.0  ;;  %1467 = vst [vmem:[%s2218_s25 + $0x2e0] sm:$0xff] %v1339_v8  ;;  %v687_v27 = vpop.f32.mrb[33].mxu0  ;;  %v847_v26 = vpop.f32.mrb[33].mxu1 }
 0x14d   : > { %v1852_v37 = vadd.f32 %v1851_v18, %v1671_v47  ;;  %1406 = vst [vmem:[%s2218_s25 + $0xf8] sm:$0xff] %v1278_v14  ;;  %v1587_v62 = vadd.f32 %v1586_v32, %v1278_v14  ;;  %v1673_v0 = vmul.f32 %v1278_v14, %v1278_v14  ;;  %v2814_v22 = vsel %vm1101_vm14, %v838_v6, 0.0  ;;  %v689_v49 = vpop.f32.mrb[34].mxu0  ;;  %v849_v28 = vpop.f32.mrb[34].mxu1 }
 0x14e   : > { %v1784_v17 = vadd.f32 %v1783_v29, %v1672_v15  ;;  %v840_v7 = vadd.f32 %v839_v61, %v2348_v58  ;;  %v842_v38 = vadd.f32 %v841_v63, %v2362_v4  ;;  %v686_v11 = vadd.f32 %v685_v24, %v2348_v58  ;;  %1468 = vst [vmem:[%s2218_s25 + $0x2e8] sm:$0xff] %v2814_v22  ;;  %v691_v25 = vpop.f32.mrb[35].mxu0  ;;  %v851_v33 = vpop.f32.mrb[35].mxu1 }
 0x14f   : > { %v1853_v16 = vadd.f32 %v1852_v37, %v1673_v0  ;;  %v846_v13 = vadd.f32 %v845_v19, %v2348_v58  ;;  %vm1103_vm3 = vcmp.lt.s32.totalorder %v2785_v21, 1200  ;;  %v688_v36 = vadd.f32 %v687_v27, %v2362_v4 }
 0x150   : > { %vm1074_vm4 = vcmp.lt.s32.totalorder %v2453_v48, 1200  ;;  %v2827_v18 = vsel %vm1102_vm0, %v840_v7, 0.0  ;;  %v2831_v20 = vsel %vm1102_vm0, %v842_v38, 0.0  ;;  %vm1104_vm5 = vcmp.lt.s32.totalorder %v2794_v39, 1200 }
 0x151   : > { %v1279_v57 = vsel %vm1071_vm15, %v686_v11, 0.0  ;;  %v690_v31 = vadd.f32 %v689_v49, %v2348_v58  ;;  %1469 = vst [vmem:[%s2218_s25 + $0x2f0] sm:$0xff] %v2827_v18  ;;  %1470 = vst [vmem:[%s2218_s25 + $0x2f8] sm:$0xff] %v2831_v20  ;;  %v848_v35 = vadd.f32 %v847_v26, %v2362_v4  ;;  %v2843_v60 = vadd.s32 %v2343_v54, %v976_v30 }
 0x152   : > { %1407 = vst [vmem:[%s2218_s25 + $0x100] sm:$0xff] %v1279_v57  ;;  %v1519_v2 = vadd.f32 %v1518_v34, %v1279_v57  ;;  %v1674_v61 = vmul.f32 %v1279_v57, %v1279_v57  ;;  %v1280_v42 = vsel %vm1071_vm15, %v688_v36, 0.0  ;;  %v692_v46 = vadd.f32 %v691_v25, %v2362_v4 }
 0x153   : > { %1408 = vst [vmem:[%s2218_s25 + $0x108] sm:$0xff] %v1280_v42  ;;  %v1588_v50 = vadd.f32 %v1587_v62, %v1280_v42  ;;  %v1675_v6 = vmul.f32 %v1280_v42, %v1280_v42  ;;  %v1281_v63 = vsel %vm1072_vm1, %v690_v31, 0.0  ;;  %v2854_v44 = vsel %vm1103_vm3, %v846_v13, 0.0  ;;  %v695_v34 = vpop.f32.mrb[36].mxu0  ;;  %v855_v37 = vpop.f32.mrb[36].mxu1 }
 0x154   : > { %v1785_v1 = vadd.f32 %v1784_v17, %v1674_v61  ;;  %1409 = vst [vmem:[%s2218_s25 + $0x110] sm:$0xff] %v1281_v63  ;;  %v1520_v3 = vadd.f32 %v1519_v2, %v1281_v63  ;;  %v1676_v9 = vmul.f32 %v1281_v63, %v1281_v63  ;;  %v1282_v40 = vsel %vm1072_vm1, %v692_v46, 0.0  ;;  %1471 = vst [vmem:[%s2218_s25 + $0x300] sm:$0xff] %v2854_v44  ;;  %v697_v30 = vpop.f32.mrb[37].mxu0  ;;  %v857_v21 = vpop.f32.mrb[37].mxu1 }
 0x155   : > { %v1854_v32 = vadd.f32 %v1853_v16, %v1675_v6  ;;  %1410 = vst [vmem:[%s2218_s25 + $0x118] sm:$0xff] %v1282_v40  ;;  %v1589_v47 = vadd.f32 %v1588_v50, %v1282_v40  ;;  %v1677_v12 = vmul.f32 %v1282_v40, %v1282_v40  ;;  %v977_v8 = vadd.s32 408, %v2336_v51  ;;  %v699_v38 = vpop.f32.mrb[38].mxu0  ;;  %v859_v11 = vpop.f32.mrb[38].mxu1 }
 0x156   : > { %v1786_v29 = vadd.f32 %v1785_v1, %v1676_v9  ;;  %vm1075_vm6 = vcmp.lt.s32.totalorder %v2462_v52, 1200  ;;  %v2866_v15 = vsel %vm1103_vm3, %v848_v35, 0.0  ;;  %v850_v43 = vadd.f32 %v849_v28, %v2348_v58  ;;  %v701_v26 = vpop.f32.mrb[39].mxu0  ;;  %v861_v49 = vpop.f32.mrb[39].mxu1 }
 0x157   : > { %v852_v14 = vadd.f32 %v851_v33, %v2362_v4  ;;  %v1855_v62 = vadd.f32 %v1854_v32, %v1677_v12  ;;  %v696_v0 = vadd.f32 %v695_v34, %v2348_v58  ;;  %v955_v17 = vadd.s32 232, %v2336_v51  ;;  %1472 = vst [vmem:[%s2218_s25 + $0x308] sm:$0xff] %v2866_v15 }
 0x158   : > { %v856_v24 = vadd.f32 %v855_v37, %v2348_v58  ;;  %v698_v7 = vadd.f32 %v697_v30, %v2362_v4  ;;  %vm1076_vm7 = vcmp.lt.s32.totalorder %v2467_v59, 1200  ;;  %v2879_v19 = vsel %vm1104_vm5, %v850_v43, 0.0 }
 0x159   : > { %v2883_v16 = vsel %vm1104_vm5, %v852_v14, 0.0  ;;  %vm1105_vm8 = vcmp.lt.s32.totalorder %v2843_v60, 1200  ;;  %v1283_v27 = vsel %vm1073_vm2, %v696_v0, 0.0  ;;  %v700_v13 = vadd.f32 %v699_v38, %v2348_v58  ;;  %1473 = vst [vmem:[%s2218_s25 + $0x310] sm:$0xff] %v2879_v19 }
 0x15a   : > { %1474 = vst [vmem:[%s2218_s25 + $0x318] sm:$0xff] %v2883_v16  ;;  %v858_v36 = vadd.f32 %v857_v21, %v2362_v4  ;;  %v1042_v39 = vadd.s32 %v2343_v54, %v977_v8  ;;  %1411 = vst [vmem:[%s2218_s25 + $0x120] sm:$0xff] %v1283_v27  ;;  %v1521_v28 = vadd.f32 %v1520_v3, %v1283_v27  ;;  %v1284_v31 = vsel %vm1073_vm2, %v698_v7, 0.0 }
 0x15b   : > { %v1678_v57 = vmul.f32 %v1283_v27, %v1283_v27  ;;  %v702_v25 = vadd.f32 %v701_v26, %v2362_v4  ;;  %1412 = vst [vmem:[%s2218_s25 + $0x128] sm:$0xff] %v1284_v31  ;;  %v1590_v35 = vadd.f32 %v1589_v47, %v1284_v31  ;;  %v1679_v33 = vmul.f32 %v1284_v31, %v1284_v31  ;;  %v705_v40 = vpop.f32.mrb[40].mxu0  ;;  %v865_v47 = vpop.f32.mrb[40].mxu1 }
 0x15c   : > { %v1285_v2 = vsel %vm1074_vm4, %v700_v13, 0.0  ;;  %v2904_v61 = vsel %vm1105_vm8, %v856_v24, 0.0  ;;  %v2914_v3 = vadd.s32 %v2343_v54, %v2624_v55  ;;  %vm1077_vm9 = vcmp.lt.s32.totalorder %v2509_v56, 1200  ;;  %v867_v60 = vpop.f32.mrb[41].mxu1 }
 0x15d   : > { %3514 = vst [vmem:[#allocation2_spill] sm:$0xff] %v2904_v61  ;;  %v1787_v42 = vadd.f32 %v1786_v29, %v1678_v57  ;;  %1413 = vst [vmem:[%s2218_s25 + $0x130] sm:$0xff] %v1285_v2  ;;  %v1522_v46 = vadd.f32 %v1521_v28, %v1285_v2  ;;  %v1680_v50 = vmul.f32 %v1285_v2, %v1285_v2  ;;  %v1286_v45 = vsel %vm1074_vm4, %v702_v25, 0.0  ;;  %v707_v29 = vpop.f32.mrb[41].mxu0  ;;  %v869_v0 = vpop.f32.mrb[42].mxu1 }
 0x15e   : > { %1475 = vst [vmem:[%s2218_s25 + $0x320] sm:$0xff] %v2904_v61  ;;  %v1856_v6 = vadd.f32 %v1855_v62, %v1679_v33  ;;  %1414 = vst [vmem:[%s2218_s25 + $0x138] sm:$0xff] %v1286_v45  ;;  %v1591_v63 = vadd.f32 %v1590_v35, %v1286_v45  ;;  %v1681_v1 = vmul.f32 %v1286_v45, %v1286_v45  ;;  %v2919_v32 = vsel %vm1105_vm8, %v858_v36, 0.0  ;;  %v709_v14 = vpop.f32.mrb[42].mxu0  ;;  %v871_v38 = vpop.f32.mrb[43].mxu1 }
 0x15f   : > { %v1788_v9 = vadd.f32 %v1787_v42, %v1680_v50  ;;  %3515 = vst [vmem:[#allocation3_spill] sm:$0xff] %v2919_v32  ;;  %v860_v48 = vadd.f32 %v859_v11, %v2348_v58  ;;  %vm1106_vm10 = vcmp.lt.s32.totalorder %v1042_v39, 1200  ;;  %v706_v8 = vadd.f32 %v705_v40, %v2348_v58  ;;  %1476 = vst [vmem:[%s2218_s25 + $0x328] sm:$0xff] %v2919_v32  ;;  %v711_v21 = vpop.f32.mrb[43].mxu0  ;;  %v2145_v32 = vld [vmem:[%s2218_s25 + $0x258] sm:$0xff] }
 0x160   : > { %v1857_v12 = vadd.f32 %v1856_v6, %v1681_v1  ;;  %v2925_v55 = vadd.s32 %v2343_v54, %v2659_v53  ;;  %v862_v34 = vadd.f32 %v861_v49, %v2362_v4  ;;  %v708_v43 = vadd.f32 %v707_v29, %v2362_v4 }
 0x161   : > { %vm1078_vm11 = vcmp.lt.s32.totalorder %v2512_v5, 1200  ;;  %v2933_v37 = vadd.s32 %v2343_v54, %v955_v17  ;;  %v956_v62 = vadd.s32 240, %v2336_v51  ;;  %v2937_v53 = vsel %vm1106_vm10, %v860_v48, 0.0 }
 0x162   : > { %3516 = vst [vmem:[#allocation4_spill] sm:$0xff] %v2937_v53  ;;  %v1287_v30 = vsel %vm1075_vm6, %v706_v8, 0.0  ;;  %v710_v24 = vadd.f32 %v709_v14, %v2348_v58  ;;  %1477 = vst [vmem:[%s2218_s25 + $0x330] sm:$0xff] %v2937_v53  ;;  %v2945_v17 = vsel %vm1106_vm10, %v862_v34, 0.0  ;;  %v978_v7 = vadd.s32 416, %v2336_v51 }
 0x163   : > { %3517 = vst [vmem:[#allocation5_spill] sm:$0xff] %v2945_v17  ;;  %1415 = vst [vmem:[%s2218_s25 + $0x140] sm:$0xff] %v1287_v30  ;;  %v1523_v11 = vadd.f32 %v1522_v46, %v1287_v30  ;;  %v1682_v27 = vmul.f32 %v1287_v30, %v1287_v30  ;;  %v1288_v13 = vsel %vm1075_vm6, %v708_v43, 0.0  ;;  %v712_v26 = vadd.f32 %v711_v21, %v2362_v4  ;;  %v715_v50 = vpop.f32.mrb[44].mxu0  ;;  %v875_v1 = vpop.f32.mrb[44].mxu1 }
 0x164   : > { %1478 = vst [vmem:[%s2218_s25 + $0x338] sm:$0xff] %v2945_v17  ;;  %1416 = vst [vmem:[%s2218_s25 + $0x148] sm:$0xff] %v1288_v13  ;;  %v1592_v36 = vadd.f32 %v1591_v63, %v1288_v13  ;;  %v1683_v39 = vmul.f32 %v1288_v13, %v1288_v13  ;;  %v1289_v49 = vsel %vm1076_vm7, %v710_v24, 0.0  ;;  %v866_v28 = vadd.f32 %v865_v47, %v2348_v58  ;;  %v717_v40 = vpop.f32.mrb[45].mxu0  ;;  %v877_v47 = vpop.f32.mrb[45].mxu1 }
 0x165   : > { %v1789_v57 = vadd.f32 %v1788_v9, %v1682_v27  ;;  %1417 = vst [vmem:[%s2218_s25 + $0x150] sm:$0xff] %v1289_v49  ;;  %v1524_v31 = vadd.f32 %v1523_v11, %v1289_v49  ;;  %v1684_v25 = vmul.f32 %v1289_v49, %v1289_v49  ;;  %v1290_v52 = vsel %vm1076_vm7, %v712_v26, 0.0  ;;  %v719_v8 = vpop.f32.mrb[46].mxu0  ;;  %v879_v43 = vpop.f32.mrb[46].mxu1 }
 0x166   : > { %v1858_v35 = vadd.f32 %v1857_v12, %v1683_v39  ;;  %1418 = vst [vmem:[%s2218_s25 + $0x158] sm:$0xff] %v1290_v52  ;;  %v1593_v33 = vadd.f32 %v1592_v36, %v1290_v52  ;;  %v1685_v2 = vmul.f32 %v1290_v52, %v1290_v52  ;;  %v1043_v42 = vadd.s32 %v2343_v54, %v978_v7  ;;  %v721_v30 = vpop.f32.mrb[47].mxu0  ;;  %v881_v7 = vpop.f32.mrb[47].mxu1 }
 0x167   : > { %v1790_v46 = vadd.f32 %v1789_v57, %v1684_v25  ;;  %vm1079_vm12 = vcmp.lt.s32.totalorder %v2557_v10, 1200  ;;  %v2965_v45 = vadd.s32 %v2343_v54, %v956_v62  ;;  %v868_v6 = vadd.f32 %v867_v60, %v2362_v4 }
 0x168   : > { %v979_v63 = vadd.s32 424, %v2336_v51  ;;  %v1859_v59 = vadd.f32 %v1858_v35, %v1685_v2  ;;  %v716_v9 = vadd.f32 %v715_v50, %v2348_v58  ;;  %v957_v48 = vadd.s32 248, %v2336_v51  ;;  %v3002_v35 = vld [vmem:[%s2218_s25 + $0x200] sm:$0xff] }
 0x169   : > { %vm1107_vm13 = vcmp.lt.s32.totalorder %v1043_v42, 1200  ;;  %v718_v12 = vadd.f32 %v717_v40, %v2362_v4  ;;  %vm1080_vm14 = vcmp.lt.s32.totalorder %v2563_v23, 1200  ;;  %v720_v62 = vadd.f32 %v719_v8, %v2348_v58 }
 0x16a   : > { %v2973_v29 = vsel %vm1107_vm13, %v866_v28, 0.0  ;;  %v2975_v34 = vsel %vm1107_vm13, %v868_v6, 0.0  ;;  %v1044_v60 = vadd.s32 %v2343_v54, %v979_v63  ;;  %v1291_v14 = vsel %vm1077_vm9, %v716_v9, 0.0 }
 0x16b   : > { %3518 = vst [vmem:[#allocation6_spill] sm:$0xff] %v2973_v29  ;;  %3519 = vst [vmem:[#allocation7_spill] sm:$0xff] %v2975_v34  ;;  %v870_v24 = vadd.f32 %v869_v0, %v2348_v58  ;;  %v872_v21 = vadd.f32 %v871_v38, %v2362_v4  ;;  %v1525_v11 = vadd.f32 %v1524_v31, %v1291_v14  ;;  %v1292_v13 = vsel %vm1077_vm9, %v718_v12, 0.0  ;;  %v725_v42 = vpop.f32.mrb[48].mxu0  ;;  %v3017_v50 = vpop.f32.mrb[48].mxu1 }
 0x16c   : > { %1479 = vst [vmem:[%s2218_s25 + $0x340] sm:$0xff] %v2973_v29  ;;  %1480 = vst [vmem:[%s2218_s25 + $0x348] sm:$0xff] %v2975_v34  ;;  %v1686_v27 = vmul.f32 %v1291_v14, %v1291_v14  ;;  %v722_v26 = vadd.f32 %v721_v30, %v2362_v4  ;;  %v1594_v36 = vadd.f32 %v1593_v33, %v1292_v13  ;;  %v1293_v49 = vsel %vm1078_vm11, %v720_v62, 0.0 }
 0x16d   : > { %1419 = vst [vmem:[%s2218_s25 + $0x160] sm:$0xff] %v1291_v14  ;;  %1420 = vst [vmem:[%s2218_s25 + $0x168] sm:$0xff] %v1292_v13  ;;  %v1687_v39 = vmul.f32 %v1292_v13, %v1292_v13  ;;  %vm1108_vm15 = vcmp.lt.s32.totalorder %v1044_v60, 1200  ;;  %v1526_v38 = vadd.f32 %v1525_v11, %v1293_v49  ;;  %v1688_v28 = vmul.f32 %v1293_v49, %v1293_v49 }
 0x16e   : > { %v1791_v0 = vadd.f32 %v1790_v46, %v1686_v27  ;;  %1421 = vst [vmem:[%s2218_s25 + $0x170] sm:$0xff] %v1293_v49  ;;  %v1294_v57 = vsel %vm1078_vm11, %v722_v26, 0.0  ;;  %v2999_v52 = vsel %vm1108_vm15, %v870_v24, 0.0  ;;  %v3006_v33 = vmul.f32 %v3002_v35, %v3002_v35 }
 0x16f   : > { %v1860_v56 = vadd.f32 %v1859_v59, %v1687_v39  ;;  %1422 = vst [vmem:[%s2218_s25 + $0x178] sm:$0xff] %v1294_v57  ;;  %v1595_v31 = vadd.f32 %v1594_v36, %v1294_v57  ;;  %v1689_v25 = vmul.f32 %v1294_v57, %v1294_v57  ;;  %3520 = vst [vmem:[#allocation8_spill] sm:$0xff] %v2999_v52  ;;  %vm1081_vm0 = vcmp.lt.s32.totalorder %v2615_v41, 1200  ;;  %v727_v59 = vpop.f32.mrb[49].mxu0 }
 0x170   : > { %v1792_v2 = vadd.f32 %v1791_v0, %v1688_v28  ;;  %v3010_v5 = vadd.s32 %v2343_v54, %v957_v48  ;;  %1481 = vst [vmem:[%s2218_s25 + $0x350] sm:$0xff] %v2999_v52  ;;  %v3015_v46 = vsel %vm1108_vm15, %v872_v21, 0.0  ;;  %v726_v63 = vadd.f32 %v725_v42, %v2348_v58  ;;  %v3024_v48 = vpop.f32.mrb[49].mxu1  ;;  %v729_v8 = vpop.f32.mrb[50].mxu0  ;;  %v3055_v42 = vld [vmem:[%s2218_s25 + $0x208] sm:$0xff] }
 0x171   : > { %3521 = vst [vmem:[#allocation9_spill] sm:$0xff] %v3015_v46  ;;  %v1861_v6 = vadd.f32 %v1860_v56, %v1689_v25  ;;  %1482 = vst [vmem:[%s2218_s25 + $0x358] sm:$0xff] %v3015_v46  ;;  %v876_v9 = vadd.f32 %v875_v1, %v2348_v58  ;;  %v980_v40 = vadd.s32 432, %v2336_v51  ;;  %v728_v12 = vadd.f32 %v727_v59, %v2362_v4  ;;  %v3031_v30 = vpop.f32.mrb[50].mxu1  ;;  %v731_v21 = vpop.f32.mrb[51].mxu0 }
 0x172   : > { %vm1082_vm1 = vcmp.lt.s32.totalorder %v2914_v3, 1200  ;;  %v878_v60 = vadd.f32 %v877_v47, %v2362_v4  ;;  %v880_v14 = vadd.f32 %v879_v43, %v2348_v58  ;;  %v981_v62 = vadd.s32 440, %v2336_v51  ;;  %v3038_v13 = vpop.f32.mrb[51].mxu1 }
 0x173   : > { %v1295_v1 = vsel %vm1079_vm12, %v726_v63, 0.0  ;;  %v730_v24 = vadd.f32 %v729_v8, %v2348_v58  ;;  %v1045_v11 = vadd.s32 %v2343_v54, %v980_v40  ;;  %v882_v27 = vadd.f32 %v881_v7, %v2362_v4  ;;  %v735_v23 = vpop.f32.mrb[52].mxu0  ;;  %v3071_v40 = vld [vmem:[%s2218_s25 + $0x210] sm:$0xff]  ;;  %v3078_v8 = vld [vmem:[%s2218_s25 + $0x218] sm:$0xff] }
 0x174   : > { %1423 = vst [vmem:[%s2218_s25 + $0x180] sm:$0xff] %v1295_v1  ;;  %v1527_v47 = vadd.f32 %v1526_v38, %v1295_v1  ;;  %v1690_v43 = vmul.f32 %v1295_v1, %v1295_v1  ;;  %v1296_v26 = vsel %vm1079_vm12, %v728_v12, 0.0  ;;  %v732_v36 = vadd.f32 %v731_v21, %v2362_v4  ;;  %v737_v21 = vpop.f32.mrb[53].mxu0 }
 0x175   : > { %1424 = vst [vmem:[%s2218_s25 + $0x188] sm:$0xff] %v1296_v26  ;;  %v1596_v39 = vadd.f32 %v1595_v31, %v1296_v26  ;;  %v1691_v49 = vmul.f32 %v1296_v26, %v1296_v26  ;;  %v1297_v0 = vsel %vm1080_vm14, %v730_v24, 0.0  ;;  %vm1109_vm2 = vcmp.lt.s32.totalorder %v1045_v11, 1200  ;;  %v3090_v11 = vld [vmem:[%s2218_s25 + $0x220] sm:$0xff]  ;;  %v739_v26 = vpop.f32.mrb[54].mxu0 }
 0x176   : > { %v1793_v7 = vadd.f32 %v1792_v2, %v1690_v43  ;;  %1425 = vst [vmem:[%s2218_s25 + $0x190] sm:$0xff] %v1297_v0  ;;  %v1528_v28 = vadd.f32 %v1527_v47, %v1297_v0  ;;  %v1692_v57 = vmul.f32 %v1297_v0, %v1297_v0  ;;  %v1298_v10 = vsel %vm1080_vm14, %v732_v36, 0.0 }
 0x177   : > { %v1862_v38 = vadd.f32 %v1861_v6, %v1691_v49  ;;  %1426 = vst [vmem:[%s2218_s25 + $0x198] sm:$0xff] %v1298_v10  ;;  %v1597_v56 = vadd.f32 %v1596_v39, %v1298_v10  ;;  %v1693_v25 = vmul.f32 %v1298_v10, %v1298_v10  ;;  %v3052_v31 = vsel %vm1109_vm2, %v876_v9, 0.0  ;;  %v3068_v9 = vpop.f32.mrb[52].mxu1 }
 0x178   : > { %3522 = vst [vmem:[#allocation10_spill] sm:$0xff] %v3052_v31  ;;  %v3059_v2 = vmul.f32 %v3055_v42, %v3055_v42  ;;  %v1794_v63 = vadd.f32 %v1793_v7, %v1692_v57  ;;  %vm1083_vm3 = vcmp.lt.s32.totalorder %v2925_v55, 1200  ;;  %1483 = vst [vmem:[%s2218_s25 + $0x360] sm:$0xff] %v3052_v31  ;;  %v3065_v6 = vsel %vm1109_vm2, %v878_v60, 0.0  ;;  %v741_v7 = vpop.f32.mrb[55].mxu0 }
 0x179   : > { %3523 = vst [vmem:[#allocation11_spill] sm:$0xff] %v3065_v6  ;;  %v1046_v59 = vadd.s32 %v2343_v54, %v981_v62  ;;  %v3075_v12 = vmul.f32 %v3071_v40, %v3071_v40  ;;  %v3082_v1 = vmul.f32 %v3078_v8, %v3078_v8  ;;  %v1863_v24 = vadd.f32 %v1862_v38, %v1693_v25  ;;  %v3087_v62 = vpop.f32.mrb[53].mxu1 }
 0x17a   : > { %v736_v60 = vadd.f32 %v735_v23, %v2348_v58  ;;  %1484 = vst [vmem:[%s2218_s25 + $0x368] sm:$0xff] %v3065_v6  ;;  %v3094_v47 = vmul.f32 %v3090_v11, %v3090_v11  ;;  %v738_v43 = vadd.f32 %v737_v21, %v2362_v4  ;;  %vm1084_vm4 = vcmp.lt.s32.totalorder %v2933_v37, 1200  ;;  %v3099_v39 = vpop.f32.mrb[54].mxu1 }
 0x17b   : > { %vm1110_vm5 = vcmp.lt.s32.totalorder %v1046_v59, 1200  ;;  %v982_v36 = vadd.s32 448, %v2336_v51  ;;  %v740_v0 = vadd.f32 %v739_v26, %v2348_v58  ;;  %v3108_v38 = vpop.f32.mrb[55].mxu1  ;;  %v742_v21 = vadd.f32 %v741_v7, %v2362_v4 }
 0x17c   : > { %v1299_v49 = vsel %vm1081_vm0, %v736_v60, 0.0  ;;  %v3104_v57 = vsel %vm1110_vm5, %v880_v14, 0.0  ;;  %v3106_v10 = vsel %vm1110_vm5, %v882_v27, 0.0  ;;  %v1300_v59 = vsel %vm1081_vm0, %v738_v43, 0.0 }
 0x17d   : > { %3524 = vst [vmem:[#allocation12_spill] sm:$0xff] %v3104_v57  ;;  %3525 = vst [vmem:[#allocation13_spill] sm:$0xff] %v3106_v10  ;;  %v1529_v25 = vadd.f32 %v1528_v28, %v1299_v49  ;;  %v1694_v23 = vmul.f32 %v1299_v49, %v1299_v49  ;;  %v1598_v14 = vadd.f32 %v1597_v56, %v1300_v59  ;;  %v1301_v60 = vsel %vm1082_vm1, %v740_v0, 0.0  ;;  %v745_v0 = vpop.f32.mrb[56].mxu0 }
 0x17e   : > { %1427 = vst [vmem:[%s2218_s25 + $0x1a0] sm:$0xff] %v1299_v49  ;;  %1485 = vst [vmem:[%s2218_s25 + $0x370] sm:$0xff] %v3104_v57  ;;  %v1695_v27 = vmul.f32 %v1300_v59, %v1300_v59  ;;  %v886_v28 = vadd.f32 %v3017_v50, %v2348_v58  ;;  %v1696_v43 = vmul.f32 %v1301_v60, %v1301_v60  ;;  %v1302_v49 = vsel %vm1082_vm1, %v742_v21, 0.0 }
 0x17f   : > { %1486 = vst [vmem:[%s2218_s25 + $0x378] sm:$0xff] %v3106_v10  ;;  %1428 = vst [vmem:[%s2218_s25 + $0x1a8] sm:$0xff] %v1300_v59  ;;  %v1795_v26 = vadd.f32 %v1794_v63, %v1694_v23  ;;  %v1530_v41 = vadd.f32 %v1529_v25, %v1301_v60  ;;  %v1599_v10 = vadd.f32 %v1598_v14, %v1302_v49  ;;  %v3130_v59 = vld [vmem:[%s2218_s25 + $0x228] sm:$0xff]  ;;  %vm1085_vm6 = vcmp.lt.s32.totalorder %v2965_v45, 1200  ;;  %v3139_v25 = vpop.f32.mrb[56].mxu1  ;;  %v3142_v23 = vld [vmem:[%s2218_s25 + $0x230] sm:$0xff] }
 0x180   : > { %1429 = vst [vmem:[%s2218_s25 + $0x1b0] sm:$0xff] %v1301_v60  ;;  %v1864_v7 = vadd.f32 %v1863_v24, %v1695_v27  ;;  %1430 = vst [vmem:[%s2218_s25 + $0x1b8] sm:$0xff] %v1302_v49  ;;  %v1697_v57 = vmul.f32 %v1302_v49, %v1302_v49  ;;  %v888_v56 = vadd.f32 %v3024_v48, %v2362_v4  ;;  %v983_v24 = vadd.s32 456, %v2336_v51  ;;  %v747_v27 = vpop.f32.mrb[57].mxu0 }
 0x181   : > { %v3134_v50 = vmul.f32 %v3130_v59, %v3130_v59  ;;  %v1796_v63 = vadd.f32 %v1795_v26, %v1696_v43  ;;  %v1047_v3 = vadd.s32 %v2343_v54, %v982_v36  ;;  %v3146_v48 = vmul.f32 %v3142_v23, %v3142_v23  ;;  %v3151_v26 = vpop.f32.mrb[57].mxu1  ;;  %v749_v43 = vpop.f32.mrb[58].mxu0 }
 0x182   : > { %v1865_v21 = vadd.f32 %v1864_v7, %v1697_v57  ;;  %v746_v14 = vadd.f32 %v745_v0, %v2348_v58  ;;  %v890_v60 = vadd.f32 %v3031_v30, %v2348_v58  ;;  %v748_v36 = vadd.f32 %v747_v27, %v2362_v4  ;;  %v3157_v7 = vpop.f32.mrb[58].mxu1  ;;  %v751_v6 = vpop.f32.mrb[59].mxu0 }
 0x183   : > { %vm1086_vm7 = vcmp.lt.s32.totalorder %v3010_v5, 1200  ;;  %vm1111_vm8 = vcmp.lt.s32.totalorder %v1047_v3, 1200  ;;  %v1048_v49 = vadd.s32 %v2343_v54, %v983_v24  ;;  %v984_v57 = vadd.s32 464, %v2336_v51  ;;  %v3166_v3 = vpop.f32.mrb[59].mxu1 }
 0x184   : > { %v1303_v30 = vsel %vm1083_vm3, %v746_v14, 0.0  ;;  %v750_v0 = vadd.f32 %v749_v43, %v2348_v58  ;;  %v3162_v27 = vsel %vm1111_vm8, %v886_v28, 0.0  ;;  %v3164_v31 = vsel %vm1111_vm8, %v888_v56, 0.0 }
 0x185   : > { %3526 = vst [vmem:[#allocation14_spill] sm:$0xff] %v3162_v27  ;;  %3527 = vst [vmem:[#allocation15_spill] sm:$0xff] %v3164_v31  ;;  %v1531_v24 = vadd.f32 %v1530_v41, %v1303_v30  ;;  %v1698_v46 = vmul.f32 %v1303_v30, %v1303_v30  ;;  %v1304_v52 = vsel %vm1083_vm3, %v748_v36, 0.0  ;;  %v752_v34 = vadd.f32 %v751_v6, %v2362_v4 }
 0x186   : > { %1431 = vst [vmem:[%s2218_s25 + $0x1c0] sm:$0xff] %v1303_v30  ;;  %1487 = vst [vmem:[%s2218_s25 + $0x380] sm:$0xff] %v3162_v27  ;;  %v1600_v28 = vadd.f32 %v1599_v10, %v1304_v52  ;;  %v1699_v14 = vmul.f32 %v1304_v52, %v1304_v52  ;;  %v1305_v56 = vsel %vm1084_vm4, %v750_v0, 0.0  ;;  %v892_v41 = vadd.f32 %v3038_v13, %v2362_v4  ;;  %v755_v0 = vpop.f32.mrb[60].mxu0 }
 0x187   : > { %1488 = vst [vmem:[%s2218_s25 + $0x388] sm:$0xff] %v3164_v31  ;;  %1432 = vst [vmem:[%s2218_s25 + $0x1c8] sm:$0xff] %v1304_v52  ;;  %v1797_v43 = vadd.f32 %v1796_v63, %v1698_v46  ;;  %v1532_v55 = vadd.f32 %v1531_v24, %v1305_v56  ;;  %v1700_v30 = vmul.f32 %v1305_v56, %v1305_v56  ;;  %v1306_v6 = vsel %vm1084_vm4, %v752_v34, 0.0  ;;  %v3190_v34 = vpop.f32.mrb[60].mxu1 }
 0x188   : > { %1433 = vst [vmem:[%s2218_s25 + $0x1d0] sm:$0xff] %v1305_v56  ;;  %v1866_v36 = vadd.f32 %v1865_v21, %v1699_v14  ;;  %1434 = vst [vmem:[%s2218_s25 + $0x1d8] sm:$0xff] %v1306_v6  ;;  %v1601_v31 = vadd.f32 %v1600_v28, %v1306_v6  ;;  %v1701_v27 = vmul.f32 %v1306_v6, %v1306_v6  ;;  %vm1112_vm9 = vcmp.lt.s32.totalorder %v1048_v49, 1200  ;;  %v757_v21 = vpop.f32.mrb[61].mxu0  ;;  %v3200_v49 = vld [vmem:[%s2218_s25 + $0x238] sm:$0xff] }
 0x189   : > { %v896_v52 = vadd.f32 %v3068_v9, %v2348_v58  ;;  %v1798_v10 = vadd.f32 %v1797_v43, %v1700_v30  ;;  %v1049_v46 = vadd.s32 %v2343_v54, %v984_v57  ;;  %v898_v37 = vadd.f32 %v3087_v62, %v2362_v4  ;;  %v3197_v9 = vpop.f32.mrb[61].mxu1  ;;  %v3207_v62 = vld [vmem:[%s2218_s25 + $0x240] sm:$0xff]  ;;  %v759_v14 = vpop.f32.mrb[62].mxu0 }
 0x18a   : > { %v1867_v13 = vadd.f32 %v1866_v36, %v1701_v27  ;;  %v756_v63 = vadd.f32 %v755_v0, %v2348_v58  ;;  %v3193_v24 = vsel %vm1112_vm9, %v890_v60, 0.0  ;;  %v3195_v28 = vsel %vm1112_vm9, %v892_v41, 0.0  ;;  %v3218_v56 = vpop.f32.mrb[62].mxu1  ;;  %v761_v30 = vpop.f32.mrb[63].mxu0 }
 0x18b   : > { %3528 = vst [vmem:[#allocation16_spill] sm:$0xff] %v3193_v24  ;;  %3529 = vst [vmem:[#allocation17_spill] sm:$0xff] %v3195_v28  ;;  %v3204_v57 = vmul.f32 %v3200_v49, %v3200_v49  ;;  %v3211_v27 = vmul.f32 %v3207_v62, %v3207_v62  ;;  %v758_v60 = vadd.f32 %v757_v21, %v2362_v4  ;;  %vm1113_vm10 = vcmp.lt.s32.totalorder %v1049_v46, 1200  ;;  %v3227_v0 = vpop.f32.mrb[63].mxu1 }
 0x18c   : > { %1489 = vst [vmem:[%s2218_s25 + $0x390] sm:$0xff] %v3193_v24  ;;  %1490 = vst [vmem:[%s2218_s25 + $0x398] sm:$0xff] %v3195_v28  ;;  %v1307_v41 = vsel %vm1085_vm6, %v756_v63, 0.0  ;;  %v760_v43 = vadd.f32 %v759_v14, %v2348_v58  ;;  %v3223_v6 = vsel %vm1113_vm10, %v896_v52, 0.0  ;;  %v3225_v36 = vsel %vm1113_vm10, %v898_v37, 0.0  ;;  %v2143_v52 = vld [vmem:[%s2218_s25 + $0x248] sm:$0xff] }
 0x18d   : > { %3530 = vst [vmem:[#allocation18_spill] sm:$0xff] %v3223_v6  ;;  %3531 = vst [vmem:[#allocation19_spill] sm:$0xff] %v3225_v36  ;;  %v1533_v21 = vadd.f32 %v1532_v55, %v1307_v41  ;;  %v1702_v28 = vmul.f32 %v1307_v41, %v1307_v41  ;;  %v1308_v46 = vsel %vm1085_vm6, %v758_v60, 0.0  ;;  %v762_v24 = vadd.f32 %v761_v30, %v2362_v4 }
 0x18e   : > { %1435 = vst [vmem:[%s2218_s25 + $0x1e0] sm:$0xff] %v1307_v41  ;;  %1491 = vst [vmem:[%s2218_s25 + $0x3a0] sm:$0xff] %v3223_v6  ;;  %v3238_v37 = vmul.f32 %v2143_v52, %v2143_v52  ;;  %v1602_v63 = vadd.f32 %v1601_v31, %v1308_v46  ;;  %v1703_v14 = vmul.f32 %v1308_v46, %v1308_v46  ;;  %v1309_v55 = vsel %vm1086_vm7, %v760_v43, 0.0  ;;  %v2144_v6 = vld [vmem:[%s2218_s25 + $0x250] sm:$0xff] }
 0x18f   : > { %1492 = vst [vmem:[%s2218_s25 + $0x3a8] sm:$0xff] %v3225_v36  ;;  %1436 = vst [vmem:[%s2218_s25 + $0x1e8] sm:$0xff] %v1308_v46  ;;  %v1799_v45 = vadd.f32 %v1798_v10, %v1702_v28  ;;  %v1534_v60 = vadd.f32 %v1533_v21, %v1309_v55  ;;  %v1704_v41 = vmul.f32 %v1309_v55, %v1309_v55  ;;  %v1310_v30 = vsel %vm1086_vm7, %v762_v24, 0.0 }
 0x190   : > { %1437 = vst [vmem:[%s2218_s25 + $0x1f0] sm:$0xff] %v1309_v55  ;;  %v3247_v29 = vmul.f32 %v2144_v6, %v2144_v6  ;;  %v1868_v36 = vadd.f32 %v1867_v13, %v1703_v14  ;;  %1438 = vst [vmem:[%s2218_s25 + $0x1f8] sm:$0xff] %v1310_v30  ;;  %v1603_v17 = vadd.f32 %v1602_v63, %v1310_v30  ;;  %v985_v10 = vadd.s32 472, %v2336_v51 }
 0x191   : > { %v1705_v53 = vmul.f32 %v1310_v30, %v1310_v30  ;;  %v1717_v31 = vmul.f32 %v2145_v32, %v2145_v32  ;;  %v1535_v46 = vadd.f32 %v3002_v35, %v1534_v60  ;;  %v1800_v61 = vadd.f32 %v1799_v45, %v1704_v41  ;;  %v2148_v30 = vld [vmem:[%s2218_s25 + $0x270] sm:$0xff] }
 0x192   : > { %v1604_v28 = vadd.f32 %v3055_v42, %v1603_v17  ;;  %v900_v5 = vadd.f32 %v3099_v39, %v2348_v58  ;;  %v902_v24 = vadd.f32 %v3108_v38, %v2362_v4  ;;  %v1050_v63 = vadd.s32 %v2343_v54, %v985_v10 }
 0x193   : > { %v1869_v43 = vadd.f32 %v1868_v36, %v1705_v53  ;;  %v1536_v13 = vadd.f32 %v3071_v40, %v1535_v46  ;;  %v1801_v21 = vadd.f32 %v1800_v61, %v3006_v33  ;;  %v986_v35 = vadd.s32 480, %v2336_v51 }
 0x194   : > { %v1605_v14 = vadd.f32 %v3078_v8, %v1604_v28  ;;  %v906_v17 = vadd.f32 %v3139_v25, %v2348_v58  ;;  %v908_v42 = vadd.f32 %v3151_v26, %v2362_v4  ;;  %vm1114_vm11 = vcmp.lt.s32.totalorder %v1050_v63, 1200  ;;  %v2146_v25 = vld [vmem:[%s2218_s25 + $0x260] sm:$0xff]  ;;  %v2147_v26 = vld [vmem:[%s2218_s25 + $0x268] sm:$0xff] }
 0x195   : > { %v1870_v53 = vadd.f32 %v1869_v43, %v3059_v2  ;;  %v1537_v40 = vadd.f32 %v3090_v11, %v1536_v13  ;;  %v1802_v61 = vadd.f32 %v1801_v21, %v3075_v12  ;;  %v1051_v33 = vadd.s32 %v2343_v54, %v986_v35  ;;  %v2150_v21 = vld [vmem:[%s2218_s25 + $0x280] sm:$0xff] }
 0x196   : > { %v1606_v39 = vadd.f32 %v3130_v59, %v1605_v14  ;;  %v3273_v2 = vsel %vm1114_vm11, %v900_v5, 0.0  ;;  %v3275_v38 = vsel %vm1114_vm11, %v902_v24, 0.0  ;;  %v1718_v36 = vmul.f32 %v2146_v25, %v2146_v25  ;;  %v2149_v5 = vld [vmem:[%s2218_s25 + $0x278] sm:$0xff] }
 0x197   : > { %v1871_v8 = vadd.f32 %v1870_v53, %v3082_v1  ;;  %v1719_v55 = vmul.f32 %v2147_v26, %v2147_v26  ;;  %v1538_v11 = vadd.f32 %v3142_v23, %v1537_v40  ;;  %v1803_v12 = vadd.f32 %v1802_v61, %v3094_v47  ;;  %1493 = vst [vmem:[%s2218_s25 + $0x3b0] sm:$0xff] %v3273_v2 }
 0x198   : > { %1494 = vst [vmem:[%s2218_s25 + $0x3b8] sm:$0xff] %v3275_v38  ;;  %v1607_v1 = vadd.f32 %v3200_v49, %v1606_v39  ;;  %vm1115_vm12 = vcmp.lt.s32.totalorder %v1051_v33, 1200  ;;  %v987_v45 = vadd.s32 488, %v2336_v51  ;;  %v1720_v46 = vmul.f32 %v2148_v30, %v2148_v30  ;;  %v2152_v33 = vld [vmem:[%s2218_s25 + $0x290] sm:$0xff] }
 0x199   : > { %v1872_v59 = vadd.f32 %v1871_v8, %v3134_v50  ;;  %v1539_v60 = vadd.f32 %v3207_v62, %v1538_v11  ;;  %v1804_v23 = vadd.f32 %v1803_v12, %v3146_v48  ;;  %v3290_v41 = vsel %vm1115_vm12, %v906_v17, 0.0  ;;  %v2151_v17 = vld [vmem:[%s2218_s25 + $0x288] sm:$0xff] }
 0x19a   : > { %v3292_v47 = vsel %vm1115_vm12, %v908_v42, 0.0  ;;  %v1608_v10 = vadd.f32 %v2143_v52, %v1607_v1  ;;  %1495 = vst [vmem:[%s2218_s25 + $0x3c0] sm:$0xff] %v3290_v41  ;;  %v910_v50 = vadd.f32 %v3157_v7, %v2348_v58  ;;  %v1052_v28 = vadd.s32 %v2343_v54, %v987_v45 }
 0x19b   : > { %v1873_v49 = vadd.f32 %v1872_v59, %v3204_v57  ;;  %1496 = vst [vmem:[%s2218_s25 + $0x3c8] sm:$0xff] %v3292_v47  ;;  %v1540_v62 = vadd.f32 %v2144_v6, %v1539_v60  ;;  %v1805_v48 = vadd.f32 %v1804_v23, %v3211_v27  ;;  %v912_v43 = vadd.f32 %v3166_v3, %v2362_v4 }
 0x19c   : > { %v1721_v52 = vmul.f32 %v2149_v5, %v2149_v5  ;;  %v1609_v57 = vadd.f32 %v2145_v32, %v1608_v10  ;;  %v988_v13 = vadd.s32 496, %v2336_v51  ;;  %v1722_v7 = vmul.f32 %v2150_v21, %v2150_v21 }
 0x19d   : > { %v1874_v24 = vadd.f32 %v1873_v49, %v3238_v37  ;;  %v1541_v6 = vadd.f32 %v2146_v25, %v1540_v62  ;;  %v1806_v27 = vadd.f32 %v1805_v48, %v3247_v29  ;;  %vm1116_vm13 = vcmp.lt.s32.totalorder %v1052_v28, 1200  ;;  %v2155_v48 = vld [vmem:[%s2218_s25 + $0x2a8] sm:$0xff] }
 0x19e   : > { %v1610_v63 = vadd.f32 %v2147_v26, %v1609_v57  ;;  %v3311_v3 = vsel %vm1116_vm13, %v910_v50, 0.0  ;;  %v3313_v14 = vsel %vm1116_vm13, %v912_v43, 0.0  ;;  %v916_v37 = vadd.f32 %v3190_v34, %v2348_v58  ;;  %v2153_v26 = vld [vmem:[%s2218_s25 + $0x298] sm:$0xff]  ;;  %v2156_v43 = vld [vmem:[%s2218_s25 + $0x2b0] sm:$0xff] }
 0x19f   : > { %v1875_v35 = vadd.f32 %v1874_v24, %v1717_v31  ;;  %v1542_v53 = vadd.f32 %v2148_v30, %v1541_v6  ;;  %v1807_v32 = vadd.f32 %v1806_v27, %v1718_v36  ;;  %1497 = vst [vmem:[%s2218_s25 + $0x3d0] sm:$0xff] %v3311_v3  ;;  %1498 = vst [vmem:[%s2218_s25 + $0x3d8] sm:$0xff] %v3313_v14  ;;  %v989_v36 = vadd.s32 504, %v2336_v51 }
 0x1a0   : > { %v918_v29 = vadd.f32 %v3197_v9, %v2362_v4  ;;  %v1723_v42 = vmul.f32 %v2151_v17, %v2151_v17  ;;  %v1611_v31 = vadd.f32 %v2149_v5, %v1610_v63  ;;  %v1053_v61 = vadd.s32 %v2343_v54, %v988_v13 }
 0x1a1   : > { %v1876_v40 = vadd.f32 %v1875_v35, %v1719_v55  ;;  %v1724_v39 = vmul.f32 %v2152_v33, %v2152_v33  ;;  %v1808_v8 = vadd.f32 %v1807_v32, %v1720_v46  ;;  %v1543_v25 = vadd.f32 %v2150_v21, %v1542_v53  ;;  %v2154_v46 = vld [vmem:[%s2218_s25 + $0x2a0] sm:$0xff]  ;;  %v2159_v35 = vld [vmem:[%s2218_s25 + $0x2c8] sm:$0xff] }
 0x1a2   : > { %v1725_v34 = vmul.f32 %v2153_v26, %v2153_v26  ;;  %v1612_v12 = vadd.f32 %v2151_v17, %v1611_v31  ;;  %vm1117_vm14 = vcmp.lt.s32.totalorder %v1053_v61, 1200  ;;  %v920_v23 = vadd.f32 %v3218_v56, %v2348_v58  ;;  %v2157_v58 = vld [vmem:[%s2218_s25 + $0x2b8] sm:$0xff] }
 0x1a3   : > { %v1877_v11 = vadd.f32 %v1876_v40, %v1721_v52  ;;  %v1544_v9 = vadd.f32 %v2152_v33, %v1543_v25  ;;  %v1809_v1 = vadd.f32 %v1808_v8, %v1722_v7  ;;  %v3328_v55 = vsel %vm1117_vm14, %v916_v37, 0.0  ;;  %v2158_v7 = vld [vmem:[%s2218_s25 + $0x2c0] sm:$0xff]  ;;  %v2161_v40 = vld [vmem:[%s2218_s25 + $0x2d8] sm:$0xff] }
 0x1a4   : > { %v3330_v59 = vsel %vm1117_vm14, %v918_v29, 0.0  ;;  %v1613_v45 = vadd.f32 %v2153_v26, %v1612_v12  ;;  %1499 = vst [vmem:[%s2218_s25 + $0x3e0] sm:$0xff] %v3328_v55  ;;  %v922_v30 = vadd.f32 %v3227_v0, %v2362_v4  ;;  %v1726_v10 = vmul.f32 %v2154_v46, %v2154_v46  ;;  %v2160_v29 = vld [vmem:[%s2218_s25 + $0x2d0] sm:$0xff]  ;;  %v2162_v8 = vld [vmem:[%s2218_s25 + $0x2e0] sm:$0xff] }
 0x1a5   : > { %v1878_v60 = vadd.f32 %v1877_v11, %v1723_v42  ;;  %1500 = vst [vmem:[%s2218_s25 + $0x3e8] sm:$0xff] %v3330_v59  ;;  %v1545_v49 = vadd.f32 %v2154_v46, %v1544_v9  ;;  %v1810_v50 = vadd.f32 %v1809_v1, %v1724_v39  ;;  %v1054_v62 = vadd.s32 %v2343_v54, %v989_v36 }
 0x1a6   : > { %v1727_v28 = vmul.f32 %v2155_v48, %v2155_v48  ;;  %v1728_v5 = vmul.f32 %v2156_v43, %v2156_v43  ;;  %v1614_v52 = vadd.f32 %v2155_v48, %v1613_v45  ;;  %v1729_v56 = vmul.f32 %v2157_v58, %v2157_v58 }
 0x1a7   : > { %v1879_v57 = vadd.f32 %v1878_v60, %v1725_v34  ;;  %v1546_v24 = vadd.f32 %v2156_v43, %v1545_v49  ;;  %v1811_v4 = vadd.f32 %v1810_v50, %v1726_v10  ;;  %vm1118_vm15 = vcmp.lt.s32.totalorder %v1054_v62, 1200 }
 0x1a8   : > { %v1615_v0 = vadd.f32 %v2157_v58, %v1614_v52  ;;  %v3345_v21 = vsel %vm1118_vm15, %v920_v23, 0.0  ;;  %v3347_v54 = vsel %vm1118_vm15, %v922_v30, 0.0  ;;  %v1730_v6 = vmul.f32 %v2158_v7, %v2158_v7  ;;  %v3532_v52 = vld [vmem:[#allocation2_spill] sm:$0xff] }
 0x1a9   : > { %v1880_v13 = vadd.f32 %v1879_v57, %v1727_v28  ;;  %v1547_v27 = vadd.f32 %v2158_v7, %v1546_v24  ;;  %v1812_v63 = vadd.f32 %v1811_v4, %v1728_v5  ;;  %1501 = vst [vmem:[%s2218_s25 + $0x3f0] sm:$0xff] %v3345_v21  ;;  %1502 = vst [vmem:[%s2218_s25 + $0x3f8] sm:$0xff] %v3347_v54  ;;  %vm1908_vm0 = vcmask 1040384  }
 0x1aa   : > { %v1731_v53 = vmul.f32 %v2159_v35, %v2159_v35  ;;  %v1616_v32 = vadd.f32 %v2159_v35, %v1615_v0  ;;  %v1732_v17 = vmul.f32 %v2160_v29, %v2160_v29  ;;  %v1733_v61 = vmul.f32 %v2161_v40, %v2161_v40 }
 0x1ab   : > { %v1881_v37 = vadd.f32 %v1880_v13, %v1729_v56  ;;  %v1548_v42 = vadd.f32 %v2160_v29, %v1547_v27  ;;  %v1813_v31 = vadd.f32 %v1812_v63, %v1730_v6  ;;  %v1734_v25 = vmul.f32 %v2162_v8, %v2162_v8  ;;  %v3533_v56 = vld [vmem:[#allocation3_spill] sm:$0xff] }
 0x1ac   : > { %v1617_v33 = vadd.f32 %v2161_v40, %v1616_v32  ;;  %v1735_v34 = vmul.f32 %v2814_v22, %v2814_v22  ;;  %v1736_v9 = vmul.f32 %v2827_v18, %v2827_v18  ;;  %v1737_v60 = vmul.f32 %v2831_v20, %v2831_v20 }
 0x1ad   : > { %v1882_v39 = vadd.f32 %v1881_v37, %v1731_v53  ;;  %v1549_v36 = vadd.f32 %v2162_v8, %v1548_v42  ;;  %v1814_v26 = vadd.f32 %v1813_v31, %v1732_v17  ;;  %v1738_v10 = vmul.f32 %v2854_v44, %v2854_v44  ;;  %v3536_v53 = vld [vmem:[#allocation6_spill] sm:$0xff]  ;;  %v3537_v17 = vld [vmem:[#allocation7_spill] sm:$0xff] }
 0x1ae   : > { %v1618_v11 = vadd.f32 %v1617_v33, %v2814_v22  ;;  %v1739_v50 = vmul.f32 %v2866_v15, %v2866_v15  ;;  %v1740_v28 = vmul.f32 %v2879_v19, %v2879_v19  ;;  %v1741_v5 = vmul.f32 %v2883_v16, %v2883_v16 }
 0x1af   : > { %v1883_v12 = vadd.f32 %v1882_v39, %v1733_v61  ;;  %v1550_v1 = vadd.f32 %v1549_v36, %v2827_v18  ;;  %v1815_v45 = vadd.f32 %v1814_v26, %v1734_v25  ;;  %v1742_v58 = vmul.f32 %v3532_v52, %v3532_v52  ;;  %v3538_v61 = vld [vmem:[#allocation8_spill] sm:$0xff]  ;;  %v3539_v25 = vld [vmem:[#allocation9_spill] sm:$0xff] }
 0x1b0   : > { %v1619_v23 = vadd.f32 %v1618_v11, %v2831_v20  ;;  %v1743_v4 = vmul.f32 %v3533_v56, %v3533_v56  ;;  %v1746_v37 = vmul.f32 %v3536_v53, %v3536_v53  ;;  %v1747_v31 = vmul.f32 %v3537_v17, %v3537_v17  ;;  %v3540_v11 = vld [vmem:[#allocation10_spill] sm:$0xff] }
 0x1b1   : > { %v1884_v30 = vadd.f32 %v1883_v12, %v1735_v34  ;;  %v1551_v46 = vadd.f32 %v1550_v1, %v2854_v44  ;;  %v1816_v49 = vadd.f32 %v1815_v45, %v1736_v9  ;;  %v1748_v39 = vmul.f32 %v3538_v61, %v3538_v61  ;;  %v3541_v45 = vld [vmem:[#allocation11_spill] sm:$0xff] }
 0x1b2   : > { %v1620_v22 = vadd.f32 %v1619_v23, %v2866_v15  ;;  %v1749_v26 = vmul.f32 %v3539_v25, %v3539_v25  ;;  %v1750_v9 = vmul.f32 %v3540_v11, %v3540_v11  ;;  %v1751_v23 = vmul.f32 %v3541_v45, %v3541_v45 }
 0x1b3   : > { %v1885_v62 = vadd.f32 %v1884_v30, %v1737_v60  ;;  %v1817_v18 = vadd.f32 %v1816_v49, %v1738_v10  ;;  %v1552_v48 = vadd.f32 %v1551_v46, %v2879_v19  ;;  %v3534_v19 = vld [vmem:[#allocation4_spill] sm:$0xff] }
 0x1b4   : > { %v1621_v43 = vadd.f32 %v1620_v22, %v2883_v16  ;;  %v1744_v7 = vmul.f32 %v3534_v19, %v3534_v19  ;;  %v3535_v16 = vld [vmem:[#allocation5_spill] sm:$0xff]  ;;  %v3542_v46 = vld [vmem:[#allocation12_spill] sm:$0xff] }
 0x1b5   : > { %v1886_v20 = vadd.f32 %v1885_v62, %v1739_v50  ;;  %v1818_v44 = vadd.f32 %v1817_v18, %v1740_v28  ;;  %v1553_v57 = vadd.f32 %v1552_v48, %v3532_v52  ;;  %v1745_v63 = vmul.f32 %v3535_v16, %v3535_v16  ;;  %v3543_v50 = vld [vmem:[#allocation13_spill] sm:$0xff]  ;;  %v3544_v28 = vld [vmem:[#allocation14_spill] sm:$0xff] }
 0x1b6   : > { %v1622_v24 = vadd.f32 %v1621_v43, %v3533_v56  ;;  %v1752_v49 = vmul.f32 %v3542_v46, %v3542_v46  ;;  %v1753_v18 = vmul.f32 %v3543_v50, %v3543_v50  ;;  %v1754_v43 = vmul.f32 %v3544_v28, %v3544_v28 }
 0x1b7   : > { %v1887_v15 = vadd.f32 %v1886_v20, %v1741_v5  ;;  %v1819_v0 = vadd.f32 %v1818_v44, %v1742_v58  ;;  %v1554_v13 = vadd.f32 %v1553_v57, %v3534_v19  ;;  %v3545_v44 = vld [vmem:[#allocation15_spill] sm:$0xff] }
 0x1b8   : > { %v1623_v27 = vadd.f32 %v1622_v24, %v3535_v16  ;;  %v1755_v57 = vmul.f32 %v3545_v44, %v3545_v44 }
 0x1b9   : > { %v1888_v6 = vadd.f32 %v1887_v15, %v1743_v4  ;;  %v1820_v35 = vadd.f32 %v1819_v0, %v1744_v7  ;;  %v1555_v32 = vadd.f32 %v1554_v13, %v3536_v53  ;;  %v3546_v15 = vld [vmem:[#allocation16_spill] sm:$0xff]  ;;  %v3547_v0 = vld [vmem:[#allocation17_spill] sm:$0xff] }
 0x1ba   : > { %v1624_v42 = vadd.f32 %v1623_v27, %v3537_v17  ;;  %v1756_v24 = vmul.f32 %v3546_v15, %v3546_v15  ;;  %v1757_v13 = vmul.f32 %v3547_v0, %v3547_v0  ;;  %v1760_v17 = vmul.f32 %v3273_v2, %v3273_v2 }
 0x1bb   : > { %v1889_v29 = vadd.f32 %v1888_v6, %v1745_v63  ;;  %v1821_v40 = vadd.f32 %v1820_v35, %v1746_v37  ;;  %v1556_v33 = vadd.f32 %v1555_v32, %v3538_v61  ;;  %v3548_v6 = vld [vmem:[#allocation18_spill] sm:$0xff]  ;;  %v3549_v35 = vld [vmem:[#allocation19_spill] sm:$0xff] }
 0x1bc   : > { %v1625_v36 = vadd.f32 %v1624_v42, %v3539_v25  ;;  %v1758_v27 = vmul.f32 %v3548_v6, %v3548_v6  ;;  %v1759_v32 = vmul.f32 %v3549_v35, %v3549_v35 }
 0x1bd   : > { %v1890_v8 = vadd.f32 %v1889_v29, %v1747_v31  ;;  %v1822_v34 = vadd.f32 %v1821_v40, %v1748_v39  ;;  %v1557_v12 = vadd.f32 %v1556_v33, %v3540_v11  ;;  %v1761_v40 = vmul.f32 %v3275_v38, %v3275_v38 }
 0x1be   : > { %v1626_v60 = vadd.f32 %v1625_v36, %v3541_v45  ;;  %v1762_v39 = vmul.f32 %v3290_v41, %v3290_v41  ;;  %v1763_v36 = vmul.f32 %v3292_v47, %v3292_v47 }
 0x1bf   : > { %v1891_v1 = vadd.f32 %v1890_v8, %v1749_v26  ;;  %v1823_v30 = vadd.f32 %v1822_v34, %v1750_v9  ;;  %v1558_v10 = vadd.f32 %v1557_v12, %v3542_v46  ;;  %v1764_v34 = vmul.f32 %v3311_v3, %v3311_v3 }
 0x1c0   : > { %v1627_v62 = vadd.f32 %v1626_v60, %v3543_v50  ;;  %v1767_v9 = vmul.f32 %v3330_v59, %v3330_v59 }
 0x1c1   : > { %v1892_v22 = vadd.f32 %v1891_v1, %v1751_v23  ;;  %v1824_v48 = vadd.f32 %v1823_v30, %v1752_v49  ;;  %v1559_v20 = vadd.f32 %v1558_v10, %v3544_v28  ;;  %v1768_v30 = vmul.f32 %v3345_v21, %v3345_v21 }
 0x1c2   : > { %v1628_v52 = vadd.f32 %v1627_v62, %v3545_v44 }
 0x1c3   : > { %v1893_v5 = vadd.f32 %v1892_v22, %v1753_v18  ;;  %v1825_v58 = vadd.f32 %v1824_v48, %v1754_v43  ;;  %v1560_v56 = vadd.f32 %v1559_v20, %v3546_v15 }
 0x1c4   : > { %v1629_v19 = vadd.f32 %v1628_v52, %v3547_v0  ;;  %v2173_v52 = vmov 1983009808  }
 0x1c5   : > { %v1894_v4 = vadd.f32 %v1893_v5, %v1755_v57  ;;  %v1826_v7 = vadd.f32 %v1825_v58, %v1756_v24  ;;  %v1561_v16 = vadd.f32 %v1560_v56, %v3548_v6  ;;  %v1915_v57 = vunpack.c.l.s4 %v2173_v52 }
 0x1c6   : > { %v1630_v53 = vadd.f32 %v1629_v19, %v3549_v35 }
 0x1c7   : > { %v1895_v63 = vadd.f32 %v1894_v4, %v1757_v13  ;;  %v1827_v37 = vadd.f32 %v1826_v7, %v1758_v27  ;;  %v1562_v29 = vadd.f32 %v1561_v16, %v3273_v2  ;;  %v1916_v19 = vunpack.c.0.s8 %v1915_v57 }
 0x1c8   : > { %v1631_v31 = vadd.f32 %v1630_v53, %v3275_v38  ;;  %v1766_v38 = vmul.f32 %v3328_v55, %v3328_v55 }
 0x1c9   : > { %v1896_v42 = vadd.f32 %v1895_v63, %v1759_v32  ;;  %v1828_v61 = vadd.f32 %v1827_v37, %v1760_v17  ;;  %v1563_v33 = vadd.f32 %v1562_v29, %v3290_v41  ;;  %v1765_v41 = vmul.f32 %v3313_v14, %v3313_v14  ;;  %v1503_v37 = vld [vmem:[%s3477_s4] sm:$0xf] }
 0x1ca   : > { %v1632_v25 = vadd.f32 %v1631_v31, %v3292_v47  ;;  %v1919_v35 = vsub.s32 %v1916_v19, %v2336_v51 }
 0x1cb   : > { %v1897_v8 = vadd.f32 %v1896_v42, %v1761_v40  ;;  %v1829_v26 = vadd.f32 %v1828_v61, %v1762_v39  ;;  %v1564_v2 = vadd.f32 %v1563_v33, %v3311_v3 }
 0x1cc   : > { %v1633_v12 = vadd.f32 %v1632_v25, %v3313_v14  ;;  %v1769_v14 = vmul.f32 %v3347_v54, %v3347_v54 }
 0x1cd   : > { %v1898_v11 = vadd.f32 %v1897_v8, %v1763_v36  ;;  %v1830_v1 = vadd.f32 %v1829_v26, %v1764_v34  ;;  %v1565_v47 = vadd.f32 %v1564_v2, %v3328_v55 }
 0x1ce   : > { %v1634_v60 = vadd.f32 %v1633_v12, %v3330_v59 }
 0x1cf   : > { %v1899_v45 = vadd.f32 %v1898_v11, %v1765_v41  ;;  %v1831_v23 = vadd.f32 %v1830_v1, %v1766_v38  ;;  %v1566_v3 = vadd.f32 %v1565_v47, %v3345_v21 }
 0x1d0   : > { %v1635_v10 = vadd.f32 %v1634_v60, %v3347_v54 }
 0x1d1   : > { %v1900_v46 = vadd.f32 %v1899_v45, %v1767_v9  ;;  %v1567_v49 = vrot.slane %v1566_v3, 4  ;;  %v1832_v22 = vadd.f32 %v1831_v23, %v1768_v30 }
 0x1d2   : > { %v1636_v50 = vrot.slane %v1635_v10, 4 }
 0x1d3   : > { %v1901_v62 = vadd.f32 %v1900_v46, %v1769_v14  ;;  %v1568_v55 = vadd.f32 %v1567_v49, %v1566_v3  ;;  %v1833_v18 = vrot.slane %v1832_v22, 4 }
 0x1d4   : > { %v1637_v48 = vadd.f32 %v1636_v50, %v1635_v10 }
 0x1d5   : > { %v1902_v59 = vrot.slane %v1901_v62, 4  ;;  %v1569_v28 = vrot.slane %v1568_v55, 2  ;;  %v1834_v20 = vadd.f32 %v1833_v18, %v1832_v22 }
 0x1d6   : > { %v1638_v43 = vrot.slane %v1637_v48, 2 }
 0x1d7   : > { %v1903_v5 = vadd.f32 %v1902_v59, %v1901_v62  ;;  %v1570_v44 = vadd.f32 %v1569_v28, %v1568_v55  ;;  %v1835_v21 = vrot.slane %v1834_v20, 2 }
 0x1d8   : > { %v1639_v58 = vadd.f32 %v1638_v43, %v1637_v48 }
 0x1d9   : > { %v1904_v15 = vrot.slane %v1903_v5, 2  ;;  %v1571_v56 = vrot.slane %v1570_v44, 1  ;;  %v1836_v54 = vadd.f32 %v1835_v21, %v1834_v20 }
 0x1da   : > { %v1640_v24 = vrot.slane %v1639_v58, 1 }
 0x1db   : > { %v1905_v4 = vadd.f32 %v1904_v15, %v1903_v5  ;;  %v1837_v0 = vrot.slane %v1836_v54, 1  ;;  %v1572_v7 = vadd.f32 %v1571_v56, %v1570_v44 }
 0x1dc   : > { %v1641_v16 = vadd.f32 %v1640_v24, %v1639_v58 }
 0x1dd   : > { %v1906_v13 = vrot.slane %v1905_v4, 1  ;;  %v1838_v6 = vadd.f32 %v1837_v0, %v1836_v54 }
 0x1df   : > { %v1907_v27 = vadd.f32 %v1906_v13, %v1905_v4  ;;  %v1909_v63 = vsel %vm1908_vm0, %v1572_v7, %v1838_v6 }
 0x1e1   : > { %v1910_v53 = vsel %vm1908_vm0, %v1641_v16, %v1907_v27 }
 0x1e2   : > { %v1913_v32 = vcombine.low %v1909_v63, %v1910_v53 }
 0x1e4   : > { %v1920_v29 = vrot.slane %v1913_v32, %v1919_v35 }
 0x1e6   : > { %v1922_v17 = vadd.f32 %v1920_v29, %v1503_v37 }
 0x1e8   : > { %1923 = vst [vmem:[%s3477_s4] sm:$0xf] %v1922_v17 }
 0x1e9 PF: > { %s15_s15 = sadd.s32 1, %s2169_s15  }
 0x1ea   : > { %p12_p5 = scmp.ge.s32.totalorder %s15_s15, 5  }
 0x1ec   :  { %14 = sbr.rel (!%p12_p5) target bundleno = 1 (0x1), region = 74 }

// kernel: _lambda_.6
= control target key start
LH: loop header
LB: loop body
LE: loop exit
PB: predicated region body
PF: predicated region fallthrough
CT: control target
= control target key end

     0   :  { %s2830_s15 = smov 0   ;;  %s3847_s0 = inlined_call_operand.vmem [shape: bf16[1536,384], index: 0, kind: input, shape index: {}]   ;;  %s3848_s1 = inlined_call_operand.vmem [shape: bf16[384,128], index: 1, kind: input, shape index: {}]   ;;  %s3849_s2 = inlined_call_operand.vmem [shape: f32[1,128], index: 2, kind: input, shape index: {}]   ;;  %s3850_s3 = inlined_call_operand.vmem [shape: f32[1536,128], index: 3, kind: output, shape index: {0}]   ;;  %s3851_s4 = inlined_call_operand.vmem [shape: f32[2,128], index: 4, kind: output, shape index: {1}]  }
   0x1 LB: > { %s2836_s16 = sadd.s32 4294967295, %s2801_s15   ;;  %p2349_p0 = scmp.ge.s32.totalorder %s2801_s15, 1  ;;  %s2801_s15 = sphi %s2830_s15, %s15_s15  }
   0x2   : > { %p162_p1 = scmp.lt.s32.totalorder %s2801_s15, 4 }
   0x4   : > { %p163_p2 = pnand %p2349_p0, %p162_p1 }
   0x5   : > { %s2350_s17 = sshll.u32 (!%p163_p2), %s2836_s16, 6  ;;  %p2354_p4 = scmp.ne.s32.totalorder (!%p163_p2), %s2836_s16, 0 }
   0x6   : > { %166 = sbr.rel (%p163_p2) target bundleno = 540 (0x21c), region = 32  ;;  %p190_p3 = scmp.lt.s32.totalorder (!%p163_p2), %s2350_s17, 191 }
   0xd   : > { %s3853_s17 = smov (!%p190_p3, %s2350_s17), 191  ;;  %206 = sbr.rel (%p2354_p4) target bundleno = 20 (0x14), region = 36 }
   0xe   : > { %s2631_s18 = smul.u32 12, %s3853_s17  ;;  %s2353_s19 = sshll.u32 %s3853_s17, 3  ;;  %v2803_v0 = vmov (!%p2354_p4), 0.0  }
   0xf   : > { %s2844_s22 = scalar_lea.vmem %s3850_s3, %s2353_s19  ;;  %207 = vst [vmem:[%s3851_s4] sm:$0x3] (!%p2354_p4), %v2803_v0 }
  0x10   : > { %s2849_s25 = scalar_lea.vmem %s3847_s0, %s2631_s18 }
  0x14 PF: > { %v2642_v1 = vld [vmem:[%s3848_s1] sm:$0xff]   ;;  %v2804_v2 = vmov 0   ;;  %v2643_v3 = vld [vmem:[%s3848_s1 + $0x8] sm:$0xff]   ;;  %v2644_v4 = vld [vmem:[%s3848_s1 + $0x10] sm:$0xff]  }
  0x15   : > { %1047 = vmatprep.subr.bf16.mxu0 %v2804_v2  ;;  %2599 = vmatprep.subr.bf16.mxu1 %v2804_v2  ;;  %v2645_v5 = vld [vmem:[%s3848_s1 + $0x18] sm:$0xff]   ;;  %v2646_v6 = vld [vmem:[%s3848_s1 + $0x20] sm:$0xff]   ;;  %v2647_v8 = vld [vmem:[%s3848_s1 + $0x28] sm:$0xff]  }
  0x16   : > { %1048 = vmatpush1.bf16.msra.mxu0 %v2642_v1  ;;  %2615 = vmatpush1.bf16.msra.mxu1 %v2642_v1  ;;  %v2660_v7 = vld [vmem:[%s2849_s25 + $0x4] ss:$12 sps:$4 sm:$0xff]   ;;  %v2649_v11 = vld [vmem:[%s3848_s1 + $0x38] sm:$0xff]   ;;  %v2651_v13 = vld [vmem:[%s3848_s1 + $0x48] sm:$0xff]  }
  0x17   : > { %1049 = vmatprep.subr.bf16.mxu0 %v2804_v2  ;;  %2600 = vmatprep.subr.bf16.mxu1 %v2804_v2  ;;  %v2663_v9 = vld [vmem:[%s2849_s25 + $0x244] ss:$12 sps:$4 sm:$0xff]   ;;  %v2653_v15 = vld [vmem:[%s3848_s1 + $0x58] sm:$0xff]   ;;  %v2655_v17 = vld [vmem:[%s3848_s1 + $0x68] sm:$0xff]  }
  0x18   : > { %1079 = vmatprep.mubr.bf16.mxu0 %v2660_v7  ;;  %1271 = vmatprep.mubr.bf16.mxu1 %v2663_v9  ;;  %v2648_v10 = vld [vmem:[%s3848_s1 + $0x30] sm:$0xff]   ;;  %v2650_v12 = vld [vmem:[%s3848_s1 + $0x40] sm:$0xff]   ;;  %v2657_v19 = vld [vmem:[%s3848_s1 + $0x78] sm:$0xff]  }
  0x19   : > { %v2652_v14 = vld [vmem:[%s3848_s1 + $0x50] sm:$0xff]   ;;  %v2654_v16 = vld [vmem:[%s3848_s1 + $0x60] sm:$0xff]   ;;  %v2664_v23 = vld [vmem:[%s2849_s25 + $0x1c] ss:$12 sps:$4 sm:$0xff]  }
  0x1a   : > { %1050 = vmatpush1.bf16.msra.mxu0 %v2643_v3  ;;  %2616 = vmatpush1.bf16.msra.mxu1 %v2643_v3  ;;  %v2656_v18 = vld [vmem:[%s3848_s1 + $0x70] sm:$0xff]   ;;  %v2682_v20 = vld [vmem:[%s3848_s1 + $0x80] sm:$0xff]   ;;  %v2666_v24 = vld [vmem:[%s2849_s25 + $0x25c] ss:$12 sps:$4 sm:$0xff]  }
  0x1b   : > { %1051 = vmatprep.subr.bf16.mxu0 %v2804_v2  ;;  %2601 = vmatprep.subr.bf16.mxu1 %v2804_v2  ;;  %v2658_v21 = vld [vmem:[%s2849_s25] ss:$12 sps:$4 sm:$0xff]   ;;  %v2668_v26 = vld [vmem:[%s2849_s25 + $0x18] ss:$12 sps:$4 sm:$0xff]   ;;  %v2696_v27 = vld [vmem:[%s3848_s1 + $0x90] sm:$0xff]  }
  0x1c   : > { %v2661_v22 = vld [vmem:[%s2849_s25 + $0x240] ss:$12 sps:$4 sm:$0xff]   ;;  %v2669_v28 = vld [vmem:[%s2849_s25 + $0x258] ss:$12 sps:$4 sm:$0xff]   ;;  %v2674_v32 = vld [vmem:[%s2849_s25 + $0x30] ss:$12 sps:$4 sm:$0xff]  }
  0x1d   : > { %v2689_v25 = vld [vmem:[%s3848_s1 + $0x88] sm:$0xff]   ;;  %v2670_v29 = vld [vmem:[%s2849_s25 + $0x34] ss:$12 sps:$4 sm:$0xff]   ;;  %v2697_v31 = vld [vmem:[%s3848_s1 + $0x98] sm:$0xff]  }
  0x1e   : > { %1052 = vmatpush1.bf16.msra.mxu0 %v2644_v4  ;;  %2617 = vmatpush1.bf16.msra.mxu1 %v2644_v4  ;;  %v2672_v30 = vld [vmem:[%s2849_s25 + $0x274] ss:$12 sps:$4 sm:$0xff]   ;;  %v2675_v34 = vld [vmem:[%s2849_s25 + $0x270] ss:$12 sps:$4 sm:$0xff]   ;;  %v2676_v35 = vld [vmem:[%s2849_s25 + $0x4c] ss:$12 sps:$4 sm:$0xff]  }
  0x1f   : > { %1053 = vmatprep.subr.bf16.mxu0 %v2804_v2  ;;  %2602 = vmatprep.subr.bf16.mxu1 %v2804_v2  ;;  %v2704_v33 = vld [vmem:[%s3848_s1 + $0xa0] sm:$0xff]   ;;  %v2678_v36 = vld [vmem:[%s2849_s25 + $0x28c] ss:$12 sps:$4 sm:$0xff]   ;;  %v2680_v38 = vld [vmem:[%s2849_s25 + $0x48] ss:$12 sps:$4 sm:$0xff]  }
  0x20   : > { %v2705_v37 = vld [vmem:[%s3848_s1 + $0xa8] sm:$0xff]   ;;  %v2683_v40 = vld [vmem:[%s2849_s25 + $0x64] ss:$12 sps:$4 sm:$0xff]   ;;  %v2713_v43 = vld [vmem:[%s3848_s1 + $0xb8] sm:$0xff]  }
  0x21   : > { %v2681_v39 = vld [vmem:[%s2849_s25 + $0x288] ss:$12 sps:$4 sm:$0xff]   ;;  %v2685_v41 = vld [vmem:[%s2849_s25 + $0x2a4] ss:$12 sps:$4 sm:$0xff]   ;;  %v2687_v44 = vld [vmem:[%s2849_s25 + $0x60] ss:$12 sps:$4 sm:$0xff]  }
  0x22   : > { %1054 = vmatpush1.bf16.msra.mxu0 %v2645_v5  ;;  %2618 = vmatpush1.bf16.msra.mxu1 %v2645_v5  ;;  %v2712_v42 = vld [vmem:[%s3848_s1 + $0xb0] sm:$0xff]   ;;  %v2688_v45 = vld [vmem:[%s2849_s25 + $0x2a0] ss:$12 sps:$4 sm:$0xff]   ;;  %v2690_v46 = vld [vmem:[%s2849_s25 + $0x7c] ss:$12 sps:$4 sm:$0xff]  }
  0x23   : > { %1055 = vmatprep.subr.bf16.mxu0 %v2804_v2  ;;  %2603 = vmatprep.subr.bf16.mxu1 %v2804_v2  ;;  %v2692_v47 = vld [vmem:[%s2849_s25 + $0x2bc] ss:$12 sps:$4 sm:$0xff]   ;;  %v2694_v48 = vld [vmem:[%s2849_s25 + $0x78] ss:$12 sps:$4 sm:$0xff]   ;;  %v2698_v50 = vld [vmem:[%s2849_s25 + $0x94] ss:$12 sps:$4 sm:$0xff]  }
  0x24   : > { %v2695_v49 = vld [vmem:[%s2849_s25 + $0x2b8] ss:$12 sps:$4 sm:$0xff]   ;;  %v2700_v51 = vld [vmem:[%s2849_s25 + $0x2d4] ss:$12 sps:$4 sm:$0xff]   ;;  %v2702_v52 = vld [vmem:[%s2849_s25 + $0x90] ss:$12 sps:$4 sm:$0xff]  }
  0x25   : > { %v2703_v53 = vld [vmem:[%s2849_s25 + $0x2d0] ss:$12 sps:$4 sm:$0xff]   ;;  %v2706_v54 = vld [vmem:[%s2849_s25 + $0xac] ss:$12 sps:$4 sm:$0xff]   ;;  %v2710_v56 = vld [vmem:[%s2849_s25 + $0xa8] ss:$12 sps:$4 sm:$0xff]  }
  0x26   : > { %1056 = vmatpush1.bf16.msra.mxu0 %v2646_v6  ;;  %2619 = vmatpush1.bf16.msra.mxu1 %v2646_v6  ;;  %v2708_v55 = vld [vmem:[%s2849_s25 + $0x2ec] ss:$12 sps:$4 sm:$0xff]   ;;  %v2711_v57 = vld [vmem:[%s2849_s25 + $0x2e8] ss:$12 sps:$4 sm:$0xff]   ;;  %v2714_v58 = vld [vmem:[%s2849_s25 + $0xc4] ss:$12 sps:$4 sm:$0xff]  }
  0x27   : > { %1057 = vmatprep.subr.bf16.mxu0 %v2804_v2  ;;  %2604 = vmatprep.subr.bf16.mxu1 %v2804_v2  ;;  %v2716_v59 = vld [vmem:[%s2849_s25 + $0x8] ss:$12 sps:$4 sm:$0xff]   ;;  %v2717_v60 = vld [vmem:[%s2849_s25 + $0xc0] ss:$12 sps:$4 sm:$0xff]   ;;  %v2721_v63 = vld [vmem:[%s2849_s25 + $0x38] ss:$12 sps:$4 sm:$0xff]  }
  0x28   : > { %v2718_v61 = vld [vmem:[%s2849_s25 + $0x20] ss:$12 sps:$4 sm:$0xff]   ;;  %v2719_v62 = vld [vmem:[%s2849_s25 + $0xdc] ss:$12 sps:$4 sm:$0xff]   ;;  %v2722_v0 = vld [vmem:[%s2849_s25 + $0xd8] ss:$12 sps:$4 sm:$0xff]  }
  0x29   : > { %v2723_v1 = vld [vmem:[%s2849_s25 + $0x50] ss:$12 sps:$4 sm:$0xff]   ;;  %v2726_v3 = vld [vmem:[%s2849_s25 + $0x68] ss:$12 sps:$4 sm:$0xff]   ;;  %v2728_v5 = vld [vmem:[%s2849_s25 + $0x80] ss:$12 sps:$4 sm:$0xff]  }
  0x2a   : > { %1058 = vmatpush1.bf16.msra.mxu0 %v2647_v8  ;;  %2620 = vmatpush1.bf16.msra.mxu1 %v2647_v8  ;;  %v2727_v4 = vld [vmem:[%s2849_s25 + $0xf0] ss:$12 sps:$4 sm:$0xff]   ;;  %v2729_v6 = vld [vmem:[%s2849_s25 + $0x10c] ss:$12 sps:$4 sm:$0xff]   ;;  %v2732_v8 = vld [vmem:[%s2849_s25 + $0x108] ss:$12 sps:$4 sm:$0xff]  }
  0x2b   : > { %1059 = vmatprep.subr.bf16.mxu0 %v2804_v2  ;;  %2605 = vmatprep.subr.bf16.mxu1 %v2804_v2  ;;  %v2731_v7 = vld [vmem:[%s2849_s25 + $0x98] ss:$12 sps:$4 sm:$0xff]   ;;  %v2733_v9 = vld [vmem:[%s2849_s25 + $0xb0] ss:$12 sps:$4 sm:$0xff]  }
  0x2e   : > { %1060 = vmatpush1.bf16.msra.mxu0 %v2648_v10  ;;  %2621 = vmatpush1.bf16.msra.mxu1 %v2648_v10  ;;  %v2734_v10 = vld [vmem:[%s2849_s25 + $0x124] ss:$12 sps:$4 sm:$0xff]  }
  0x2f   : > { %1061 = vmatprep.subr.bf16.mxu0 %v2804_v2  ;;  %2606 = vmatprep.subr.bf16.mxu1 %v2804_v2 }
  0x32   : > { %1062 = vmatpush1.bf16.msra.mxu0 %v2649_v11  ;;  %2622 = vmatpush1.bf16.msra.mxu1 %v2649_v11  ;;  %v2736_v11 = vld [vmem:[%s2849_s25 + $0xc8] ss:$12 sps:$4 sm:$0xff]  }
  0x33   : > { %1063 = vmatprep.subr.bf16.mxu0 %v2804_v2  ;;  %2607 = vmatprep.subr.bf16.mxu1 %v2804_v2 }
  0x36   : > { %1064 = vmatpush1.bf16.msra.mxu0 %v2650_v12  ;;  %2623 = vmatpush1.bf16.msra.mxu1 %v2650_v12  ;;  %v2737_v12 = vld [vmem:[%s2849_s25 + $0x120] ss:$12 sps:$4 sm:$0xff]  }
  0x37   : > { %1065 = vmatprep.subr.bf16.mxu0 %v2804_v2  ;;  %2608 = vmatprep.subr.bf16.mxu1 %v2804_v2 }
  0x3a   : > { %1066 = vmatpush1.bf16.msra.mxu0 %v2651_v13  ;;  %2624 = vmatpush1.bf16.msra.mxu1 %v2651_v13  ;;  %v2738_v13 = vld [vmem:[%s2849_s25 + $0xe0] ss:$12 sps:$4 sm:$0xff]  }
  0x3b   : > { %1067 = vmatprep.subr.bf16.mxu0 %v2804_v2  ;;  %2609 = vmatprep.subr.bf16.mxu1 %v2804_v2 }
  0x3e   : > { %1068 = vmatpush1.bf16.msra.mxu0 %v2652_v14  ;;  %2625 = vmatpush1.bf16.msra.mxu1 %v2652_v14  ;;  %v2739_v14 = vld [vmem:[%s2849_s25 + $0x13c] ss:$12 sps:$4 sm:$0xff]  }
  0x3f   : > { %1069 = vmatprep.subr.bf16.mxu0 %v2804_v2  ;;  %2610 = vmatprep.subr.bf16.mxu1 %v2804_v2 }
  0x42   : > { %1070 = vmatpush1.bf16.msra.mxu0 %v2653_v15  ;;  %2626 = vmatpush1.bf16.msra.mxu1 %v2653_v15  ;;  %v2741_v15 = vld [vmem:[%s2849_s25 + $0xf8] ss:$12 sps:$4 sm:$0xff]  }
  0x43   : > { %1071 = vmatprep.subr.bf16.mxu0 %v2804_v2  ;;  %2611 = vmatprep.subr.bf16.mxu1 %v2804_v2 }
  0x46   : > { %1072 = vmatpush1.bf16.msra.mxu0 %v2654_v16  ;;  %2627 = vmatpush1.bf16.msra.mxu1 %v2654_v16  ;;  %v2742_v16 = vld [vmem:[%s2849_s25 + $0x138] ss:$12 sps:$4 sm:$0xff]  }
  0x47   : > { %1073 = vmatprep.subr.bf16.mxu0 %v2804_v2  ;;  %2612 = vmatprep.subr.bf16.mxu1 %v2804_v2 }
  0x4a   : > { %1074 = vmatpush1.bf16.msra.mxu0 %v2655_v17  ;;  %2628 = vmatpush1.bf16.msra.mxu1 %v2655_v17  ;;  %v2743_v17 = vld [vmem:[%s2849_s25 + $0x110] ss:$12 sps:$4 sm:$0xff]  }
  0x4b   : > { %1075 = vmatprep.subr.bf16.mxu0 %v2804_v2  ;;  %2613 = vmatprep.subr.bf16.mxu1 %v2804_v2 }
  0x4e   : > { %1076 = vmatpush1.bf16.msra.mxu0 %v2656_v18  ;;  %2629 = vmatpush1.bf16.msra.mxu1 %v2656_v18  ;;  %v2744_v18 = vld [vmem:[%s2849_s25 + $0x154] ss:$12 sps:$4 sm:$0xff]  }
  0x4f   : > { %1077 = vmatprep.subr.bf16.mxu0 %v2804_v2  ;;  %2614 = vmatprep.subr.bf16.mxu1 %v2804_v2  ;;  %v2724_v2 = vld [vmem:[%s2849_s25 + $0xf4] ss:$12 sps:$4 sm:$0xff]  }
  0x52   : > { %1078 = vmatpush1.bf16.msra.mxu0 %v2657_v19  ;;  %2630 = vmatpush1.bf16.msra.mxu1 %v2657_v19  ;;  %v2746_v19 = vld [vmem:[%s2849_s25 + $0x128] ss:$12 sps:$4 sm:$0xff]  }
  0x53   : > { %2519 = vmatprep.subr.bf16.mxu1 %v2682_v20 }
  0x55   : > { %1080 = vmatmul.mubr.bf16.vlgmr.msra.gmra.mrb[0].mxu0 %v2658_v21  ;;  %1272 = vmatmul.mubr.bf16.vlgmr.msra.gmra.mrb[0].mxu1 %v2661_v22  ;;  %v2748_v21 = vld [vmem:[%s2849_s25 + $0x140] ss:$12 sps:$4 sm:$0xff]  }
  0x56   : > { %1087 = vmatprep.mubr.bf16.mxu0 %v2664_v23  ;;  %1279 = vmatprep.mubr.bf16.mxu1 %v2666_v24  ;;  %v2749_v22 = vld [vmem:[%s2849_s25 + $0x16c] ss:$12 sps:$4 sm:$0xff]   ;;  %v2752_v24 = vld [vmem:[%s2849_s25 + $0x168] ss:$12 sps:$4 sm:$0xff]  }
  0x57   : > { %2520 = vmatpush3.bf16.msra.mxu1 %v2682_v20  ;;  %v2747_v20 = vld [vmem:[%s2849_s25 + $0x150] ss:$12 sps:$4 sm:$0xff]   ;;  %v2751_v23 = vld [vmem:[%s2849_s25 + $0x158] ss:$12 sps:$4 sm:$0xff]  }
  0x58   : > { %2521 = vmatprep.subr.bf16.mxu1 %v2689_v25 }
  0x5b   : > { %2522 = vmatpush3.bf16.msra.mxu1 %v2689_v25  ;;  %v2753_v25 = vld [vmem:[%s2849_s25 + $0x170] ss:$12 sps:$4 sm:$0xff]  }
  0x5c   : > { %2523 = vmatprep.subr.bf16.mxu1 %v2696_v27 }
  0x5d   : > { %1088 = vmatmul.mubr.bf16.gmra.mrb[4].mxu0 %v2668_v26  ;;  %1280 = vmatmul.mubr.bf16.gmra.mrb[4].mxu1 %v2669_v28  ;;  %v2754_v26 = vld [vmem:[%s2849_s25 + $0x184] ss:$12 sps:$4 sm:$0xff]   ;;  %v2757_v28 = vld [vmem:[%s2849_s25 + $0x180] ss:$12 sps:$4 sm:$0xff]  }
  0x5e   : > { %1095 = vmatprep.mubr.bf16.mxu0 %v2670_v29  ;;  %1287 = vmatprep.mubr.bf16.mxu1 %v2672_v30  ;;  %v2758_v29 = vld [vmem:[%s2849_s25 + $0x1a0] ss:$12 sps:$4 sm:$0xff]   ;;  %v2759_v30 = vld [vmem:[%s2849_s25 + $0x19c] ss:$12 sps:$4 sm:$0xff]  }
  0x5f   : > { %2524 = vmatpush3.bf16.msra.mxu1 %v2696_v27  ;;  %v2756_v27 = vld [vmem:[%s2849_s25 + $0x188] ss:$12 sps:$4 sm:$0xff]  }
  0x60   : > { %2525 = vmatprep.subr.bf16.mxu1 %v2697_v31 }
  0x63   : > { %2526 = vmatpush3.bf16.msra.mxu1 %v2697_v31  ;;  %v2761_v31 = vld [vmem:[%s2849_s25 + $0x1b8] ss:$12 sps:$4 sm:$0xff]  }
  0x64   : > { %2527 = vmatprep.subr.bf16.mxu1 %v2704_v33 }
  0x65   : > { %1096 = vmatmul.mubr.bf16.gmra.mrb[8].mxu0 %v2674_v32  ;;  %1288 = vmatmul.mubr.bf16.gmra.mrb[8].mxu1 %v2675_v34  ;;  %v2762_v32 = vld [vmem:[%s2849_s25 + $0x198] ss:$12 sps:$4 sm:$0xff]   ;;  %v2764_v34 = vld [vmem:[%s2849_s25 + $0x1b4] ss:$12 sps:$4 sm:$0xff]  }
  0x66   : > { %1103 = vmatprep.mubr.bf16.mxu0 %v2676_v35  ;;  %1295 = vmatprep.mubr.bf16.mxu1 %v2678_v36  ;;  %v2766_v35 = vld [vmem:[%s2849_s25 + $0x1e8] ss:$12 sps:$4 sm:$0xff]   ;;  %v2767_v36 = vld [vmem:[%s2849_s25 + $0x1b0] ss:$12 sps:$4 sm:$0xff]  }
  0x67   : > { %2528 = vmatpush3.bf16.msra.mxu1 %v2704_v33  ;;  %v2763_v33 = vld [vmem:[%s2849_s25 + $0x1d0] ss:$12 sps:$4 sm:$0xff]  }
  0x68   : > { %2529 = vmatprep.subr.bf16.mxu1 %v2705_v37 }
  0x6b   : > { %2530 = vmatpush3.bf16.msra.mxu1 %v2705_v37  ;;  %v2768_v37 = vld [vmem:[%s2849_s25 + $0x200] ss:$12 sps:$4 sm:$0xff]  }
  0x6c   : > { %2531 = vmatprep.subr.bf16.mxu1 %v2712_v42 }
  0x6d   : > { %1104 = vmatmul.mubr.bf16.gmra.mrb[12].mxu0 %v2680_v38  ;;  %1296 = vmatmul.mubr.bf16.gmra.mrb[12].mxu1 %v2681_v39  ;;  %v2769_v38 = vld [vmem:[%s2849_s25 + $0x1cc] ss:$12 sps:$4 sm:$0xff]  }
  0x6e   : > { %1111 = vmatprep.mubr.bf16.mxu0 %v2683_v40  ;;  %1303 = vmatprep.mubr.bf16.mxu1 %v2685_v41  ;;  %v2771_v39 = vld [vmem:[%s2849_s25 + $0x218] ss:$12 sps:$4 sm:$0xff]   ;;  %v2772_v40 = vld [vmem:[%s2849_s25 + $0x1c8] ss:$12 sps:$4 sm:$0xff]   ;;  %v2773_v41 = vld [vmem:[%s2849_s25 + $0x230] ss:$12 sps:$4 sm:$0xff]  }
  0x6f   : > { %2532 = vmatpush3.bf16.msra.mxu1 %v2712_v42  ;;  %v2774_v42 = vld [vmem:[%s2849_s25 + $0x1e4] ss:$12 sps:$4 sm:$0xff]  }
  0x70   : > { %2533 = vmatprep.subr.bf16.mxu1 %v2713_v43 }
  0x73   : > { %2534 = vmatpush3.bf16.msra.mxu1 %v2713_v43  ;;  %v2776_v43 = vld [vmem:[%s2849_s25 + $0x248] ss:$12 sps:$4 sm:$0xff]  }
  0x75   : > { %1112 = vmatmul.mubr.bf16.gmra.mrb[16].mxu0 %v2687_v44  ;;  %1304 = vmatmul.mubr.bf16.gmra.mrb[16].mxu1 %v2688_v45  ;;  %v2777_v44 = vld [vmem:[%s2849_s25 + $0x1e0] ss:$12 sps:$4 sm:$0xff]  }
  0x76   : > { %1119 = vmatprep.mubr.bf16.mxu0 %v2690_v46  ;;  %1311 = vmatprep.mubr.bf16.mxu1 %v2692_v47  ;;  %v2778_v45 = vld [vmem:[%s2849_s25 + $0x260] ss:$12 sps:$4 sm:$0xff]   ;;  %v2779_v46 = vld [vmem:[%s2849_s25 + $0x1fc] ss:$12 sps:$4 sm:$0xff]   ;;  %v2781_v47 = vld [vmem:[%s2849_s25 + $0x278] ss:$12 sps:$4 sm:$0xff]  }
  0x7d   : > { %1120 = vmatmul.mubr.bf16.gmra.mrb[20].mxu0 %v2694_v48  ;;  %1312 = vmatmul.mubr.bf16.gmra.mrb[20].mxu1 %v2695_v49  ;;  %v2782_v48 = vld [vmem:[%s2849_s25 + $0x1f8] ss:$12 sps:$4 sm:$0xff]   ;;  %v2783_v49 = vld [vmem:[%s2849_s25 + $0x290] ss:$12 sps:$4 sm:$0xff]  }
  0x7e   : > { %1127 = vmatprep.mubr.bf16.mxu0 %v2698_v50  ;;  %1319 = vmatprep.mubr.bf16.mxu1 %v2700_v51  ;;  %v2784_v50 = vld [vmem:[%s2849_s25 + $0x214] ss:$12 sps:$4 sm:$0xff]  }
  0x7f   : > { %v2786_v51 = vld [vmem:[%s2849_s25 + $0x2a8] ss:$12 sps:$4 sm:$0xff]  }
  0x85   : > { %1128 = vmatmul.mubr.bf16.gmra.mrb[24].mxu0 %v2702_v52  ;;  %1320 = vmatmul.mubr.bf16.gmra.mrb[24].mxu1 %v2703_v53  ;;  %v2787_v52 = vld [vmem:[%s2849_s25 + $0x210] ss:$12 sps:$4 sm:$0xff]   ;;  %v2788_v53 = vld [vmem:[%s2849_s25 + $0x2c0] ss:$12 sps:$4 sm:$0xff]  }
  0x86   : > { %1135 = vmatprep.mubr.bf16.mxu0 %v2706_v54  ;;  %1327 = vmatprep.mubr.bf16.mxu1 %v2708_v55  ;;  %v2789_v54 = vld [vmem:[%s2849_s25 + $0x22c] ss:$12 sps:$4 sm:$0xff]  }
  0x87   : > { %v2791_v55 = vld [vmem:[%s2849_s25 + $0x2d8] ss:$12 sps:$4 sm:$0xff]  }
  0x8d   : > { %1136 = vmatmul.mubr.bf16.gmra.mrb[28].mxu0 %v2710_v56  ;;  %1328 = vmatmul.mubr.bf16.gmra.mrb[28].mxu1 %v2711_v57  ;;  %v2792_v56 = vld [vmem:[%s2849_s25 + $0x228] ss:$12 sps:$4 sm:$0xff]   ;;  %v2793_v57 = vld [vmem:[%s2849_s25 + $0x2f0] ss:$12 sps:$4 sm:$0xff]   ;;  %s2476_s25 = sshll.u32 %s2836_s16, 9 }
  0x8e   : > { %1143 = vmatprep.mubr.bf16.mxu0 %v2714_v58  ;;  %2535 = vmatprep.mubr.bf16.mxu1 %v2716_v59 }
  0x95   : > { %1144 = vmatmul.mubr.bf16.gmra.mrb[32].mxu0 %v2717_v60  ;;  %2536 = vmatmul.mubr.bf16.vlgmr.msra.gmra.mrb[32].mxu1 %v2718_v61 }
  0x96   : > { %1151 = vmatprep.mubr.bf16.mxu0 %v2719_v62  ;;  %2539 = vmatprep.mubr.bf16.mxu1 %v2721_v63 }
  0x9d   : > { %1152 = vmatmul.mubr.bf16.gmra.mrb[36].mxu0 %v2722_v0  ;;  %2540 = vmatmul.mubr.bf16.gmra.mrb[36].mxu1 %v2723_v1 }
  0x9e   : > { %1159 = vmatprep.mubr.bf16.mxu0 %v2724_v2  ;;  %2543 = vmatprep.mubr.bf16.mxu1 %v2726_v3 }
  0xa5   : > { %1160 = vmatmul.mubr.bf16.gmra.mrb[40].mxu0 %v2727_v4  ;;  %2544 = vmatmul.mubr.bf16.gmra.mrb[40].mxu1 %v2728_v5 }
  0xa6   : > { %1167 = vmatprep.mubr.bf16.mxu0 %v2729_v6  ;;  %2547 = vmatprep.mubr.bf16.mxu1 %v2731_v7 }
  0xad   : > { %1168 = vmatmul.mubr.bf16.gmra.mrb[44].mxu0 %v2732_v8  ;;  %2548 = vmatmul.mubr.bf16.gmra.mrb[44].mxu1 %v2733_v9 }
  0xae   : > { %1175 = vmatprep.mubr.bf16.mxu0 %v2734_v10  ;;  %2551 = vmatprep.mubr.bf16.mxu1 %v2736_v11 }
  0xb5   : > { %1176 = vmatmul.mubr.bf16.gmra.mrb[48].mxu0 %v2737_v12  ;;  %2552 = vmatmul.mubr.bf16.gmra.mrb[48].mxu1 %v2738_v13 }
  0xb6   : > { %1183 = vmatprep.mubr.bf16.mxu0 %v2739_v14  ;;  %2555 = vmatprep.mubr.bf16.mxu1 %v2741_v15 }
  0xbd   : > { %1184 = vmatmul.mubr.bf16.gmra.mrb[52].mxu0 %v2742_v16  ;;  %2556 = vmatmul.mubr.bf16.gmra.mrb[52].mxu1 %v2743_v17 }
  0xbe   : > { %1191 = vmatprep.mubr.bf16.mxu0 %v2744_v18  ;;  %2559 = vmatprep.mubr.bf16.mxu1 %v2746_v19 }
  0xc5   : > { %1192 = vmatmul.mubr.bf16.gmra.mrb[56].mxu0 %v2747_v20  ;;  %2560 = vmatmul.mubr.bf16.gmra.mrb[56].mxu1 %v2748_v21 }
  0xc6   : > { %1199 = vmatprep.mubr.bf16.mxu0 %v2749_v22  ;;  %2563 = vmatprep.mubr.bf16.mxu1 %v2751_v23 }
  0xcd   : > { %1200 = vmatmul.mubr.bf16.gmra.mrb[60].mxu0 %v2752_v24  ;;  %2564 = vmatmul.mubr.bf16.gmra.mrb[60].mxu1 %v2753_v25 }
  0xce   : > { %1207 = vmatprep.mubr.bf16.mxu0 %v2754_v26  ;;  %2567 = vmatprep.mubr.bf16.mxu1 %v2756_v27 }
  0xd5   : > { %1208 = vmatmul.mubr.bf16.gmra.mrb[64].mxu0 %v2757_v28  ;;  %2568 = vmatmul.mubr.bf16.gmra.mrb[64].mxu1 %v2758_v29 }
  0xd6   : > { %1215 = vmatprep.mubr.bf16.mxu0 %v2759_v30  ;;  %2571 = vmatprep.mubr.bf16.mxu1 %v2761_v31 }
  0xdd   : > { %1216 = vmatmul.mubr.bf16.gmra.mrb[68].mxu0 %v2762_v32  ;;  %2572 = vmatmul.mubr.bf16.gmra.mrb[68].mxu1 %v2763_v33 }
  0xde   : > { %1223 = vmatprep.mubr.bf16.mxu0 %v2764_v34  ;;  %2575 = vmatprep.mubr.bf16.mxu1 %v2766_v35 }
  0xe5   : > { %1224 = vmatmul.mubr.bf16.gmra.mrb[72].mxu0 %v2767_v36  ;;  %2576 = vmatmul.mubr.bf16.gmra.mrb[72].mxu1 %v2768_v37 }
  0xe6   : > { %1231 = vmatprep.mubr.bf16.mxu0 %v2769_v38  ;;  %2579 = vmatprep.mubr.bf16.mxu1 %v2771_v39 }
  0xed   : > { %1232 = vmatmul.mubr.bf16.gmra.mrb[76].mxu0 %v2772_v40  ;;  %2580 = vmatmul.mubr.bf16.gmra.mrb[76].mxu1 %v2773_v41 }
  0xee   : > { %1239 = vmatprep.mubr.bf16.mxu0 %v2774_v42  ;;  %2583 = vmatprep.mubr.bf16.mxu1 %v2776_v43  ;;  %v1626_v42 = vlaneseq }
  0xf5   : > { %1240 = vmatmul.mubr.bf16.gmra.mrb[80].mxu0 %v2777_v44  ;;  %2584 = vmatmul.mubr.bf16.gmra.mrb[80].mxu1 %v2778_v45 }
  0xf6   : > { %1247 = vmatprep.mubr.bf16.mxu0 %v2779_v46  ;;  %2587 = vmatprep.mubr.bf16.mxu1 %v2781_v47 }
  0xfd   : > { %1248 = vmatmul.mubr.bf16.gmra.mrb[84].mxu0 %v2782_v48  ;;  %2588 = vmatmul.mubr.bf16.gmra.mrb[84].mxu1 %v2783_v49  ;;  %v3111_v49 = vshrl.u32 %v1626_v42, 7 }
  0xfe   : > { %1255 = vmatprep.mubr.bf16.mxu0 %v2784_v50  ;;  %2591 = vmatprep.mubr.bf16.mxu1 %v2786_v51 }
 0x105   : > { %1256 = vmatmul.mubr.bf16.gmra.mrb[88].mxu0 %v2787_v52  ;;  %2592 = vmatmul.mubr.bf16.gmra.mrb[88].mxu1 %v2788_v53  ;;  %v1629_v52 = vadd.s32 16, %v3111_v49  ;;  %v3115_v53 = vstv %s2476_s25 }
 0x106   : > { %1263 = vmatprep.mubr.bf16.mxu0 %v2789_v54  ;;  %2595 = vmatprep.mubr.bf16.mxu1 %v2791_v55  ;;  %v1630_v54 = vadd.s32 24, %v3111_v49 }
 0x10d   : > { %1264 = vmatmul.mubr.bf16.gmra.mrb[92].mxu0 %v2792_v56  ;;  %2596 = vmatmul.mubr.bf16.gmra.mrb[92].mxu1 %v2793_v57 }
 0x128   : > { %v3055_v58 = vpop.f32.mrb[0].mxu0  ;;  %v3057_v59 = vpop.f32.mrb[0].mxu1 }
 0x129   : > { %v1083_v60 = vpop.f32.mrb[1].mxu0  ;;  %v1275_v61 = vpop.f32.mrb[1].mxu1 }
 0x12a   : > { %v3059_v62 = vpop.f32.mrb[2].mxu0  ;;  %v3061_v63 = vpop.f32.mrb[2].mxu1 }
 0x12b   : > { %v1086_v0 = vpop.f32.mrb[3].mxu0  ;;  %v1278_v1 = vpop.f32.mrb[3].mxu1 }
 0x12c   : > { %v1694_v1 = vadd.s32 %v3115_v53, %v1629_v52 }
 0x12e   : > { %vm1758_vm0 = vcmp.lt.s32.totalorder %v1694_v1, 1200 }
 0x130   : > { %v3063_v2 = vpop.f32.mrb[4].mxu0  ;;  %v3065_v3 = vpop.f32.mrb[4].mxu1 }
 0x131   : > { %v1091_v4 = vpop.f32.mrb[5].mxu0  ;;  %v1283_v5 = vpop.f32.mrb[5].mxu1 }
 0x132   : > { %v3067_v6 = vpop.f32.mrb[6].mxu0  ;;  %v3069_v7 = vpop.f32.mrb[6].mxu1  ;;  %v1692_v4 = vadd.s32 %v3115_v53, %v3111_v49 }
 0x133   : > { %v1094_v8 = vpop.f32.mrb[7].mxu0  ;;  %v1286_v9 = vpop.f32.mrb[7].mxu1 }
 0x134   : > { %v1695_v9 = vadd.s32 %v3115_v53, %v1630_v54  ;;  %vm1756_vm1 = vcmp.lt.s32.totalorder %v1692_v4, 1200 }
 0x136   : > { %vm1759_vm2 = vcmp.lt.s32.totalorder %v1695_v9, 1200 }
 0x138   : > { %v3071_v10 = vpop.f32.mrb[8].mxu0  ;;  %v3073_v11 = vpop.f32.mrb[8].mxu1 }
 0x139   : > { %v1099_v12 = vpop.f32.mrb[9].mxu0  ;;  %v1291_v13 = vpop.f32.mrb[9].mxu1 }
 0x13a   : > { %v3075_v14 = vpop.f32.mrb[10].mxu0  ;;  %v3077_v15 = vpop.f32.mrb[10].mxu1  ;;  %v1628_v12 = vadd.s32 8, %v3111_v49  ;;  %v1633_v13 = vadd.s32 48, %v3111_v49 }
 0x13b   : > { %v1102_v16 = vpop.f32.mrb[11].mxu0  ;;  %v1294_v17 = vpop.f32.mrb[11].mxu1 }
 0x13c   : > { %v1631_v16 = vadd.s32 32, %v3111_v49  ;;  %v1634_v17 = vadd.s32 56, %v3111_v49 }
 0x140   : > { %v3079_v18 = vpop.f32.mrb[12].mxu0  ;;  %v3081_v19 = vpop.f32.mrb[12].mxu1 }
 0x141   : > { %v1107_v20 = vpop.f32.mrb[13].mxu0  ;;  %v1299_v21 = vpop.f32.mrb[13].mxu1 }
 0x142   : > { %v3083_v22 = vpop.f32.mrb[14].mxu0  ;;  %v3085_v23 = vpop.f32.mrb[14].mxu1  ;;  %v3137_v20 = vld [vmem:[%s3849_s2] ss:$0 sm:$0xff]  ;;  %v1632_v21 = vadd.s32 40, %v3111_v49 }
 0x143   : > { %v1110_v24 = vpop.f32.mrb[15].mxu0  ;;  %v1302_v25 = vpop.f32.mrb[15].mxu1  ;;  %v1106_v9 = vadd.f32 %v3137_v20, %v3079_v18 }
 0x144   : > { %v1090_v24 = vadd.f32 %v3137_v20, %v3063_v2  ;;  %v1693_v25 = vadd.s32 %v3115_v53, %v1628_v12  ;;  %v1637_v2 = vadd.s32 80, %v3111_v49 }
 0x146   : > { %vm1757_vm3 = vcmp.lt.s32.totalorder %v1693_v25, 1200 }
 0x148   : > { %v3087_v26 = vpop.f32.mrb[16].mxu0  ;;  %v3089_v27 = vpop.f32.mrb[16].mxu1 }
 0x149   : > { %v1115_v28 = vpop.f32.mrb[17].mxu0  ;;  %v1307_v29 = vpop.f32.mrb[17].mxu1 }
 0x14a   : > { %v3091_v30 = vpop.f32.mrb[18].mxu0  ;;  %v3093_v31 = vpop.f32.mrb[18].mxu1  ;;  %v3144_v28 = vadd.s32 %v3115_v53, %v1633_v13  ;;  %v1082_v29 = vadd.f32 %v3137_v20, %v3055_v58  ;;  %v3160_v58 = vadd.s32 %v3115_v53, %v1632_v21 }
 0x14b   : > { %v1118_v32 = vpop.f32.mrb[19].mxu0  ;;  %v1310_v33 = vpop.f32.mrb[19].mxu1 }
 0x14c   : > { %vm1762_vm4 = vcmp.lt.s32.totalorder %v3144_v28, 1200  ;;  %vm1761_vm7 = vcmp.lt.s32.totalorder %v3160_v58, 1200 }
 0x150   : > { %v3095_v34 = vpop.f32.mrb[20].mxu0  ;;  %v3097_v35 = vpop.f32.mrb[20].mxu1 }
 0x151   : > { %v1123_v36 = vpop.f32.mrb[21].mxu0  ;;  %v1315_v37 = vpop.f32.mrb[21].mxu1 }
 0x152   : > { %v3099_v38 = vpop.f32.mrb[22].mxu0  ;;  %v3101_v39 = vpop.f32.mrb[22].mxu1  ;;  %v3151_v36 = vadd.s32 %v3115_v53, %v1631_v16  ;;  %v3154_v37 = vadd.s32 %v3115_v53, %v1634_v17  ;;  %v3174_v16 = vadd.s32 %v3115_v53, %v1637_v2  ;;  %v1641_v17 = vadd.s32 112, %v3111_v49 }
 0x153   : > { %v1126_v40 = vpop.f32.mrb[23].mxu0  ;;  %v1318_v41 = vpop.f32.mrb[23].mxu1 }
 0x154   : > { %v1093_v40 = vadd.f32 %v3137_v20, %v3067_v6  ;;  %v1636_v6 = vadd.s32 72, %v3111_v49  ;;  %vm1760_vm5 = vcmp.lt.s32.totalorder %v3151_v36, 1200  ;;  %vm1763_vm6 = vcmp.lt.s32.totalorder %v3154_v37, 1200 }
 0x155   : > { %vm1766_vm8 = vcmp.lt.s32.totalorder %v3174_v16, 1200  ;;  %v1114_v37 = vadd.f32 %v3137_v20, %v3087_v26  ;;  %v1117_v26 = vadd.f32 %v3137_v20, %v3091_v30 }
 0x156   : > { %v3190_v25 = vadd.s32 %v3115_v53, %v1636_v6 }
 0x158   : > { %v3103_v43 = vpop.f32.mrb[24].mxu0  ;;  %v3105_v44 = vpop.f32.mrb[24].mxu1  ;;  %vm1765_vm11 = vcmp.lt.s32.totalorder %v3190_v25, 1200 }
 0x159   : > { %v1131_v45 = vpop.f32.mrb[25].mxu0  ;;  %v1323_v46 = vpop.f32.mrb[25].mxu1 }
 0x15a   : > { %v3107_v47 = vpop.f32.mrb[26].mxu0  ;;  %v3109_v48 = vpop.f32.mrb[26].mxu1  ;;  %v1635_v46 = vadd.s32 64, %v3111_v49 }
 0x15b   : > { %v1134_v50 = vpop.f32.mrb[27].mxu0  ;;  %v1326_v51 = vpop.f32.mrb[27].mxu1 }
 0x15c   : > { %v1085_v50 = vadd.f32 %v3137_v20, %v3059_v62  ;;  %v3182_v21 = vadd.s32 %v3115_v53, %v1635_v46  ;;  %v1639_v46 = vadd.s32 96, %v3111_v49 }
 0x15e   : > { %vm1764_vm9 = vcmp.lt.s32.totalorder %v3182_v21, 1200 }
 0x160   : > { %v3118_v55 = vpop.f32.mrb[28].mxu0  ;;  %v3120_v56 = vpop.f32.mrb[28].mxu1 }
 0x161   : > { %v1139_v57 = vpop.f32.mrb[29].mxu0  ;;  %v1331_v60 = vpop.f32.mrb[29].mxu1 }
 0x162   : > { %v3122_v61 = vpop.f32.mrb[30].mxu0  ;;  %v3124_v0 = vpop.f32.mrb[30].mxu1  ;;  %v1638_v57 = vadd.s32 88, %v3111_v49 }
 0x163   : > { %v1142_v5 = vpop.f32.mrb[31].mxu0  ;;  %v1334_v8 = vpop.f32.mrb[31].mxu1 }
 0x168   : > { %v3148_v32 = vpop.f32.mrb[32].mxu0  ;;  %v2537_v33 = vpop.f32.mrb[32].mxu1 }
 0x169   : > { %v1379_v41 = vadd.f32 %v2537_v33, %v1090_v24  ;;  %v1147_v42 = vpop.f32.mrb[33].mxu0  ;;  %v1370_v45 = vpop.f32.mrb[33].mxu1  ;;  %v3187_v24 = vadd.s32 %v3115_v53, %v1638_v57 }
 0x16a   : > { %v1371_v51 = vadd.f32 %v1370_v45, %v1082_v29  ;;  %v3165_v52 = vpop.f32.mrb[34].mxu0  ;;  %v2538_v54 = vpop.f32.mrb[34].mxu1  ;;  %v3201_v45 = vadd.s32 %v3115_v53, %v1641_v17 }
 0x16b   : > { %v1950_v60 = vsel %vm1758_vm0, %v1379_v41, 0.0  ;;  %v1382_v5 = vadd.f32 %v2538_v54, %v1093_v40  ;;  %v1150_v8 = vpop.f32.mrb[35].mxu0  ;;  %v1373_v12 = vpop.f32.mrb[35].mxu1  ;;  %v1098_v40 = vadd.f32 %v3137_v20, %v3071_v10  ;;  %v1101_v10 = vadd.f32 %v3137_v20, %v3075_v14 }
 0x16c   : > { %2014 = vst [vmem:[%s2844_s22 + $0x10] sm:$0xff] %v1950_v60  ;;  %v1948_v62 = vsel %vm1756_vm1, %v1371_v51, 0.0  ;;  %v1374_v13 = vadd.f32 %v1373_v12, %v1085_v50  ;;  %v1642_v50 = vadd.s32 120, %v3111_v49  ;;  %v2148_v18 = vmul.f32 %v1950_v60, %v1950_v60 }
 0x16d   : > { %2012 = vst [vmem:[%s2844_s22] sm:$0xff] %v1948_v62  ;;  %v1951_v1 = vsel %vm1759_vm2, %v1382_v5, 0.0  ;;  %v2146_v29 = vmul.f32 %v1948_v62, %v1948_v62  ;;  %v1109_v8 = vadd.f32 %v3137_v20, %v3083_v22  ;;  %vm1767_vm10 = vcmp.lt.s32.totalorder %v3187_v24, 1200 }
 0x16e   : > { %2015 = vst [vmem:[%s2844_s22 + $0x18] sm:$0xff] %v1951_v1  ;;  %v1949_v4 = vsel %vm1757_vm3, %v1374_v13, 0.0  ;;  %v2149_v17 = vmul.f32 %v1951_v1, %v1951_v1  ;;  %vm1770_vm12 = vcmp.lt.s32.totalorder %v3201_v45, 1200  ;;  %v1130_v24 = vadd.f32 %v3137_v20, %v3103_v43 }
 0x16f   : > { %2013 = vst [vmem:[%s2844_s22 + $0x8] sm:$0xff] %v1949_v4  ;;  %v2077_v33 = vadd.f32 %v1949_v4, %v1948_v62  ;;  %v2147_v2 = vmul.f32 %v1949_v4, %v1949_v4  ;;  %v1133_v43 = vadd.f32 %v3137_v20, %v3107_v47 }
 0x170   : > { %v3197_v41 = vpop.f32.mrb[36].mxu0  ;;  %v2541_v42 = vpop.f32.mrb[36].mxu1 }
 0x171   : > { %v2078_v51 = vadd.f32 %v2077_v33, %v1950_v60  ;;  %v2210_v54 = vadd.f32 %v2147_v2, %v2146_v29  ;;  %v1395_v57 = vadd.f32 %v2541_v42, %v1106_v9  ;;  %v1155_v6 = vpop.f32.mrb[37].mxu0  ;;  %v1386_v5 = vpop.f32.mrb[37].mxu1  ;;  %v1640_v60 = vadd.s32 104, %v3111_v49 }
 0x172   : > { %v1387_v12 = vadd.f32 %v1386_v5, %v1098_v40  ;;  %v3210_v62 = vpop.f32.mrb[38].mxu0  ;;  %v2542_v13 = vpop.f32.mrb[38].mxu1  ;;  %v1645_v42 = vadd.s32 144, %v3111_v49  ;;  %v1122_v5 = vadd.f32 %v3137_v20, %v3095_v34  ;;  %v1646_v34 = vadd.s32 152, %v3111_v49 }
 0x173   : > { %v2211_v4 = vadd.f32 %v2210_v54, %v2148_v18  ;;  %v1954_v9 = vsel %vm1762_vm4, %v1395_v57, 0.0  ;;  %v2079_v29 = vadd.f32 %v2078_v51, %v1951_v1  ;;  %v1158_v33 = vpop.f32.mrb[39].mxu0  ;;  %v1389_v2 = vpop.f32.mrb[39].mxu1  ;;  %v1398_v22 = vadd.f32 %v2542_v13, %v1109_v8 }
 0x174   : > { %2018 = vst [vmem:[%s2844_s22 + $0x30] sm:$0xff] %v1954_v9  ;;  %v1952_v14 = vsel %vm1760_vm5, %v1387_v12, 0.0  ;;  %v1390_v40 = vadd.f32 %v1389_v2, %v1101_v10  ;;  %v3223_v51 = vadd.s32 %v3115_v53, %v1639_v46  ;;  %v3230_v57 = vadd.s32 %v3115_v53, %v1642_v50 }
 0x175   : > { %2016 = vst [vmem:[%s2844_s22 + $0x20] sm:$0xff] %v1952_v14  ;;  %v2080_v28 = vadd.f32 %v2079_v29, %v1952_v14  ;;  %v2150_v18 = vmul.f32 %v1952_v14, %v1952_v14  ;;  %v2212_v1 = vadd.f32 %v2211_v4, %v2149_v17  ;;  %v1955_v54 = vsel %vm1763_vm6, %v1398_v22, 0.0 }
 0x176   : > { %v1953_v36 = vsel %vm1761_vm7, %v1390_v40, 0.0  ;;  %v3233_v6 = vadd.s32 %v3115_v53, %v1640_v60  ;;  %2019 = vst [vmem:[%s2844_s22 + $0x38] sm:$0xff] %v1955_v54  ;;  %v3245_v50 = vadd.s32 %v3115_v53, %v1645_v42  ;;  %v1643_v13 = vadd.s32 128, %v3111_v49 }
 0x177   : > { %v2213_v10 = vadd.f32 %v2212_v1, %v2150_v18  ;;  %2017 = vst [vmem:[%s2844_s22 + $0x28] sm:$0xff] %v1953_v36  ;;  %v2081_v46 = vadd.f32 %v2080_v28, %v1953_v36  ;;  %v2151_v8 = vmul.f32 %v1953_v36, %v1953_v36  ;;  %v2152_v60 = vmul.f32 %v1954_v9, %v1954_v9 }
 0x178   : > { %v3241_v12 = vpop.f32.mrb[40].mxu0  ;;  %v2545_v58 = vpop.f32.mrb[40].mxu1  ;;  %vm1768_vm13 = vcmp.lt.s32.totalorder %v3223_v51, 1200  ;;  %v1125_v14 = vadd.f32 %v3137_v20, %v3099_v38  ;;  %v2153_v28 = vmul.f32 %v1955_v54, %v1955_v54  ;;  %vm1771_vm14 = vcmp.lt.s32.totalorder %v3230_v57, 1200 }
 0x179   : > { %v2082_v17 = vadd.f32 %v2081_v46, %v1954_v9  ;;  %v2214_v4 = vadd.f32 %v2213_v10, %v2151_v8  ;;  %v1411_v29 = vadd.f32 %v2545_v58, %v1122_v5  ;;  %v1163_v33 = vpop.f32.mrb[41].mxu0  ;;  %v1402_v2 = vpop.f32.mrb[41].mxu1  ;;  %v1644_v9 = vadd.s32 136, %v3111_v49 }
 0x17a   : > { %v1403_v22 = vadd.f32 %v1402_v2, %v1114_v37  ;;  %v3254_v40 = vpop.f32.mrb[42].mxu0  ;;  %v2546_v42 = vpop.f32.mrb[42].mxu1  ;;  %vm1769_vm15 = vcmp.lt.s32.totalorder %v3233_v6, 1200  ;;  %v1649_v8 = vadd.s32 176, %v3111_v49  ;;  %v3267_v58 = vadd.s32 %v3115_v53, %v1643_v13 }
 0x17b   : > { %v2215_v18 = vadd.f32 %v2214_v4, %v2152_v60  ;;  %v1958_v1 = vsel %vm1766_vm8, %v1411_v29, 0.0  ;;  %v2083_v36 = vadd.f32 %v2082_v17, %v1955_v54  ;;  %v1166_v5 = vpop.f32.mrb[43].mxu0  ;;  %v1405_v10 = vpop.f32.mrb[43].mxu1  ;;  %v1414_v38 = vadd.f32 %v2546_v42, %v1125_v14 }
 0x17c   : > { %2022 = vst [vmem:[%s2844_s22 + $0x50] sm:$0xff] %v1958_v1  ;;  %v1956_v30 = vsel %vm1764_vm9, %v1403_v22, 0.0  ;;  %v1406_v46 = vadd.f32 %v1405_v10, %v1117_v26  ;;  %v3274_v17 = vadd.s32 %v3115_v53, %v1646_v34  ;;  %v3277_v4 = vadd.s32 %v3115_v53, %v1644_v9 }
 0x17d   : > { %2020 = vst [vmem:[%s2844_s22 + $0x40] sm:$0xff] %v1956_v30  ;;  %v2084_v16 = vadd.f32 %v2083_v36, %v1956_v30  ;;  %v2154_v37 = vmul.f32 %v1956_v30, %v1956_v30  ;;  %v2216_v54 = vadd.f32 %v2215_v18, %v2153_v28  ;;  %v1959_v60 = vsel %vm1767_vm10, %v1414_v38, 0.0 }
 0x17e   : > { %v1957_v21 = vsel %vm1765_vm11, %v1406_v46, 0.0  ;;  %v1138_v29 = vadd.f32 %v3137_v20, %v3118_v55  ;;  %2023 = vst [vmem:[%s2844_s22 + $0x58] sm:$0xff] %v1959_v60  ;;  %vm1774_vm0 = vcmp.lt.s32.totalorder %v3245_v50, 1200  ;;  %v3289_v34 = vadd.s32 %v3115_v53, %v1649_v8 }
 0x17f   : > { %v2217_v33 = vadd.f32 %v2216_v54, %v2154_v37  ;;  %2021 = vst [vmem:[%s2844_s22 + $0x48] sm:$0xff] %v1957_v21  ;;  %v2085_v13 = vadd.f32 %v2084_v16, %v1957_v21  ;;  %v2155_v2 = vmul.f32 %v1957_v21, %v1957_v21  ;;  %v1647_v14 = vadd.s32 160, %v3111_v49 }
 0x180   : > { %v3285_v26 = vpop.f32.mrb[44].mxu0  ;;  %v2549_v25 = vpop.f32.mrb[44].mxu1  ;;  %v1650_v55 = vadd.s32 184, %v3111_v49  ;;  %v2156_v22 = vmul.f32 %v1958_v1, %v1958_v1  ;;  %vm1772_vm1 = vcmp.lt.s32.totalorder %v3267_v58, 1200  ;;  %v1141_v5 = vadd.f32 %v3137_v20, %v3122_v61 }
 0x181   : > { %v2086_v42 = vadd.f32 %v2085_v13, %v1958_v1  ;;  %v2218_v9 = vadd.f32 %v2217_v33, %v2155_v2  ;;  %v1427_v28 = vadd.f32 %v2549_v25, %v1138_v29  ;;  %v1171_v18 = vpop.f32.mrb[45].mxu0  ;;  %v1418_v36 = vpop.f32.mrb[45].mxu1  ;;  %v1648_v1 = vadd.s32 168, %v3111_v49 }
 0x182   : > { %v1419_v10 = vadd.f32 %v1418_v36, %v1130_v24  ;;  %v3298_v30 = vpop.f32.mrb[46].mxu0  ;;  %v2550_v38 = vpop.f32.mrb[46].mxu1  ;;  %v2157_v46 = vmul.f32 %v1959_v60, %v1959_v60  ;;  %vm1775_vm2 = vcmp.lt.s32.totalorder %v3274_v17, 1200  ;;  %v1653_v33 = vadd.s32 208, %v3111_v49 }
 0x183   : > { %v2219_v8 = vadd.f32 %v2218_v9, %v2156_v22  ;;  %v1962_v16 = vsel %vm1770_vm12, %v1427_v28, 0.0  ;;  %v2087_v37 = vadd.f32 %v2086_v42, %v1959_v60  ;;  %v1174_v54 = vpop.f32.mrb[47].mxu0  ;;  %v1421_v21 = vpop.f32.mrb[47].mxu1  ;;  %v1430_v61 = vadd.f32 %v2550_v38, %v1141_v5 }
 0x184   : > { %2026 = vst [vmem:[%s2844_s22 + $0x70] sm:$0xff] %v1962_v16  ;;  %v1960_v47 = vsel %vm1768_vm13, %v1419_v10, 0.0  ;;  %v1422_v29 = vadd.f32 %v1421_v21, %v1133_v43  ;;  %v3310_v60 = vadd.s32 %v3115_v53, %v1647_v14  ;;  %vm1773_vm3 = vcmp.lt.s32.totalorder %v3277_v4, 1200 }
 0x185   : > { %2024 = vst [vmem:[%s2844_s22 + $0x60] sm:$0xff] %v1960_v47  ;;  %v2088_v13 = vadd.f32 %v2087_v37, %v1960_v47  ;;  %v2158_v2 = vmul.f32 %v1960_v47, %v1960_v47  ;;  %v2220_v45 = vadd.f32 %v2219_v8, %v2157_v46  ;;  %v1963_v24 = vsel %vm1771_vm14, %v1430_v61, 0.0 }
 0x186   : > { %v1961_v51 = vsel %vm1769_vm15, %v1422_v29, 0.0  ;;  %v3318_v25 = vadd.s32 %v3115_v53, %v1650_v55  ;;  %v1154_v22 = vadd.f32 %v3137_v20, %v3197_v41  ;;  %2027 = vst [vmem:[%s2844_s22 + $0x78] sm:$0xff] %v1963_v24  ;;  %v1146_v57 = vadd.f32 %v3137_v20, %v3148_v32 }
 0x187   : > { %v2221_v42 = vadd.f32 %v2220_v45, %v2158_v2  ;;  %2025 = vst [vmem:[%s2844_s22 + $0x68] sm:$0xff] %v1961_v51  ;;  %v2089_v9 = vadd.f32 %v2088_v13, %v1961_v51  ;;  %v2159_v14 = vmul.f32 %v1961_v51, %v1961_v51  ;;  %vm1778_vm4 = vcmp.lt.s32.totalorder %v3289_v34, 1200 }
 0x188   : > { %v3326_v28 = vpop.f32.mrb[48].mxu0  ;;  %v2553_v6 = vpop.f32.mrb[48].mxu1  ;;  %v3330_v18 = vadd.s32 %v3115_v53, %v1648_v1  ;;  %v3333_v55 = vadd.s32 %v3115_v53, %v1653_v33  ;;  %v1651_v41 = vadd.s32 192, %v3111_v49  ;;  %v2160_v36 = vmul.f32 %v1962_v16, %v1962_v16 }
 0x189   : > { %v2090_v43 = vadd.f32 %v2089_v9, %v1962_v16  ;;  %v2222_v5 = vadd.f32 %v2221_v42, %v2159_v14  ;;  %v1443_v10 = vadd.f32 %v2553_v6, %v1154_v22  ;;  %v1179_v38 = vpop.f32.mrb[49].mxu0  ;;  %v1434_v32 = vpop.f32.mrb[49].mxu1  ;;  %vm1776_vm5 = vcmp.lt.s32.totalorder %v3310_v60, 1200 }
 0x18a   : > { %v1149_v46 = vadd.f32 %v3137_v20, %v3165_v52  ;;  %v1157_v1 = vadd.f32 %v3137_v20, %v3210_v62  ;;  %v1435_v8 = vadd.f32 %v1434_v32, %v1146_v57  ;;  %v3341_v37 = vpop.f32.mrb[50].mxu0  ;;  %v2554_v54 = vpop.f32.mrb[50].mxu1  ;;  %v1654_v16 = vadd.s32 216, %v3111_v49 }
 0x18b   : > { %v2161_v21 = vmul.f32 %v1963_v24, %v1963_v24  ;;  %v2223_v47 = vadd.f32 %v2222_v5, %v2160_v36  ;;  %v1966_v61 = vsel %vm1774_vm0, %v1443_v10, 0.0  ;;  %v2091_v29 = vadd.f32 %v2090_v43, %v1963_v24  ;;  %v1182_v33 = vpop.f32.mrb[51].mxu0  ;;  %v1437_v13 = vpop.f32.mrb[51].mxu1 }
 0x18c   : > { %2030 = vst [vmem:[%s2844_s22 + $0x90] sm:$0xff] %v1966_v61  ;;  %v1964_v52 = vsel %vm1772_vm1, %v1435_v8, 0.0  ;;  %v1446_v62 = vadd.f32 %v2554_v54, %v1157_v1  ;;  %v1438_v2 = vadd.f32 %v1437_v13, %v1149_v46  ;;  %v1652_v45 = vadd.s32 200, %v3111_v49 }
 0x18d   : > { %2028 = vst [vmem:[%s2844_s22 + $0x80] sm:$0xff] %v1964_v52  ;;  %v2092_v51 = vadd.f32 %v2091_v29, %v1964_v52  ;;  %v2162_v22 = vmul.f32 %v1964_v52, %v1964_v52  ;;  %v2224_v42 = vadd.f32 %v2223_v47, %v2161_v21  ;;  %vm1779_vm6 = vcmp.lt.s32.totalorder %v3318_v25, 1200 }
 0x18e   : > { %v1967_v50 = vsel %vm1775_vm2, %v1446_v62, 0.0  ;;  %v1965_v24 = vsel %vm1773_vm3, %v1438_v2, 0.0  ;;  %vm1777_vm7 = vcmp.lt.s32.totalorder %v3330_v18, 1200  ;;  %v3358_v58 = vadd.s32 %v3115_v53, %v1651_v41 }
 0x18f   : > { %v1170_v9 = vadd.f32 %v3137_v20, %v3285_v26  ;;  %v2225_v14 = vadd.f32 %v2224_v42, %v2162_v22  ;;  %2031 = vst [vmem:[%s2844_s22 + $0x98] sm:$0xff] %v1967_v50  ;;  %2029 = vst [vmem:[%s2844_s22 + $0x88] sm:$0xff] %v1965_v24  ;;  %v2093_v57 = vadd.f32 %v2092_v51, %v1965_v24  ;;  %vm1782_vm8 = vcmp.lt.s32.totalorder %v3333_v55, 1200 }
 0x190   : > { %v2163_v6 = vmul.f32 %v1965_v24, %v1965_v24  ;;  %v1162_v17 = vadd.f32 %v3137_v20, %v3241_v12  ;;  %v1185_v36 = vpop.f32.mrb[52].mxu0  ;;  %v2557_v43 = vpop.f32.mrb[52].mxu1  ;;  %v3368_v4 = vadd.s32 %v3115_v53, %v1654_v16  ;;  %v3371_v41 = vadd.s32 %v3115_v53, %v1652_v45 }
 0x191   : > { %v2164_v5 = vmul.f32 %v1966_v61, %v1966_v61  ;;  %v2094_v26 = vadd.f32 %v2093_v57, %v1966_v61  ;;  %v1459_v38 = vadd.f32 %v2557_v43, %v1170_v9  ;;  %v1187_v32 = vpop.f32.mrb[53].mxu0  ;;  %v1450_v46 = vpop.f32.mrb[53].mxu1  ;;  %v1165_v12 = vadd.f32 %v3137_v20, %v3254_v40 }
 0x192   : > { %v2226_v10 = vadd.f32 %v2225_v14, %v2163_v6  ;;  %v1173_v1 = vadd.f32 %v3137_v20, %v3298_v30  ;;  %v1451_v8 = vadd.f32 %v1450_v46, %v1162_v17  ;;  %v1188_v54 = vpop.f32.mrb[54].mxu0  ;;  %v2558_v16 = vpop.f32.mrb[54].mxu1  ;;  %v1655_v21 = vadd.s32 224, %v3111_v49 }
 0x193   : > { %v2165_v47 = vmul.f32 %v1967_v50, %v1967_v50  ;;  %v1970_v61 = vsel %vm1778_vm4, %v1459_v38, 0.0  ;;  %v2095_v33 = vadd.f32 %v2094_v26, %v1967_v50  ;;  %v1190_v13 = vpop.f32.mrb[55].mxu0  ;;  %v1453_v52 = vpop.f32.mrb[55].mxu1  ;;  %v1657_v2 = vadd.s32 240, %v3111_v49 }
 0x194   : > { %v2227_v29 = vadd.f32 %v2226_v10, %v2164_v5  ;;  %2034 = vst [vmem:[%s2844_s22 + $0xb0] sm:$0xff] %v1970_v61  ;;  %v1968_v40 = vsel %vm1776_vm5, %v1451_v8, 0.0  ;;  %v1462_v30 = vadd.f32 %v2558_v16, %v1173_v1  ;;  %v1454_v62 = vadd.f32 %v1453_v52, %v1165_v12 }
 0x195   : > { %2032 = vst [vmem:[%s2844_s22 + $0xa0] sm:$0xff] %v1968_v40  ;;  %v2096_v45 = vadd.f32 %v2095_v33, %v1968_v40  ;;  %v2166_v51 = vmul.f32 %v1968_v40, %v1968_v40  ;;  %vm1780_vm9 = vcmp.lt.s32.totalorder %v3358_v58, 1200  ;;  %vm1783_vm10 = vcmp.lt.s32.totalorder %v3368_v4, 1200 }
 0x196   : > { %v2228_v22 = vadd.f32 %v2227_v29, %v2165_v47  ;;  %v1971_v34 = vsel %vm1779_vm6, %v1462_v30, 0.0  ;;  %v1969_v42 = vsel %vm1777_vm7, %v1454_v62, 0.0  ;;  %vm1781_vm11 = vcmp.lt.s32.totalorder %v3371_v41, 1200 }
 0x197   : > { %v1186_v60 = vadd.f32 %v3137_v20, %v1185_v36  ;;  %2035 = vst [vmem:[%s2844_s22 + $0xb8] sm:$0xff] %v1971_v34  ;;  %2033 = vst [vmem:[%s2844_s22 + $0xa8] sm:$0xff] %v1969_v42  ;;  %v2097_v24 = vadd.f32 %v2096_v45, %v1969_v42  ;;  %v2167_v9 = vmul.f32 %v1969_v42, %v1969_v42  ;;  %v1656_v17 = vadd.s32 232, %v3111_v49 }
 0x198   : > { %v2229_v50 = vadd.f32 %v2228_v22, %v2166_v51  ;;  %v1178_v14 = vadd.f32 %v3137_v20, %v3326_v28  ;;  %v1193_v57 = vpop.f32.mrb[56].mxu0  ;;  %v2561_v25 = vpop.f32.mrb[56].mxu1  ;;  %v3398_v6 = vadd.s32 %v3115_v53, %v1657_v2  ;;  %v1720_v18 = vadd.s32 %v3115_v53, %v1655_v21 }
 0x199   : > { %v2168_v43 = vmul.f32 %v1970_v61, %v1970_v61  ;;  %v2098_v5 = vadd.f32 %v2097_v24, %v1970_v61  ;;  %v1475_v26 = vadd.f32 %v2561_v25, %v1186_v60  ;;  %v1195_v10 = vpop.f32.mrb[57].mxu0  ;;  %v1466_v38 = vpop.f32.mrb[57].mxu1  ;;  %v1181_v32 = vadd.f32 %v3137_v20, %v3341_v37 }
 0x19a   : > { %v2230_v36 = vadd.f32 %v2229_v50, %v2167_v9  ;;  %v1189_v28 = vadd.f32 %v3137_v20, %v1188_v54  ;;  %v1467_v46 = vadd.f32 %v1466_v38, %v1178_v14  ;;  %v1196_v12 = vpop.f32.mrb[58].mxu0  ;;  %v2562_v1 = vpop.f32.mrb[58].mxu1  ;;  %v1658_v8 = vadd.s32 248, %v3111_v49 }
 0x19b   : > { %v2169_v16 = vmul.f32 %v1971_v34, %v1971_v34  ;;  %v1974_v47 = vsel %vm1782_vm8, %v1475_v26, 0.0  ;;  %v2099_v29 = vadd.f32 %v2098_v5, %v1971_v34  ;;  %v1198_v61 = vpop.f32.mrb[59].mxu0  ;;  %v1469_v33 = vpop.f32.mrb[59].mxu1  ;;  %v1721_v52 = vadd.s32 %v3115_v53, %v1656_v17 }
 0x19c   : > { %v2231_v21 = vadd.f32 %v2230_v36, %v2168_v43  ;;  %2038 = vst [vmem:[%s2844_s22 + $0xd0] sm:$0xff] %v1974_v47  ;;  %v1972_v37 = vsel %vm1780_vm9, %v1467_v46, 0.0  ;;  %v1478_v54 = vadd.f32 %v2562_v1, %v1189_v28  ;;  %v1470_v13 = vadd.f32 %v1469_v33, %v1181_v32 }
 0x19d   : > { %2036 = vst [vmem:[%s2844_s22 + $0xc0] sm:$0xff] %v1972_v37  ;;  %v2100_v40 = vadd.f32 %v2099_v29, %v1972_v37  ;;  %v2170_v30 = vmul.f32 %v1972_v37, %v1972_v37  ;;  %vm1784_vm12 = vcmp.lt.s32.totalorder %v1720_v18, 1200  ;;  %v1194_v22 = vadd.f32 %v3137_v20, %v1193_v57 }
 0x19e   : > { %v2232_v62 = vadd.f32 %v2231_v21, %v2169_v16  ;;  %v1975_v55 = vsel %vm1783_vm10, %v1478_v54, 0.0  ;;  %v1973_v2 = vsel %vm1781_vm11, %v1470_v13, 0.0  ;;  %vm1786_vm13 = vcmp.lt.s32.totalorder %v3398_v6, 1200 }
 0x19f   : > { %2039 = vst [vmem:[%s2844_s22 + $0xd8] sm:$0xff] %v1975_v55  ;;  %2037 = vst [vmem:[%s2844_s22 + $0xc8] sm:$0xff] %v1973_v2  ;;  %v2101_v51 = vadd.f32 %v2100_v40, %v1973_v2  ;;  %v2171_v58 = vmul.f32 %v1973_v2, %v1973_v2  ;;  %v1723_v60 = vadd.s32 %v3115_v53, %v1658_v8  ;;  %vm1785_vm14 = vcmp.lt.s32.totalorder %v1721_v52, 1200 }
 0x1a0   : > { %v2233_v45 = vadd.f32 %v2232_v62, %v2170_v30  ;;  %v1201_v34 = vpop.f32.mrb[60].mxu0  ;;  %v2565_v42 = vpop.f32.mrb[60].mxu1  ;;  %v2172_v4 = vmul.f32 %v1974_v47, %v1974_v47  ;;  %v1197_v25 = vadd.f32 %v3137_v20, %v1196_v12  ;;  %v2173_v17 = vmul.f32 %v1975_v55, %v1975_v55 }
 0x1a1   : > { %v2102_v50 = vadd.f32 %v2101_v51, %v1974_v47  ;;  %v1202_v41 = vadd.f32 %v3137_v20, %v1201_v34  ;;  %v1203_v9 = vpop.f32.mrb[61].mxu0  ;;  %v1482_v14 = vpop.f32.mrb[61].mxu1  ;;  %v1659_v36 = vadd.s32 256, %v3111_v49  ;;  %vm1787_vm15 = vcmp.lt.s32.totalorder %v1723_v60, 1200 }
 0x1a2   : > { %v2234_v24 = vadd.f32 %v2233_v45, %v2171_v58  ;;  %v1483_v43 = vadd.f32 %v1482_v14, %v1194_v22  ;;  %v1204_v57 = vpop.f32.mrb[62].mxu0  ;;  %v2566_v5 = vpop.f32.mrb[62].mxu1  ;;  %v1660_v8 = vadd.s32 264, %v3111_v49  ;;  %v1661_v60 = vadd.s32 272, %v3111_v49 }
 0x1a3   : > { %v1491_v10 = vadd.f32 %v2565_v42, %v1202_v41  ;;  %v2103_v38 = vadd.f32 %v2102_v50, %v1975_v55  ;;  %v1205_v32 = vadd.f32 %v3137_v20, %v1204_v57  ;;  %v1206_v28 = vpop.f32.mrb[63].mxu0  ;;  %v1485_v46 = vpop.f32.mrb[63].mxu1  ;;  %v1724_v37 = vadd.s32 %v3115_v53, %v1659_v36 }
 0x1a4   : > { %v2235_v26 = vadd.f32 %v2234_v24, %v2172_v4  ;;  %v1976_v1 = vsel %vm1784_vm12, %v1483_v43, 0.0  ;;  %v1486_v12 = vadd.f32 %v1485_v46, %v1197_v25  ;;  %v1725_v62 = vadd.s32 %v3115_v53, %v1660_v8 }
 0x1a5   : > { %v1978_v16 = vsel %vm1786_vm13, %v1491_v10, 0.0  ;;  %2040 = vst [vmem:[%s2844_s22 + $0xe0] sm:$0xff] %v1976_v1  ;;  %v2104_v21 = vadd.f32 %v2103_v38, %v1976_v1  ;;  %v2174_v47 = vmul.f32 %v1976_v1, %v1976_v1  ;;  %v1494_v61 = vadd.f32 %v2566_v5, %v1205_v32 }
 0x1a6   : > { %v2236_v29 = vadd.f32 %v2235_v26, %v2173_v17  ;;  %2042 = vst [vmem:[%s2844_s22 + $0xf0] sm:$0xff] %v1978_v16  ;;  %v1977_v33 = vsel %vm1785_vm14, %v1486_v12, 0.0  ;;  %v2176_v55 = vmul.f32 %v1978_v16, %v1978_v16  ;;  %vm1788_vm0 = vcmp.lt.s32.totalorder %v1724_v37, 1200 }
 0x1a7   : > { %2041 = vst [vmem:[%s2844_s22 + $0xe8] sm:$0xff] %v1977_v33  ;;  %v2105_v54 = vadd.f32 %v2104_v21, %v1977_v33  ;;  %v2175_v13 = vmul.f32 %v1977_v33, %v1977_v33  ;;  %v1979_v40 = vsel %vm1787_vm15, %v1494_v61, 0.0  ;;  %vm1789_vm1 = vcmp.lt.s32.totalorder %v1725_v62, 1200 }
 0x1a8   : > { %v2237_v18 = vadd.f32 %v2236_v29, %v2174_v47  ;;  %v1209_v30 = vpop.f32.mrb[64].mxu0  ;;  %v2569_v6 = vpop.f32.mrb[64].mxu1  ;;  %2043 = vst [vmem:[%s2844_s22 + $0xf8] sm:$0xff] %v1979_v40  ;;  %v2177_v22 = vmul.f32 %v1979_v40, %v1979_v40  ;;  %v1662_v25 = vadd.s32 280, %v3111_v49  ;;  %v1726_v26 = vadd.s32 %v3115_v53, %v1661_v60 }
 0x1a9   : > { %v2106_v2 = vadd.f32 %v2105_v54, %v1978_v16  ;;  %v1210_v51 = vadd.f32 %v3137_v20, %v1209_v30  ;;  %v1211_v52 = vpop.f32.mrb[65].mxu0  ;;  %v1498_v58 = vpop.f32.mrb[65].mxu1  ;;  %v1663_v47 = vadd.s32 288, %v3111_v49  ;;  %v1664_v37 = vadd.s32 296, %v3111_v49 }
 0x1aa   : > { %v2238_v45 = vadd.f32 %v2237_v18, %v2175_v13  ;;  %v1212_v34 = vpop.f32.mrb[66].mxu0  ;;  %v2570_v42 = vpop.f32.mrb[66].mxu1  ;;  %v1727_v1 = vadd.s32 %v3115_v53, %v1662_v25  ;;  %vm1790_vm2 = vcmp.lt.s32.totalorder %v1726_v26, 1200  ;;  %v1665_v30 = vadd.s32 304, %v3111_v49 }
 0x1ab   : > { %v1213_v50 = vadd.f32 %v3137_v20, %v1212_v34  ;;  %v1499_v24 = vadd.f32 %v1498_v58, %v1210_v51  ;;  %v2107_v41 = vadd.f32 %v2106_v2, %v1979_v40  ;;  %v1214_v9 = vpop.f32.mrb[67].mxu0  ;;  %v1501_v14 = vpop.f32.mrb[67].mxu1  ;;  %v3457_v62 = vadd.f32 %v3137_v20, %v3057_v59 }
 0x1ac   : > { %v2239_v4 = vadd.f32 %v2238_v45, %v2176_v55  ;;  %v3461_v55 = vadd.f32 %v3137_v20, %v3061_v63  ;;  %v3465_v2 = vadd.f32 %v3137_v20, %v3065_v3  ;;  %vm1791_vm3 = vcmp.lt.s32.totalorder %v1727_v1, 1200 }
 0x1ad   : > { %v1980_v17 = vsel %vm1788_vm0, %v1499_v24, 0.0  ;;  %v1502_v57 = vadd.f32 %v1501_v14, %v1213_v50  ;;  %v1728_v51 = vadd.s32 %v3115_v53, %v1663_v47  ;;  %v1666_v52 = vadd.s32 312, %v3111_v49 }
 0x1ae   : > { %v2240_v43 = vadd.f32 %v2239_v4, %v2177_v22  ;;  %2044 = vst [vmem:[%s2844_s22 + $0x100] sm:$0xff] %v1980_v17  ;;  %v2108_v5 = vadd.f32 %v2107_v41, %v1980_v17  ;;  %v2178_v36 = vmul.f32 %v1980_v17, %v1980_v17  ;;  %v3471_v59 = vadd.f32 %v3137_v20, %v3069_v7 }
 0x1af   : > { %v1981_v10 = vsel %vm1789_vm1, %v1502_v57, 0.0  ;;  %v1729_v22 = vadd.s32 %v3115_v53, %v1664_v37  ;;  %v3477_v3 = vadd.f32 %v3137_v20, %v3073_v11  ;;  %v3481_v34 = vadd.f32 %v3137_v20, %v3077_v15 }
 0x1b0   : > { %v2241_v38 = vadd.f32 %v2240_v43, %v2178_v36  ;;  %2045 = vst [vmem:[%s2844_s22 + $0x108] sm:$0xff] %v1981_v10  ;;  %v2109_v32 = vadd.f32 %v2108_v5, %v1981_v10  ;;  %v2179_v28 = vmul.f32 %v1981_v10, %v1981_v10  ;;  %v1217_v46 = vpop.f32.mrb[68].mxu0  ;;  %v3446_v12 = vpop.f32.mrb[68].mxu1  ;;  %v3484_v60 = vadd.s32 %v3115_v53, %v1665_v30 }
 0x1b1   : > { %v1218_v8 = vadd.f32 %v3137_v20, %v1217_v46  ;;  %v1219_v16 = vpop.f32.mrb[69].mxu0  ;;  %v1514_v21 = vpop.f32.mrb[69].mxu1  ;;  %v1677_v9 = vadd.s32 400, %v3111_v49  ;;  %vm1792_vm4 = vcmp.lt.s32.totalorder %v1728_v51, 1200  ;;  %v3494_v15 = vadd.s32 %v3115_v53, %v1666_v52 }
 0x1b2   : > { %v2242_v29 = vadd.f32 %v2241_v38, %v2179_v28  ;;  %v1220_v61 = vpop.f32.mrb[70].mxu0  ;;  %v3450_v33 = vpop.f32.mrb[70].mxu1  ;;  %v1675_v17 = vadd.s32 384, %v3111_v49  ;;  %v3499_v43 = vadd.f32 %v3137_v20, %v3081_v19  ;;  %vm1793_vm5 = vcmp.lt.s32.totalorder %v1729_v22, 1200 }
 0x1b3   : > { %v1507_v18 = vadd.f32 %v2569_v6, %v1218_v8  ;;  %v1221_v54 = vadd.f32 %v3137_v20, %v1220_v61  ;;  %v1222_v13 = vpop.f32.mrb[71].mxu0  ;;  %v1517_v40 = vpop.f32.mrb[71].mxu1  ;;  %v1667_v26 = vadd.s32 320, %v3111_v49  ;;  %v1678_v46 = vadd.s32 408, %v3111_v49 }
 0x1b4   : > { %v1676_v1 = vadd.s32 392, %v3111_v49  ;;  %v3511_v19 = vadd.f32 %v3137_v20, %v3085_v23  ;;  %vm1794_vm6 = vcmp.lt.s32.totalorder %v3484_v60, 1200  ;;  %v3515_v8 = vadd.s32 %v3115_v53, %v1677_v9  ;;  %v3592_v60 = vld [vmem:[%s3849_s2] ss:$0 sm:$0xff] }
 0x1b5   : > { %v1982_v6 = vsel %vm1790_vm2, %v1507_v18, 0.0  ;;  %v1510_v45 = vadd.f32 %v2570_v42, %v1221_v54  ;;  %v1668_v16 = vadd.s32 328, %v3111_v49  ;;  %vm1795_vm7 = vcmp.lt.s32.totalorder %v3494_v15, 1200 }
 0x1b6   : > { %2046 = vst [vmem:[%s2844_s22 + $0x110] sm:$0xff] %v1982_v6  ;;  %v2110_v58 = vadd.f32 %v2109_v32, %v1982_v6  ;;  %v2180_v63 = vmul.f32 %v1982_v6, %v1982_v6  ;;  %v3525_v23 = vadd.f32 %v3137_v20, %v3089_v27  ;;  %v3529_v18 = vadd.s32 %v3115_v53, %v1667_v26 }
 0x1b7   : > { %v1983_v42 = vsel %vm1791_vm3, %v1510_v45, 0.0  ;;  %v3533_v54 = vadd.f32 %v3137_v20, %v3093_v31  ;;  %v3540_v30 = vadd.s32 %v3115_v53, %v1676_v1  ;;  %vm1806_vm8 = vcmp.lt.s32.totalorder %v3515_v8, 1200 }
 0x1b8   : > { %v2243_v4 = vadd.f32 %v2242_v29, %v2180_v63  ;;  %2047 = vst [vmem:[%s2844_s22 + $0x118] sm:$0xff] %v1983_v42  ;;  %v2181_v7 = vmul.f32 %v1983_v42, %v1983_v42  ;;  %v1225_v50 = vpop.f32.mrb[72].mxu0  ;;  %v2111_v24 = vadd.f32 %v2110_v58, %v1983_v42  ;;  %v3487_v41 = vpop.f32.mrb[72].mxu1  ;;  %v3521_v29 = vadd.s32 %v3115_v53, %v1675_v17 }
 0x1b9   : > { %v1226_v11 = vadd.f32 %v3137_v20, %v1225_v50  ;;  %v1227_v14 = vpop.f32.mrb[73].mxu0  ;;  %v3491_v25 = vpop.f32.mrb[73].mxu1  ;;  %v3547_v31 = vadd.s32 %v3115_v53, %v1668_v16  ;;  %v1681_v42 = vadd.s32 432, %v3111_v49  ;;  %vm1796_vm10 = vcmp.lt.s32.totalorder %v3529_v18, 1200 }
 0x1ba   : > { %v1228_v57 = vpop.f32.mrb[74].mxu0  ;;  %v2244_v5 = vadd.f32 %v2243_v4, %v2181_v7  ;;  %v3501_v36 = vpop.f32.mrb[74].mxu1  ;;  %vm1804_vm9 = vcmp.lt.s32.totalorder %v3521_v29, 1200  ;;  %v1679_v4 = vadd.s32 416, %v3111_v49  ;;  %v1669_v9 = vadd.s32 336, %v3111_v49 }
 0x1bb   : > { %v1229_v10 = vadd.f32 %v3137_v20, %v1228_v57  ;;  %v1515_v38 = vadd.f32 %v1514_v21, %v1226_v11  ;;  %v1230_v32 = vpop.f32.mrb[75].mxu0  ;;  %v3505_v28 = vpop.f32.mrb[75].mxu1  ;;  %v1682_v11 = vadd.s32 440, %v3111_v49  ;;  %v1670_v26 = vadd.s32 344, %v3111_v49 }
 0x1bc   : > { %vm1797_vm11 = vcmp.lt.s32.totalorder %v3547_v31, 1200  ;;  %vm1805_vm13 = vcmp.lt.s32.totalorder %v3540_v30, 1200  ;;  %v3580_v1 = vadd.s32 %v3115_v53, %v1679_v4  ;;  %v3584_v16 = vadd.s32 %v3115_v53, %v1669_v9 }
 0x1bd   : > { %v1984_v21 = vsel %vm1792_vm4, %v1515_v38, 0.0  ;;  %v1518_v47 = vadd.f32 %v1517_v40, %v1229_v10  ;;  %v3537_v40 = vadd.s32 %v3115_v53, %v1678_v46  ;;  %v1680_v10 = vadd.s32 424, %v3111_v49 }
 0x1be   : > { %2048 = vst [vmem:[%s2844_s22 + $0x120] sm:$0xff] %v1984_v21  ;;  %v2112_v61 = vadd.f32 %v2111_v24, %v1984_v21  ;;  %v2182_v37 = vmul.f32 %v1984_v21, %v1984_v21  ;;  %v3568_v38 = vadd.f32 %v3137_v20, %v3097_v35  ;;  %v3577_v46 = vadd.s32 %v3115_v53, %v1681_v42 }
 0x1bf   : > { %v1985_v13 = vsel %vm1793_vm5, %v1518_v47, 0.0  ;;  %vm1807_vm12 = vcmp.lt.s32.totalorder %v3537_v40, 1200  ;;  %v3587_v21 = vadd.s32 %v3115_v53, %v1682_v11  ;;  %vm1808_vm15 = vcmp.lt.s32.totalorder %v3580_v1, 1200 }
 0x1c0   : > { %v2245_v27 = vadd.f32 %v2244_v5, %v2182_v37  ;;  %2049 = vst [vmem:[%s2844_s22 + $0x128] sm:$0xff] %v1985_v13  ;;  %v2113_v6 = vadd.f32 %v2112_v61, %v1985_v13  ;;  %v2183_v45 = vmul.f32 %v1985_v13, %v1985_v13  ;;  %v1233_v51 = vpop.f32.mrb[76].mxu0  ;;  %v3543_v52 = vpop.f32.mrb[76].mxu1  ;;  %v3601_v61 = vadd.s32 %v3115_v53, %v1670_v26 }
 0x1c1   : > { %v1234_v58 = vadd.f32 %v3137_v20, %v1233_v51  ;;  %v1235_v63 = vpop.f32.mrb[77].mxu0  ;;  %v3550_v22 = vpop.f32.mrb[77].mxu1  ;;  %v3604_v37 = vadd.s32 %v3115_v53, %v1680_v10  ;;  %vm1810_vm14 = vcmp.lt.s32.totalorder %v3577_v46, 1200  ;;  %vm1798_vm0 = vcmp.lt.s32.totalorder %v3584_v16, 1200 }
 0x1c2   : > { %v2246_v7 = vadd.f32 %v2245_v27, %v2183_v45  ;;  %v1236_v50 = vpop.f32.mrb[78].mxu0  ;;  %v3555_v24 = vpop.f32.mrb[78].mxu1  ;;  %vm1811_vm1 = vcmp.lt.s32.totalorder %v3587_v21, 1200  ;;  %v1671_v11 = vadd.s32 352, %v3111_v49  ;;  %vm1799_vm3 = vcmp.lt.s32.totalorder %v3601_v61, 1200 }
 0x1c3   : > { %v1523_v14 = vadd.f32 %v3446_v12, %v1234_v58  ;;  %v1237_v17 = vadd.f32 %v3137_v20, %v1236_v50  ;;  %v1238_v57 = vpop.f32.mrb[79].mxu0  ;;  %v3562_v5 = vpop.f32.mrb[79].mxu1  ;;  %v1685_v58 = vadd.s32 464, %v3111_v49  ;;  %vm1809_vm2 = vcmp.lt.s32.totalorder %v3604_v37, 1200 }
 0x1c4   : > { %v3661_v40 = vadd.f32 %v3592_v60, %v3109_v48 }
 0x1c5   : > { %v1986_v12 = vsel %vm1794_vm6, %v1523_v14, 0.0  ;;  %v1526_v32 = vadd.f32 %v3450_v33, %v1237_v17  ;;  %v3596_v33 = vadd.f32 %v3592_v60, %v3101_v39  ;;  %v3634_v8 = vadd.s32 %v3115_v53, %v1685_v58 }
 0x1c6   : > { %2050 = vst [vmem:[%s2844_s22 + $0x130] sm:$0xff] %v1986_v12  ;;  %v2114_v35 = vadd.f32 %v2113_v6, %v1986_v12  ;;  %v2184_v20 = vmul.f32 %v1986_v12, %v1986_v12 }
 0x1c7   : > { %v1987_v47 = vsel %vm1795_vm7, %v1526_v32, 0.0  ;;  %vm1814_vm4 = vcmp.lt.s32.totalorder %v3634_v8, 1200 }
 0x1c8   : > { %v2247_v13 = vadd.f32 %v2246_v7, %v2184_v20  ;;  %2051 = vst [vmem:[%s2844_s22 + $0x138] sm:$0xff] %v1987_v47  ;;  %v2115_v27 = vadd.f32 %v2114_v35, %v1987_v47  ;;  %v2185_v6 = vmul.f32 %v1987_v47, %v1987_v47  ;;  %v1241_v45 = vpop.f32.mrb[80].mxu0  ;;  %v2585_v51 = vpop.f32.mrb[80].mxu1 }
 0x1c9   : > { %v1242_v39 = vadd.f32 %v3592_v60, %v1241_v45  ;;  %v1571_v63 = vadd.f32 %v2585_v51, %v3465_v2  ;;  %v1243_v15 = vpop.f32.mrb[81].mxu0  ;;  %v1562_v42 = vpop.f32.mrb[81].mxu1  ;;  %v1683_v2 = vadd.s32 448, %v3111_v49 }
 0x1ca   : > { %v2248_v4 = vadd.f32 %v2247_v13, %v2185_v6  ;;  %v1563_v7 = vadd.f32 %v1562_v42, %v3457_v62  ;;  %v1244_v50 = vpop.f32.mrb[82].mxu0  ;;  %v2586_v9 = vpop.f32.mrb[82].mxu1  ;;  %v1672_v13 = vadd.s32 360, %v3111_v49 }
 0x1cb   : > { %v1531_v14 = vadd.f32 %v3491_v25, %v1242_v39  ;;  %v3620_v17 = vsel %vm1806_vm8, %v1571_v63, 0.0  ;;  %v1245_v57 = vadd.f32 %v3592_v60, %v1244_v50  ;;  %v1574_v62 = vadd.f32 %v2586_v9, %v3471_v59  ;;  %v1246_v26 = vpop.f32.mrb[83].mxu0  ;;  %v1565_v10 = vpop.f32.mrb[83].mxu1 }
 0x1cc   : > { %2062 = vst [vmem:[%s2844_s22 + $0x190] sm:$0xff] %v3620_v17  ;;  %v3629_v12 = vsel %vm1804_vm9, %v1563_v7, 0.0  ;;  %v1566_v25 = vadd.f32 %v1565_v10, %v3461_v55  ;;  %v1686_v59 = vadd.s32 472, %v3111_v49  ;;  %v1684_v55 = vadd.s32 456, %v3111_v49 }
 0x1cd   : > { %v1988_v32 = vsel %vm1796_vm10, %v1531_v14, 0.0  ;;  %2060 = vst [vmem:[%s2844_s22 + $0x180] sm:$0xff] %v3629_v12  ;;  %v1534_v29 = vadd.f32 %v3505_v28, %v1245_v57  ;;  %v3644_v35 = vsel %vm1807_vm12, %v1574_v62, 0.0  ;;  %v3657_v28 = vadd.f32 %v3592_v60, %v3105_v44 }
 0x1ce   : > { %2052 = vst [vmem:[%s2844_s22 + $0x140] sm:$0xff] %v1988_v32  ;;  %v2116_v20 = vadd.f32 %v2115_v27, %v1988_v32  ;;  %v2186_v47 = vmul.f32 %v1988_v32, %v1988_v32  ;;  %2063 = vst [vmem:[%s2844_s22 + $0x198] sm:$0xff] %v3644_v35  ;;  %v3652_v18 = vsel %vm1805_vm13, %v1566_v25, 0.0  ;;  %v3668_v6 = vadd.s32 %v3115_v53, %v1683_v2 }
 0x1cf   : > { %v1989_v27 = vsel %vm1797_vm11, %v1534_v29, 0.0  ;;  %2061 = vst [vmem:[%s2844_s22 + $0x188] sm:$0xff] %v3652_v18  ;;  %v3672_v44 = vadd.s32 %v3115_v53, %v1671_v11  ;;  %v3678_v42 = vadd.s32 %v3115_v53, %v1686_v59  ;;  %v3682_v11 = vadd.s32 %v3115_v53, %v1672_v13 }
 0x1d0   : > { %v2249_v30 = vadd.f32 %v2248_v4, %v2186_v47  ;;  %2053 = vst [vmem:[%s2844_s22 + $0x148] sm:$0xff] %v1989_v27  ;;  %v2117_v45 = vadd.f32 %v2116_v20, %v1989_v27  ;;  %v2187_v51 = vmul.f32 %v1989_v27, %v1989_v27  ;;  %v1249_v58 = vpop.f32.mrb[84].mxu0  ;;  %v2589_v39 = vpop.f32.mrb[84].mxu1  ;;  %v3685_v2 = vadd.s32 %v3115_v53, %v1684_v55 }
 0x1d1   : > { %v1250_v48 = vadd.f32 %v3592_v60, %v1249_v58  ;;  %v1587_v63 = vadd.f32 %v2589_v39, %v3499_v43  ;;  %v1251_v31 = vpop.f32.mrb[85].mxu0  ;;  %v1578_v15 = vpop.f32.mrb[85].mxu1  ;;  %vm1800_vm5 = vcmp.lt.s32.totalorder %v3672_v44, 1200  ;;  %vm1812_vm6 = vcmp.lt.s32.totalorder %v3668_v6, 1200 }
 0x1d2   : > { %v2250_v4 = vadd.f32 %v2249_v30, %v2187_v51  ;;  %v1579_v7 = vadd.f32 %v1578_v15, %v3477_v3  ;;  %v1252_v50 = vpop.f32.mrb[86].mxu0  ;;  %v2590_v9 = vpop.f32.mrb[86].mxu1  ;;  %v1689_v25 = vadd.s32 496, %v3111_v49  ;;  %v1687_v32 = vadd.s32 480, %v3111_v49 }
 0x1d3   : > { %v1539_v43 = vadd.f32 %v3487_v41, %v1250_v48  ;;  %v3690_v14 = vsel %vm1810_vm14, %v1587_v63, 0.0  ;;  %v1253_v57 = vadd.f32 %v3592_v60, %v1252_v50  ;;  %v1590_v3 = vadd.f32 %v2590_v9, %v3511_v19  ;;  %v1254_v62 = vpop.f32.mrb[87].mxu0  ;;  %v1581_v26 = vpop.f32.mrb[87].mxu1 }
 0x1d4   : > { %2066 = vst [vmem:[%s2844_s22 + $0x1b0] sm:$0xff] %v3690_v14  ;;  %v3698_v10 = vsel %vm1808_vm15, %v1579_v7, 0.0  ;;  %v1582_v41 = vadd.f32 %v1581_v26, %v3481_v34  ;;  %vm1801_vm7 = vcmp.lt.s32.totalorder %v3682_v11, 1200  ;;  %vm1815_vm8 = vcmp.lt.s32.totalorder %v3678_v42, 1200 }
 0x1d5   : > { %v1990_v46 = vsel %vm1798_vm0, %v1539_v43, 0.0  ;;  %2064 = vst [vmem:[%s2844_s22 + $0x1a0] sm:$0xff] %v3698_v10  ;;  %v1542_v19 = vadd.f32 %v3501_v36, %v1253_v57  ;;  %v3710_v1 = vsel %vm1811_vm1, %v1590_v3, 0.0  ;;  %vm1813_vm9 = vcmp.lt.s32.totalorder %v3685_v2, 1200 }
 0x1d6   : > { %2054 = vst [vmem:[%s2844_s22 + $0x150] sm:$0xff] %v1990_v46  ;;  %v2118_v34 = vadd.f32 %v2117_v45, %v1990_v46  ;;  %v2188_v59 = vmul.f32 %v1990_v46, %v1990_v46  ;;  %2067 = vst [vmem:[%s2844_s22 + $0x1b8] sm:$0xff] %v3710_v1  ;;  %v3718_v16 = vsel %vm1809_vm2, %v1582_v41, 0.0  ;;  %v1673_v47 = vadd.s32 368, %v3111_v49 }
 0x1d7   : > { %v1991_v36 = vsel %vm1799_vm3, %v1542_v19, 0.0  ;;  %2065 = vst [vmem:[%s2844_s22 + $0x1a8] sm:$0xff] %v3718_v16  ;;  %v1754_v45 = vadd.s32 %v3115_v53, %v1689_v25  ;;  %v1690_v51 = vadd.s32 504, %v3111_v49  ;;  %v1752_v31 = vadd.s32 %v3115_v53, %v1687_v32 }
 0x1d8   : > { %v2251_v21 = vadd.f32 %v2250_v4, %v2188_v59  ;;  %2055 = vst [vmem:[%s2844_s22 + $0x158] sm:$0xff] %v1991_v36  ;;  %v2119_v29 = vadd.f32 %v2118_v34, %v1991_v36  ;;  %v2189_v55 = vmul.f32 %v1991_v36, %v1991_v36  ;;  %v1257_v37 = vpop.f32.mrb[88].mxu0  ;;  %v2593_v20 = vpop.f32.mrb[88].mxu1  ;;  %v1688_v15 = vadd.s32 488, %v3111_v49 }
 0x1d9   : > { %v1258_v13 = vadd.f32 %v3592_v60, %v1257_v37  ;;  %v1603_v61 = vadd.f32 %v2593_v20, %v3568_v38  ;;  %v1259_v27 = vpop.f32.mrb[89].mxu0  ;;  %v1594_v30 = vpop.f32.mrb[89].mxu1  ;;  %v1738_v8 = vadd.s32 %v3115_v53, %v1673_v47  ;;  %v1674_v57 = vadd.s32 376, %v3111_v49 }
 0x1da   : > { %v2252_v58 = vadd.f32 %v2251_v21, %v2189_v55  ;;  %v1595_v39 = vadd.f32 %v1594_v30, %v3525_v23  ;;  %v1260_v48 = vpop.f32.mrb[90].mxu0  ;;  %v2594_v63 = vpop.f32.mrb[90].mxu1  ;;  %v1755_v62 = vadd.s32 %v3115_v53, %v1690_v51  ;;  %v1753_v44 = vadd.s32 %v3115_v53, %v1688_v15 }
 0x1db   : > { %v1547_v4 = vadd.f32 %v3550_v22, %v1258_v13  ;;  %v3740_v38 = vsel %vm1814_vm4, %v1603_v61, 0.0  ;;  %v1261_v7 = vadd.f32 %v3592_v60, %v1260_v48  ;;  %v1606_v50 = vadd.f32 %v2594_v63, %v3596_v33  ;;  %v1262_v23 = vpop.f32.mrb[91].mxu0  ;;  %v1597_v9 = vpop.f32.mrb[91].mxu1 }
 0x1dc   : > { %2070 = vst [vmem:[%s2844_s22 + $0x1d0] sm:$0xff] %v3740_v38  ;;  %v3748_v43 = vsel %vm1812_vm6, %v1595_v39, 0.0  ;;  %v1598_v22 = vadd.f32 %v1597_v9, %v3533_v54  ;;  %v1333_v42 = vadd.f32 %v3592_v60, %v3124_v0  ;;  %vm1818_vm10 = vcmp.lt.s32.totalorder %v1754_v45, 1200 }
 0x1dd   : > { %v1992_v3 = vsel %vm1800_vm5, %v1547_v4, 0.0  ;;  %2068 = vst [vmem:[%s2844_s22 + $0x1c0] sm:$0xff] %v3748_v43  ;;  %v1550_v33 = vadd.f32 %v3562_v5, %v1261_v7  ;;  %v3760_v6 = vsel %vm1815_vm8, %v1606_v50, 0.0  ;;  %v1330_v5 = vadd.f32 %v3592_v60, %v3120_v56 }
 0x1de   : > { %2056 = vst [vmem:[%s2844_s22 + $0x160] sm:$0xff] %v1992_v3  ;;  %v2120_v54 = vadd.f32 %v2119_v29, %v1992_v3  ;;  %v2190_v26 = vmul.f32 %v1992_v3, %v1992_v3  ;;  %2071 = vst [vmem:[%s2844_s22 + $0x1d8] sm:$0xff] %v3760_v6  ;;  %v3768_v49 = vsel %vm1813_vm9, %v1598_v22, 0.0  ;;  %v1739_v59 = vadd.s32 %v3115_v53, %v1674_v57 }
 0x1df   : > { %v1993_v41 = vsel %vm1801_vm7, %v1550_v33, 0.0  ;;  %2069 = vst [vmem:[%s2844_s22 + $0x1c8] sm:$0xff] %v3768_v49  ;;  %vm1802_vm11 = vcmp.lt.s32.totalorder %v1738_v8, 1200  ;;  %vm1816_vm12 = vcmp.lt.s32.totalorder %v1752_v31, 1200  ;;  %vm1819_vm13 = vcmp.lt.s32.totalorder %v1755_v62, 1200 }
 0x1e0   : > { %v2253_v46 = vadd.f32 %v2252_v58, %v2190_v26  ;;  %2057 = vst [vmem:[%s2844_s22 + $0x168] sm:$0xff] %v1993_v41  ;;  %v2121_v19 = vadd.f32 %v2120_v54, %v1993_v41  ;;  %v2191_v2 = vmul.f32 %v1993_v41, %v1993_v41  ;;  %v1265_v25 = vpop.f32.mrb[92].mxu0  ;;  %v2597_v34 = vpop.f32.mrb[92].mxu1  ;;  %vm1817_vm14 = vcmp.lt.s32.totalorder %v1753_v44, 1200 }
 0x1e1   : > { %v1266_v32 = vadd.f32 %v3592_v60, %v1265_v25  ;;  %v1619_v56 = vadd.f32 %v2597_v34, %v1330_v5  ;;  %v1267_v0 = vpop.f32.mrb[93].mxu0  ;;  %v1610_v36 = vpop.f32.mrb[93].mxu1  ;;  %vm1803_vm15 = vcmp.lt.s32.totalorder %v1739_v59, 1200  ;;  %v2196_v23 = vmul.f32 %v3620_v17, %v3620_v17 }
 0x1e2   : > { %v2254_v11 = vadd.f32 %v2253_v46, %v2191_v2  ;;  %v1611_v21 = vadd.f32 %v1610_v36, %v3657_v28  ;;  %v1268_v29 = vpop.f32.mrb[94].mxu0  ;;  %v2598_v55 = vpop.f32.mrb[94].mxu1  ;;  %v2197_v8 = vmul.f32 %v3644_v35, %v3644_v35  ;;  %vm2279_vm0 = vcmask 1040384  }
 0x1e3   : > { %v1555_v37 = vadd.f32 %v3543_v52, %v1266_v32  ;;  %v3785_v53 = vsel %vm1818_vm10, %v1619_v56, 0.0  ;;  %v1269_v20 = vadd.f32 %v3592_v60, %v1268_v29  ;;  %v1622_v47 = vadd.f32 %v2598_v55, %v1333_v42  ;;  %v1270_v13 = vpop.f32.mrb[95].mxu0  ;;  %v1613_v61 = vpop.f32.mrb[95].mxu1 }
 0x1e4   : > { %2074 = vst [vmem:[%s2844_s22 + $0x1f0] sm:$0xff] %v3785_v53  ;;  %v2008_v28 = vsel %vm1816_vm12, %v1611_v21, 0.0  ;;  %v1614_v27 = vadd.f32 %v1613_v61, %v3661_v40  ;;  %v2194_v40 = vmul.f32 %v3629_v12, %v3629_v12 }
 0x1e5   : > { %v1994_v30 = vsel %vm1802_vm11, %v1555_v37, 0.0  ;;  %2072 = vst [vmem:[%s2844_s22 + $0x1e0] sm:$0xff] %v2008_v28  ;;  %v1558_v52 = vadd.f32 %v3555_v24, %v1269_v20  ;;  %v2011_v45 = vsel %vm1819_vm13, %v1622_v47, 0.0  ;;  %v2195_v24 = vmul.f32 %v3652_v18, %v3652_v18 }
 0x1e6   : > { %2058 = vst [vmem:[%s2844_s22 + $0x170] sm:$0xff] %v1994_v30  ;;  %v2122_v51 = vadd.f32 %v2121_v19, %v1994_v30  ;;  %v2192_v60 = vmul.f32 %v1994_v30, %v1994_v30  ;;  %2075 = vst [vmem:[%s2844_s22 + $0x1f8] sm:$0xff] %v2011_v45  ;;  %v2009_v58 = vsel %vm1817_vm14, %v1614_v27, 0.0 }
 0x1e7   : > { %v1995_v39 = vsel %vm1803_vm15, %v1558_v52, 0.0  ;;  %2073 = vst [vmem:[%s2844_s22 + $0x1e8] sm:$0xff] %v2009_v58  ;;  %v2207_v21 = vmul.f32 %v2009_v58, %v2009_v58 }
 0x1e8   : > { %v2255_v48 = vadd.f32 %v2254_v11, %v2192_v60  ;;  %2059 = vst [vmem:[%s2844_s22 + $0x178] sm:$0xff] %v1995_v39  ;;  %v2123_v63 = vadd.f32 %v2122_v51, %v1995_v39  ;;  %v2193_v31 = vmul.f32 %v1995_v39, %v1995_v39 }
 0x1ea   : > { %v2124_v15 = vadd.f32 %v2123_v63, %v3629_v12  ;;  %v2256_v4 = vadd.f32 %v2255_v48, %v2193_v31  ;;  %v2198_v12 = vmul.f32 %v3698_v10, %v3698_v10 }
 0x1ec   : > { %v2125_v7 = vadd.f32 %v2124_v15, %v3652_v18  ;;  %v2257_v50 = vadd.f32 %v2256_v4, %v2194_v40  ;;  %v2199_v18 = vmul.f32 %v3718_v16, %v3718_v16 }
 0x1ee   : > { %v2126_v9 = vadd.f32 %v2125_v7, %v3620_v17  ;;  %v2258_v22 = vadd.f32 %v2257_v50, %v2195_v24  ;;  %v2200_v17 = vmul.f32 %v3690_v14, %v3690_v14 }
 0x1f0   : > { %v2127_v57 = vadd.f32 %v2126_v9, %v3644_v35  ;;  %v2259_v3 = vadd.f32 %v2258_v22, %v2196_v23  ;;  %v2201_v35 = vmul.f32 %v3710_v1, %v3710_v1 }
 0x1f2   : > { %v2128_v33 = vadd.f32 %v2127_v57, %v3698_v10  ;;  %v2260_v62 = vadd.f32 %v2259_v3, %v2197_v8  ;;  %v2202_v10 = vmul.f32 %v3748_v43, %v3748_v43 }
 0x1f4   : > { %v2129_v54 = vadd.f32 %v2128_v33, %v3718_v16  ;;  %v2261_v26 = vadd.f32 %v2260_v62, %v2198_v12  ;;  %v2203_v16 = vmul.f32 %v3768_v49, %v3768_v49 }
 0x1f6   : > { %v2262_v44 = vadd.f32 %v2261_v26, %v2199_v18  ;;  %v2130_v5 = vadd.f32 %v2129_v54, %v3690_v14  ;;  %v2204_v14 = vmul.f32 %v3740_v38, %v3740_v38 }
 0x1f8   : > { %v2131_v42 = vadd.f32 %v2130_v5, %v3710_v1  ;;  %v2263_v41 = vadd.f32 %v2262_v44, %v2200_v17  ;;  %v2205_v1 = vmul.f32 %v3760_v6, %v3760_v6 }
 0x1fa   : > { %v2132_v46 = vadd.f32 %v2131_v42, %v3748_v43  ;;  %v2264_v19 = vadd.f32 %v2263_v41, %v2201_v35  ;;  %v2206_v43 = vmul.f32 %v2008_v28, %v2008_v28 }
 0x1fc   : > { %v2133_v2 = vadd.f32 %v2132_v46, %v3768_v49  ;;  %v2265_v25 = vadd.f32 %v2264_v19, %v2202_v10  ;;  %v2208_v49 = vmul.f32 %v3785_v53, %v3785_v53 }
 0x1fe   : > { %v2134_v34 = vadd.f32 %v2133_v2, %v3740_v38  ;;  %v2266_v59 = vadd.f32 %v2265_v25, %v2203_v16  ;;  %v2209_v38 = vmul.f32 %v2011_v45, %v2011_v45 }
 0x200   : > { %v2135_v32 = vadd.f32 %v2134_v34, %v3760_v6  ;;  %v2267_v56 = vadd.f32 %v2266_v59, %v2204_v14 }
 0x202   : > { %v2136_v0 = vadd.f32 %v2135_v32, %v2008_v28  ;;  %v2268_v36 = vadd.f32 %v2267_v56, %v2205_v1 }
 0x204   : > { %v2137_v11 = vadd.f32 %v2136_v0, %v2009_v58  ;;  %v2269_v29 = vadd.f32 %v2268_v36, %v2206_v43 }
 0x206   : > { %v2138_v55 = vadd.f32 %v2137_v11, %v3785_v53  ;;  %v2270_v37 = vadd.f32 %v2269_v29, %v2207_v21  ;;  %v2076_v53 = vld [vmem:[%s3851_s4] sm:$0x3] }
 0x208   : > { %v2139_v20 = vadd.f32 %v2138_v55, %v2011_v45  ;;  %v2271_v47 = vadd.f32 %v2270_v37, %v2208_v49 }
 0x20a   : > { %v2140_v13 = vrot.slane %v2139_v20, 4  ;;  %v2272_v61 = vadd.f32 %v2271_v47, %v2209_v38 }
 0x20c   : > { %v2141_v27 = vadd.f32 %v2140_v13, %v2139_v20  ;;  %v2273_v6 = vrot.slane %v2272_v61, 4 }
 0x20e   : > { %v2142_v30 = vrot.slane %v2141_v27, 2  ;;  %v2274_v52 = vadd.f32 %v2273_v6, %v2272_v61 }
 0x210   : > { %v2143_v28 = vadd.f32 %v2142_v30, %v2141_v27  ;;  %v2275_v51 = vrot.slane %v2274_v52, 2 }
 0x212   : > { %v2144_v60 = vrot.slane %v2143_v28, 1  ;;  %v2276_v58 = vadd.f32 %v2275_v51, %v2274_v52 }
 0x214   : > { %v2277_v39 = vrot.slane %v2276_v58, 1  ;;  %v2145_v48 = vadd.f32 %v2144_v60, %v2143_v28 }
 0x216   : > { %v2278_v63 = vadd.f32 %v2277_v39, %v2276_v58 }
 0x218   : > { %v2280_v45 = vsel %vm2279_vm0, %v2145_v48, %v2278_v63 }
 0x219   : > { %v2281_v31 = vadd.f32 %v2280_v45, %v2076_v53 }
 0x21b   : > { %2282 = vst [vmem:[%s3851_s4] sm:$0x3] %v2281_v31 }
 0x21c PF: > { %s15_s15 = sadd.s32 1, %s2801_s15  }
 0x21d   : > { %p12_p5 = scmp.ge.s32.totalorder %s15_s15, 5  }
 0x21f   :  { %14 = sbr.rel (!%p12_p5) target bundleno = 1 (0x1), region = 74 }

// kernel: _lambda_.7
= control target key start
LH: loop header
LB: loop body
LE: loop exit
PB: predicated region body
PF: predicated region fallthrough
CT: control target
= control target key end

     0   :  { %s1422_s18 = smov 0   ;;  %s1424_s19 = smov 0   ;;  %s2096_s0 = inlined_call_operand.vmem [shape: f32[1536,128], index: 0, kind: input, shape index: {}]   ;;  %s2097_s1 = inlined_call_operand.vmem [shape: f32[2,128], index: 1, kind: input, shape index: {}]   ;;  %s2098_s2 = inlined_call_operand.vmem [shape: f32[1536,256], index: 2, kind: input, shape index: {}]   ;;  %s2099_s3 = inlined_call_operand.vmem [shape: f32[2,256], index: 3, kind: input, shape index: {}]   ;;  %s2100_s4 = inlined_call_operand.vmem [shape: f32[4,128], index: 4, kind: input, shape index: {}]   ;;  %s2101_s5 = inlined_call_operand.vmem [shape: f32[1536,128], index: 5, kind: output, shape index: {}]  }
   0x1   :  { %s1426_s20 = smov 0  }
   0x2 LB: > { %s1258_s21 = sadd.s32 4294967295, %s1390_s20   ;;  %s1439_s22 = sadd.s32 1, %s1390_s20   ;;  %s1390_s20 = sphi %s1426_s20, %s2104_s20   ;;  %s1386_s19 = sphi %s1424_s19, %s2103_s19   ;;  %s1382_s18 = sphi %s1422_s18, %s2102_s18  }
   0x3   : > { %s66_s23 = ssub.s32 %s1390_s20, %s1439_s22  ;;  %s69_s24 = sadd.s32 1, %s1386_s19 }
   0x4   : > { %p67_p0 = scmp.eq.s32.totalorder %s66_s23, 0  ;;  %p76_p1 = scmp.ne.s32.totalorder %s1386_s19, %s1382_s18 }
   0x5   : > { %p77_p2 = scmp.eq.s32.totalorder %s1390_s20, 0  ;;  %p1262_p4 = scmp.ge.s32.totalorder %s1390_s20, 3 }
   0x6   : > { %s1448_s25 = scalar_select %p67_p0, %s1386_s19, %s69_s24  }
   0x7   : > { %p78_p3 = por %p77_p2, %p76_p1  ;;  %180 = sbr.rel (%p1262_p4) target bundleno = 50 (0x32), region = 28 }
   0xe   : > { %192 = sbr.rel (!%p78_p3) target bundleno = 50 (0x32), region = 36  ;;  %s194_s26 = sand.u32 (%p78_p3), 1, %s1386_s19  }
   0xf   : > { %s1339_s27 = sshll.u32 (%p78_p3), %s1390_s20, 10  ;;  %s1263_s28 = sshll.u32 (%p78_p3), %s194_s26, 9 }
  0x10   : > { %s1456_s6 = scalar_lea.vmem (%p78_p3), %s2098_s2, %s1339_s27  ;;  %s1461_s7 = scalar_lea.vmem (%p78_p3), [#allocation2], %s1263_s28 }
  0x11   : > { %v1266_v0 = vld [vmem:[%s1456_s6 + $0x8] sm:$0xff] (%p78_p3)  ;;  %v1267_v1 = vld [vmem:[%s1456_s6 + $0x18] sm:$0xff] (%p78_p3) }
  0x12   : > { %v1268_v2 = vld [vmem:[%s1456_s6 + $0x28] sm:$0xff] (%p78_p3)  ;;  %356 = vst [vmem:[%s1461_s7] sm:$0xff] (%p78_p3), %v1266_v0  ;;  %358 = vst [vmem:[%s1461_s7 + $0x8] sm:$0xff] (%p78_p3), %v1267_v1  ;;  %v1269_v3 = vld [vmem:[%s1456_s6 + $0x38] sm:$0xff] (%p78_p3) }
  0x13   : > { %360 = vst [vmem:[%s1461_s7 + $0x10] sm:$0xff] (%p78_p3), %v1268_v2  ;;  %v1270_v4 = vld [vmem:[%s1456_s6 + $0x48] sm:$0xff] (%p78_p3)  ;;  %v1271_v5 = vld [vmem:[%s1456_s6 + $0x58] sm:$0xff] (%p78_p3)  ;;  %362 = vst [vmem:[%s1461_s7 + $0x18] sm:$0xff] (%p78_p3), %v1269_v3 }
  0x14   : > { %364 = vst [vmem:[%s1461_s7 + $0x20] sm:$0xff] (%p78_p3), %v1270_v4  ;;  %366 = vst [vmem:[%s1461_s7 + $0x28] sm:$0xff] (%p78_p3), %v1271_v5  ;;  %v1272_v6 = vld [vmem:[%s1456_s6 + $0x68] sm:$0xff] (%p78_p3)  ;;  %v1273_v7 = vld [vmem:[%s1456_s6 + $0x78] sm:$0xff] (%p78_p3) }
  0x15   : > { %v1274_v8 = vld [vmem:[%s1456_s6 + $0x88] sm:$0xff]  ;;  %368 = vst [vmem:[%s1461_s7 + $0x30] sm:$0xff] %v1272_v6  ;;  %370 = vst [vmem:[%s1461_s7 + $0x38] sm:$0xff] %v1273_v7  ;;  %v1275_v9 = vld [vmem:[%s1456_s6 + $0x98] sm:$0xff] }
  0x16   : > { %372 = vst [vmem:[%s1461_s7 + $0x40] sm:$0xff] %v1274_v8  ;;  %v1276_v10 = vld [vmem:[%s1456_s6 + $0xa8] sm:$0xff]  ;;  %v1277_v11 = vld [vmem:[%s1456_s6 + $0xb8] sm:$0xff]  ;;  %374 = vst [vmem:[%s1461_s7 + $0x48] sm:$0xff] %v1275_v9 }
  0x17   : > { %376 = vst [vmem:[%s1461_s7 + $0x50] sm:$0xff] %v1276_v10  ;;  %378 = vst [vmem:[%s1461_s7 + $0x58] sm:$0xff] %v1277_v11  ;;  %v1278_v12 = vld [vmem:[%s1456_s6 + $0xc8] sm:$0xff]  ;;  %v1279_v13 = vld [vmem:[%s1456_s6 + $0xd8] sm:$0xff] }
  0x18   : > { %v1280_v14 = vld [vmem:[%s1456_s6 + $0xe8] sm:$0xff]  ;;  %380 = vst [vmem:[%s1461_s7 + $0x60] sm:$0xff] %v1278_v12  ;;  %382 = vst [vmem:[%s1461_s7 + $0x68] sm:$0xff] %v1279_v13  ;;  %v1281_v15 = vld [vmem:[%s1456_s6 + $0xf8] sm:$0xff] }
  0x19   : > { %384 = vst [vmem:[%s1461_s7 + $0x70] sm:$0xff] %v1280_v14  ;;  %v1282_v16 = vld [vmem:[%s1456_s6 + $0x108] sm:$0xff]  ;;  %v1283_v17 = vld [vmem:[%s1456_s6 + $0x118] sm:$0xff]  ;;  %386 = vst [vmem:[%s1461_s7 + $0x78] sm:$0xff] %v1281_v15 }
  0x1a   : > { %388 = vst [vmem:[%s1461_s7 + $0x80] sm:$0xff] %v1282_v16  ;;  %390 = vst [vmem:[%s1461_s7 + $0x88] sm:$0xff] %v1283_v17  ;;  %v1284_v18 = vld [vmem:[%s1456_s6 + $0x128] sm:$0xff]  ;;  %v1285_v19 = vld [vmem:[%s1456_s6 + $0x138] sm:$0xff] }
  0x1b   : > { %v1286_v20 = vld [vmem:[%s1456_s6 + $0x148] sm:$0xff]  ;;  %392 = vst [vmem:[%s1461_s7 + $0x90] sm:$0xff] %v1284_v18  ;;  %394 = vst [vmem:[%s1461_s7 + $0x98] sm:$0xff] %v1285_v19  ;;  %v1287_v21 = vld [vmem:[%s1456_s6 + $0x158] sm:$0xff] }
  0x1c   : > { %396 = vst [vmem:[%s1461_s7 + $0xa0] sm:$0xff] %v1286_v20  ;;  %v1288_v22 = vld [vmem:[%s1456_s6 + $0x168] sm:$0xff]  ;;  %v1289_v23 = vld [vmem:[%s1456_s6 + $0x178] sm:$0xff]  ;;  %398 = vst [vmem:[%s1461_s7 + $0xa8] sm:$0xff] %v1287_v21 }
  0x1d   : > { %400 = vst [vmem:[%s1461_s7 + $0xb0] sm:$0xff] %v1288_v22  ;;  %402 = vst [vmem:[%s1461_s7 + $0xb8] sm:$0xff] %v1289_v23  ;;  %v1290_v24 = vld [vmem:[%s1456_s6 + $0x188] sm:$0xff]  ;;  %v1291_v25 = vld [vmem:[%s1456_s6 + $0x198] sm:$0xff] }
  0x1e   : > { %v1292_v26 = vld [vmem:[%s1456_s6 + $0x1a8] sm:$0xff]  ;;  %404 = vst [vmem:[%s1461_s7 + $0xc0] sm:$0xff] %v1290_v24  ;;  %406 = vst [vmem:[%s1461_s7 + $0xc8] sm:$0xff] %v1291_v25  ;;  %v1293_v27 = vld [vmem:[%s1456_s6 + $0x1b8] sm:$0xff] }
  0x1f   : > { %408 = vst [vmem:[%s1461_s7 + $0xd0] sm:$0xff] %v1292_v26  ;;  %v1294_v28 = vld [vmem:[%s1456_s6 + $0x1c8] sm:$0xff]  ;;  %v1295_v29 = vld [vmem:[%s1456_s6 + $0x1d8] sm:$0xff]  ;;  %410 = vst [vmem:[%s1461_s7 + $0xd8] sm:$0xff] %v1293_v27 }
  0x20   : > { %412 = vst [vmem:[%s1461_s7 + $0xe0] sm:$0xff] %v1294_v28  ;;  %414 = vst [vmem:[%s1461_s7 + $0xe8] sm:$0xff] %v1295_v29  ;;  %v1296_v30 = vld [vmem:[%s1456_s6 + $0x1e8] sm:$0xff]  ;;  %v1297_v31 = vld [vmem:[%s1456_s6 + $0x1f8] sm:$0xff] }
  0x21   : > { %v1298_v32 = vld [vmem:[%s1456_s6 + $0x208] sm:$0xff]  ;;  %416 = vst [vmem:[%s1461_s7 + $0xf0] sm:$0xff] %v1296_v30  ;;  %418 = vst [vmem:[%s1461_s7 + $0xf8] sm:$0xff] %v1297_v31  ;;  %v1299_v33 = vld [vmem:[%s1456_s6 + $0x218] sm:$0xff] }
  0x22   : > { %420 = vst [vmem:[%s1461_s7 + $0x100] sm:$0xff] %v1298_v32  ;;  %v1300_v34 = vld [vmem:[%s1456_s6 + $0x228] sm:$0xff]  ;;  %v1301_v35 = vld [vmem:[%s1456_s6 + $0x238] sm:$0xff]  ;;  %422 = vst [vmem:[%s1461_s7 + $0x108] sm:$0xff] %v1299_v33 }
  0x23   : > { %424 = vst [vmem:[%s1461_s7 + $0x110] sm:$0xff] %v1300_v34  ;;  %426 = vst [vmem:[%s1461_s7 + $0x118] sm:$0xff] %v1301_v35  ;;  %v1302_v36 = vld [vmem:[%s1456_s6 + $0x248] sm:$0xff]  ;;  %v1303_v37 = vld [vmem:[%s1456_s6 + $0x258] sm:$0xff] }
  0x24   : > { %v1304_v38 = vld [vmem:[%s1456_s6 + $0x268] sm:$0xff]  ;;  %428 = vst [vmem:[%s1461_s7 + $0x120] sm:$0xff] %v1302_v36  ;;  %430 = vst [vmem:[%s1461_s7 + $0x128] sm:$0xff] %v1303_v37  ;;  %v1305_v39 = vld [vmem:[%s1456_s6 + $0x278] sm:$0xff] }
  0x25   : > { %432 = vst [vmem:[%s1461_s7 + $0x130] sm:$0xff] %v1304_v38  ;;  %v1306_v40 = vld [vmem:[%s1456_s6 + $0x288] sm:$0xff]  ;;  %v1307_v41 = vld [vmem:[%s1456_s6 + $0x298] sm:$0xff]  ;;  %434 = vst [vmem:[%s1461_s7 + $0x138] sm:$0xff] %v1305_v39 }
  0x26   : > { %436 = vst [vmem:[%s1461_s7 + $0x140] sm:$0xff] %v1306_v40  ;;  %438 = vst [vmem:[%s1461_s7 + $0x148] sm:$0xff] %v1307_v41  ;;  %v1308_v42 = vld [vmem:[%s1456_s6 + $0x2a8] sm:$0xff]  ;;  %v1309_v43 = vld [vmem:[%s1456_s6 + $0x2b8] sm:$0xff] }
  0x27   : > { %v1310_v44 = vld [vmem:[%s1456_s6 + $0x2c8] sm:$0xff]  ;;  %440 = vst [vmem:[%s1461_s7 + $0x150] sm:$0xff] %v1308_v42  ;;  %442 = vst [vmem:[%s1461_s7 + $0x158] sm:$0xff] %v1309_v43  ;;  %v1311_v45 = vld [vmem:[%s1456_s6 + $0x2d8] sm:$0xff] }
  0x28   : > { %444 = vst [vmem:[%s1461_s7 + $0x160] sm:$0xff] %v1310_v44  ;;  %v1312_v46 = vld [vmem:[%s1456_s6 + $0x2e8] sm:$0xff]  ;;  %v1313_v47 = vld [vmem:[%s1456_s6 + $0x2f8] sm:$0xff]  ;;  %446 = vst [vmem:[%s1461_s7 + $0x168] sm:$0xff] %v1311_v45 }
  0x29   : > { %448 = vst [vmem:[%s1461_s7 + $0x170] sm:$0xff] %v1312_v46  ;;  %450 = vst [vmem:[%s1461_s7 + $0x178] sm:$0xff] %v1313_v47  ;;  %v1314_v48 = vld [vmem:[%s1456_s6 + $0x308] sm:$0xff]  ;;  %v1315_v49 = vld [vmem:[%s1456_s6 + $0x318] sm:$0xff] }
  0x2a   : > { %v1316_v50 = vld [vmem:[%s1456_s6 + $0x328] sm:$0xff]  ;;  %452 = vst [vmem:[%s1461_s7 + $0x180] sm:$0xff] %v1314_v48  ;;  %454 = vst [vmem:[%s1461_s7 + $0x188] sm:$0xff] %v1315_v49  ;;  %v1317_v51 = vld [vmem:[%s1456_s6 + $0x338] sm:$0xff] }
  0x2b   : > { %456 = vst [vmem:[%s1461_s7 + $0x190] sm:$0xff] %v1316_v50  ;;  %v1318_v52 = vld [vmem:[%s1456_s6 + $0x348] sm:$0xff]  ;;  %v1319_v53 = vld [vmem:[%s1456_s6 + $0x358] sm:$0xff]  ;;  %458 = vst [vmem:[%s1461_s7 + $0x198] sm:$0xff] %v1317_v51 }
  0x2c   : > { %460 = vst [vmem:[%s1461_s7 + $0x1a0] sm:$0xff] %v1318_v52  ;;  %462 = vst [vmem:[%s1461_s7 + $0x1a8] sm:$0xff] %v1319_v53  ;;  %v1320_v54 = vld [vmem:[%s1456_s6 + $0x368] sm:$0xff]  ;;  %v1321_v55 = vld [vmem:[%s1456_s6 + $0x378] sm:$0xff] }
  0x2d   : > { %v1322_v56 = vld [vmem:[%s1456_s6 + $0x388] sm:$0xff]  ;;  %464 = vst [vmem:[%s1461_s7 + $0x1b0] sm:$0xff] %v1320_v54  ;;  %466 = vst [vmem:[%s1461_s7 + $0x1b8] sm:$0xff] %v1321_v55  ;;  %v1323_v57 = vld [vmem:[%s1456_s6 + $0x398] sm:$0xff] }
  0x2e   : > { %468 = vst [vmem:[%s1461_s7 + $0x1c0] sm:$0xff] %v1322_v56  ;;  %v1324_v58 = vld [vmem:[%s1456_s6 + $0x3a8] sm:$0xff]  ;;  %v1325_v59 = vld [vmem:[%s1456_s6 + $0x3b8] sm:$0xff]  ;;  %470 = vst [vmem:[%s1461_s7 + $0x1c8] sm:$0xff] %v1323_v57 }
  0x2f   : > { %472 = vst [vmem:[%s1461_s7 + $0x1d0] sm:$0xff] %v1324_v58  ;;  %474 = vst [vmem:[%s1461_s7 + $0x1d8] sm:$0xff] %v1325_v59  ;;  %v1326_v60 = vld [vmem:[%s1456_s6 + $0x3c8] sm:$0xff]  ;;  %v1327_v61 = vld [vmem:[%s1456_s6 + $0x3d8] sm:$0xff] }
  0x30   : > { %v1328_v62 = vld [vmem:[%s1456_s6 + $0x3e8] sm:$0xff]  ;;  %476 = vst [vmem:[%s1461_s7 + $0x1e0] sm:$0xff] %v1326_v60  ;;  %478 = vst [vmem:[%s1461_s7 + $0x1e8] sm:$0xff] %v1327_v61  ;;  %v1329_v63 = vld [vmem:[%s1456_s6 + $0x3f8] sm:$0xff] }
  0x31   : > { %480 = vst [vmem:[%s1461_s7 + $0x1f0] sm:$0xff] %v1328_v62  ;;  %482 = vst [vmem:[%s1461_s7 + $0x1f8] sm:$0xff] %v1329_v63 }
  0x32 PF: > { %p1330_p5 = scmp.ge.s32.totalorder %s1390_s20, 1  ;;  %p487_p6 = scmp.lt.s32.totalorder %s1390_s20, 4 }
  0x34   : > { %p488_p7 = pnand %p1330_p5, %p487_p6 }
  0x35   : > { %v541_v0 = vld [vmem:[%s2097_s1] sm:$0x3] (!%p488_p7)  ;;  %v1336_v2 = vld [vmem:[%s2099_s3 + $0x2] sm:$0x3] (!%p488_p7)  ;;  %s1332_s12 = sshll.u32 (!%p488_p7), %s1258_s21, 6  ;;  %v645_v12 = vlaneseq (!%p488_p7)  ;;  %s494_s15 = sand.u32 (!%p488_p7), 1, %s1382_s18  }
  0x36   : > { %491 = sbr.rel (%p488_p7) target bundleno = 183 (0xb7), region = 74  ;;  %v544_v1 = vmul.f32 (!%p488_p7), 0.00083333335, %v541_v0  ;;  %v564_v4 = vmul.f32 (!%p488_p7), 0.00083333335, %v1336_v2  ;;  %p528_p8 = scmp.lt.s32.totalorder (!%p488_p7), %s1332_s12, 191 }
  0x37   : > { %v542_v13 = vld [vmem:[%s2100_s4] sm:$0x1] (!%p488_p7)  ;;  %v646_v14 = vshrl.u32 (!%p488_p7), %v645_v12, 7  ;;  %v562_v15 = vld [vmem:[%s2100_s4 + $0x2] sm:$0x1] (!%p488_p7)  ;;  %s1331_s21 = sshll.u32 (!%p488_p7), %s494_s15, 9 }
  0x38   : > { %v545_v3 = vmul.f32 (!%p488_p7), %v544_v1, %v544_v1  ;;  %v565_v6 = vmul.f32 (!%p488_p7), %v564_v4, %v564_v4  ;;  %v553_v16 = vrot.slane (!%p488_p7), %v542_v13, 7  ;;  %v573_v17 = vrot.slane (!%p488_p7), %v562_v15, 7  ;;  %v543_v22 = vld [vmem:[%s2100_s4 + $0x1] sm:$0x1] (!%p488_p7)  ;;  %v563_v31 = vld [vmem:[%s2100_s4 + $0x3] sm:$0x1] (!%p488_p7) }
  0x39   : > { %v647_v18 = vsub.s32 (!%p488_p7), 1, %v646_v14  ;;  %v715_v32 = vsub.s32 (!%p488_p7), 0, %v646_v14  ;;  %s1628_s30 = scalar_lea.vmem (!%p488_p7), [#allocation2], %s1331_s21 }
  0x3a   : > { %v547_v5 = vrot.slane (!%p488_p7), %v545_v3, 7  ;;  %v567_v8 = vrot.slane (!%p488_p7), %v565_v6, 7  ;;  %v781_v33 = vld [vmem:[%s1628_s30] sm:$0xff] (!%p488_p7)  ;;  %v782_v34 = vld [vmem:[%s1628_s30 + $0x8] sm:$0xff] (!%p488_p7)  ;;  %v783_v35 = vld [vmem:[%s1628_s30 + $0x10] sm:$0xff] (!%p488_p7) }
  0x3b   : > { %v784_v40 = vld [vmem:[%s1628_s30 + $0x18] sm:$0xff] (!%p488_p7)  ;;  %v785_v41 = vld [vmem:[%s1628_s30 + $0x20] sm:$0xff] (!%p488_p7)  ;;  %v786_v47 = vld [vmem:[%s1628_s30 + $0x28] sm:$0xff] (!%p488_p7) }
  0x3c   : > { %v549_v7 = vsub.f32 (!%p488_p7), %v544_v1, %v547_v5  ;;  %v569_v10 = vsub.f32 (!%p488_p7), %v564_v4, %v567_v8  ;;  %v787_v49 = vld [vmem:[%s1628_s30 + $0x30] sm:$0xff] (!%p488_p7)  ;;  %v788_v55 = vld [vmem:[%s1628_s30 + $0x38] sm:$0xff] (!%p488_p7) }
  0x3d   : > { %s2106_s12 = smov (!%p528_p8, %s1332_s12), 191 }
  0x3e   : > { %v550_v9 = vadd.f32 1e-05, %v549_v7  ;;  %v570_v11 = vadd.f32 1e-05, %v569_v10  ;;  %s1333_s16 = sshll.u32 %s2106_s12, 3 }
  0x3f   : > { %s1613_s26 = scalar_lea.vmem %s2096_s0, %s1333_s16  ;;  %s1686_s8 = scalar_lea.vmem %s2101_s5, %s1333_s16 }
  0x40   : > { %1364 = vrsqrt.f32 %v550_v9  ;;  %v581_v23 = vld [vmem:[%s1613_s26] sm:$0xff]  ;;  %v582_v24 = vld [vmem:[%s1613_s26 + $0x8] sm:$0xff]  ;;  %v583_v28 = vld [vmem:[%s1613_s26 + $0x10] sm:$0xff] }
  0x41   : > { %1366 = vrsqrt.f32 %v570_v11  ;;  %v584_v29 = vld [vmem:[%s1613_s26 + $0x18] sm:$0xff]  ;;  %v585_v30 = vld [vmem:[%s1613_s26 + $0x20] sm:$0xff]  ;;  %v586_v42 = vld [vmem:[%s1613_s26 + $0x28] sm:$0xff] }
  0x42   : > { %v587_v48 = vld [vmem:[%s1613_s26 + $0x30] sm:$0xff]  ;;  %v588_v54 = vld [vmem:[%s1613_s26 + $0x38] sm:$0xff]  ;;  %v589_v56 = vld [vmem:[%s1613_s26 + $0x40] sm:$0xff] }
  0x4a   : > { %v1365_v19 = vpop.eup %1364 }
  0x4b   : > { %v555_v20 = vmul.f32 %v1365_v19, %v553_v16  ;;  %v1367_v21 = vpop.eup %1366 }
  0x4c   : > { %v575_v26 = vmul.f32 %v1367_v21, %v573_v17 }
  0x4d   : > { %v557_v25 = vrot.slane %v555_v20, 1  ;;  %v1620_v27 = vrot.slane %v555_v20, %v647_v18 }
  0x4e   : > { %v577_v37 = vrot.slane %v575_v26, 1  ;;  %v1634_v39 = vrot.slane %v575_v26, %v647_v18 }
  0x4f   : > { %v559_v36 = vmul.f32 %v557_v25, %v544_v1  ;;  %v649_v38 = vmul.f32 %v1620_v27, %v581_v23  ;;  %v650_v43 = vmul.f32 %v1620_v27, %v582_v24  ;;  %v651_v44 = vmul.f32 %v1620_v27, %v583_v28  ;;  %v789_v25 = vld [vmem:[%s1628_s30 + $0x40] sm:$0xff] }
  0x50   : > { %v652_v45 = vmul.f32 %v1620_v27, %v584_v29  ;;  %v653_v46 = vmul.f32 %v1620_v27, %v585_v30  ;;  %v579_v51 = vmul.f32 %v577_v37, %v564_v4  ;;  %v849_v52 = vmul.f32 %v1634_v39, %v781_v33  ;;  %v591_v33 = vld [vmem:[%s1613_s26 + $0x50] sm:$0xff] }
  0x51   : > { %v560_v50 = vsub.f32 %v543_v22, %v559_v36  ;;  %v850_v53 = vmul.f32 %v1634_v39, %v782_v34  ;;  %v851_v57 = vmul.f32 %v1634_v39, %v783_v35  ;;  %v852_v58 = vmul.f32 %v1634_v39, %v784_v40  ;;  %v592_v40 = vld [vmem:[%s1613_s26 + $0x58] sm:$0xff] }
  0x52   : > { %v853_v59 = vmul.f32 %v1634_v39, %v785_v41  ;;  %v654_v60 = vmul.f32 %v1620_v27, %v586_v42  ;;  %v580_v61 = vsub.f32 %v563_v31, %v579_v51  ;;  %v854_v63 = vmul.f32 %v1634_v39, %v786_v47  ;;  %v590_v31 = vld [vmem:[%s1613_s26 + $0x48] sm:$0xff] }
  0x53   : > { %v1655_v62 = vrot.slane %v560_v50, %v715_v32  ;;  %v655_v0 = vmul.f32 %v1620_v27, %v587_v48  ;;  %v855_v1 = vmul.f32 %v1634_v39, %v787_v49  ;;  %v656_v2 = vmul.f32 %v1620_v27, %v588_v54  ;;  %v593_v50 = vld [vmem:[%s1613_s26 + $0x60] sm:$0xff] }
  0x54   : > { %v856_v3 = vmul.f32 %v1634_v39, %v788_v55  ;;  %v657_v4 = vmul.f32 %v1620_v27, %v589_v56  ;;  %v1664_v6 = vrot.slane %v580_v61, %v715_v32  ;;  %v790_v32 = vld [vmem:[%s1628_s30 + $0x48] sm:$0xff]  ;;  %v857_v47 = vmul.f32 %v1634_v39, %v789_v25  ;;  %v793_v55 = vld [vmem:[%s1628_s30 + $0x60] sm:$0xff] }
  0x55   : > { %v717_v5 = vadd.f32 %v1655_v62, %v649_v38  ;;  %v718_v7 = vadd.f32 %v1655_v62, %v650_v43  ;;  %v719_v8 = vadd.f32 %v1655_v62, %v651_v44  ;;  %v720_v9 = vadd.f32 %v1655_v62, %v652_v45  ;;  %v791_v38 = vld [vmem:[%s1628_s30 + $0x50] sm:$0xff]  ;;  %v792_v45 = vld [vmem:[%s1628_s30 + $0x58] sm:$0xff]  ;;  %v794_v61 = vld [vmem:[%s1628_s30 + $0x68] sm:$0xff] }
  0x56   : > { %v721_v10 = vadd.f32 %v1655_v62, %v653_v46  ;;  %v722_v11 = vadd.f32 %v1655_v62, %v654_v60  ;;  %v723_v12 = vadd.f32 %v1655_v62, %v655_v0  ;;  %v917_v13 = vadd.f32 %v1664_v6, %v849_v52  ;;  %v594_v60 = vld [vmem:[%s1613_s26 + $0x68] sm:$0xff]  ;;  %v797_v25 = vld [vmem:[%s1628_s30 + $0x80] sm:$0xff] }
  0x57   : > { %v918_v14 = vadd.f32 %v1664_v6, %v850_v53  ;;  %v919_v15 = vadd.f32 %v1664_v6, %v851_v57  ;;  %v920_v16 = vadd.f32 %v1664_v6, %v852_v58  ;;  %v921_v17 = vadd.f32 %v1664_v6, %v853_v59 }
  0x58   : > { %v922_v18 = vadd.f32 %v1664_v6, %v854_v63  ;;  %v923_v19 = vadd.f32 %v1664_v6, %v855_v1  ;;  %v724_v20 = vadd.f32 %v1655_v62, %v656_v2  ;;  %v981_v21 = vadd.f32 %v917_v13, %v717_v5  ;;  %v795_v13 = vld [vmem:[%s1628_s30 + $0x70] sm:$0xff] }
  0x59   : > { %v982_v22 = vadd.f32 %v918_v14, %v718_v7  ;;  %v983_v23 = vadd.f32 %v919_v15, %v719_v8  ;;  %v984_v24 = vadd.f32 %v920_v16, %v720_v9  ;;  %v985_v26 = vadd.f32 %v921_v17, %v721_v10  ;;  %v595_v8 = vld [vmem:[%s1613_s26 + $0x70] sm:$0xff]  ;;  %v596_v14 = vld [vmem:[%s1613_s26 + $0x78] sm:$0xff] }
  0x5a   : > { %v986_v28 = vadd.f32 %v922_v18, %v722_v11  ;;  %v987_v29 = vadd.f32 %v923_v19, %v723_v12  ;;  %v924_v30 = vadd.f32 %v1664_v6, %v856_v3  ;;  %v1045_v34 = vmax.f32 %v981_v21, 0.0  ;;  %v796_v19 = vld [vmem:[%s1628_s30 + $0x78] sm:$0xff] }
  0x5b   : > { %v1046_v35 = vmax.f32 %v982_v22, 0.0  ;;  %v1047_v36 = vmax.f32 %v983_v23, 0.0  ;;  %v1048_v37 = vmax.f32 %v984_v24, 0.0  ;;  %v1049_v41 = vmax.f32 %v985_v26, 0.0 }
  0x5c   : > { %v1050_v42 = vmax.f32 %v986_v28, 0.0  ;;  %v1051_v43 = vmax.f32 %v987_v29, 0.0  ;;  %v988_v44 = vadd.f32 %v924_v30, %v724_v20  ;;  %1109 = vst [vmem:[%s1686_s8] sm:$0xff] %v1045_v34  ;;  %v725_v46 = vadd.f32 %v1655_v62, %v657_v4  ;;  %v597_v20 = vld [vmem:[%s1613_s26 + $0x80] sm:$0xff] }
  0x5d   : > { %1110 = vst [vmem:[%s1686_s8 + $0x8] sm:$0xff] %v1046_v35  ;;  %1111 = vst [vmem:[%s1686_s8 + $0x10] sm:$0xff] %v1047_v36  ;;  %v658_v48 = vmul.f32 %v1620_v27, %v590_v31  ;;  %v858_v49 = vmul.f32 %v1634_v39, %v790_v32  ;;  %v659_v52 = vmul.f32 %v1620_v27, %v591_v33  ;;  %v598_v31 = vld [vmem:[%s1613_s26 + $0x88] sm:$0xff] }
  0x5e   : > { %1112 = vst [vmem:[%s1686_s8 + $0x18] sm:$0xff] %v1048_v37  ;;  %1113 = vst [vmem:[%s1686_s8 + $0x20] sm:$0xff] %v1049_v41  ;;  %v1052_v51 = vmax.f32 %v988_v44, 0.0  ;;  %v859_v53 = vmul.f32 %v1634_v39, %v791_v38  ;;  %v660_v54 = vmul.f32 %v1620_v27, %v592_v40  ;;  %v925_v56 = vadd.f32 %v1664_v6, %v857_v47  ;;  %v798_v36 = vld [vmem:[%s1628_s30 + $0x88] sm:$0xff]  ;;  %v599_v37 = vld [vmem:[%s1613_s26 + $0x90] sm:$0xff] }
  0x5f   : > { %1114 = vst [vmem:[%s1686_s8 + $0x28] sm:$0xff] %v1050_v42  ;;  %1115 = vst [vmem:[%s1686_s8 + $0x30] sm:$0xff] %v1051_v43  ;;  %v726_v57 = vadd.f32 %v1655_v62, %v658_v48  ;;  %v926_v58 = vadd.f32 %v1664_v6, %v858_v49  ;;  %v860_v59 = vmul.f32 %v1634_v39, %v792_v45  ;;  %v799_v43 = vld [vmem:[%s1628_s30 + $0x90] sm:$0xff]  ;;  %v600_v44 = vld [vmem:[%s1613_s26 + $0x98] sm:$0xff] }
  0x60   : > { %1116 = vst [vmem:[%s1686_s8 + $0x38] sm:$0xff] %v1052_v51  ;;  %v727_v63 = vadd.f32 %v1655_v62, %v659_v52  ;;  %v927_v0 = vadd.f32 %v1664_v6, %v859_v53  ;;  %v728_v1 = vadd.f32 %v1655_v62, %v660_v54  ;;  %v661_v2 = vmul.f32 %v1620_v27, %v593_v50  ;;  %v800_v53 = vld [vmem:[%s1628_s30 + $0x98] sm:$0xff] }
  0x61   : > { %v989_v3 = vadd.f32 %v925_v56, %v725_v46  ;;  %v990_v4 = vadd.f32 %v926_v58, %v726_v57  ;;  %v928_v5 = vadd.f32 %v1664_v6, %v860_v59  ;;  %v861_v7 = vmul.f32 %v1634_v39, %v793_v55  ;;  %v601_v58 = vld [vmem:[%s1613_s26 + $0xa0] sm:$0xff] }
  0x62   : > { %v991_v9 = vadd.f32 %v927_v0, %v727_v63  ;;  %v729_v10 = vadd.f32 %v1655_v62, %v661_v2  ;;  %v662_v11 = vmul.f32 %v1620_v27, %v594_v60  ;;  %v862_v12 = vmul.f32 %v1634_v39, %v794_v61  ;;  %v801_v59 = vld [vmem:[%s1628_s30 + $0xa0] sm:$0xff]  ;;  %v802_v2 = vld [vmem:[%s1628_s30 + $0xa8] sm:$0xff] }
  0x63   : > { %v1053_v15 = vmax.f32 %v989_v3, 0.0  ;;  %v1054_v16 = vmax.f32 %v990_v4, 0.0  ;;  %v992_v17 = vadd.f32 %v928_v5, %v728_v1  ;;  %v929_v18 = vadd.f32 %v1664_v6, %v861_v7  ;;  %v602_v1 = vld [vmem:[%s1613_s26 + $0xa8] sm:$0xff] }
  0x64   : > { %v1055_v21 = vmax.f32 %v991_v9, 0.0  ;;  %v730_v22 = vadd.f32 %v1655_v62, %v662_v11  ;;  %v930_v23 = vadd.f32 %v1664_v6, %v862_v12  ;;  %v663_v24 = vmul.f32 %v1620_v27, %v595_v8  ;;  %v603_v8 = vld [vmem:[%s1613_s26 + $0xb0] sm:$0xff] }
  0x65   : > { %1117 = vst [vmem:[%s1686_s8 + $0x40] sm:$0xff] %v1053_v15  ;;  %1118 = vst [vmem:[%s1686_s8 + $0x48] sm:$0xff] %v1054_v16  ;;  %v1056_v26 = vmax.f32 %v992_v17, 0.0  ;;  %v993_v28 = vadd.f32 %v929_v18, %v729_v10  ;;  %v863_v29 = vmul.f32 %v1634_v39, %v795_v13  ;;  %v664_v30 = vmul.f32 %v1620_v27, %v596_v14  ;;  %v803_v17 = vld [vmem:[%s1628_s30 + $0xb0] sm:$0xff]  ;;  %v604_v18 = vld [vmem:[%s1613_s26 + $0xb8] sm:$0xff] }
  0x66   : > { %1119 = vst [vmem:[%s1686_s8 + $0x50] sm:$0xff] %v1055_v21  ;;  %v994_v32 = vadd.f32 %v930_v23, %v730_v22  ;;  %v731_v33 = vadd.f32 %v1655_v62, %v663_v24  ;;  %v864_v34 = vmul.f32 %v1634_v39, %v796_v19  ;;  %v665_v35 = vmul.f32 %v1620_v27, %v597_v20  ;;  %v804_v23 = vld [vmem:[%s1628_s30 + $0xb8] sm:$0xff]  ;;  %v605_v24 = vld [vmem:[%s1613_s26 + $0xc0] sm:$0xff] }
  0x67   : > { %1120 = vst [vmem:[%s1686_s8 + $0x58] sm:$0xff] %v1056_v26  ;;  %v1057_v38 = vmax.f32 %v993_v28, 0.0  ;;  %v931_v40 = vadd.f32 %v1664_v6, %v863_v29  ;;  %v732_v41 = vadd.f32 %v1655_v62, %v664_v30  ;;  %v865_v42 = vmul.f32 %v1634_v39, %v797_v25  ;;  %v805_v30 = vld [vmem:[%s1628_s30 + $0xc0] sm:$0xff] }
  0x68   : > { %v1058_v45 = vmax.f32 %v994_v32, 0.0  ;;  %v932_v46 = vadd.f32 %v1664_v6, %v864_v34  ;;  %v733_v47 = vadd.f32 %v1655_v62, %v665_v35  ;;  %v666_v48 = vmul.f32 %v1620_v27, %v598_v31  ;;  %v606_v35 = vld [vmem:[%s1613_s26 + $0xc8] sm:$0xff] }
  0x69   : > { %1121 = vst [vmem:[%s1686_s8 + $0x60] sm:$0xff] %v1057_v38  ;;  %v995_v49 = vadd.f32 %v931_v40, %v731_v33  ;;  %v933_v50 = vadd.f32 %v1664_v6, %v865_v42  ;;  %v866_v51 = vmul.f32 %v1634_v39, %v798_v36  ;;  %v667_v52 = vmul.f32 %v1620_v27, %v599_v37  ;;  %v607_v42 = vld [vmem:[%s1613_s26 + $0xd0] sm:$0xff] }
  0x6a   : > { %1122 = vst [vmem:[%s1686_s8 + $0x68] sm:$0xff] %v1058_v45  ;;  %v996_v54 = vadd.f32 %v932_v46, %v732_v41  ;;  %v734_v55 = vadd.f32 %v1655_v62, %v666_v48  ;;  %v867_v56 = vmul.f32 %v1634_v39, %v799_v43  ;;  %v668_v57 = vmul.f32 %v1620_v27, %v600_v44  ;;  %v806_v41 = vld [vmem:[%s1628_s30 + $0xc8] sm:$0xff]  ;;  %v608_v48 = vld [vmem:[%s1613_s26 + $0xd8] sm:$0xff] }
  0x6b   : > { %v1059_v60 = vmax.f32 %v995_v49, 0.0  ;;  %v997_v61 = vadd.f32 %v933_v50, %v733_v47  ;;  %v934_v63 = vadd.f32 %v1664_v6, %v866_v51  ;;  %v735_v0 = vadd.f32 %v1655_v62, %v667_v52  ;;  %v807_v47 = vld [vmem:[%s1628_s30 + $0xd0] sm:$0xff] }
  0x6c   : > { %v1060_v3 = vmax.f32 %v996_v54, 0.0  ;;  %v935_v4 = vadd.f32 %v1664_v6, %v867_v56  ;;  %v736_v5 = vadd.f32 %v1655_v62, %v668_v57  ;;  %v868_v7 = vmul.f32 %v1634_v39, %v800_v53  ;;  %v808_v57 = vld [vmem:[%s1628_s30 + $0xd8] sm:$0xff] }
  0x6d   : > { %1123 = vst [vmem:[%s1686_s8 + $0x70] sm:$0xff] %v1059_v60  ;;  %v1061_v9 = vmax.f32 %v997_v61, 0.0  ;;  %v998_v10 = vadd.f32 %v934_v63, %v734_v55  ;;  %v669_v11 = vmul.f32 %v1620_v27, %v601_v58  ;;  %v869_v12 = vmul.f32 %v1634_v39, %v801_v59  ;;  %v609_v63 = vld [vmem:[%s1613_s26 + $0xe0] sm:$0xff] }
  0x6e   : > { %1124 = vst [vmem:[%s1686_s8 + $0x78] sm:$0xff] %v1060_v3  ;;  %v999_v13 = vadd.f32 %v935_v4, %v735_v0  ;;  %v936_v14 = vadd.f32 %v1664_v6, %v868_v7  ;;  %v670_v15 = vmul.f32 %v1620_v27, %v602_v1  ;;  %v870_v16 = vmul.f32 %v1634_v39, %v802_v2  ;;  %v809_v0 = vld [vmem:[%s1628_s30 + $0xe0] sm:$0xff]  ;;  %v810_v7 = vld [vmem:[%s1628_s30 + $0xe8] sm:$0xff] }
  0x6f   : > { %1125 = vst [vmem:[%s1686_s8 + $0x80] sm:$0xff] %v1061_v9  ;;  %v1062_v19 = vmax.f32 %v998_v10, 0.0  ;;  %v737_v20 = vadd.f32 %v1655_v62, %v669_v11  ;;  %v937_v21 = vadd.f32 %v1664_v6, %v869_v12  ;;  %v671_v22 = vmul.f32 %v1620_v27, %v603_v8  ;;  %v611_v12 = vld [vmem:[%s1613_s26 + $0xf0] sm:$0xff] }
  0x70   : > { %v1063_v25 = vmax.f32 %v999_v13, 0.0  ;;  %v1000_v26 = vadd.f32 %v936_v14, %v736_v5  ;;  %v738_v28 = vadd.f32 %v1655_v62, %v670_v15  ;;  %v938_v29 = vadd.f32 %v1664_v6, %v870_v16  ;;  %v610_v5 = vld [vmem:[%s1613_s26 + $0xe8] sm:$0xff] }
  0x71   : > { %1126 = vst [vmem:[%s1686_s8 + $0x88] sm:$0xff] %v1062_v19  ;;  %v1001_v31 = vadd.f32 %v937_v21, %v737_v20  ;;  %v739_v32 = vadd.f32 %v1655_v62, %v671_v22  ;;  %v871_v33 = vmul.f32 %v1634_v39, %v803_v17  ;;  %v672_v34 = vmul.f32 %v1620_v27, %v604_v18  ;;  %v811_v21 = vld [vmem:[%s1628_s30 + $0xf0] sm:$0xff]  ;;  %v612_v22 = vld [vmem:[%s1613_s26 + $0xf8] sm:$0xff] }
  0x72   : > { %1127 = vst [vmem:[%s1686_s8 + $0x90] sm:$0xff] %v1063_v25  ;;  %v1064_v36 = vmax.f32 %v1000_v26, 0.0  ;;  %v1002_v37 = vadd.f32 %v938_v29, %v738_v28  ;;  %v872_v38 = vmul.f32 %v1634_v39, %v804_v23  ;;  %v673_v40 = vmul.f32 %v1620_v27, %v605_v24  ;;  %v812_v28 = vld [vmem:[%s1628_s30 + $0xf8] sm:$0xff]  ;;  %v613_v29 = vld [vmem:[%s1613_s26 + $0x100] sm:$0xff] }
  0x73   : > { %v1065_v43 = vmax.f32 %v1001_v31, 0.0  ;;  %v939_v44 = vadd.f32 %v1664_v6, %v871_v33  ;;  %v740_v45 = vadd.f32 %v1655_v62, %v672_v34  ;;  %v873_v46 = vmul.f32 %v1634_v39, %v805_v30  ;;  %v813_v34 = vld [vmem:[%s1628_s30 + $0x100] sm:$0xff] }
  0x74   : > { %1128 = vst [vmem:[%s1686_s8 + $0x98] sm:$0xff] %v1064_v36  ;;  %v1066_v49 = vmax.f32 %v1002_v37, 0.0  ;;  %v940_v50 = vadd.f32 %v1664_v6, %v872_v38  ;;  %v741_v51 = vadd.f32 %v1655_v62, %v673_v40  ;;  %v674_v52 = vmul.f32 %v1620_v27, %v606_v35  ;;  %v614_v40 = vld [vmem:[%s1613_s26 + $0x108] sm:$0xff] }
  0x75   : > { %1129 = vst [vmem:[%s1686_s8 + $0xa0] sm:$0xff] %v1065_v43  ;;  %v1003_v53 = vadd.f32 %v939_v44, %v739_v32  ;;  %v941_v54 = vadd.f32 %v1664_v6, %v873_v46  ;;  %v874_v55 = vmul.f32 %v1634_v39, %v806_v41  ;;  %v675_v56 = vmul.f32 %v1620_v27, %v607_v42  ;;  %v615_v46 = vld [vmem:[%s1613_s26 + $0x110] sm:$0xff] }
  0x76   : > { %1130 = vst [vmem:[%s1686_s8 + $0xa8] sm:$0xff] %v1066_v49  ;;  %v1004_v58 = vadd.f32 %v940_v50, %v740_v45  ;;  %v742_v59 = vadd.f32 %v1655_v62, %v674_v52  ;;  %v875_v60 = vmul.f32 %v1634_v39, %v807_v47  ;;  %v676_v61 = vmul.f32 %v1620_v27, %v608_v48  ;;  %v814_v45 = vld [vmem:[%s1628_s30 + $0x108] sm:$0xff]  ;;  %v616_v52 = vld [vmem:[%s1613_s26 + $0x118] sm:$0xff] }
  0x77   : > { %v1067_v1 = vmax.f32 %v1003_v53, 0.0  ;;  %v1005_v2 = vadd.f32 %v941_v54, %v741_v51  ;;  %v942_v3 = vadd.f32 %v1664_v6, %v874_v55  ;;  %v743_v4 = vadd.f32 %v1655_v62, %v675_v56  ;;  %v815_v51 = vld [vmem:[%s1628_s30 + $0x110] sm:$0xff] }
  0x78   : > { %v1068_v8 = vmax.f32 %v1004_v58, 0.0  ;;  %v943_v9 = vadd.f32 %v1664_v6, %v875_v60  ;;  %v744_v10 = vadd.f32 %v1655_v62, %v676_v61  ;;  %v876_v11 = vmul.f32 %v1634_v39, %v808_v57  ;;  %v816_v61 = vld [vmem:[%s1628_s30 + $0x118] sm:$0xff] }
  0x79   : > { %1131 = vst [vmem:[%s1686_s8 + $0xb0] sm:$0xff] %v1067_v1  ;;  %v1069_v13 = vmax.f32 %v1005_v2, 0.0  ;;  %v1006_v14 = vadd.f32 %v942_v3, %v742_v59  ;;  %v677_v15 = vmul.f32 %v1620_v27, %v609_v63  ;;  %v877_v16 = vmul.f32 %v1634_v39, %v809_v0  ;;  %v617_v3 = vld [vmem:[%s1613_s26 + $0x120] sm:$0xff] }
  0x7a   : > { %1132 = vst [vmem:[%s1686_s8 + $0xb8] sm:$0xff] %v1068_v8  ;;  %v1007_v17 = vadd.f32 %v943_v9, %v743_v4  ;;  %v944_v18 = vadd.f32 %v1664_v6, %v876_v11  ;;  %v678_v19 = vmul.f32 %v1620_v27, %v610_v5  ;;  %v878_v20 = vmul.f32 %v1634_v39, %v810_v7  ;;  %v817_v4 = vld [vmem:[%s1628_s30 + $0x120] sm:$0xff]  ;;  %v818_v11 = vld [vmem:[%s1628_s30 + $0x128] sm:$0xff] }
  0x7b   : > { %1133 = vst [vmem:[%s1686_s8 + $0xc0] sm:$0xff] %v1069_v13  ;;  %v1070_v23 = vmax.f32 %v1006_v14, 0.0  ;;  %v745_v24 = vadd.f32 %v1655_v62, %v677_v15  ;;  %v945_v25 = vadd.f32 %v1664_v6, %v877_v16  ;;  %v679_v26 = vmul.f32 %v1620_v27, %v611_v12  ;;  %v619_v16 = vld [vmem:[%s1613_s26 + $0x130] sm:$0xff] }
  0x7c   : > { %v1071_v30 = vmax.f32 %v1007_v17, 0.0  ;;  %v1008_v31 = vadd.f32 %v944_v18, %v744_v10  ;;  %v746_v32 = vadd.f32 %v1655_v62, %v678_v19  ;;  %v946_v33 = vadd.f32 %v1664_v6, %v878_v20  ;;  %v618_v10 = vld [vmem:[%s1613_s26 + $0x128] sm:$0xff] }
  0x7d   : > { %1134 = vst [vmem:[%s1686_s8 + $0xc8] sm:$0xff] %v1070_v23  ;;  %v1009_v35 = vadd.f32 %v945_v25, %v745_v24  ;;  %v747_v36 = vadd.f32 %v1655_v62, %v679_v26  ;;  %v879_v37 = vmul.f32 %v1634_v39, %v811_v21  ;;  %v680_v38 = vmul.f32 %v1620_v27, %v612_v22  ;;  %v819_v25 = vld [vmem:[%s1628_s30 + $0x130] sm:$0xff]  ;;  %v620_v26 = vld [vmem:[%s1613_s26 + $0x138] sm:$0xff] }
  0x7e   : > { %1135 = vst [vmem:[%s1686_s8 + $0xd0] sm:$0xff] %v1071_v30  ;;  %v1072_v41 = vmax.f32 %v1008_v31, 0.0  ;;  %v1010_v42 = vadd.f32 %v946_v33, %v746_v32  ;;  %v880_v43 = vmul.f32 %v1634_v39, %v812_v28  ;;  %v681_v44 = vmul.f32 %v1620_v27, %v613_v29  ;;  %v820_v32 = vld [vmem:[%s1628_s30 + $0x138] sm:$0xff]  ;;  %v621_v33 = vld [vmem:[%s1613_s26 + $0x140] sm:$0xff] }
  0x7f   : > { %v1073_v47 = vmax.f32 %v1009_v35, 0.0  ;;  %v947_v48 = vadd.f32 %v1664_v6, %v879_v37  ;;  %v748_v49 = vadd.f32 %v1655_v62, %v680_v38  ;;  %v881_v50 = vmul.f32 %v1634_v39, %v813_v34  ;;  %v821_v38 = vld [vmem:[%s1628_s30 + $0x140] sm:$0xff] }
  0x80   : > { %1136 = vst [vmem:[%s1686_s8 + $0xd8] sm:$0xff] %v1072_v41  ;;  %v1074_v53 = vmax.f32 %v1010_v42, 0.0  ;;  %v948_v54 = vadd.f32 %v1664_v6, %v880_v43  ;;  %v749_v55 = vadd.f32 %v1655_v62, %v681_v44  ;;  %v682_v56 = vmul.f32 %v1620_v27, %v614_v40  ;;  %v622_v44 = vld [vmem:[%s1613_s26 + $0x148] sm:$0xff] }
  0x81   : > { %1137 = vst [vmem:[%s1686_s8 + $0xe0] sm:$0xff] %v1073_v47  ;;  %v1011_v57 = vadd.f32 %v947_v48, %v747_v36  ;;  %v949_v58 = vadd.f32 %v1664_v6, %v881_v50  ;;  %v882_v59 = vmul.f32 %v1634_v39, %v814_v45  ;;  %v683_v60 = vmul.f32 %v1620_v27, %v615_v46  ;;  %v623_v50 = vld [vmem:[%s1613_s26 + $0x150] sm:$0xff] }
  0x82   : > { %1138 = vst [vmem:[%s1686_s8 + $0xe8] sm:$0xff] %v1074_v53  ;;  %v1012_v63 = vadd.f32 %v948_v54, %v748_v49  ;;  %v750_v0 = vadd.f32 %v1655_v62, %v682_v56  ;;  %v883_v1 = vmul.f32 %v1634_v39, %v815_v51  ;;  %v684_v2 = vmul.f32 %v1620_v27, %v616_v52  ;;  %v822_v49 = vld [vmem:[%s1628_s30 + $0x148] sm:$0xff]  ;;  %v624_v56 = vld [vmem:[%s1613_s26 + $0x158] sm:$0xff] }
  0x83   : > { %v1075_v5 = vmax.f32 %v1011_v57, 0.0  ;;  %v1013_v7 = vadd.f32 %v949_v58, %v749_v55  ;;  %v950_v8 = vadd.f32 %v1664_v6, %v882_v59  ;;  %v751_v9 = vadd.f32 %v1655_v62, %v683_v60  ;;  %v823_v55 = vld [vmem:[%s1628_s30 + $0x150] sm:$0xff] }
  0x84   : > { %v1076_v12 = vmax.f32 %v1012_v63, 0.0  ;;  %v951_v13 = vadd.f32 %v1664_v6, %v883_v1  ;;  %v752_v14 = vadd.f32 %v1655_v62, %v684_v2  ;;  %v884_v15 = vmul.f32 %v1634_v39, %v816_v61  ;;  %v824_v2 = vld [vmem:[%s1628_s30 + $0x158] sm:$0xff] }
  0x85   : > { %1139 = vst [vmem:[%s1686_s8 + $0xf0] sm:$0xff] %v1075_v5  ;;  %v1077_v17 = vmax.f32 %v1013_v7, 0.0  ;;  %v1014_v18 = vadd.f32 %v950_v8, %v750_v0  ;;  %v685_v19 = vmul.f32 %v1620_v27, %v617_v3  ;;  %v885_v20 = vmul.f32 %v1634_v39, %v817_v4  ;;  %v625_v8 = vld [vmem:[%s1613_s26 + $0x160] sm:$0xff] }
  0x86   : > { %1140 = vst [vmem:[%s1686_s8 + $0xf8] sm:$0xff] %v1076_v12  ;;  %v1015_v21 = vadd.f32 %v951_v13, %v751_v9  ;;  %v952_v22 = vadd.f32 %v1664_v6, %v884_v15  ;;  %v686_v23 = vmul.f32 %v1620_v27, %v618_v10  ;;  %v886_v24 = vmul.f32 %v1634_v39, %v818_v11  ;;  %v825_v9 = vld [vmem:[%s1628_s30 + $0x160] sm:$0xff]  ;;  %v826_v15 = vld [vmem:[%s1628_s30 + $0x168] sm:$0xff] }
  0x87   : > { %1141 = vst [vmem:[%s1686_s8 + $0x100] sm:$0xff] %v1077_v17  ;;  %v1078_v28 = vmax.f32 %v1014_v18, 0.0  ;;  %v753_v29 = vadd.f32 %v1655_v62, %v685_v19  ;;  %v953_v30 = vadd.f32 %v1664_v6, %v885_v20  ;;  %v687_v31 = vmul.f32 %v1620_v27, %v619_v16  ;;  %v627_v20 = vld [vmem:[%s1613_s26 + $0x170] sm:$0xff] }
  0x88   : > { %v1079_v34 = vmax.f32 %v1015_v21, 0.0  ;;  %v1016_v35 = vadd.f32 %v952_v22, %v752_v14  ;;  %v754_v36 = vadd.f32 %v1655_v62, %v686_v23  ;;  %v954_v37 = vadd.f32 %v1664_v6, %v886_v24  ;;  %v626_v14 = vld [vmem:[%s1613_s26 + $0x168] sm:$0xff] }
  0x89   : > { %1142 = vst [vmem:[%s1686_s8 + $0x108] sm:$0xff] %v1078_v28  ;;  %v1017_v40 = vadd.f32 %v953_v30, %v753_v29  ;;  %v755_v41 = vadd.f32 %v1655_v62, %v687_v31  ;;  %v887_v42 = vmul.f32 %v1634_v39, %v819_v25  ;;  %v688_v43 = vmul.f32 %v1620_v27, %v620_v26  ;;  %v827_v30 = vld [vmem:[%s1628_s30 + $0x170] sm:$0xff]  ;;  %v628_v31 = vld [vmem:[%s1613_s26 + $0x178] sm:$0xff] }
  0x8a   : > { %1143 = vst [vmem:[%s1686_s8 + $0x110] sm:$0xff] %v1079_v34  ;;  %v1080_v45 = vmax.f32 %v1016_v35, 0.0  ;;  %v1018_v46 = vadd.f32 %v954_v37, %v754_v36  ;;  %v888_v47 = vmul.f32 %v1634_v39, %v820_v32  ;;  %v689_v48 = vmul.f32 %v1620_v27, %v621_v33  ;;  %v828_v36 = vld [vmem:[%s1628_s30 + $0x178] sm:$0xff]  ;;  %v629_v37 = vld [vmem:[%s1613_s26 + $0x180] sm:$0xff] }
  0x8b   : > { %v1081_v51 = vmax.f32 %v1017_v40, 0.0  ;;  %v955_v52 = vadd.f32 %v1664_v6, %v887_v42  ;;  %v756_v53 = vadd.f32 %v1655_v62, %v688_v43  ;;  %v889_v54 = vmul.f32 %v1634_v39, %v821_v38  ;;  %v829_v43 = vld [vmem:[%s1628_s30 + $0x180] sm:$0xff] }
  0x8c   : > { %1144 = vst [vmem:[%s1686_s8 + $0x118] sm:$0xff] %v1080_v45  ;;  %v1082_v57 = vmax.f32 %v1018_v46, 0.0  ;;  %v956_v58 = vadd.f32 %v1664_v6, %v888_v47  ;;  %v757_v59 = vadd.f32 %v1655_v62, %v689_v48  ;;  %v690_v60 = vmul.f32 %v1620_v27, %v622_v44  ;;  %v630_v48 = vld [vmem:[%s1613_s26 + $0x188] sm:$0xff] }
  0x8d   : > { %1145 = vst [vmem:[%s1686_s8 + $0x120] sm:$0xff] %v1081_v51  ;;  %v1019_v61 = vadd.f32 %v955_v52, %v755_v41  ;;  %v957_v63 = vadd.f32 %v1664_v6, %v889_v54  ;;  %v890_v0 = vmul.f32 %v1634_v39, %v822_v49  ;;  %v691_v1 = vmul.f32 %v1620_v27, %v623_v50  ;;  %v631_v54 = vld [vmem:[%s1613_s26 + $0x190] sm:$0xff] }
  0x8e   : > { %1146 = vst [vmem:[%s1686_s8 + $0x128] sm:$0xff] %v1082_v57  ;;  %v1020_v3 = vadd.f32 %v956_v58, %v756_v53  ;;  %v758_v4 = vadd.f32 %v1655_v62, %v690_v60  ;;  %v891_v5 = vmul.f32 %v1634_v39, %v823_v55  ;;  %v692_v7 = vmul.f32 %v1620_v27, %v624_v56  ;;  %v830_v53 = vld [vmem:[%s1628_s30 + $0x188] sm:$0xff]  ;;  %v632_v60 = vld [vmem:[%s1613_s26 + $0x198] sm:$0xff] }
  0x8f   : > { %v1083_v10 = vmax.f32 %v1019_v61, 0.0  ;;  %v1021_v11 = vadd.f32 %v957_v63, %v757_v59  ;;  %v958_v12 = vadd.f32 %v1664_v6, %v890_v0  ;;  %v759_v13 = vadd.f32 %v1655_v62, %v691_v1  ;;  %v831_v59 = vld [vmem:[%s1628_s30 + $0x190] sm:$0xff] }
  0x90   : > { %v1084_v16 = vmax.f32 %v1020_v3, 0.0  ;;  %v959_v17 = vadd.f32 %v1664_v6, %v891_v5  ;;  %v760_v18 = vadd.f32 %v1655_v62, %v692_v7  ;;  %v892_v19 = vmul.f32 %v1634_v39, %v824_v2  ;;  %v832_v7 = vld [vmem:[%s1628_s30 + $0x198] sm:$0xff] }
  0x91   : > { %1147 = vst [vmem:[%s1686_s8 + $0x130] sm:$0xff] %v1083_v10  ;;  %v1085_v21 = vmax.f32 %v1021_v11, 0.0  ;;  %v1022_v22 = vadd.f32 %v958_v12, %v758_v4  ;;  %v693_v23 = vmul.f32 %v1620_v27, %v625_v8  ;;  %v893_v24 = vmul.f32 %v1634_v39, %v825_v9  ;;  %v633_v12 = vld [vmem:[%s1613_s26 + $0x1a0] sm:$0xff] }
  0x92   : > { %1148 = vst [vmem:[%s1686_s8 + $0x138] sm:$0xff] %v1084_v16  ;;  %v1023_v25 = vadd.f32 %v959_v17, %v759_v13  ;;  %v960_v26 = vadd.f32 %v1664_v6, %v892_v19  ;;  %v694_v28 = vmul.f32 %v1620_v27, %v626_v14  ;;  %v894_v29 = vmul.f32 %v1634_v39, %v826_v15  ;;  %v833_v13 = vld [vmem:[%s1628_s30 + $0x1a0] sm:$0xff]  ;;  %v834_v19 = vld [vmem:[%s1628_s30 + $0x1a8] sm:$0xff] }
  0x93   : > { %1149 = vst [vmem:[%s1686_s8 + $0x140] sm:$0xff] %v1085_v21  ;;  %v1086_v32 = vmax.f32 %v1022_v22, 0.0  ;;  %v761_v33 = vadd.f32 %v1655_v62, %v693_v23  ;;  %v961_v34 = vadd.f32 %v1664_v6, %v893_v24  ;;  %v695_v35 = vmul.f32 %v1620_v27, %v627_v20  ;;  %v635_v24 = vld [vmem:[%s1613_s26 + $0x1b0] sm:$0xff] }
  0x94   : > { %v1087_v38 = vmax.f32 %v1023_v25, 0.0  ;;  %v1024_v40 = vadd.f32 %v960_v26, %v760_v18  ;;  %v762_v41 = vadd.f32 %v1655_v62, %v694_v28  ;;  %v962_v42 = vadd.f32 %v1664_v6, %v894_v29  ;;  %v634_v18 = vld [vmem:[%s1613_s26 + $0x1a8] sm:$0xff] }
  0x95   : > { %1150 = vst [vmem:[%s1686_s8 + $0x148] sm:$0xff] %v1086_v32  ;;  %v1025_v44 = vadd.f32 %v961_v34, %v761_v33  ;;  %v763_v45 = vadd.f32 %v1655_v62, %v695_v35  ;;  %v895_v46 = vmul.f32 %v1634_v39, %v827_v30  ;;  %v696_v47 = vmul.f32 %v1620_v27, %v628_v31  ;;  %v835_v34 = vld [vmem:[%s1628_s30 + $0x1b0] sm:$0xff]  ;;  %v636_v35 = vld [vmem:[%s1613_s26 + $0x1b8] sm:$0xff] }
  0x96   : > { %1151 = vst [vmem:[%s1686_s8 + $0x150] sm:$0xff] %v1087_v38  ;;  %v1088_v49 = vmax.f32 %v1024_v40, 0.0  ;;  %v1026_v50 = vadd.f32 %v962_v42, %v762_v41  ;;  %v896_v51 = vmul.f32 %v1634_v39, %v828_v36  ;;  %v697_v52 = vmul.f32 %v1620_v27, %v629_v37  ;;  %v836_v41 = vld [vmem:[%s1628_s30 + $0x1b8] sm:$0xff]  ;;  %v637_v42 = vld [vmem:[%s1613_s26 + $0x1c0] sm:$0xff] }
  0x97   : > { %v1089_v55 = vmax.f32 %v1025_v44, 0.0  ;;  %v963_v56 = vadd.f32 %v1664_v6, %v895_v46  ;;  %v764_v57 = vadd.f32 %v1655_v62, %v696_v47  ;;  %v897_v58 = vmul.f32 %v1634_v39, %v829_v43  ;;  %v837_v47 = vld [vmem:[%s1628_s30 + $0x1c0] sm:$0xff] }
  0x98   : > { %1152 = vst [vmem:[%s1686_s8 + $0x158] sm:$0xff] %v1088_v49  ;;  %v1090_v61 = vmax.f32 %v1026_v50, 0.0  ;;  %v964_v63 = vadd.f32 %v1664_v6, %v896_v51  ;;  %v765_v0 = vadd.f32 %v1655_v62, %v697_v52  ;;  %v698_v1 = vmul.f32 %v1620_v27, %v630_v48  ;;  %v638_v52 = vld [vmem:[%s1613_s26 + $0x1c8] sm:$0xff] }
  0x99   : > { %1153 = vst [vmem:[%s1686_s8 + $0x160] sm:$0xff] %v1089_v55  ;;  %v1027_v2 = vadd.f32 %v963_v56, %v763_v45  ;;  %v965_v3 = vadd.f32 %v1664_v6, %v897_v58  ;;  %v898_v4 = vmul.f32 %v1634_v39, %v830_v53  ;;  %v699_v5 = vmul.f32 %v1620_v27, %v631_v54  ;;  %v639_v58 = vld [vmem:[%s1613_s26 + $0x1d0] sm:$0xff] }
  0x9a   : > { %1154 = vst [vmem:[%s1686_s8 + $0x168] sm:$0xff] %v1090_v61  ;;  %v1028_v8 = vadd.f32 %v964_v63, %v764_v57  ;;  %v766_v9 = vadd.f32 %v1655_v62, %v698_v1  ;;  %v899_v10 = vmul.f32 %v1634_v39, %v831_v59  ;;  %v700_v11 = vmul.f32 %v1620_v27, %v632_v60  ;;  %v838_v57 = vld [vmem:[%s1628_s30 + $0x1c8] sm:$0xff]  ;;  %v640_v1 = vld [vmem:[%s1613_s26 + $0x1d8] sm:$0xff] }
  0x9b   : > { %v1091_v14 = vmax.f32 %v1027_v2, 0.0  ;;  %v1029_v15 = vadd.f32 %v965_v3, %v765_v0  ;;  %v966_v16 = vadd.f32 %v1664_v6, %v898_v4  ;;  %v767_v17 = vadd.f32 %v1655_v62, %v699_v5  ;;  %v839_v0 = vld [vmem:[%s1628_s30 + $0x1d0] sm:$0xff] }
  0x9c   : > { %v1092_v20 = vmax.f32 %v1028_v8, 0.0  ;;  %v967_v21 = vadd.f32 %v1664_v6, %v899_v10  ;;  %v768_v22 = vadd.f32 %v1655_v62, %v700_v11  ;;  %v900_v23 = vmul.f32 %v1634_v39, %v832_v7  ;;  %v840_v11 = vld [vmem:[%s1628_s30 + $0x1d8] sm:$0xff] }
  0x9d   : > { %1155 = vst [vmem:[%s1686_s8 + $0x170] sm:$0xff] %v1091_v14  ;;  %v1093_v25 = vmax.f32 %v1029_v15, 0.0  ;;  %v1030_v26 = vadd.f32 %v966_v16, %v766_v9  ;;  %v701_v28 = vmul.f32 %v1620_v27, %v633_v12  ;;  %v901_v29 = vmul.f32 %v1634_v39, %v833_v13  ;;  %v641_v16 = vld [vmem:[%s1613_s26 + $0x1e0] sm:$0xff] }
  0x9e   : > { %1156 = vst [vmem:[%s1686_s8 + $0x178] sm:$0xff] %v1092_v20  ;;  %v1031_v30 = vadd.f32 %v967_v21, %v767_v17  ;;  %v968_v31 = vadd.f32 %v1664_v6, %v900_v23  ;;  %v702_v32 = vmul.f32 %v1620_v27, %v634_v18  ;;  %v902_v33 = vmul.f32 %v1634_v39, %v834_v19  ;;  %v841_v17 = vld [vmem:[%s1628_s30 + $0x1e0] sm:$0xff]  ;;  %v842_v23 = vld [vmem:[%s1628_s30 + $0x1e8] sm:$0xff] }
  0x9f   : > { %1157 = vst [vmem:[%s1686_s8 + $0x180] sm:$0xff] %v1093_v25  ;;  %v1094_v36 = vmax.f32 %v1030_v26, 0.0  ;;  %v769_v37 = vadd.f32 %v1655_v62, %v701_v28  ;;  %v969_v38 = vadd.f32 %v1664_v6, %v901_v29  ;;  %v703_v40 = vmul.f32 %v1620_v27, %v635_v24  ;;  %v643_v29 = vld [vmem:[%s1613_s26 + $0x1f0] sm:$0xff] }
  0xa0   : > { %v1095_v43 = vmax.f32 %v1031_v30, 0.0  ;;  %v1032_v44 = vadd.f32 %v968_v31, %v768_v22  ;;  %v770_v45 = vadd.f32 %v1655_v62, %v702_v32  ;;  %v970_v46 = vadd.f32 %v1664_v6, %v902_v33  ;;  %v642_v22 = vld [vmem:[%s1613_s26 + $0x1e8] sm:$0xff] }
  0xa1   : > { %1158 = vst [vmem:[%s1686_s8 + $0x188] sm:$0xff] %v1094_v36  ;;  %v1033_v48 = vadd.f32 %v969_v38, %v769_v37  ;;  %v771_v49 = vadd.f32 %v1655_v62, %v703_v40  ;;  %v903_v50 = vmul.f32 %v1634_v39, %v835_v34  ;;  %v704_v51 = vmul.f32 %v1620_v27, %v636_v35  ;;  %v843_v38 = vld [vmem:[%s1628_s30 + $0x1f0] sm:$0xff]  ;;  %v644_v40 = vld [vmem:[%s1613_s26 + $0x1f8] sm:$0xff] }
  0xa2   : > { %1159 = vst [vmem:[%s1686_s8 + $0x190] sm:$0xff] %v1095_v43  ;;  %v1096_v53 = vmax.f32 %v1032_v44, 0.0  ;;  %v1034_v54 = vadd.f32 %v970_v46, %v770_v45  ;;  %v904_v55 = vmul.f32 %v1634_v39, %v836_v41  ;;  %v705_v56 = vmul.f32 %v1620_v27, %v637_v42  ;;  %v844_v45 = vld [vmem:[%s1628_s30 + $0x1f8] sm:$0xff] }
  0xa3   : > { %v1097_v59 = vmax.f32 %v1033_v48, 0.0  ;;  %v971_v60 = vadd.f32 %v1664_v6, %v903_v50  ;;  %v772_v61 = vadd.f32 %v1655_v62, %v704_v51  ;;  %v905_v63 = vmul.f32 %v1634_v39, %v837_v47 }
  0xa4   : > { %1160 = vst [vmem:[%s1686_s8 + $0x198] sm:$0xff] %v1096_v53  ;;  %v1098_v2 = vmax.f32 %v1034_v54, 0.0  ;;  %v972_v3 = vadd.f32 %v1664_v6, %v904_v55  ;;  %v773_v4 = vadd.f32 %v1655_v62, %v705_v56  ;;  %v706_v5 = vmul.f32 %v1620_v27, %v638_v52 }
  0xa5   : > { %1161 = vst [vmem:[%s1686_s8 + $0x1a0] sm:$0xff] %v1097_v59  ;;  %v1035_v7 = vadd.f32 %v971_v60, %v771_v49  ;;  %v973_v8 = vadd.f32 %v1664_v6, %v905_v63  ;;  %v906_v9 = vmul.f32 %v1634_v39, %v838_v57  ;;  %v707_v10 = vmul.f32 %v1620_v27, %v639_v58 }
  0xa6   : > { %1162 = vst [vmem:[%s1686_s8 + $0x1a8] sm:$0xff] %v1098_v2  ;;  %v1036_v12 = vadd.f32 %v972_v3, %v772_v61  ;;  %v774_v13 = vadd.f32 %v1655_v62, %v706_v5  ;;  %v907_v14 = vmul.f32 %v1634_v39, %v839_v0  ;;  %v708_v15 = vmul.f32 %v1620_v27, %v640_v1 }
  0xa7   : > { %v1099_v18 = vmax.f32 %v1035_v7, 0.0  ;;  %v1037_v19 = vadd.f32 %v973_v8, %v773_v4  ;;  %v974_v20 = vadd.f32 %v1664_v6, %v906_v9  ;;  %v775_v21 = vadd.f32 %v1655_v62, %v707_v10 }
  0xa8   : > { %v1100_v24 = vmax.f32 %v1036_v12, 0.0  ;;  %v975_v25 = vadd.f32 %v1664_v6, %v907_v14  ;;  %v776_v26 = vadd.f32 %v1655_v62, %v708_v15  ;;  %v908_v28 = vmul.f32 %v1634_v39, %v840_v11 }
  0xa9   : > { %1163 = vst [vmem:[%s1686_s8 + $0x1b0] sm:$0xff] %v1099_v18  ;;  %v1101_v30 = vmax.f32 %v1037_v19, 0.0  ;;  %v1038_v31 = vadd.f32 %v974_v20, %v774_v13  ;;  %v709_v32 = vmul.f32 %v1620_v27, %v641_v16  ;;  %v909_v33 = vmul.f32 %v1634_v39, %v841_v17 }
  0xaa   : > { %1164 = vst [vmem:[%s1686_s8 + $0x1b8] sm:$0xff] %v1100_v24  ;;  %v1039_v34 = vadd.f32 %v975_v25, %v775_v21  ;;  %v976_v35 = vadd.f32 %v1664_v6, %v908_v28  ;;  %v710_v36 = vmul.f32 %v1620_v27, %v642_v22  ;;  %v910_v37 = vmul.f32 %v1634_v39, %v842_v23 }
  0xab   : > { %1165 = vst [vmem:[%s1686_s8 + $0x1c0] sm:$0xff] %v1101_v30  ;;  %v1102_v41 = vmax.f32 %v1038_v31, 0.0  ;;  %v777_v42 = vadd.f32 %v1655_v62, %v709_v32  ;;  %v977_v43 = vadd.f32 %v1664_v6, %v909_v33  ;;  %v711_v44 = vmul.f32 %v1620_v27, %v643_v29 }
  0xac   : > { %v1103_v46 = vmax.f32 %v1039_v34, 0.0  ;;  %v1040_v47 = vadd.f32 %v976_v35, %v776_v26  ;;  %v778_v48 = vadd.f32 %v1655_v62, %v710_v36  ;;  %v978_v49 = vadd.f32 %v1664_v6, %v910_v37 }
  0xad   : > { %1166 = vst [vmem:[%s1686_s8 + $0x1c8] sm:$0xff] %v1102_v41  ;;  %v1041_v50 = vadd.f32 %v977_v43, %v777_v42  ;;  %v779_v51 = vadd.f32 %v1655_v62, %v711_v44  ;;  %v911_v52 = vmul.f32 %v1634_v39, %v843_v38  ;;  %v712_v53 = vmul.f32 %v1620_v27, %v644_v40 }
  0xae   : > { %1167 = vst [vmem:[%s1686_s8 + $0x1d0] sm:$0xff] %v1103_v46  ;;  %v1104_v54 = vmax.f32 %v1040_v47, 0.0  ;;  %v1042_v55 = vadd.f32 %v978_v49, %v778_v48  ;;  %v912_v56 = vmul.f32 %v1634_v39, %v844_v45 }
  0xaf   : > { %v1105_v57 = vmax.f32 %v1041_v50, 0.0  ;;  %v979_v58 = vadd.f32 %v1664_v6, %v911_v52  ;;  %v780_v59 = vadd.f32 %v1655_v62, %v712_v53 }
  0xb0   : > { %1168 = vst [vmem:[%s1686_s8 + $0x1d8] sm:$0xff] %v1104_v54  ;;  %v1106_v60 = vmax.f32 %v1042_v55, 0.0  ;;  %v980_v61 = vadd.f32 %v1664_v6, %v912_v56 }
  0xb1   : > { %1169 = vst [vmem:[%s1686_s8 + $0x1e0] sm:$0xff] %v1105_v57  ;;  %v1043_v63 = vadd.f32 %v979_v58, %v779_v51 }
  0xb2   : > { %1170 = vst [vmem:[%s1686_s8 + $0x1e8] sm:$0xff] %v1106_v60  ;;  %v1044_v27 = vadd.f32 %v980_v61, %v780_v59 }
  0xb3   : > { %v1107_v0 = vmax.f32 %v1043_v63, 0.0 }
  0xb4   : > { %v1108_v1 = vmax.f32 %v1044_v27, 0.0 }
  0xb5   : > { %1171 = vst [vmem:[%s1686_s8 + $0x1f0] sm:$0xff] %v1107_v0 }
  0xb6   : > { %1172 = vst [vmem:[%s1686_s8 + $0x1f8] sm:$0xff] %v1108_v1 }
  0xb7 PF: > { %p12_p9 = scmp.ge.s32.totalorder %s1439_s22, 5   ;;  %s2102_s18 = smov %s1386_s19 }
  0xb8   : > { %s2103_s19 = smov %s1448_s25  ;;  %s2104_s20 = smov %s1439_s22 }
  0xb9   :  { %14 = sbr.rel (!%p12_p9) target bundleno = 2 (0x2), region = 119 }

</bundles_post_ra>
